<compile_context>
chip_gen: v7x
topology: tpu7x:2x2x1
jax: 0.10.0
libtpu: 0.0.40
codegen_flags: <defaults>
</compile_context>

<pallas_src>
import jax
import jax.numpy as jnp
import numpy as np
from jax import lax
from jax.experimental import pallas as pl
from jax.experimental.pallas import tpu as pltpu

EPS = 1e-5
_LPAD = 8                       # left halo pad in the conv2 scratch (aligned interior store)
_VMEM_LIMIT = 32 * 1024 * 1024  # explicit scoped-VMEM limit (safe on v5e/v6e/v7x)


def _round_up(v, m):
    return (v + m - 1) // m * m


# ---------------- stage 1: relu(bn1(x)) @ W1  (1x1 conv) ----------------
def _stage1_kernel(x_ref, s_ref, b_ref, w_ref, o_ref):
    _, th, w, cin = x_ref.shape
    p = w_ref.shape[1]
    m = th * w
    x = x_ref[...].astype(jnp.float32).reshape(m, cin)
    h = jnp.maximum(x * s_ref[...] + b_ref[...], 0.0)            # folded BN + ReLU (f32)
    o = jnp.dot(h.astype(jnp.bfloat16), w_ref[...],              # bf16 MXU, f32 accumulate
                preferred_element_type=jnp.float32)
    o_ref[...] = o.reshape(1, th, w, p).astype(o_ref.dtype)


# ---------------- stage 2: conv3x3(relu(bn2(o1))), padding=1 ----------------
def _stage2_kernel(o1_ref, s_ref, b_ref, w2_ref, o2_ref, xp_ref, acc_ref):
    _, H, W, P = o1_ref.shape
    m = H * W
    wp = xp_ref.shape[2]

    h = jnp.maximum(
        o1_ref[...].astype(jnp.float32).reshape(m, P) * s_ref[...] + b_ref[...], 0.0)

    # Zero only the halo border (not the whole scratch); interior store is at a
    # sublane-aligned column offset (_LPAD) in a bf16 scratch.
    zrow = jnp.zeros((1, 1, wp, P), xp_ref.dtype)
    xp_ref[:, 0:1, :, :] = zrow
    xp_ref[:, H + 1:H + 2, :, :] = zrow
    xp_ref[:, 1:H + 1, 0:_LPAD, :] = jnp.zeros((1, H, _LPAD, P), xp_ref.dtype)
    xp_ref[:, 1:H + 1, _LPAD + W:wp, :] = jnp.zeros((1, H, wp - _LPAD - W, P), xp_ref.dtype)
    xp_ref[:, 1:H + 1, _LPAD:_LPAD + W, :] = h.reshape(1, H, W, P).astype(xp_ref.dtype)

    # 3x3 conv as 9 shifted (M,P)x(P,P) bf16 matmuls accumulated into a VMEM
    # f32 accumulator.
    # TODO(synk): fuse the 9 taps into a single (M,9P)x(9P,P) matmul once P is
    # large enough for the concat relayout to be worthwhile.
    w2 = w2_ref[...]                                             # (3,3,P,P) bf16, loaded once
    acc_ref[...] = jnp.zeros_like(acc_ref)
    for dy in range(3):
        for dx in range(3):
            c0 = _LPAD - 1 + dx
            sh = xp_ref[:, dy:dy + H, c0:c0 + W, :].reshape(m, P)
            acc_ref[...] += jnp.dot(sh, w2[dy, dx],
                                    preferred_element_type=jnp.float32)
    o2_ref[...] = acc_ref[...].reshape(1, H, W, P).astype(o2_ref.dtype)


# ---------------- stage 3: relu(bn3(o2)) @ W3 + residual ----------------
def _stage3_kernel(o2_ref, x_ref, s_ref, b_ref, w_ref, out_ref):
    _, th, w, p = o2_ref.shape
    cout = w_ref.shape[1]
    m = th * w
    h = jnp.maximum(
        o2_ref[...].astype(jnp.float32).reshape(m, p) * s_ref[...] + b_ref[...], 0.0)
    o = jnp.dot(h.astype(jnp.bfloat16), w_ref[...],
                preferred_element_type=jnp.float32)
    res = x_ref[...].astype(jnp.float32)
    out_ref[...] = (o.reshape(1, th, w, cout) + res).astype(out_ref.dtype)


def _fold_bn(v, gamma, beta):
    """Training-mode BatchNorm folded to per-channel scale/bias.

    Global (N,H,W) stats, biased *centered* variance (no E[x^2]-E[x]^2
    cancellation), eps=1e-5 -> matches nn.BatchNorm2d forward in training mode.
    """
    v = v.astype(jnp.float32)
    mean = jnp.mean(v, axis=(0, 1, 2))
    var = jnp.mean(jnp.square(v - mean), axis=(0, 1, 2))
    inv = gamma.reshape(-1).astype(jnp.float32) * lax.rsqrt(var + EPS)
    bias = beta.reshape(-1).astype(jnp.float32) - mean * inv
    return inv.reshape(1, -1), bias.reshape(1, -1)


def preact_bottleneck_block(x_nhwc, params):
    """x_nhwc: (N, H, W, inplanes) with inplanes == 4 * planes (stride=1, downsample=None)."""
    N, H, W, Cin = x_nhwc.shape
    P = params["w1"].shape[1]
    assert Cin == 4 * P, "identity residual requires inplanes == 4*planes"

    th = 8 if H % 8 == 0 else H                 # H row-band per grid step (1x1 stages)
    wp = _round_up(_LPAD + W + 1, 8)            # padded-scratch width (3x3 stage)

    w1 = params["w1"].astype(jnp.bfloat16)
    w2 = params["w2"].astype(jnp.bfloat16)
    w3 = params["w3"].astype(jnp.bfloat16)

    cp2 = pltpu.CompilerParams(dimension_semantics=("parallel", "parallel"),
                               vmem_limit_bytes=_VMEM_LIMIT)
    cp1 = pltpu.CompilerParams(dimension_semantics=("parallel",),
                               vmem_limit_bytes=_VMEM_LIMIT)
    const2 = lambda n, h: (0, 0)                # weights / BN vectors stay resident

    # ---- stage 1: relu(bn1(x)) @ W1 ----
    s1, b1 = _fold_bn(x_nhwc, params["g1"], params["b1"])
    o1 = pl.pallas_call(
        _stage1_kernel,
        out_shape=jax.ShapeDtypeStruct((N, H, W, P), jnp.float32),
        grid=(N, H // th),
        in_specs=[
            pl.BlockSpec((1, th, W, Cin), lambda n, h: (n, h, 0, 0)),
            pl.BlockSpec((1, Cin), const2),
            pl.BlockSpec((1, Cin), const2),
            pl.BlockSpec((Cin, P), const2),
        ],
        out_specs=pl.BlockSpec((1, th, W, P), lambda n, h: (n, h, 0, 0)),
        compiler_params=cp2,
    )(x_nhwc, s1, b1, w1)

    # ---- stage 2: conv3x3(relu(bn2(o1))) ----
    s2, b2 = _fold_bn(o1, params["g2"], params["b2"])
    o2 = pl.pallas_call(
        _stage2_kernel,
        out_shape=jax.ShapeDtypeStruct((N, H, W, P), jnp.float32),
        grid=(N,),
        in_specs=[
            pl.BlockSpec((1, H, W, P), lambda n: (n, 0, 0, 0)),
            pl.BlockSpec((1, P), lambda n: (0, 0)),
            pl.BlockSpec((1, P), lambda n: (0, 0)),
            pl.BlockSpec((3, 3, P, P), lambda n: (0, 0, 0, 0)),
        ],
        out_specs=pl.BlockSpec((1, H, W, P), lambda n: (n, 0, 0, 0)),
        scratch_shapes=[
            pltpu.VMEM((1, H + 2, wp, P), jnp.bfloat16),   # zero-padded activations
            pltpu.VMEM((H * W, P), jnp.float32),           # conv f32 accumulator
        ],
        compiler_params=cp1,
    )(o1, s2, b2, w2)

    # ---- stage 3: relu(bn3(o2)) @ W3 + residual ----
    s3, b3 = _fold_bn(o2, params["g3"], params["b3"])
    out = pl.pallas_call(
        _stage3_kernel,
        out_shape=jax.ShapeDtypeStruct((N, H, W, Cin), x_nhwc.dtype),
        grid=(N, H // th),
        in_specs=[
            pl.BlockSpec((1, th, W, P), lambda n, h: (n, h, 0, 0)),
            pl.BlockSpec((1, th, W, Cin), lambda n, h: (n, h, 0, 0)),
            pl.BlockSpec((1, P), const2),
            pl.BlockSpec((1, P), const2),
            pl.BlockSpec((P, Cin), const2),
        ],
        out_specs=pl.BlockSpec((1, th, W, Cin), lambda n, h: (n, h, 0, 0)),
        compiler_params=cp2,
    )(o2, x_nhwc, s3, b3, w3)
    return out


def reference(x_nhwc, p):
    """Pure-JAX f32 reference (same NHWC layout, same training-mode BN)."""
    def bn_relu(v, g, b):
        mean = jnp.mean(v, axis=(0, 1, 2), keepdims=True)
        var = jnp.mean((v - mean) ** 2, axis=(0, 1, 2), keepdims=True)
        return jnp.maximum((v - mean) * lax.rsqrt(var + EPS) * g + b, 0.0)

    h1 = bn_relu(x_nhwc, p["g1"], p["b1"])
    o1 = jnp.einsum("nhwc,cd->nhwd", h1, p["w1"])
    h2 = bn_relu(o1, p["g2"], p["b2"])
    o2 = lax.conv_general_dilated(h2, p["w2"], window_strides=(1, 1),
                                  padding="SAME",
                                  dimension_numbers=("NHWC", "HWIO", "NHWC"))
    h3 = bn_relu(o2, p["g3"], p["b3"])
    o3 = jnp.einsum("nhwc,cd->nhwd", h3, p["w3"])
    return o3 + x_nhwc


if __name__ == "__main__":
    key = jax.random.PRNGKey(0)
    N, H, W = 2, 16, 16
    planes = 32
    inplanes = planes * 4   # 128 — lane-dense channels; identity residual needs inplanes == 4*planes

    ks = jax.random.split(key, 10)
    params = {
        # conv1: PyTorch weight (planes, inplanes, 1, 1) stored here as (inplanes, planes)
        "w1": 0.1 * jax.random.normal(ks[0], (inplanes, planes), jnp.float32),
        # conv2: PyTorch weight (planes, planes, 3, 3) stored here as HWIO (3, 3, planes, planes)
        "w2": 0.1 * jax.random.normal(ks[1], (3, 3, planes, planes), jnp.float32),
        # conv3: PyTorch weight (4*planes, planes, 1, 1) stored here as (planes, 4*planes)
        "w3": 0.1 * jax.random.normal(ks[2], (planes, planes * 4), jnp.float32),
        # BatchNorm affine params (gamma, beta), shaped (1, C) for lane broadcast
        "g1": 1.0 + 0.1 * jax.random.normal(ks[3], (1, inplanes), jnp.float32),
        "b1": 0.1 * jax.random.normal(ks[4], (1, inplanes), jnp.float32),
        "g2": 1.0 + 0.1 * jax.random.normal(ks[5], (1, planes), jnp.float32),
        "b2": 0.1 * jax.random.normal(ks[6], (1, planes), jnp.float32),
        "g3": 1.0 + 0.1 * jax.random.normal(ks[7], (1, planes), jnp.float32),
        "b3": 0.1 * jax.random.normal(ks[8], (1, planes), jnp.float32),
    }
    x = jax.random.normal(ks[9], (N, H, W, inplanes), jnp.float32)

    block = jax.jit(preact_bottleneck_block)
    out = jax.block_until_ready(block(x, params))

    ref = reference(x, params)
    # Kernels use bf16 MXU operands with f32 accumulation; reference is pure f32,
    # so allow a few-percent tolerance.
    np.testing.assert_allclose(np.asarray(out), np.asarray(ref), rtol=3e-2, atol=3e-2)
    print("KERNEL_OK")
</pallas_src>

<mosaic_0001>
module attributes {stable_mosaic.version = 11 : i64} {
  func.func @_stage1_kernel(%arg0: i32, %arg1: i32, %arg2: memref<1x8x16x128xf32, #tpu.memory_space<vmem>>, %arg3: memref<1x128xf32, #tpu.memory_space<vmem>>, %arg4: memref<1x128xf32, #tpu.memory_space<vmem>>, %arg5: memref<128x32xbf16, #tpu.memory_space<vmem>>, %arg6: memref<1x8x16x32xf32, #tpu.memory_space<vmem>>) attributes {dimension_semantics = [#tpu.dimension_semantics<parallel>, #tpu.dimension_semantics<parallel>], iteration_bounds = array<i64: 2, 2>, scalar_prefetch = 0 : i64, scratch_operands = 0 : i64, tpu.core_type = #tpu.core_type<tc>, window_params = [{transform_indices = @transform_0, window_bounds = array<i64: 1, 8, 16, 128>}, {pipeline_mode = #tpu.pipeline_mode<synchronous>, transform_indices = @transform_1, window_bounds = array<i64: 1, 128>}, {pipeline_mode = #tpu.pipeline_mode<synchronous>, transform_indices = @transform_2, window_bounds = array<i64: 1, 128>}, {pipeline_mode = #tpu.pipeline_mode<synchronous>, transform_indices = @transform_3, window_bounds = array<i64: 128, 32>}, {transform_indices = @transform_4, window_bounds = array<i64: 1, 8, 16, 32>}]} {
    %c0 = arith.constant 0 : index
    %c0_0 = arith.constant 0 : index
    %c0_1 = arith.constant 0 : index
    %c0_2 = arith.constant 0 : index
    %0 = vector.load %arg2[%c0, %c0_0, %c0_1, %c0_2] : memref<1x8x16x128xf32, #tpu.memory_space<vmem>>, vector<1x8x16x128xf32>
    %1 = vector.shape_cast %0 : vector<1x8x16x128xf32> to vector<128x128xf32>
    %c0_3 = arith.constant 0 : index
    %c0_4 = arith.constant 0 : index
    %2 = vector.load %arg3[%c0_3, %c0_4] : memref<1x128xf32, #tpu.memory_space<vmem>>, vector<1x128xf32>
    %3 = vector.broadcast %2 : vector<1x128xf32> to vector<128x128xf32>
    %4 = arith.mulf %1, %3 : vector<128x128xf32>
    %c0_5 = arith.constant 0 : index
    %c0_6 = arith.constant 0 : index
    %5 = vector.load %arg4[%c0_5, %c0_6] : memref<1x128xf32, #tpu.memory_space<vmem>>, vector<1x128xf32>
    %6 = vector.broadcast %5 : vector<1x128xf32> to vector<128x128xf32>
    %7 = arith.addf %4, %6 : vector<128x128xf32>
    %cst = arith.constant 0.000000e+00 : f32
    %8 = vector.broadcast %cst : f32 to vector<128x128xf32>
    %9 = arith.maximumf %7, %8 : vector<128x128xf32>
    %10 = arith.truncf %9 : vector<128x128xf32> to vector<128x128xbf16>
    %c0_7 = arith.constant 0 : index
    %c0_8 = arith.constant 0 : index
    %11 = vector.load %arg5[%c0_7, %c0_8] : memref<128x32xbf16, #tpu.memory_space<vmem>>, vector<128x32xbf16>
    %cst_9 = arith.constant dense<0.000000e+00> : vector<128x32xf32>
    %12 = tpu.matmul %10, %11, %cst_9 {dimension_numbers = #tpu.dot_dimension_numbers<[1], [0], [0], [1], [0, 0, 1, 1], [], []>} : vector<128x128xbf16>, vector<128x32xbf16>, vector<128x32xf32> -> vector<128x32xf32>
    %13 = vector.shape_cast %12 : vector<128x32xf32> to vector<1x8x16x32xf32>
    %c0_10 = arith.constant 0 : index
    %c0_11 = arith.constant 0 : index
    %c0_12 = arith.constant 0 : index
    %c0_13 = arith.constant 0 : index
    %14 = vector.load %arg6[%c0_10, %c0_11, %c0_12, %c0_13] : memref<1x8x16x32xf32, #tpu.memory_space<vmem>>, vector<1x8x16x32xf32>
    tpu.vector_store %arg6[%c0_10, %c0_11, %c0_12, %c0_13], %13 {strides = array<i32>} : memref<1x8x16x32xf32, #tpu.memory_space<vmem>>, vector<1x8x16x32xf32>,
    return
  }
  func.func @transform_0(%arg0: i32, %arg1: i32) -> (i32, i32, i32, i32) {
    %c0_i32 = arith.constant 0 : i32
    %c0_i32_0 = arith.constant 0 : i32
    %c0_i32_1 = arith.constant 0 : i32
    return %arg0, %arg1, %c0_i32, %c0_i32_0 : i32, i32, i32, i32
  }
  func.func @transform_1(%arg0: i32, %arg1: i32) -> (i32, i32) {
    %c0_i32 = arith.constant 0 : i32
    %c0_i32_0 = arith.constant 0 : i32
    %c0_i32_1 = arith.constant 0 : i32
    return %c0_i32, %c0_i32_0 : i32, i32
  }
  func.func @transform_2(%arg0: i32, %arg1: i32) -> (i32, i32) {
    %c0_i32 = arith.constant 0 : i32
    %c0_i32_0 = arith.constant 0 : i32
    %c0_i32_1 = arith.constant 0 : i32
    return %c0_i32, %c0_i32_0 : i32, i32
  }
  func.func @transform_3(%arg0: i32, %arg1: i32) -> (i32, i32) {
    %c0_i32 = arith.constant 0 : i32
    %c0_i32_0 = arith.constant 0 : i32
    %c0_i32_1 = arith.constant 0 : i32
    return %c0_i32, %c0_i32_0 : i32, i32
  }
  func.func @transform_4(%arg0: i32, %arg1: i32) -> (i32, i32, i32, i32) {
    %c0_i32 = arith.constant 0 : i32
    %c0_i32_0 = arith.constant 0 : i32
    %c0_i32_1 = arith.constant 0 : i32
    return %arg0, %arg1, %c0_i32, %c0_i32_0 : i32, i32, i32, i32
  }
}

module attributes {stable_mosaic.version = 11 : i64} {
  func.func @_stage3_kernel(%arg0: i32, %arg1: i32, %arg2: memref<1x8x16x32xf32, #tpu.memory_space<vmem>>, %arg3: memref<1x8x16x128xf32, #tpu.memory_space<vmem>>, %arg4: memref<1x32xf32, #tpu.memory_space<vmem>>, %arg5: memref<1x32xf32, #tpu.memory_space<vmem>>, %arg6: memref<32x128xbf16, #tpu.memory_space<vmem>>, %arg7: memref<1x8x16x128xf32, #tpu.memory_space<vmem>>) attributes {dimension_semantics = [#tpu.dimension_semantics<parallel>, #tpu.dimension_semantics<parallel>], iteration_bounds = array<i64: 2, 2>, scalar_prefetch = 0 : i64, scratch_operands = 0 : i64, tpu.core_type = #tpu.core_type<tc>, window_params = [{transform_indices = @transform_0, window_bounds = array<i64: 1, 8, 16, 32>}, {transform_indices = @transform_1, window_bounds = array<i64: 1, 8, 16, 128>}, {pipeline_mode = #tpu.pipeline_mode<synchronous>, transform_indices = @transform_2, window_bounds = array<i64: 1, 32>}, {pipeline_mode = #tpu.pipeline_mode<synchronous>, transform_indices = @transform_3, window_bounds = array<i64: 1, 32>}, {pipeline_mode = #tpu.pipeline_mode<synchronous>, transform_indices = @transform_4, window_bounds = array<i64: 32, 128>}, {transform_indices = @transform_5, window_bounds = array<i64: 1, 8, 16, 128>}]} {
    %c0 = arith.constant 0 : index
    %c0_0 = arith.constant 0 : index
    %c0_1 = arith.constant 0 : index
    %c0_2 = arith.constant 0 : index
    %0 = vector.load %arg2[%c0, %c0_0, %c0_1, %c0_2] : memref<1x8x16x32xf32, #tpu.memory_space<vmem>>, vector<1x8x16x32xf32>
    %1 = vector.shape_cast %0 : vector<1x8x16x32xf32> to vector<128x32xf32>
    %c0_3 = arith.constant 0 : index
    %c0_4 = arith.constant 0 : index
    %2 = vector.load %arg4[%c0_3, %c0_4] : memref<1x32xf32, #tpu.memory_space<vmem>>, vector<1x32xf32>
    %3 = vector.broadcast %2 : vector<1x32xf32> to vector<128x32xf32>
    %4 = arith.mulf %1, %3 : vector<128x32xf32>
    %c0_5 = arith.constant 0 : index
    %c0_6 = arith.constant 0 : index
    %5 = vector.load %arg5[%c0_5, %c0_6] : memref<1x32xf32, #tpu.memory_space<vmem>>, vector<1x32xf32>
    %6 = vector.broadcast %5 : vector<1x32xf32> to vector<128x32xf32>
    %7 = arith.addf %4, %6 : vector<128x32xf32>
    %cst = arith.constant 0.000000e+00 : f32
    %8 = vector.broadcast %cst : f32 to vector<128x32xf32>
    %9 = arith.maximumf %7, %8 : vector<128x32xf32>
    %10 = arith.truncf %9 : vector<128x32xf32> to vector<128x32xbf16>
    %c0_7 = arith.constant 0 : index
    %c0_8 = arith.constant 0 : index
    %11 = vector.load %arg6[%c0_7, %c0_8] : memref<32x128xbf16, #tpu.memory_space<vmem>>, vector<32x128xbf16>
    %cst_9 = arith.constant dense<0.000000e+00> : vector<128x128xf32>
    %12 = tpu.matmul %10, %11, %cst_9 {dimension_numbers = #tpu.dot_dimension_numbers<[1], [0], [0], [1], [0, 0, 1, 1], [], []>} : vector<128x32xbf16>, vector<32x128xbf16>, vector<128x128xf32> -> vector<128x128xf32>
    %c0_10 = arith.constant 0 : index
    %c0_11 = arith.constant 0 : index
    %c0_12 = arith.constant 0 : index
    %c0_13 = arith.constant 0 : index
    %13 = vector.load %arg3[%c0_10, %c0_11, %c0_12, %c0_13] : memref<1x8x16x128xf32, #tpu.memory_space<vmem>>, vector<1x8x16x128xf32>
    %14 = vector.shape_cast %12 : vector<128x128xf32> to vector<1x8x16x128xf32>
    %15 = arith.addf %14, %13 : vector<1x8x16x128xf32>
    %c0_14 = arith.constant 0 : index
    %c0_15 = arith.constant 0 : index
    %c0_16 = arith.constant 0 : index
    %c0_17 = arith.constant 0 : index
    %16 = vector.load %arg7[%c0_14, %c0_15, %c0_16, %c0_17] : memref<1x8x16x128xf32, #tpu.memory_space<vmem>>, vector<1x8x16x128xf32>
    tpu.vector_store %arg7[%c0_14, %c0_15, %c0_16, %c0_17], %15 {strides = array<i32>} : memref<1x8x16x128xf32, #tpu.memory_space<vmem>>, vector<1x8x16x128xf32>,
    return
  }
  func.func @transform_0(%arg0: i32, %arg1: i32) -> (i32, i32, i32, i32) {
    %c0_i32 = arith.constant 0 : i32
    %c0_i32_0 = arith.constant 0 : i32
    %c0_i32_1 = arith.constant 0 : i32
    return %arg0, %arg1, %c0_i32, %c0_i32_0 : i32, i32, i32, i32
  }
  func.func @transform_1(%arg0: i32, %arg1: i32) -> (i32, i32, i32, i32) {
    %c0_i32 = arith.constant 0 : i32
    %c0_i32_0 = arith.constant 0 : i32
    %c0_i32_1 = arith.constant 0 : i32
    return %arg0, %arg1, %c0_i32, %c0_i32_0 : i32, i32, i32, i32
  }
  func.func @transform_2(%arg0: i32, %arg1: i32) -> (i32, i32) {
    %c0_i32 = arith.constant 0 : i32
    %c0_i32_0 = arith.constant 0 : i32
    %c0_i32_1 = arith.constant 0 : i32
    return %c0_i32, %c0_i32_0 : i32, i32
  }
  func.func @transform_3(%arg0: i32, %arg1: i32) -> (i32, i32) {
    %c0_i32 = arith.constant 0 : i32
    %c0_i32_0 = arith.constant 0 : i32
    %c0_i32_1 = arith.constant 0 : i32
    return %c0_i32, %c0_i32_0 : i32, i32
  }
  func.func @transform_4(%arg0: i32, %arg1: i32) -> (i32, i32) {
    %c0_i32 = arith.constant 0 : i32
    %c0_i32_0 = arith.constant 0 : i32
    %c0_i32_1 = arith.constant 0 : i32
    return %c0_i32, %c0_i32_0 : i32, i32
  }
  func.func @transform_5(%arg0: i32, %arg1: i32) -> (i32, i32, i32, i32) {
    %c0_i32 = arith.constant 0 : i32
    %c0_i32_0 = arith.constant 0 : i32
    %c0_i32_1 = arith.constant 0 : i32
    return %arg0, %arg1, %c0_i32, %c0_i32_0 : i32, i32, i32, i32
  }
}

module attributes {stable_mosaic.version = 11 : i64} {
  func.func @_stage2_kernel(%arg0: i32, %arg1: memref<1x16x16x32xf32, #tpu.memory_space<vmem>>, %arg2: memref<1x32xf32, #tpu.memory_space<vmem>>, %arg3: memref<1x32xf32, #tpu.memory_space<vmem>>, %arg4: memref<3x3x32x32xbf16, #tpu.memory_space<vmem>>, %arg5: memref<1x16x16x32xf32, #tpu.memory_space<vmem>>, %arg6: memref<1x18x32x32xbf16, #tpu.memory_space<vmem>>, %arg7: memref<256x32xf32, #tpu.memory_space<vmem>>) attributes {dimension_semantics = [#tpu.dimension_semantics<parallel>], iteration_bounds = array<i64: 2>, scalar_prefetch = 0 : i64, scratch_operands = 2 : i64, tpu.core_type = #tpu.core_type<tc>, window_params = [{transform_indices = @transform_0, window_bounds = array<i64: 1, 16, 16, 32>}, {pipeline_mode = #tpu.pipeline_mode<synchronous>, transform_indices = @transform_1, window_bounds = array<i64: 1, 32>}, {pipeline_mode = #tpu.pipeline_mode<synchronous>, transform_indices = @transform_2, window_bounds = array<i64: 1, 32>}, {pipeline_mode = #tpu.pipeline_mode<synchronous>, transform_indices = @transform_3, window_bounds = array<i64: 3, 3, 32, 32>}, {transform_indices = @transform_4, window_bounds = array<i64: 1, 16, 16, 32>}]} {
    %c0 = arith.constant 0 : index
    %c0_0 = arith.constant 0 : index
    %c0_1 = arith.constant 0 : index
    %c0_2 = arith.constant 0 : index
    %0 = vector.load %arg1[%c0, %c0_0, %c0_1, %c0_2] : memref<1x16x16x32xf32, #tpu.memory_space<vmem>>, vector<1x16x16x32xf32>
    %1 = vector.shape_cast %0 : vector<1x16x16x32xf32> to vector<256x32xf32>
    %c0_3 = arith.constant 0 : index
    %c0_4 = arith.constant 0 : index
    %2 = vector.load %arg2[%c0_3, %c0_4] : memref<1x32xf32, #tpu.memory_space<vmem>>, vector<1x32xf32>
    %3 = vector.broadcast %2 : vector<1x32xf32> to vector<256x32xf32>
    %4 = arith.mulf %1, %3 : vector<256x32xf32>
    %c0_5 = arith.constant 0 : index
    %c0_6 = arith.constant 0 : index
    %5 = vector.load %arg3[%c0_5, %c0_6] : memref<1x32xf32, #tpu.memory_space<vmem>>, vector<1x32xf32>
    %6 = vector.broadcast %5 : vector<1x32xf32> to vector<256x32xf32>
    %7 = arith.addf %4, %6 : vector<256x32xf32>
    %cst = arith.constant 0.000000e+00 : f32
    %8 = vector.broadcast %cst : f32 to vector<256x32xf32>
    %9 = arith.maximumf %7, %8 : vector<256x32xf32>
    %cst_7 = arith.constant 0.000000e+00 : bf16
    %10 = vector.broadcast %cst_7 : bf16 to vector<1x1x32x32xbf16>
    %c0_8 = arith.constant 0 : index
    %c0_9 = arith.constant 0 : index
    %c0_10 = arith.constant 0 : index
    %c0_11 = arith.constant 0 : index
    %11 = vector.load %arg6[%c0_8, %c0_9, %c0_10, %c0_11] : memref<1x18x32x32xbf16, #tpu.memory_space<vmem>>, vector<1x1x32x32xbf16>
    tpu.vector_store %arg6[%c0_8, %c0_9, %c0_10, %c0_11], %10 {strides = array<i32>} : memref<1x18x32x32xbf16, #tpu.memory_space<vmem>>, vector<1x1x32x32xbf16>,
    %c0_12 = arith.constant 0 : index
    %c17 = arith.constant 17 : index
    %c0_13 = arith.constant 0 : index
    %c0_14 = arith.constant 0 : index
    %12 = vector.load %arg6[%c0_12, %c17, %c0_13, %c0_14] : memref<1x18x32x32xbf16, #tpu.memory_space<vmem>>, vector<1x1x32x32xbf16>
    tpu.vector_store %arg6[%c0_12, %c17, %c0_13, %c0_14], %10 {strides = array<i32>} : memref<1x18x32x32xbf16, #tpu.memory_space<vmem>>, vector<1x1x32x32xbf16>,
    %cst_15 = arith.constant 0.000000e+00 : bf16
    %13 = vector.broadcast %cst_15 : bf16 to vector<1x16x8x32xbf16>
    %c0_16 = arith.constant 0 : index
    %c1 = arith.constant 1 : index
    %c0_17 = arith.constant 0 : index
    %c0_18 = arith.constant 0 : index
    %14 = vector.load %arg6[%c0_16, %c1, %c0_17, %c0_18] : memref<1x18x32x32xbf16, #tpu.memory_space<vmem>>, vector<1x16x8x32xbf16>
    tpu.vector_store %arg6[%c0_16, %c1, %c0_17, %c0_18], %13 {strides = array<i32>} : memref<1x18x32x32xbf16, #tpu.memory_space<vmem>>, vector<1x16x8x32xbf16>,
    %cst_19 = arith.constant 0.000000e+00 : bf16
    %15 = vector.broadcast %cst_19 : bf16 to vector<1x16x8x32xbf16>
    %c0_20 = arith.constant 0 : index
    %c1_21 = arith.constant 1 : index
    %c24 = arith.constant 24 : index
    %c0_22 = arith.constant 0 : index
    %16 = vector.load %arg6[%c0_20, %c1_21, %c24, %c0_22] : memref<1x18x32x32xbf16, #tpu.memory_space<vmem>>, vector<1x16x8x32xbf16>
    tpu.vector_store %arg6[%c0_20, %c1_21, %c24, %c0_22], %15 {strides = array<i32>} : memref<1x18x32x32xbf16, #tpu.memory_space<vmem>>, vector<1x16x8x32xbf16>,
    %17 = vector.shape_cast %9 : vector<256x32xf32> to vector<1x16x16x32xf32>
    %18 = arith.truncf %17 : vector<1x16x16x32xf32> to vector<1x16x16x32xbf16>
    %c0_23 = arith.constant 0 : index
    %c1_24 = arith.constant 1 : index
    %c8 = arith.constant 8 : index
    %c0_25 = arith.constant 0 : index
    %19 = vector.load %arg6[%c0_23, %c1_24, %c8, %c0_25] : memref<1x18x32x32xbf16, #tpu.memory_space<vmem>>, vector<1x16x16x32xbf16>
    tpu.vector_store %arg6[%c0_23, %c1_24, %c8, %c0_25], %18 {strides = array<i32>} : memref<1x18x32x32xbf16, #tpu.memory_space<vmem>>, vector<1x16x16x32xbf16>,
    %c0_26 = arith.constant 0 : index
    %c0_27 = arith.constant 0 : index
    %c0_28 = arith.constant 0 : index
    %c0_29 = arith.constant 0 : index
    %20 = vector.load %arg4[%c0_26, %c0_27, %c0_28, %c0_29] : memref<3x3x32x32xbf16, #tpu.memory_space<vmem>>, vector<3x3x32x32xbf16>
    %cst_30 = arith.constant 0.000000e+00 : f32
    %21 = vector.broadcast %cst_30 : f32 to vector<256x32xf32>
    %c0_31 = arith.constant 0 : index
    %c0_32 = arith.constant 0 : index
    %22 = vector.load %arg7[%c0_31, %c0_32] : memref<256x32xf32, #tpu.memory_space<vmem>>, vector<256x32xf32>
    tpu.vector_store %arg7[%c0_31, %c0_32], %21 {strides = array<i32>} : memref<256x32xf32, #tpu.memory_space<vmem>>, vector<256x32xf32>,
    %c0_33 = arith.constant 0 : index
    %c0_34 = arith.constant 0 : index
    %c7 = arith.constant 7 : index
    %c0_35 = arith.constant 0 : index
    %23 = vector.load %arg6[%c0_33, %c0_34, %c7, %c0_35] : memref<1x18x32x32xbf16, #tpu.memory_space<vmem>>, vector<1x16x16x32xbf16>
    %24 = vector.shape_cast %23 : vector<1x16x16x32xbf16> to vector<256x32xbf16>
    %c0_36 = arith.constant 0 : index
    %c0_37 = arith.constant 0 : index
    %25 = vector.load %arg7[%c0_36, %c0_37] : memref<256x32xf32, #tpu.memory_space<vmem>>, vector<256x32xf32>
    %26 = vector.extract_strided_slice %20 {offsets = [0, 0, 0, 0], sizes = [1, 1, 32, 32], strides = [1, 1, 1, 1]} : vector<3x3x32x32xbf16> to vector<1x1x32x32xbf16>
    %27 = vector.shape_cast %26 : vector<1x1x32x32xbf16> to vector<32x32xbf16>
    %cst_38 = arith.constant dense<0.000000e+00> : vector<256x32xf32>
    %28 = tpu.matmul %24, %27, %cst_38 {dimension_numbers = #tpu.dot_dimension_numbers<[1], [0], [0], [1], [0, 0, 1, 1], [], []>} : vector<256x32xbf16>, vector<32x32xbf16>, vector<256x32xf32> -> vector<256x32xf32>
    %29 = arith.addf %25, %28 : vector<256x32xf32>
    %c0_39 = arith.constant 0 : index
    %c0_40 = arith.constant 0 : index
    %30 = vector.load %arg7[%c0_39, %c0_40] : memref<256x32xf32, #tpu.memory_space<vmem>>, vector<256x32xf32>
    tpu.vector_store %arg7[%c0_39, %c0_40], %29 {strides = array<i32>} : memref<256x32xf32, #tpu.memory_space<vmem>>, vector<256x32xf32>,
    %c0_41 = arith.constant 0 : index
    %c0_42 = arith.constant 0 : index
    %c8_43 = arith.constant 8 : index
    %c0_44 = arith.constant 0 : index
    %31 = vector.load %arg6[%c0_41, %c0_42, %c8_43, %c0_44] : memref<1x18x32x32xbf16, #tpu.memory_space<vmem>>, vector<1x16x16x32xbf16>
    %32 = vector.shape_cast %31 : vector<1x16x16x32xbf16> to vector<256x32xbf16>
    %c0_45 = arith.constant 0 : index
    %c0_46 = arith.constant 0 : index
    %33 = vector.load %arg7[%c0_45, %c0_46] : memref<256x32xf32, #tpu.memory_space<vmem>>, vector<256x32xf32>
    %34 = vector.extract_strided_slice %20 {offsets = [0, 1, 0, 0], sizes = [1, 1, 32, 32], strides = [1, 1, 1, 1]} : vector<3x3x32x32xbf16> to vector<1x1x32x32xbf16>
    %35 = vector.shape_cast %34 : vector<1x1x32x32xbf16> to vector<32x32xbf16>
    %cst_47 = arith.constant dense<0.000000e+00> : vector<256x32xf32>
    %36 = tpu.matmul %32, %35, %cst_47 {dimension_numbers = #tpu.dot_dimension_numbers<[1], [0], [0], [1], [0, 0, 1, 1], [], []>} : vector<256x32xbf16>, vector<32x32xbf16>, vector<256x32xf32> -> vector<256x32xf32>
    %37 = arith.addf %33, %36 : vector<256x32xf32>
    %c0_48 = arith.constant 0 : index
    %c0_49 = arith.constant 0 : index
    %38 = vector.load %arg7[%c0_48, %c0_49] : memref<256x32xf32, #tpu.memory_space<vmem>>, vector<256x32xf32>
    tpu.vector_store %arg7[%c0_48, %c0_49], %37 {strides = array<i32>} : memref<256x32xf32, #tpu.memory_space<vmem>>, vector<256x32xf32>,
    %c0_50 = arith.constant 0 : index
    %c0_51 = arith.constant 0 : index
    %c9 = arith.constant 9 : index
    %c0_52 = arith.constant 0 : index
    %39 = vector.load %arg6[%c0_50, %c0_51, %c9, %c0_52] : memref<1x18x32x32xbf16, #tpu.memory_space<vmem>>, vector<1x16x16x32xbf16>
    %40 = vector.shape_cast %39 : vector<1x16x16x32xbf16> to vector<256x32xbf16>
    %c0_53 = arith.constant 0 : index
    %c0_54 = arith.constant 0 : index
    %41 = vector.load %arg7[%c0_53, %c0_54] : memref<256x32xf32, #tpu.memory_space<vmem>>, vector<256x32xf32>
    %42 = vector.extract_strided_slice %20 {offsets = [0, 2, 0, 0], sizes = [1, 1, 32, 32], strides = [1, 1, 1, 1]} : vector<3x3x32x32xbf16> to vector<1x1x32x32xbf16>
    %43 = vector.shape_cast %42 : vector<1x1x32x32xbf16> to vector<32x32xbf16>
    %cst_55 = arith.constant dense<0.000000e+00> : vector<256x32xf32>
    %44 = tpu.matmul %40, %43, %cst_55 {dimension_numbers = #tpu.dot_dimension_numbers<[1], [0], [0], [1], [0, 0, 1, 1], [], []>} : vector<256x32xbf16>, vector<32x32xbf16>, vector<256x32xf32> -> vector<256x32xf32>
    %45 = arith.addf %41, %44 : vector<256x32xf32>
    %c0_56 = arith.constant 0 : index
    %c0_57 = arith.constant 0 : index
    %46 = vector.load %arg7[%c0_56, %c0_57] : memref<256x32xf32, #tpu.memory_space<vmem>>, vector<256x32xf32>
    tpu.vector_store %arg7[%c0_56, %c0_57], %45 {strides = array<i32>} : memref<256x32xf32, #tpu.memory_space<vmem>>, vector<256x32xf32>,
    %c0_58 = arith.constant 0 : index
    %c1_59 = arith.constant 1 : index
    %c7_60 = arith.constant 7 : index
    %c0_61 = arith.constant 0 : index
    %47 = vector.load %arg6[%c0_58, %c1_59, %c7_60, %c0_61] : memref<1x18x32x32xbf16, #tpu.memory_space<vmem>>, vector<1x16x16x32xbf16>
    %48 = vector.shape_cast %47 : vector<1x16x16x32xbf16> to vector<256x32xbf16>
    %c0_62 = arith.constant 0 : index
    %c0_63 = arith.constant 0 : index
    %49 = vector.load %arg7[%c0_62, %c0_63] : memref<256x32xf32, #tpu.memory_space<vmem>>, vector<256x32xf32>
    %50 = vector.extract_strided_slice %20 {offsets = [1, 0, 0, 0], sizes = [1, 1, 32, 32], strides = [1, 1, 1, 1]} : vector<3x3x32x32xbf16> to vector<1x1x32x32xbf16>
    %51 = vector.shape_cast %50 : vector<1x1x32x32xbf16> to vector<32x32xbf16>
    %cst_64 = arith.constant dense<0.000000e+00> : vector<256x32xf32>
    %52 = tpu.matmul %48, %51, %cst_64 {dimension_numbers = #tpu.dot_dimension_numbers<[1], [0], [0], [1], [0, 0, 1, 1], [], []>} : vector<256x32xbf16>, vector<32x32xbf16>, vector<256x32xf32> -> vector<256x32xf32>
    %53 = arith.addf %49, %52 : vector<256x32xf32>
    %c0_65 = arith.constant 0 : index
    %c0_66 = arith.constant 0 : index
    %54 = vector.load %arg7[%c0_65, %c0_66] : memref<256x32xf32, #tpu.memory_space<vmem>>, vector<256x32xf32>
    tpu.vector_store %arg7[%c0_65, %c0_66], %53 {strides = array<i32>} : memref<256x32xf32, #tpu.memory_space<vmem>>, vector<256x32xf32>,
    %c0_67 = arith.constant 0 : index
    %c1_68 = arith.constant 1 : index
    %c8_69 = arith.constant 8 : index
    %c0_70 = arith.constant 0 : index
    %55 = vector.load %arg6[%c0_67, %c1_68, %c8_69, %c0_70] : memref<1x18x32x32xbf16, #tpu.memory_space<vmem>>, vector<1x16x16x32xbf16>
    %56 = vector.shape_cast %55 : vector<1x16x16x32xbf16> to vector<256x32xbf16>
    %c0_71 = arith.constant 0 : index
    %c0_72 = arith.constant 0 : index
    %57 = vector.load %arg7[%c0_71, %c0_72] : memref<256x32xf32, #tpu.memory_space<vmem>>, vector<256x32xf32>
    %58 = vector.extract_strided_slice %20 {offsets = [1, 1, 0, 0], sizes = [1, 1, 32, 32], strides = [1, 1, 1, 1]} : vector<3x3x32x32xbf16> to vector<1x1x32x32xbf16>
    %59 = vector.shape_cast %58 : vector<1x1x32x32xbf16> to vector<32x32xbf16>
    %cst_73 = arith.constant dense<0.000000e+00> : vector<256x32xf32>
    %60 = tpu.matmul %56, %59, %cst_73 {dimension_numbers = #tpu.dot_dimension_numbers<[1], [0], [0], [1], [0, 0, 1, 1], [], []>} : vector<256x32xbf16>, vector<32x32xbf16>, vector<256x32xf32> -> vector<256x32xf32>
    %61 = arith.addf %57, %60 : vector<256x32xf32>
    %c0_74 = arith.constant 0 : index
    %c0_75 = arith.constant 0 : index
    %62 = vector.load %arg7[%c0_74, %c0_75] : memref<256x32xf32, #tpu.memory_space<vmem>>, vector<256x32xf32>
    tpu.vector_store %arg7[%c0_74, %c0_75], %61 {strides = array<i32>} : memref<256x32xf32, #tpu.memory_space<vmem>>, vector<256x32xf32>,
    %c0_76 = arith.constant 0 : index
    %c1_77 = arith.constant 1 : index
    %c9_78 = arith.constant 9 : index
    %c0_79 = arith.constant 0 : index
    %63 = vector.load %arg6[%c0_76, %c1_77, %c9_78, %c0_79] : memref<1x18x32x32xbf16, #tpu.memory_space<vmem>>, vector<1x16x16x32xbf16>
    %64 = vector.shape_cast %63 : vector<1x16x16x32xbf16> to vector<256x32xbf16>
    %c0_80 = arith.constant 0 : index
    %c0_81 = arith.constant 0 : index
    %65 = vector.load %arg7[%c0_80, %c0_81] : memref<256x32xf32, #tpu.memory_space<vmem>>, vector<256x32xf32>
    %66 = vector.extract_strided_slice %20 {offsets = [1, 2, 0, 0], sizes = [1, 1, 32, 32], strides = [1, 1, 1, 1]} : vector<3x3x32x32xbf16> to vector<1x1x32x32xbf16>
    %67 = vector.shape_cast %66 : vector<1x1x32x32xbf16> to vector<32x32xbf16>
    %cst_82 = arith.constant dense<0.000000e+00> : vector<256x32xf32>
    %68 = tpu.matmul %64, %67, %cst_82 {dimension_numbers = #tpu.dot_dimension_numbers<[1], [0], [0], [1], [0, 0, 1, 1], [], []>} : vector<256x32xbf16>, vector<32x32xbf16>, vector<256x32xf32> -> vector<256x32xf32>
    %69 = arith.addf %65, %68 : vector<256x32xf32>
    %c0_83 = arith.constant 0 : index
    %c0_84 = arith.constant 0 : index
    %70 = vector.load %arg7[%c0_83, %c0_84] : memref<256x32xf32, #tpu.memory_space<vmem>>, vector<256x32xf32>
    tpu.vector_store %arg7[%c0_83, %c0_84], %69 {strides = array<i32>} : memref<256x32xf32, #tpu.memory_space<vmem>>, vector<256x32xf32>,
    %c0_85 = arith.constant 0 : index
    %c2 = arith.constant 2 : index
    %c7_86 = arith.constant 7 : index
    %c0_87 = arith.constant 0 : index
    %71 = vector.load %arg6[%c0_85, %c2, %c7_86, %c0_87] : memref<1x18x32x32xbf16, #tpu.memory_space<vmem>>, vector<1x16x16x32xbf16>
    %72 = vector.shape_cast %71 : vector<1x16x16x32xbf16> to vector<256x32xbf16>
    %c0_88 = arith.constant 0 : index
    %c0_89 = arith.constant 0 : index
    %73 = vector.load %arg7[%c0_88, %c0_89] : memref<256x32xf32, #tpu.memory_space<vmem>>, vector<256x32xf32>
    %74 = vector.extract_strided_slice %20 {offsets = [2, 0, 0, 0], sizes = [1, 1, 32, 32], strides = [1, 1, 1, 1]} : vector<3x3x32x32xbf16> to vector<1x1x32x32xbf16>
    %75 = vector.shape_cast %74 : vector<1x1x32x32xbf16> to vector<32x32xbf16>
    %cst_90 = arith.constant dense<0.000000e+00> : vector<256x32xf32>
    %76 = tpu.matmul %72, %75, %cst_90 {dimension_numbers = #tpu.dot_dimension_numbers<[1], [0], [0], [1], [0, 0, 1, 1], [], []>} : vector<256x32xbf16>, vector<32x32xbf16>, vector<256x32xf32> -> vector<256x32xf32>
    %77 = arith.addf %73, %76 : vector<256x32xf32>
    %c0_91 = arith.constant 0 : index
    %c0_92 = arith.constant 0 : index
    %78 = vector.load %arg7[%c0_91, %c0_92] : memref<256x32xf32, #tpu.memory_space<vmem>>, vector<256x32xf32>
    tpu.vector_store %arg7[%c0_91, %c0_92], %77 {strides = array<i32>} : memref<256x32xf32, #tpu.memory_space<vmem>>, vector<256x32xf32>,
    %c0_93 = arith.constant 0 : index
    %c2_94 = arith.constant 2 : index
    %c8_95 = arith.constant 8 : index
    %c0_96 = arith.constant 0 : index
    %79 = vector.load %arg6[%c0_93, %c2_94, %c8_95, %c0_96] : memref<1x18x32x32xbf16, #tpu.memory_space<vmem>>, vector<1x16x16x32xbf16>
    %80 = vector.shape_cast %79 : vector<1x16x16x32xbf16> to vector<256x32xbf16>
    %c0_97 = arith.constant 0 : index
    %c0_98 = arith.constant 0 : index
    %81 = vector.load %arg7[%c0_97, %c0_98] : memref<256x32xf32, #tpu.memory_space<vmem>>, vector<256x32xf32>
    %82 = vector.extract_strided_slice %20 {offsets = [2, 1, 0, 0], sizes = [1, 1, 32, 32], strides = [1, 1, 1, 1]} : vector<3x3x32x32xbf16> to vector<1x1x32x32xbf16>
    %83 = vector.shape_cast %82 : vector<1x1x32x32xbf16> to vector<32x32xbf16>
    %cst_99 = arith.constant dense<0.000000e+00> : vector<256x32xf32>
    %84 = tpu.matmul %80, %83, %cst_99 {dimension_numbers = #tpu.dot_dimension_numbers<[1], [0], [0], [1], [0, 0, 1, 1], [], []>} : vector<256x32xbf16>, vector<32x32xbf16>, vector<256x32xf32> -> vector<256x32xf32>
    %85 = arith.addf %81, %84 : vector<256x32xf32>
    %c0_100 = arith.constant 0 : index
    %c0_101 = arith.constant 0 : index
    %86 = vector.load %arg7[%c0_100, %c0_101] : memref<256x32xf32, #tpu.memory_space<vmem>>, vector<256x32xf32>
    tpu.vector_store %arg7[%c0_100, %c0_101], %85 {strides = array<i32>} : memref<256x32xf32, #tpu.memory_space<vmem>>, vector<256x32xf32>,
    %c0_102 = arith.constant 0 : index
    %c2_103 = arith.constant 2 : index
    %c9_104 = arith.constant 9 : index
    %c0_105 = arith.constant 0 : index
    %87 = vector.load %arg6[%c0_102, %c2_103, %c9_104, %c0_105] : memref<1x18x32x32xbf16, #tpu.memory_space<vmem>>, vector<1x16x16x32xbf16>
    %88 = vector.shape_cast %87 : vector<1x16x16x32xbf16> to vector<256x32xbf16>
    %c0_106 = arith.constant 0 : index
    %c0_107 = arith.constant 0 : index
    %89 = vector.load %arg7[%c0_106, %c0_107] : memref<256x32xf32, #tpu.memory_space<vmem>>, vector<256x32xf32>
    %90 = vector.extract_strided_slice %20 {offsets = [2, 2, 0, 0], sizes = [1, 1, 32, 32], strides = [1, 1, 1, 1]} : vector<3x3x32x32xbf16> to vector<1x1x32x32xbf16>
    %91 = vector.shape_cast %90 : vector<1x1x32x32xbf16> to vector<32x32xbf16>
    %cst_108 = arith.constant dense<0.000000e+00> : vector<256x32xf32>
    %92 = tpu.matmul %88, %91, %cst_108 {dimension_numbers = #tpu.dot_dimension_numbers<[1], [0], [0], [1], [0, 0, 1, 1], [], []>} : vector<256x32xbf16>, vector<32x32xbf16>, vector<256x32xf32> -> vector<256x32xf32>
    %93 = arith.addf %89, %92 : vector<256x32xf32>
    %c0_109 = arith.constant 0 : index
    %c0_110 = arith.constant 0 : index
    %94 = vector.load %arg7[%c0_109, %c0_110] : memref<256x32xf32, #tpu.memory_space<vmem>>, vector<256x32xf32>
    tpu.vector_store %arg7[%c0_109, %c0_110], %93 {strides = array<i32>} : memref<256x32xf32, #tpu.memory_space<vmem>>, vector<256x32xf32>,
    %c0_111 = arith.constant 0 : index
    %c0_112 = arith.constant 0 : index
    %95 = vector.load %arg7[%c0_111, %c0_112] : memref<256x32xf32, #tpu.memory_space<vmem>>, vector<256x32xf32>
    %96 = vector.shape_cast %95 : vector<256x32xf32> to vector<1x16x16x32xf32>
    %c0_113 = arith.constant 0 : index
    %c0_114 = arith.constant 0 : index
    %c0_115 = arith.constant 0 : index
    %c0_116 = arith.constant 0 : index
    %97 = vector.load %arg5[%c0_113, %c0_114, %c0_115, %c0_116] : memref<1x16x16x32xf32, #tpu.memory_space<vmem>>, vector<1x16x16x32xf32>
    tpu.vector_store %arg5[%c0_113, %c0_114, %c0_115, %c0_116], %96 {strides = array<i32>} : memref<1x16x16x32xf32, #tpu.memory_space<vmem>>, vector<1x16x16x32xf32>,
    return
  }
  func.func @transform_0(%arg0: i32) -> (i32, i32, i32, i32) {
    %c0_i32 = arith.constant 0 : i32
    %c0_i32_0 = arith.constant 0 : i32
    %c0_i32_1 = arith.constant 0 : i32
    %c0_i32_2 = arith.constant 0 : i32
    return %arg0, %c0_i32, %c0_i32_0, %c0_i32_1 : i32, i32, i32, i32
  }
  func.func @transform_1(%arg0: i32) -> (i32, i32) {
    %c0_i32 = arith.constant 0 : i32
    %c0_i32_0 = arith.constant 0 : i32
    %c0_i32_1 = arith.constant 0 : i32
    return %c0_i32, %c0_i32_0 : i32, i32
  }
  func.func @transform_2(%arg0: i32) -> (i32, i32) {
    %c0_i32 = arith.constant 0 : i32
    %c0_i32_0 = arith.constant 0 : i32
    %c0_i32_1 = arith.constant 0 : i32
    return %c0_i32, %c0_i32_0 : i32, i32
  }
  func.func @transform_3(%arg0: i32) -> (i32, i32, i32, i32) {
    %c0_i32 = arith.constant 0 : i32
    %c0_i32_0 = arith.constant 0 : i32
    %c0_i32_1 = arith.constant 0 : i32
    %c0_i32_2 = arith.constant 0 : i32
    %c0_i32_3 = arith.constant 0 : i32
    return %c0_i32, %c0_i32_0, %c0_i32_1, %c0_i32_2 : i32, i32, i32, i32
  }
  func.func @transform_4(%arg0: i32) -> (i32, i32, i32, i32) {
    %c0_i32 = arith.constant 0 : i32
    %c0_i32_0 = arith.constant 0 : i32
    %c0_i32_1 = arith.constant 0 : i32
    %c0_i32_2 = arith.constant 0 : i32
    return %arg0, %c0_i32, %c0_i32_0, %c0_i32_1 : i32, i32, i32, i32
  }
}

</mosaic_0001>

<bundles_post_ra>
// kernel: preact_bottleneck_block.3
= control target key start
LH: loop header
LB: loop body
LE: loop exit
PB: predicated region body
PF: predicated region fallthrough
CT: control target
= control target key end

     0   :  { %s808_s15 = smov 0   ;;  %s810_s16 = smov 0   ;;  %s987_s0 = inlined_call_operand.vmem [shape: f32[2,16,16,128], index: 0, kind: input, shape index: {}]   ;;  %s988_s1 = inlined_call_operand.vmem [shape: f32[1,128], index: 1, kind: input, shape index: {}]   ;;  %s989_s2 = inlined_call_operand.vmem [shape: f32[1,128], index: 2, kind: input, shape index: {}]   ;;  %s990_s3 = inlined_call_operand.vmem [shape: bf16[128,32], index: 3, kind: input, shape index: {}]   ;;  %s991_s4 = inlined_call_operand.vmem [shape: f32[2,16,16,32], index: 4, kind: output, shape index: {}]  }
   0x1   :  { %s812_s17 = smov 0   ;;  %s814_s18 = smov 0  }
   0x2   :  { %s816_s19 = smov 0  }
   0x3 LB: > { %s23_s20 = sadd.s32 1, %s773_s17  ;;  %s26_s21 = sadd.s32 1, %s777_s18  ;;  %s781_s19 = sphi %s816_s19, %s14_s19   ;;  %s777_s18 = sphi %s814_s18, %s995_s18   ;;  %s773_s17 = sphi %s812_s17, %s994_s17   ;;  %s769_s16 = sphi %s810_s16, %s993_s16   ;;  %s765_s15 = sphi %s808_s15, %s992_s15  }
   0x4   : > { %p24_p0 = scmp.ge.s32.totalorder %s23_s20, 2  ;;  %p610_p1 = scmp.ge.s32.totalorder %s781_s19, 1 }
   0x5   : > { %p184_p2 = scmp.lt.s32.totalorder %s781_s19, 5 }
   0x6   : > { %s997_s20 = smov (%p24_p0, %s23_s20), 0  ;;  %s999_s21 = smov (!%p24_p0, %s26_s21), %s777_s18 }
   0x7   : > { %p185_p3 = pnand %p610_p1, %p184_p2  ;;  %p28_p4 = scmp.ge.s32.totalorder %s999_s21, 2 }
   0x8   : > { %v735_v0 = vld [vmem:[%s990_s3] sm:$0xff] (!%p185_p3)   ;;  %s611_s24 = sshll.u32 (!%p185_p3), %s765_s15, 3  ;;  %v736_v1 = vld [vmem:[%s990_s3 + $0x8] sm:$0xff] (!%p185_p3)   ;;  %p221_p5 = scmp.lt.s32.totalorder (!%p185_p3), %s769_s16, 1  ;;  %v737_v2 = vld [vmem:[%s990_s3 + $0x10] sm:$0xff] (!%p185_p3)   ;;  %vm490_vm0 = vcmask (!%p185_p3), 261120  }
   0x9   : > { %s1001_s21 = smov (%p28_p4, %s999_s21), 0  ;;  %188 = sbr.rel (%p185_p3) target bundleno = 267 (0x10b), region = 36 }
   0xa   : > { %647 = vmatprep.subr.bf16.mxu0 (!%p185_p3), %v735_v0  ;;  %679 = vmatprep.subr.bf16.mxu1 (!%p185_p3), %v735_v0  ;;  %p223_p6 = scmp.lt.s32.totalorder (!%p185_p3), %s611_s24, 15  ;;  %v738_v3 = vld [vmem:[%s990_s3 + $0x18] sm:$0xff] (!%p185_p3)   ;;  %v859_v4 = vld [vmem:[%s988_s1] ss:$0 sm:$0xff] (!%p185_p3)  ;;  %v740_v23 = vld [vmem:[%s990_s3 + $0x28] sm:$0xff] (!%p185_p3)  }
   0xb   : > { %648 = vmatpush3.bf16.msra.mxu0 (!%p185_p3), %v735_v0  ;;  %687 = vmatpush3.bf16.msra.mxu1 (!%p185_p3), %v735_v0  ;;  %v871_v5 = vld [vmem:[%s989_s2] ss:$0 sm:$0xff] (!%p185_p3)  ;;  %v741_v42 = vld [vmem:[%s990_s3 + $0x30] sm:$0xff] (!%p185_p3)   ;;  %v742_v55 = vld [vmem:[%s990_s3 + $0x38] sm:$0xff] (!%p185_p3)  }
   0xc   : > { %649 = vmatprep.subr.bf16.mxu0 (!%p185_p3), %v736_v1  ;;  %680 = vmatprep.subr.bf16.mxu1 (!%p185_p3), %v736_v1  ;;  %v739_v13 = vld [vmem:[%s990_s3 + $0x20] sm:$0xff] (!%p185_p3)  }
   0xf   : > { %650 = vmatpush3.bf16.msra.mxu0 (!%p185_p3), %v736_v1  ;;  %688 = vmatpush3.bf16.msra.mxu1 (!%p185_p3), %v736_v1 }
  0x10   : > { %s1003_s16 = smov (!%p221_p5, %s769_s16), 1  ;;  %s1005_s24 = smov (!%p223_p6, %s611_s24), 15  ;;  %651 = vmatprep.subr.bf16.mxu0 %v737_v2  ;;  %681 = vmatprep.subr.bf16.mxu1 %v737_v2 }
  0x11   : > { %s613_s29 = sshll.u32 %s1003_s16, 5  ;;  %s612_s30 = sshll.u32 %s1005_s24, 1 }
  0x12   : > { %s850_s5 = sadd.s32 %s613_s29, %s612_s30 }
  0x13   : > { %s614_s8 = sshll.u32 %s850_s5, 3  ;;  %652 = vmatpush3.bf16.msra.mxu0 %v737_v2  ;;  %689 = vmatpush3.bf16.msra.mxu1 %v737_v2 }
  0x14   : > { %s866_s13 = scalar_lea.vmem %s987_s0, %s614_s8  ;;  %653 = vmatprep.subr.bf16.mxu0 %v738_v3  ;;  %682 = vmatprep.subr.bf16.mxu1 %v738_v3  ;;  %s938_s6 = scalar_lea.vmem %s991_s4, %s614_s8 }
  0x15   : > { %v243_v6 = vld [vmem:[%s866_s13] sm:$0xff]  ;;  %v244_v7 = vld [vmem:[%s866_s13 + $0x8] sm:$0xff]  ;;  %v245_v18 = vld [vmem:[%s866_s13 + $0x10] sm:$0xff] }
  0x16   : > { %v251_v8 = vld [vmem:[%s866_s13 + $0x40] sm:$0xff]  ;;  %v266_v9 = vmul.f32 %v859_v4, %v243_v6  ;;  %v267_v10 = vmul.f32 %v859_v4, %v244_v7  ;;  %v252_v11 = vld [vmem:[%s866_s13 + $0x48] sm:$0xff]  ;;  %v246_v20 = vld [vmem:[%s866_s13 + $0x18] sm:$0xff]  ;;  %v268_v29 = vmul.f32 %v859_v4, %v245_v18 }
  0x17   : > { %v274_v12 = vmul.f32 %v859_v4, %v251_v8  ;;  %v275_v14 = vmul.f32 %v859_v4, %v252_v11  ;;  %v253_v21 = vld [vmem:[%s866_s13 + $0x50] sm:$0xff]  ;;  %v254_v22 = vld [vmem:[%s866_s13 + $0x58] sm:$0xff]  ;;  %654 = vmatpush3.bf16.msra.mxu0 %v738_v3  ;;  %690 = vmatpush3.bf16.msra.mxu1 %v738_v3  ;;  %v247_v27 = vld [vmem:[%s866_s13 + $0x20] sm:$0xff]  ;;  %v269_v34 = vmul.f32 %v859_v4, %v246_v20 }
  0x18   : > { %v289_v15 = vadd.f32 %v871_v5, %v266_v9  ;;  %v290_v16 = vadd.f32 %v871_v5, %v267_v10  ;;  %655 = vmatprep.subr.bf16.mxu0 %v739_v13  ;;  %683 = vmatprep.subr.bf16.mxu1 %v739_v13  ;;  %v248_v30 = vld [vmem:[%s866_s13 + $0x28] sm:$0xff]  ;;  %v255_v31 = vld [vmem:[%s866_s13 + $0x60] sm:$0xff]  ;;  %v276_v35 = vmul.f32 %v859_v4, %v253_v21  ;;  %v249_v48 = vld [vmem:[%s866_s13 + $0x30] sm:$0xff] }
  0x19   : > { %v297_v17 = vadd.f32 %v871_v5, %v274_v12  ;;  %v298_v19 = vadd.f32 %v871_v5, %v275_v14  ;;  %v256_v32 = vld [vmem:[%s866_s13 + $0x68] sm:$0xff]  ;;  %v277_v36 = vmul.f32 %v859_v4, %v254_v22  ;;  %v270_v38 = vmul.f32 %v859_v4, %v247_v27  ;;  %v250_v52 = vld [vmem:[%s866_s13 + $0x38] sm:$0xff]  ;;  %v257_v53 = vld [vmem:[%s866_s13 + $0x70] sm:$0xff] }
  0x1a   : > { %v305_v24 = vmax.f32 %v289_v15, 0.0  ;;  %v306_v25 = vmax.f32 %v290_v16, 0.0  ;;  %v271_v39 = vmul.f32 %v859_v4, %v248_v30  ;;  %v278_v40 = vmul.f32 %v859_v4, %v255_v31  ;;  %v258_v54 = vld [vmem:[%s866_s13 + $0x78] sm:$0xff] }
  0x1b   : > { %v313_v26 = vmax.f32 %v297_v17, 0.0  ;;  %v314_v28 = vmax.f32 %v298_v19, 0.0  ;;  %656 = vmatpush3.bf16.msra.mxu0 %v739_v13  ;;  %691 = vmatpush3.bf16.msra.mxu1 %v739_v13  ;;  %v279_v41 = vmul.f32 %v859_v4, %v256_v32  ;;  %v291_v43 = vadd.f32 %v871_v5, %v268_v29 }
  0x1c   : > { %v321_v33 = vpack.c.bf16 %v306_v25, %v305_v24  ;;  %657 = vmatprep.subr.bf16.mxu0 %v740_v23  ;;  %684 = vmatprep.subr.bf16.mxu1 %v740_v23  ;;  %v292_v44 = vadd.f32 %v871_v5, %v269_v34  ;;  %v299_v45 = vadd.f32 %v871_v5, %v276_v35 }
  0x1d   : > { %v325_v37 = vpack.c.bf16 %v314_v28, %v313_v26  ;;  %v300_v46 = vadd.f32 %v871_v5, %v277_v36  ;;  %v293_v47 = vadd.f32 %v871_v5, %v270_v38  ;;  %v294_v49 = vadd.f32 %v871_v5, %v271_v39 }
  0x1e   : > { %663 = vmatprep.mubr.bf16.mxu0 %v321_v33  ;;  %v301_v50 = vadd.f32 %v871_v5, %v278_v40  ;;  %v302_v51 = vadd.f32 %v871_v5, %v279_v41  ;;  %v307_v56 = vmax.f32 %v291_v43, 0.0  ;;  %v308_v57 = vmax.f32 %v292_v44, 0.0 }
  0x1f   : > { %671 = vmatprep.mubr.bf16.mxu1 %v325_v37  ;;  %658 = vmatpush3.bf16.msra.mxu0 %v740_v23  ;;  %v315_v58 = vmax.f32 %v299_v45, 0.0  ;;  %v316_v59 = vmax.f32 %v300_v46, 0.0  ;;  %v272_v60 = vmul.f32 %v859_v4, %v249_v48  ;;  %v273_v61 = vmul.f32 %v859_v4, %v250_v52 }
  0x20   : > { %692 = vmatpush3.bf16.msra.mxu1 %v740_v23  ;;  %659 = vmatprep.subr.bf16.mxu0 %v741_v42  ;;  %v280_v62 = vmul.f32 %v859_v4, %v257_v53  ;;  %v281_v63 = vmul.f32 %v859_v4, %v258_v54  ;;  %v309_v0 = vmax.f32 %v293_v47, 0.0  ;;  %v310_v1 = vmax.f32 %v294_v49, 0.0 }
  0x21   : > { %685 = vmatprep.subr.bf16.mxu1 %v741_v42  ;;  %v317_v2 = vmax.f32 %v301_v50, 0.0  ;;  %v318_v3 = vmax.f32 %v302_v51, 0.0  ;;  %v322_v6 = vpack.c.bf16 %v308_v57, %v307_v56  ;;  %v326_v7 = vpack.c.bf16 %v316_v59, %v315_v58 }
  0x22   : > { %v295_v8 = vadd.f32 %v871_v5, %v272_v60  ;;  %v296_v9 = vadd.f32 %v871_v5, %v273_v61  ;;  %v303_v10 = vadd.f32 %v871_v5, %v280_v62  ;;  %v304_v11 = vadd.f32 %v871_v5, %v281_v63 }
  0x23   : > { %660 = vmatpush3.bf16.msra.mxu0 %v741_v42  ;;  %v323_v4 = vpack.c.bf16 %v310_v1, %v309_v0  ;;  %v327_v12 = vpack.c.bf16 %v318_v3, %v317_v2 }
  0x24   : > { %693 = vmatpush3.bf16.msra.mxu1 %v741_v42  ;;  %661 = vmatprep.subr.bf16.mxu0 %v742_v55  ;;  %v311_v13 = vmax.f32 %v295_v8, 0.0  ;;  %v312_v14 = vmax.f32 %v296_v9, 0.0  ;;  %v319_v15 = vmax.f32 %v303_v10, 0.0  ;;  %v320_v16 = vmax.f32 %v304_v11, 0.0 }
  0x25   : > { %686 = vmatprep.subr.bf16.mxu1 %v742_v55 }
  0x26   : > { %v324_v17 = vpack.c.bf16 %v312_v14, %v311_v13  ;;  %v328_v18 = vpack.c.bf16 %v320_v16, %v319_v15 }
  0x27   : > { %662 = vmatpush3.bf16.msra.mxu0 %v742_v55 }
  0x28   : > { %694 = vmatpush3.bf16.msra.mxu1 %v742_v55 }
  0x2a   : > { %664 = vmatmul.mubr.bf16.vlgmr.msra.gmra.mrb[0].mxu0 %v322_v6 }
  0x2b   : > { %672 = vmatmul.mubr.bf16.vlgmr.msra.gmra.mrb[0].mxu1 %v326_v7  ;;  %667 = vmatprep.mubr.bf16.mxu0 %v323_v4 }
  0x2c   : > { %675 = vmatprep.mubr.bf16.mxu1 %v327_v12 }
  0x32   : > { %668 = vmatmul.mubr.bf16.gmra.mrb[4].mxu0 %v324_v17 }
  0x33   : > { %676 = vmatmul.mubr.bf16.gmra.mrb[4].mxu1 %v328_v18 }
  0xfd   : > { %v665_v5 = vpop.f32.mrb[0].mxu0 }
  0xfe   : > { %v673_v19 = vpop.f32.mrb[0].mxu1  ;;  %493 = vst.msk [vmem:[%s938_s6 + $0x10] sm:$0xff] %vm490_vm0, %v665_v5  ;;  %v427_v20 = vpop.f32.mrb[1].mxu0 }
  0xff   : > { %501 = vst.msk [vmem:[%s938_s6 + $0x50] sm:$0xff] %vm490_vm0, %v673_v19  ;;  %v459_v21 = vpop.f32.mrb[1].mxu1  ;;  %491 = vst.msk [vmem:[%s938_s6] sm:$0xff] %vm490_vm0, %v427_v20  ;;  %v666_v22 = vpop.f32.mrb[2].mxu0 }
 0x100   : > { %499 = vst.msk [vmem:[%s938_s6 + $0x40] sm:$0xff] %vm490_vm0, %v459_v21  ;;  %v674_v23 = vpop.f32.mrb[2].mxu1  ;;  %494 = vst.msk [vmem:[%s938_s6 + $0x18] sm:$0xff] %vm490_vm0, %v666_v22  ;;  %v430_v24 = vpop.f32.mrb[3].mxu0 }
 0x101   : > { %502 = vst.msk [vmem:[%s938_s6 + $0x58] sm:$0xff] %vm490_vm0, %v674_v23  ;;  %v462_v25 = vpop.f32.mrb[3].mxu1  ;;  %492 = vst.msk [vmem:[%s938_s6 + $0x8] sm:$0xff] %vm490_vm0, %v430_v24 }
 0x102   : > { %500 = vst.msk [vmem:[%s938_s6 + $0x48] sm:$0xff] %vm490_vm0, %v462_v25 }
 0x105   : > { %v669_v26 = vpop.f32.mrb[4].mxu0 }
 0x106   : > { %v677_v27 = vpop.f32.mrb[4].mxu1  ;;  %497 = vst.msk [vmem:[%s938_s6 + $0x30] sm:$0xff] %vm490_vm0, %v669_v26  ;;  %v443_v28 = vpop.f32.mrb[5].mxu0 }
 0x107   : > { %505 = vst.msk [vmem:[%s938_s6 + $0x70] sm:$0xff] %vm490_vm0, %v677_v27  ;;  %v475_v29 = vpop.f32.mrb[5].mxu1  ;;  %495 = vst.msk [vmem:[%s938_s6 + $0x20] sm:$0xff] %vm490_vm0, %v443_v28  ;;  %v670_v30 = vpop.f32.mrb[6].mxu0 }
 0x108   : > { %503 = vst.msk [vmem:[%s938_s6 + $0x60] sm:$0xff] %vm490_vm0, %v475_v29  ;;  %v678_v31 = vpop.f32.mrb[6].mxu1  ;;  %498 = vst.msk [vmem:[%s938_s6 + $0x38] sm:$0xff] %vm490_vm0, %v670_v30  ;;  %v446_v32 = vpop.f32.mrb[7].mxu0 }
 0x109   : > { %506 = vst.msk [vmem:[%s938_s6 + $0x78] sm:$0xff] %vm490_vm0, %v678_v31  ;;  %v478_v33 = vpop.f32.mrb[7].mxu1  ;;  %496 = vst.msk [vmem:[%s938_s6 + $0x28] sm:$0xff] %vm490_vm0, %v446_v32 }
 0x10a   : > { %504 = vst.msk [vmem:[%s938_s6 + $0x68] sm:$0xff] %vm490_vm0, %v478_v33 }
 0x10b PF: > { %s14_s19 = sadd.s32 1, %s781_s19   ;;  %s992_s15 = smov %s773_s17 }
 0x10c   : > { %p11_p7 = scmp.ge.s32.totalorder %s14_s19, 6   ;;  %s993_s16 = smov %s777_s18 }
 0x10d   : > { %s994_s17 = smov %s997_s20  ;;  %s995_s18 = smov %s1001_s21 }
 0x10e   :  { %13 = sbr.rel (!%p11_p7) target bundleno = 3 (0x3), region = 66 }

// kernel: preact_bottleneck_block.5
= control target key start
LH: loop header
LB: loop body
LE: loop exit
PB: predicated region body
PF: predicated region fallthrough
CT: control target
= control target key end

     0   :  { %10 = vsyncpa [#allocation3], 0  ;;  %s1231_s0 = inlined_call_operand.vmem [shape: f32[2,16,16,32], index: 0, kind: input, shape index: {}]   ;;  %s1232_s1 = inlined_call_operand.vmem [shape: f32[2,16,16,128], index: 1, kind: input, shape index: {}]   ;;  %s1233_s2 = inlined_call_operand.vmem [shape: f32[1,32], index: 2, kind: input, shape index: {}]   ;;  %s1234_s3 = inlined_call_operand.vmem [shape: f32[1,32], index: 3, kind: input, shape index: {}]   ;;  %s1235_s4 = inlined_call_operand.vmem [shape: bf16[32,128], index: 4, kind: input, shape index: {}]   ;;  %s1236_s5 = inlined_call_operand.hbm [shape: f32[2,16,16,128], index: 5, kind: output, shape index: {}]  }
   0x1   :  { %12 = vsyncpa [#allocation3 + $0x1], 0  ;;  %s964_s18 = smov 0   ;;  %s966_s19 = smov 0  }
   0x2   :  { %s968_s20 = smov 0   ;;  %s970_s21 = smov 0  }
   0x3   :  { %s972_s22 = smov 0   ;;  %s974_s23 = smov 0  }
   0x4   :  { %s976_s24 = smov 0   ;;  %s978_s25 = smov 0  }
   0x5 LB: > { %s692_s26 = sadd.s32 4294967295, %s929_s25   ;;  %s693_s27 = sadd.s32 4294967294, %s929_s25   ;;  %s929_s25 = sphi %s978_s25, %s18_s25   ;;  %s925_s24 = sphi %s976_s24, %s1245_s24   ;;  %s921_s23 = sphi %s974_s23, %s1244_s23   ;;  %s917_s22 = sphi %s972_s22, %s1243_s22   ;;  %s913_s21 = sphi %s970_s21, %s1242_s21   ;;  %s909_s20 = sphi %s968_s20, %s1241_s20   ;;  %s905_s19 = sphi %s966_s19, %s1240_s19   ;;  %s901_s18 = sphi %s964_s18, %s1239_s18  }
   0x6   : > { %s27_s28 = sadd.s32 1, %s921_s23  ;;  %s30_s29 = sadd.s32 1, %s925_s24 }
   0x7   : > { %p28_p0 = scmp.ge.s32.totalorder %s27_s28, 2  ;;  %p168_p1 = scmp.ne.s32.totalorder %s909_s20, %s905_s19 }
   0x8   : > { %p169_p2 = scmp.eq.s32.totalorder %s692_s26, 3  ;;  %p174_p5 = scmp.ne.s32.totalorder %s905_s19, %s901_s18 }
   0x9   : > { %s1247_s28 = smov (%p28_p0, %s27_s28), 0  ;;  %s1249_s29 = smov (!%p28_p0, %s30_s29), %s925_s24 }
   0xa   : > { %s154_s30 = ssub.s32 %s921_s23, %s1247_s28  ;;  %p1015_p3 = por %p169_p2, %p168_p1 }
   0xb   : > { %p32_p4 = scmp.ge.s32.totalorder %s1249_s29, 2  ;;  %p175_p6 = scmp.eq.s32.totalorder %s693_s27, 3 }
   0xc   : > { %p696_p7 = scmp.ge.s32.totalorder %s929_s25, 1  ;;  %p230_p9 = scmp.lt.s32.totalorder %s929_s25, 5 }
   0xd   : > { %s1251_s29 = smov (%p32_p4, %s1249_s29), 0  ;;  %p1024_p8 = por %p175_p6, %p174_p5 }
   0xe   : > { %s153_s8 = ssub.s32 %s925_s24, %s1251_s29  ;;  %s158_s9 = sadd.s32 1, %s909_s20 }
   0xf   : > { %s155_s10 = sor.u32 %s154_s30, %s153_s8  ;;  %p231_p10 = pnand %p696_p7, %p230_p9 }
  0x10   : > { %p156_p11 = scmp.eq.s32.totalorder %s155_s10, 0  ;;  %v833_v0 = vld [vmem:[%s1235_s4] sm:$0xff] (!%p231_p10)   ;;  %s698_s14 = sshll.u32 (!%p231_p10), %s913_s21, 3  ;;  %v834_v1 = vld [vmem:[%s1235_s4 + $0x8] sm:$0xff] (!%p231_p10)   ;;  %vm399_vm0 = vcmask (!%p231_p10), 261120  }
  0x11   : > { %234 = sbr.rel (%p231_p10) target bundleno = 282 (0x11a), region = 40  ;;  %p274_p12 = scmp.lt.s32.totalorder (!%p231_p10), %s917_s22, 1  ;;  %736 = vmatprep.subr.bf16.mxu0 (!%p231_p10), %v833_v0  ;;  %756 = vmatprep.subr.bf16.mxu1 (!%p231_p10), %v833_v0  ;;  %v1050_v2 = vld [vmem:[%s1233_s2] ss:$0 sm:$0xff] (!%p231_p10) }
  0x12   : > { %s1033_s11 = scalar_select %p156_p11, %s909_s20, %s158_s9  }
  0x13   : > { %p276_p13 = scmp.lt.s32.totalorder (!%p231_p10), %s698_s14, 15  ;;  %737 = vmatpush3.bf16.msra.mxu0 (!%p231_p10), %v833_v0  ;;  %758 = vmatpush3.bf16.msra.mxu1 (!%p231_p10), %v833_v0  ;;  %v1062_v3 = vld [vmem:[%s1234_s3] ss:$0 sm:$0xff] (!%p231_p10)  ;;  %s721_s12 = sshll.u32 (!%p231_p10), %s917_s22, 5 }
  0x14   : > { %738 = vmatprep.subr.bf16.mxu0 (!%p231_p10), %v834_v1  ;;  %757 = vmatprep.subr.bf16.mxu1 (!%p231_p10), %v834_v1 }
  0x17   : > { %739 = vmatpush3.bf16.msra.mxu0 (!%p231_p10), %v834_v1  ;;  %759 = vmatpush3.bf16.msra.mxu1 (!%p231_p10), %v834_v1 }
  0x18   : > { %s275_s17 = scalar_select %p274_p12, %s917_s22, 1 }
  0x19   : > { %s1253_s14 = smov (!%p276_p13, %s698_s14), 15 }
  0x1a   : > { %s700_s26 = sshll.u32 %s275_s17, 5  ;;  %s699_s27 = sshll.u32 %s1253_s14, 1 }
  0x1b   : > { %s1044_s30 = sadd.s32 %s700_s26, %s699_s27  ;;  %s270_s17 = sand.u32 1, %s905_s19  }
  0x1c   : > { %s701_s8 = sshll.u32 %s1044_s30, 3  ;;  %s697_s10 = sshll.u32 %s270_s17, 7 }
  0x1d   : > { %s1057_s15 = scalar_lea.vmem %s1231_s0, %s701_s8  ;;  %s1126_s9 = scalar_lea.vmem %s1232_s1, %s701_s8 }
  0x1e   : > { %v297_v4 = vld [vmem:[%s1057_s15] sm:$0xff]  ;;  %v298_v5 = vld [vmem:[%s1057_s15 + $0x8] sm:$0xff]  ;;  %v299_v11 = vld [vmem:[%s1057_s15 + $0x10] sm:$0xff]  ;;  %s1137_s30 = scalar_lea.vmem [#allocation2], %s697_s10  ;;  %s725_s8 = sshll.u32 %s913_s21, 4 }
  0x1f   : > { %v305_v6 = vld [vmem:[%s1057_s15 + $0x40] sm:$0xff]  ;;  %v320_v7 = vmul.f32 %v1050_v2, %v297_v4  ;;  %v321_v8 = vmul.f32 %v1050_v2, %v298_v5  ;;  %v306_v9 = vld [vmem:[%s1057_s15 + $0x48] sm:$0xff]  ;;  %v300_v12 = vld [vmem:[%s1057_s15 + $0x18] sm:$0xff]  ;;  %v322_v14 = vmul.f32 %v1050_v2, %v299_v11  ;;  %s1151_s13 = sadd.s32 %s725_s8, %s721_s12  ;;  %s586_s22 = sshll.u32 %s1137_s30, 4  ;;  %s1171_s22 = int_to_ptr.vmem [resolvable:$true] %s586_s22 }
  0x20   : > { %v328_v10 = vmul.f32 %v1050_v2, %v305_v6  ;;  %v329_v13 = vmul.f32 %v1050_v2, %v306_v9  ;;  %v323_v15 = vmul.f32 %v1050_v2, %v300_v12  ;;  %v307_v16 = vld [vmem:[%s1057_s15 + $0x50] sm:$0xff]  ;;  %v308_v17 = vld [vmem:[%s1057_s15 + $0x58] sm:$0xff]  ;;  %v301_v26 = vld [vmem:[%s1057_s15 + $0x20] sm:$0xff]  ;;  %s722_s21 = sshll.u32 %s1151_s13, 7  ;;  %s1179_s26 = scalar_lea.sflag [#allocation3], %s270_s17 }
  0x21   : > { %v343_v18 = vadd.f32 %v1062_v3, %v320_v7  ;;  %v344_v19 = vadd.f32 %v1062_v3, %v321_v8  ;;  %v330_v21 = vmul.f32 %v1050_v2, %v307_v16  ;;  %v345_v23 = vadd.f32 %v1062_v3, %v322_v14  ;;  %v302_v27 = vld [vmem:[%s1057_s15 + $0x28] sm:$0xff]  ;;  %v309_v32 = vld [vmem:[%s1057_s15 + $0x60] sm:$0xff]  ;;  %v303_v38 = vld [vmem:[%s1057_s15 + $0x30] sm:$0xff]  ;;  %s1169_s14 = scalar_lea.hbm %s1236_s5, %s722_s21  ;;  %s835_s27 = scalar_lea.vmem %s1171_s22, 2048 }
  0x22   : > { %v351_v20 = vadd.f32 %v1062_v3, %v328_v10  ;;  %v352_v22 = vadd.f32 %v1062_v3, %v329_v13  ;;  %v346_v24 = vadd.f32 %v1062_v3, %v323_v15  ;;  %v331_v25 = vmul.f32 %v1050_v2, %v308_v17  ;;  %v310_v37 = vld [vmem:[%s1057_s15 + $0x68] sm:$0xff]  ;;  %v304_v43 = vld [vmem:[%s1057_s15 + $0x38] sm:$0xff]  ;;  %v311_v52 = vld [vmem:[%s1057_s15 + $0x70] sm:$0xff]  ;;  %p836_p0 = scmp.ne.s32.totalorder %s1171_s22, %s835_s27 }
  0x23   : > { %v359_v28 = vmax.f32 %v343_v18, 0.0  ;;  %v360_v29 = vmax.f32 %v344_v19, 0.0  ;;  %v353_v31 = vadd.f32 %v1062_v3, %v330_v21  ;;  %v361_v34 = vmax.f32 %v345_v23, 0.0  ;;  %v312_v53 = vld [vmem:[%s1057_s15 + $0x78] sm:$0xff]  ;;  %v521_v13 = vld [vmem:[%s1126_s9] sm:$0xff]  ;;  %v531_v15 = vld [vmem:[%s1126_s9 + $0x50] sm:$0xff] }
  0x24   : > { %v367_v30 = vmax.f32 %v351_v20, 0.0  ;;  %v368_v33 = vmax.f32 %v352_v22, 0.0  ;;  %v362_v35 = vmax.f32 %v346_v24, 0.0  ;;  %v354_v36 = vadd.f32 %v1062_v3, %v331_v25  ;;  %v524_v16 = vld [vmem:[%s1126_s9 + $0x18] sm:$0xff]  ;;  %v529_v19 = vld [vmem:[%s1126_s9 + $0x40] sm:$0xff]  ;;  %v522_v20 = vld [vmem:[%s1126_s9 + $0x8] sm:$0xff]  ;;  %p837_p1 = pnand %p836_p0, %p1015_p3 }
  0x25   : > { %v375_v39 = vpack.c.bf16 %v360_v29, %v359_v28  ;;  %v369_v40 = vmax.f32 %v353_v31, 0.0  ;;  %v324_v41 = vmul.f32 %v1050_v2, %v301_v26  ;;  %v325_v42 = vmul.f32 %v1050_v2, %v302_v27  ;;  %v532_v24 = vld [vmem:[%s1126_s9 + $0x58] sm:$0xff]  ;;  %v530_v29 = vld [vmem:[%s1126_s9 + $0x48] sm:$0xff] }
  0x26   : > { %v379_v44 = vpack.c.bf16 %v368_v33, %v367_v30  ;;  %v376_v45 = vpack.c.bf16 %v362_v35, %v361_v34  ;;  %v370_v46 = vmax.f32 %v354_v36, 0.0  ;;  %v332_v47 = vmul.f32 %v1050_v2, %v309_v32  ;;  %v527_v36 = vld [vmem:[%s1126_s9 + $0x30] sm:$0xff]  ;;  %p838_p2 = pneg %p837_p1 }
  0x27   : > { %740 = vmatprep.mubr.msk.bf16.mxu0 %vm399_vm0, %v375_v39  ;;  %v347_v48 = vadd.f32 %v1062_v3, %v324_v41  ;;  %v348_v49 = vadd.f32 %v1062_v3, %v325_v42  ;;  %v333_v50 = vmul.f32 %v1050_v2, %v310_v37  ;;  %v326_v51 = vmul.f32 %v1050_v2, %v303_v38  ;;  %v525_v37 = vld [vmem:[%s1126_s9 + $0x20] sm:$0xff]  ;;  %v535_v39 = vld [vmem:[%s1126_s9 + $0x70] sm:$0xff] }
  0x28   : > { %748 = vmatprep.mubr.msk.bf16.mxu1 %vm399_vm0, %v379_v44  ;;  %741 = vmatmul.mubr.msk.bf16.vlgmr.msra.gmra.mrb[0].mxu0 %vm399_vm0, %v376_v45  ;;  %v380_v54 = vpack.c.bf16 %v370_v46, %v369_v40  ;;  %v355_v55 = vadd.f32 %v1062_v3, %v332_v47  ;;  %v327_v56 = vmul.f32 %v1050_v2, %v304_v43  ;;  %v528_v40 = vld [vmem:[%s1126_s9 + $0x38] sm:$0xff]  ;;  %v533_v43 = vld [vmem:[%s1126_s9 + $0x60] sm:$0xff]  ;;  %v526_v44 = vld [vmem:[%s1126_s9 + $0x28] sm:$0xff] }
  0x29   : > { %v363_v57 = vmax.f32 %v347_v48, 0.0  ;;  %v364_v58 = vmax.f32 %v348_v49, 0.0  ;;  %v356_v59 = vadd.f32 %v1062_v3, %v333_v50  ;;  %v349_v60 = vadd.f32 %v1062_v3, %v326_v51  ;;  %v536_v48 = vld [vmem:[%s1126_s9 + $0x78] sm:$0xff] }
  0x2a   : > { %749 = vmatmul.mubr.msk.bf16.vlgmr.msra.gmra.mrb[0].mxu1 %vm399_vm0, %v380_v54  ;;  %v371_v61 = vmax.f32 %v355_v55, 0.0  ;;  %v350_v62 = vadd.f32 %v1062_v3, %v327_v56  ;;  %v334_v63 = vmul.f32 %v1050_v2, %v311_v52  ;;  %v335_v0 = vmul.f32 %v1050_v2, %v312_v53  ;;  %v534_v53 = vld [vmem:[%s1126_s9 + $0x68] sm:$0xff] }
  0x2b   : > { %v377_v1 = vpack.c.bf16 %v364_v58, %v363_v57  ;;  %v372_v4 = vmax.f32 %v356_v59, 0.0  ;;  %v365_v5 = vmax.f32 %v349_v60, 0.0 }
  0x2c   : > { %v366_v6 = vmax.f32 %v350_v62, 0.0  ;;  %v357_v7 = vadd.f32 %v1062_v3, %v334_v63  ;;  %v358_v8 = vadd.f32 %v1062_v3, %v335_v0  ;;  %v523_v3 = vld [vmem:[%s1126_s9 + $0x10] sm:$0xff]  ;;  %s931_s9 = smov [#allocation2]  }
  0x2d   : > { %744 = vmatprep.mubr.msk.bf16.mxu0 %vm399_vm0, %v377_v1  ;;  %v381_v9 = vpack.c.bf16 %v372_v4, %v371_v61  ;;  %s839_s10 = sshll.u32 %s931_s9, 4  ;;  %s840_s10 = int_to_ptr.vmem [resolvable:$false] %s839_s10 }
  0x2e   : > { %v378_v10 = vpack.c.bf16 %v366_v6, %v365_v5  ;;  %v373_v11 = vmax.f32 %v357_v7, 0.0  ;;  %v374_v12 = vmax.f32 %v358_v8, 0.0  ;;  %s841_s8 = scalar_lea.vmem %s840_s10, 4096  ;;  %p842_p4 = scmp.lt.s32.totalorder %s1171_s22, %s840_s10 }
  0x2f   : > { %752 = vmatprep.mubr.msk.bf16.mxu1 %vm399_vm0, %v381_v9  ;;  %p843_p5 = scmp.lt.s32.totalorder %s841_s8, %s835_s27 }
  0x30   : > { %745 = vmatmul.mubr.msk.bf16.gmra.mrb[4].mxu0 %vm399_vm0, %v378_v10  ;;  %v382_v2 = vpack.c.bf16 %v374_v12, %v373_v11 }
  0x31   : > { %p844_p6 = por %p843_p5, %p842_p4 }
  0x32   : > { %753 = vmatmul.mubr.msk.bf16.gmra.mrb[4].mxu1 %vm399_vm0, %v382_v2 }
  0x33   : > { %p845_p7 = pnand %p844_p6, %p838_p2 }
  0xfb   : > { %v742_v14 = vpop.f32.mrb[0].mxu0 }
  0xfc   : > { %v539_v17 = vadd.f32 %v742_v14, %v523_v3  ;;  %v458_v18 = vpop.f32.mrb[1].mxu0 }
  0xfd   : > { %v750_v21 = vpop.f32.mrb[0].mxu1  ;;  %v537_v22 = vadd.f32 %v521_v13, %v458_v18  ;;  %v743_v23 = vpop.f32.mrb[2].mxu0 }
  0xfe   : > { %555 = vst [vmem:[%s1137_s30 + $0x10] sm:$0xff] %v539_v17  ;;  %v547_v25 = vadd.f32 %v750_v21, %v531_v15  ;;  %v490_v26 = vpop.f32.mrb[1].mxu1  ;;  %v540_v27 = vadd.f32 %v743_v23, %v524_v16  ;;  %v461_v28 = vpop.f32.mrb[3].mxu0 }
  0xff   : > { %553 = vst [vmem:[%s1137_s30] sm:$0xff] %v537_v22  ;;  %v545_v30 = vadd.f32 %v529_v19, %v490_v26  ;;  %v751_v31 = vpop.f32.mrb[2].mxu1  ;;  %v538_v32 = vadd.f32 %v522_v20, %v461_v28 }
 0x100   : > { %563 = vst [vmem:[%s1137_s30 + $0x50] sm:$0xff] %v547_v25  ;;  %556 = vst [vmem:[%s1137_s30 + $0x18] sm:$0xff] %v540_v27  ;;  %v548_v33 = vadd.f32 %v751_v31, %v532_v24  ;;  %v493_v34 = vpop.f32.mrb[3].mxu1 }
 0x101   : > { %561 = vst [vmem:[%s1137_s30 + $0x40] sm:$0xff] %v545_v30  ;;  %554 = vst [vmem:[%s1137_s30 + $0x8] sm:$0xff] %v538_v32  ;;  %v546_v35 = vadd.f32 %v530_v29, %v493_v34 }
 0x102   : > { %564 = vst [vmem:[%s1137_s30 + $0x58] sm:$0xff] %v548_v33 }
 0x103   : > { %562 = vst [vmem:[%s1137_s30 + $0x48] sm:$0xff] %v546_v35  ;;  %v746_v38 = vpop.f32.mrb[4].mxu0 }
 0x104   : > { %v543_v41 = vadd.f32 %v746_v38, %v527_v36  ;;  %v474_v42 = vpop.f32.mrb[5].mxu0 }
 0x105   : > { %v754_v45 = vpop.f32.mrb[4].mxu1  ;;  %v541_v46 = vadd.f32 %v525_v37, %v474_v42  ;;  %v747_v47 = vpop.f32.mrb[6].mxu0 }
 0x106   : > { %559 = vst [vmem:[%s1137_s30 + $0x30] sm:$0xff] %v543_v41  ;;  %v551_v49 = vadd.f32 %v754_v45, %v535_v39  ;;  %v506_v50 = vpop.f32.mrb[5].mxu1  ;;  %v544_v51 = vadd.f32 %v747_v47, %v528_v40  ;;  %v477_v52 = vpop.f32.mrb[7].mxu0 }
 0x107   : > { %557 = vst [vmem:[%s1137_s30 + $0x20] sm:$0xff] %v541_v46  ;;  %v549_v54 = vadd.f32 %v533_v43, %v506_v50  ;;  %v755_v55 = vpop.f32.mrb[6].mxu1  ;;  %v542_v56 = vadd.f32 %v526_v44, %v477_v52 }
 0x108   : > { %567 = vst [vmem:[%s1137_s30 + $0x70] sm:$0xff] %v551_v49  ;;  %560 = vst [vmem:[%s1137_s30 + $0x38] sm:$0xff] %v544_v51  ;;  %v552_v57 = vadd.f32 %v755_v55, %v536_v48  ;;  %v509_v58 = vpop.f32.mrb[7].mxu1 }
 0x109   : > { %565 = vst [vmem:[%s1137_s30 + $0x60] sm:$0xff] %v549_v54  ;;  %558 = vst [vmem:[%s1137_s30 + $0x28] sm:$0xff] %v542_v56  ;;  %v550_v59 = vadd.f32 %v534_v53, %v509_v58 }
 0x10a   : > { %568 = vst [vmem:[%s1137_s30 + $0x78] sm:$0xff] %v552_v57 }
 0x10b   : > { %566 = vst [vmem:[%s1137_s30 + $0x68] sm:$0xff] %v550_v59 }
 0x10c   : > { %848 = shalt.err (!%p845_p7)
}
 0x10d   : > { %s849_s17 = scalar_lea.hbm %s1169_s14, 2048  ;;  %s853_s13 = scalar_lea.hbm %s1236_s5, 8192 }
 0x10e   : > { %p850_p9 = scmp.ne.s32.totalorder %s1169_s14, %s849_s17  ;;  %p854_p12 = scmp.lt.u32.totalorder %s1169_s14, %s1236_s5 }
 0x10f   : > { %p855_p13 = scmp.lt.u32.totalorder %s853_s13, %s849_s17  ;;  %p857_p1 = scmp.lt.u32.totalorder %s849_s17, %s1169_s14 }
 0x110   : > { %p851_p10 = pnand %p850_p9, %p1015_p3 }
 0x111   : > { %p856_p0 = por %p855_p13, %p854_p12 }
 0x112   : > { %p852_p11 = pneg %p851_p10 }
 0x113   : > { %p858_p2 = por %p857_p1, %p856_p0 }
 0x115   : > { %p859_p4 = pnand %p858_p2, %p852_p11 }
 0x117   : > { %862 = shalt.err (!%p859_p4)
}
 0x118   : > { %s932_s16 = smov 128   ;;  %s933_s27 = smov 8  }
 0x119   : > { %760 = dma.vmem_to_hbm [thread:$0]  (%p1015_p3), %s1171_s22, 2048, %s1169_s14, %s1179_s26, %s932_s16, %s932_s16, %s933_s27  }
 0x11a PF: > { %p766_p5 = scmp.ge.s32.totalorder %s929_s25, 2  ;;  %s601_s9 = sand.u32 1, %s901_s18  }
 0x11b   : > { %s602_s10 = scalar_lea.sflag [#allocation3], %s601_s9 }
 0x11c   : > { %p763_p6 = pnand %p766_p5, %p1024_p8 }
 0x11e   : > { %896 = dma.done.wait (!%p763_p6), %s602_s10, 2048  }
 0x11f   : > { %898 = vsyncadd (!%p763_p6), %s602_s10, 4294965248  ;;  %s18_s25 = sadd.s32 1, %s929_s25   ;;  %s1239_s18 = smov %s905_s19 }
 0x120   : > { %p15_p7 = scmp.ge.s32.totalorder %s18_s25, 6   ;;  %s1240_s19 = smov %s909_s20 }
 0x121   : > { %s1241_s20 = smov %s1033_s11  ;;  %s1242_s21 = smov %s921_s23 }
 0x122   : > { %s1243_s22 = smov %s925_s24  ;;  %s1244_s23 = smov %s1247_s28 }
 0x123   : > { %s1245_s24 = smov %s1251_s29  ;;  %17 = sbr.rel (!%p15_p7) target bundleno = 5 (0x5), region = 78 }
 0x12a   :  { %607 = vsyncpa [#allocation3], 1 }
 0x12b   :  { %609 = vsyncpa [#allocation3 + $0x1], 1 }

// kernel: preact_bottleneck_block.4
= control target key start
LH: loop header
LB: loop body
LE: loop exit
PB: predicated region body
PF: predicated region fallthrough
CT: control target
= control target key end

     0   :  { %s6414_s15 = smov 0   ;;  %s7711_s0 = inlined_call_operand.vmem [shape: f32[2,16,16,32], index: 0, kind: input, shape index: {}]   ;;  %s7712_s1 = inlined_call_operand.vmem [shape: f32[1,32], index: 1, kind: input, shape index: {}]   ;;  %s7713_s2 = inlined_call_operand.vmem [shape: f32[1,32], index: 2, kind: input, shape index: {}]   ;;  %s7714_s3 = inlined_call_operand.vmem [shape: bf16[3,3,32,32], index: 3, kind: input, shape index: {}]   ;;  %s7715_s4 = inlined_call_operand.vmem [shape: f32[2,16,16,32], index: 4, kind: output, shape index: {}]  }
   0x1 LB: > { %s5682_s16 = sadd.s32 4294967295, %s6385_s15   ;;  %p5686_p0 = scmp.ge.s32.totalorder %s6385_s15, 1  ;;  %s6385_s15 = sphi %s6414_s15, %s14_s15  }
   0x2   : > { %p162_p1 = scmp.lt.s32.totalorder %s6385_s15, 3 }
   0x4   : > { %p163_p2 = pnand %p5686_p0, %p162_p1 }
   0x5   : > { %v6359_v0 = vld [vmem:[%s7714_s3] sm:$0xff] (!%p163_p2)   ;;  %p188_p3 = scmp.lt.s32.totalorder (!%p163_p2), %s5682_s16, 1  ;;  %v6360_v1 = vld [vmem:[%s7714_s3 + $0x8] sm:$0xff] (!%p163_p2)   ;;  %vm341_vm0 = vcmask (!%p163_p2), 261120   ;;  %vm348_vm1 = vcmask (!%p163_p2), 257024   ;;  %vm365_vm2 = vcmask (!%p163_p2), 261124  }
   0x6   : > { %166 = sbr.rel (%p163_p2) target bundleno = 613 (0x265), region = 36  ;;  %6345 = vmatprep.subr.bf16.mxu1 (!%p163_p2), %v6359_v0  ;;  %6021 = vmatprep.subr.bf16.mxu0 (!%p163_p2), %v6359_v0  ;;  %v6433_v2 = vld [vmem:[%s7712_s1] ss:$0 sm:$0xff] (!%p163_p2)  ;;  %v6387_v3 = vmov (!%p163_p2), 0   ;;  %v6480_v5 = vld [vmem:[%s7714_s3 + $0x10] sm:$0xff] (!%p163_p2)   ;;  %vm1232_vm4 = vcmask (!%p163_p2), 1043456  }
   0x7   : > { %6347 = vmatpush3.bf16.msra.mxu1 (!%p163_p2), %v6359_v0  ;;  %342 = vst.msk [vmem:[#allocation2] sm:$0xff] (!%p163_p2), %vm341_vm0, %v6387_v3  ;;  %343 = vst.msk [vmem:[#allocation2 + $0x8] sm:$0xff] (!%p163_p2), %vm341_vm0, %v6387_v3  ;;  %6022 = vmatpush3.bf16.msra.mxu0 (!%p163_p2), %v6359_v0  ;;  %v6443_v4 = vld [vmem:[%s7713_s2] ss:$0 sm:$0xff] (!%p163_p2)  ;;  %vm578_vm3 = vsmask.f32 (!%p163_p2), 4352 }
   0x8   : > { %345 = vst.msk [vmem:[#allocation2 + $0x110] sm:$0xff] (!%p163_p2), %vm341_vm0, %v6387_v3  ;;  %346 = vst.msk [vmem:[#allocation2 + $0x118] sm:$0xff] (!%p163_p2), %vm341_vm0, %v6387_v3  ;;  %6346 = vmatprep.subr.bf16.mxu1 (!%p163_p2), %v6360_v1  ;;  %6023 = vmatprep.subr.bf16.mxu0 (!%p163_p2), %v6360_v1  ;;  %v6492_v6 = vld [vmem:[%s7714_s3 + $0x20] sm:$0xff] (!%p163_p2)   ;;  %vm1630_vm5 = vsmask.f32 (!%p163_p2), 3328 }
   0x9   : > { %356 = vst.msk [vmem:[#allocation2 + $0x80] sm:$0xf] (!%p163_p2), %vm348_vm1, %v6387_v3  ;;  %349 = vst.msk [vmem:[#allocation2 + $0x10] sm:$0xf] (!%p163_p2), %vm348_vm1, %v6387_v3 }
   0xa   : > { %350 = vst.msk [vmem:[#allocation2 + $0x20] sm:$0xf] (!%p163_p2), %vm348_vm1, %v6387_v3  ;;  %351 = vst.msk [vmem:[#allocation2 + $0x30] sm:$0xf] (!%p163_p2), %vm348_vm1, %v6387_v3 }
   0xb   : > { %352 = vst.msk [vmem:[#allocation2 + $0x40] sm:$0xf] (!%p163_p2), %vm348_vm1, %v6387_v3  ;;  %353 = vst.msk [vmem:[#allocation2 + $0x50] sm:$0xf] (!%p163_p2), %vm348_vm1, %v6387_v3  ;;  %6348 = vmatpush3.bf16.msra.mxu1 (!%p163_p2), %v6360_v1  ;;  %6024 = vmatpush3.bf16.msra.mxu0 (!%p163_p2), %v6360_v1 }
   0xc   : > { %354 = vst.msk [vmem:[#allocation2 + $0x60] sm:$0xf] (!%p163_p2), %vm348_vm1, %v6387_v3  ;;  %355 = vst.msk [vmem:[#allocation2 + $0x70] sm:$0xf] (!%p163_p2), %vm348_vm1, %v6387_v3  ;;  %6057 = vmatprep.subr.bf16.mxu1 (!%p163_p2), %v6480_v5  ;;  %6093 = vmatprep.subr.bf16.mxu0 (!%p163_p2), %v6492_v6 }
   0xd   : > { %s7717_s16 = smov (!%p188_p3, %s5682_s16), 1  ;;  %357 = vst.msk [vmem:[#allocation2 + $0x90] sm:$0xf] %vm348_vm1, %v6387_v3  ;;  %358 = vst.msk [vmem:[#allocation2 + $0xa0] sm:$0xf] %vm348_vm1, %v6387_v3 }
   0xe   : > { %s5857_s23 = sshll.u32 %s7717_s16, 8  ;;  %359 = vst.msk [vmem:[#allocation2 + $0xb0] sm:$0xf] %vm348_vm1, %v6387_v3  ;;  %360 = vst.msk [vmem:[#allocation2 + $0xc0] sm:$0xf] %vm348_vm1, %v6387_v3 }
   0xf   : > { %361 = vst.msk [vmem:[#allocation2 + $0xd0] sm:$0xf] %vm348_vm1, %v6387_v3  ;;  %362 = vst.msk [vmem:[#allocation2 + $0xe0] sm:$0xf] %vm348_vm1, %v6387_v3  ;;  %s6487_s30 = scalar_lea.vmem %s7711_s0, %s5857_s23  ;;  %v546_v26 = vld [vmem:[#allocation2] sm:$0xf8]  ;;  %s7590_s20 = scalar_lea.vmem %s7715_s4, %s5857_s23 }
  0x10   : > { %363 = vst.msk [vmem:[#allocation2 + $0xf0] sm:$0xf] %vm348_vm1, %v6387_v3  ;;  %364 = vst.msk [vmem:[#allocation2 + $0x100] sm:$0xf] %vm348_vm1, %v6387_v3  ;;  %v213_v7 = vld [vmem:[%s6487_s30 + $0x70] sm:$0xff]  ;;  %v214_v8 = vld [vmem:[%s6487_s30 + $0x78] sm:$0xff] }
  0x11   : > { %366 = vst.msk [vmem:[#allocation2 + $0x18] sm:$0xf0] %vm365_vm2, %v6387_v3  ;;  %367 = vst.msk [vmem:[#allocation2 + $0x28] sm:$0xf0] %vm365_vm2, %v6387_v3  ;;  %v215_v9 = vld [vmem:[%s6487_s30 + $0x80] sm:$0xff]  ;;  %v252_v10 = vmul.f32 %v6433_v2, %v213_v7  ;;  %v253_v11 = vmul.f32 %v6433_v2, %v214_v8  ;;  %v216_v12 = vld [vmem:[%s6487_s30 + $0x88] sm:$0xff] }
  0x12   : > { %368 = vst.msk [vmem:[#allocation2 + $0x38] sm:$0xf0] %vm365_vm2, %v6387_v3  ;;  %369 = vst.msk [vmem:[#allocation2 + $0x48] sm:$0xf0] %vm365_vm2, %v6387_v3  ;;  %v254_v13 = vmul.f32 %v6433_v2, %v215_v9  ;;  %v199_v14 = vld [vmem:[%s6487_s30] sm:$0xff]  ;;  %v200_v15 = vld [vmem:[%s6487_s30 + $0x8] sm:$0xff]  ;;  %v255_v16 = vmul.f32 %v6433_v2, %v216_v12 }
  0x13   : > { %370 = vst.msk [vmem:[#allocation2 + $0x58] sm:$0xf0] %vm365_vm2, %v6387_v3  ;;  %371 = vst.msk [vmem:[#allocation2 + $0x68] sm:$0xf0] %vm365_vm2, %v6387_v3  ;;  %v238_v17 = vmul.f32 %v6433_v2, %v199_v14  ;;  %v239_v18 = vmul.f32 %v6433_v2, %v200_v15  ;;  %v217_v19 = vld [vmem:[%s6487_s30 + $0x90] sm:$0xff]  ;;  %v218_v20 = vld [vmem:[%s6487_s30 + $0x98] sm:$0xff]  ;;  %v291_v21 = vadd.f32 %v6443_v4, %v252_v10 }
  0x14   : > { %372 = vst.msk [vmem:[#allocation2 + $0x78] sm:$0xf0] %vm365_vm2, %v6387_v3  ;;  %373 = vst.msk [vmem:[#allocation2 + $0x88] sm:$0xf0] %vm365_vm2, %v6387_v3  ;;  %v292_v22 = vadd.f32 %v6443_v4, %v253_v11  ;;  %v293_v23 = vadd.f32 %v6443_v4, %v254_v13  ;;  %v256_v24 = vmul.f32 %v6433_v2, %v217_v19  ;;  %v547_v27 = vld [vmem:[#allocation2 + $0x8] sm:$0xf] }
  0x15   : > { %374 = vst.msk [vmem:[#allocation2 + $0x98] sm:$0xf0] %vm365_vm2, %v6387_v3  ;;  %375 = vst.msk [vmem:[#allocation2 + $0xa8] sm:$0xf0] %vm365_vm2, %v6387_v3  ;;  %v294_v25 = vadd.f32 %v6443_v4, %v255_v16  ;;  %v277_v28 = vadd.f32 %v6443_v4, %v238_v17  ;;  %v278_v29 = vadd.f32 %v6443_v4, %v239_v18  ;;  %v323_v31 = vmax.f32 %v291_v21, 0.0  ;;  %v219_v43 = vld [vmem:[%s6487_s30 + $0xa0] sm:$0xff] }
  0x16   : > { %376 = vst.msk [vmem:[#allocation2 + $0xb8] sm:$0xf0] %vm365_vm2, %v6387_v3  ;;  %377 = vst.msk [vmem:[#allocation2 + $0xc8] sm:$0xf0] %vm365_vm2, %v6387_v3  ;;  %v257_v30 = vmul.f32 %v6433_v2, %v218_v20  ;;  %v324_v32 = vmax.f32 %v292_v22, 0.0  ;;  %v325_v33 = vmax.f32 %v293_v23, 0.0  ;;  %v295_v51 = vadd.f32 %v6443_v4, %v256_v24 }
  0x17   : > { %378 = vst.msk [vmem:[#allocation2 + $0xd8] sm:$0xf0] %vm365_vm2, %v6387_v3  ;;  %379 = vst.msk [vmem:[#allocation2 + $0xe8] sm:$0xf0] %vm365_vm2, %v6387_v3  ;;  %v580_v34 = vshrl.u32 %v546_v26, 16  ;;  %v326_v35 = vmax.f32 %v294_v25, 0.0  ;;  %v258_v58 = vmul.f32 %v6433_v2, %v219_v43 }
  0x18   : > { %380 = vst.msk [vmem:[#allocation2 + $0xf8] sm:$0xf0] %vm365_vm2, %v6387_v3  ;;  %381 = vst.msk [vmem:[#allocation2 + $0x108] sm:$0xf0] %vm365_vm2, %v6387_v3  ;;  %v583_v36 = vshll.u32 %v546_v26, 16  ;;  %v588_v37 = vshrl.u32 %v547_v27, 16  ;;  %v389_v39 = vpack.c.bf16 %v324_v32, %v323_v31  ;;  %v296_v52 = vadd.f32 %v6443_v4, %v257_v30 }
  0x19   : > { %v591_v38 = vshll.u32 %v547_v27, 16  ;;  %v582_v40 = vrot.slane %v580_v34, 3  ;;  %v309_v41 = vmax.f32 %v277_v28, 0.0  ;;  %v310_v42 = vmax.f32 %v278_v29, 0.0  ;;  %v220_v48 = vld [vmem:[%s6487_s30 + $0xa8] sm:$0xff]  ;;  %v201_v53 = vld [vmem:[%s6487_s30 + $0x10] sm:$0xff] }
  0x1a   : > { %v390_v44 = vpack.c.bf16 %v326_v35, %v325_v33  ;;  %v585_v45 = vrot.slane %v583_v36, 4  ;;  %v590_v46 = vrot.slane %v588_v37, 3  ;;  %v421_v49 = vrot.slane %v389_v39, 4  ;;  %v202_v54 = vld [vmem:[%s6487_s30 + $0x18] sm:$0xff]  ;;  %v203_v59 = vld [vmem:[%s6487_s30 + $0x20] sm:$0xff]  ;;  %v204_v60 = vld [vmem:[%s6487_s30 + $0x28] sm:$0xff] }
  0x1b   : > { %v593_v47 = vrot.slane %v591_v38, 4  ;;  %v382_v50 = vpack.c.bf16 %v310_v42, %v309_v41  ;;  %v327_v62 = vmax.f32 %v295_v51, 0.0  ;;  %v328_v63 = vmax.f32 %v296_v52, 0.0  ;;  %v221_v1 = vld [vmem:[%s6487_s30 + $0xb0] sm:$0xff]  ;;  %v222_v14 = vld [vmem:[%s6487_s30 + $0xb8] sm:$0xff]  ;;  %v223_v19 = vld [vmem:[%s6487_s30 + $0xc0] sm:$0xff] }
  0x1c   : > { %v422_v55 = vrot.slane %v390_v44, 4  ;;  %v586_v56 = vor.u32 %v585_v45, %v582_v40  ;;  %460 = vst.msk [vmem:[#allocation2 + $0x80] sm:$0xf0] %vm365_vm2, %v421_v49  ;;  %v259_v0 = vmul.f32 %v6433_v2, %v220_v48  ;;  %v297_v7 = vadd.f32 %v6443_v4, %v258_v58  ;;  %v224_v24 = vld [vmem:[%s6487_s30 + $0xc8] sm:$0xff] }
  0x1d   : > { %v594_v57 = vor.u32 %v593_v47, %v590_v46  ;;  %461 = vst.msk [vmem:[#allocation2 + $0x88] sm:$0xf] %vm348_vm1, %v421_v49  ;;  %v414_v61 = vrot.slane %v382_v50, 4  ;;  %v240_v8 = vmul.f32 %v6433_v2, %v201_v53  ;;  %v241_v9 = vmul.f32 %v6433_v2, %v202_v54 }
  0x1e   : > { %462 = vst.msk [vmem:[#allocation2 + $0x90] sm:$0xf0] %vm365_vm2, %v422_v55  ;;  %v391_v10 = vpack.c.bf16 %v328_v63, %v327_v62  ;;  %v298_v11 = vadd.f32 %v6443_v4, %v259_v0  ;;  %v242_v12 = vmul.f32 %v6433_v2, %v203_v59  ;;  %v243_v13 = vmul.f32 %v6433_v2, %v204_v60 }
  0x1f   : > { %463 = vst.msk [vmem:[#allocation2 + $0x98] sm:$0xf] %vm348_vm1, %v422_v55  ;;  %v595_v3 = vsel %vm578_vm3, %v586_v56, %v594_v57  ;;  %447 = vst.msk [vmem:[#allocation2 + $0x18] sm:$0xf] %vm348_vm1, %v414_v61  ;;  %v329_v15 = vmax.f32 %v297_v7, 0.0  ;;  %v279_v16 = vadd.f32 %v6443_v4, %v240_v8  ;;  %v280_v17 = vadd.f32 %v6443_v4, %v241_v9 }
  0x20   : > { %6025 = vmatprep.mubr.msk.bf16.mxu0 %vm341_vm0, %v595_v3  ;;  %446 = vst.msk [vmem:[#allocation2 + $0x10] sm:$0xf0] %vm365_vm2, %v414_v61  ;;  %v260_v18 = vmul.f32 %v6433_v2, %v221_v1  ;;  %v423_v20 = vrot.slane %v391_v10, 4  ;;  %v330_v21 = vmax.f32 %v298_v11, 0.0  ;;  %v281_v22 = vadd.f32 %v6443_v4, %v242_v12 }
  0x21   : > { %v282_v23 = vadd.f32 %v6443_v4, %v243_v13  ;;  %v311_v25 = vmax.f32 %v279_v16, 0.0  ;;  %v312_v26 = vmax.f32 %v280_v17, 0.0  ;;  %v261_v27 = vmul.f32 %v6433_v2, %v222_v14 }
  0x22   : > { %v6553_v28 = vadd.f32 %v6443_v4, %v260_v18  ;;  %464 = vst.msk [vmem:[#allocation2 + $0xa0] sm:$0xf0] %vm365_vm2, %v423_v20  ;;  %v6557_v29 = vpack.c.bf16 %v330_v21, %v329_v15  ;;  %v313_v30 = vmax.f32 %v281_v22, 0.0  ;;  %v262_v32 = vmul.f32 %v6433_v2, %v223_v19  ;;  %v6363_v21 = vld [vmem:[%s7714_s3 + $0x18] sm:$0xff]  }
  0x23   : > { %465 = vst.msk [vmem:[#allocation2 + $0xa8] sm:$0xf] %vm348_vm1, %v423_v20  ;;  %v314_v31 = vmax.f32 %v282_v23, 0.0  ;;  %v562_v33 = vld [vmem:[#allocation2 + $0x80] sm:$0xf8]  ;;  %v6560_v35 = vpack.c.bf16 %v312_v26, %v311_v25  ;;  %v6563_v36 = vadd.f32 %v6443_v4, %v261_v27  ;;  %v6567_v38 = vmul.f32 %v6433_v2, %v224_v24  ;;  %v205_v26 = vld [vmem:[%s6487_s30 + $0x30] sm:$0xff] }
  0x24   : > { %v563_v34 = vld [vmem:[#allocation2 + $0x88] sm:$0xf]  ;;  %v331_v37 = vmax.f32 %v6553_v28, 0.0  ;;  %v716_v39 = vshrl.u32 %v562_v33, 16  ;;  %v719_v40 = vshll.u32 %v562_v33, 16  ;;  %v6572_v49 = vadd.f32 %v6443_v4, %v262_v32  ;;  %v206_v27 = vld [vmem:[%s6487_s30 + $0x38] sm:$0xff] }
  0x25   : > { %v724_v41 = vshrl.u32 %v563_v34, 16  ;;  %v727_v42 = vshll.u32 %v563_v34, 16  ;;  %v564_v43 = vld [vmem:[#allocation2 + $0x90] sm:$0xf8]  ;;  %v6569_v48 = vpack.c.bf16 %v314_v31, %v313_v30  ;;  %v424_v25 = vrot.slane %v6557_v29, 4  ;;  %v207_v34 = vld [vmem:[%s6487_s30 + $0x40] sm:$0xff] }
  0x26   : > { %v565_v44 = vld [vmem:[#allocation2 + $0x98] sm:$0xf]  ;;  %v733_v45 = vshrl.u32 %v564_v43, 16  ;;  %v736_v46 = vshll.u32 %v564_v43, 16  ;;  %v718_v50 = vrot.slane %v716_v39, 3  ;;  %v721_v51 = vrot.slane %v719_v40, 4 }
  0x27   : > { %v548_v47 = vld [vmem:[#allocation2 + $0x10] sm:$0xf8]  ;;  %v726_v52 = vrot.slane %v724_v41, 3  ;;  %v729_v53 = vrot.slane %v727_v42, 4  ;;  %v549_v54 = vld [vmem:[#allocation2 + $0x18] sm:$0xf]  ;;  %v302_v41 = vadd.f32 %v6443_v4, %v6567_v38 }
  0x28   : > { %v735_v55 = vrot.slane %v733_v45, 3  ;;  %v738_v56 = vrot.slane %v736_v46, 4  ;;  %v741_v57 = vshrl.u32 %v565_v44, 16  ;;  %v744_v58 = vshll.u32 %v565_v44, 16  ;;  %466 = vst.msk [vmem:[#allocation2 + $0xb0] sm:$0xf0] %vm365_vm2, %v424_v25 }
  0x29   : > { %v722_v59 = vor.u32 %v721_v51, %v718_v50  ;;  %v730_v60 = vor.u32 %v729_v53, %v726_v52  ;;  %v597_v61 = vshrl.u32 %v548_v47, 16  ;;  %v600_v62 = vshll.u32 %v548_v47, 16  ;;  %v566_v7 = vld [vmem:[#allocation2 + $0xa0] sm:$0xf8]  ;;  %467 = vst.msk [vmem:[#allocation2 + $0xb8] sm:$0xf] %vm348_vm1, %v424_v25 }
  0x2a   : > { %v739_v63 = vor.u32 %v738_v56, %v735_v55  ;;  %v743_v0 = vrot.slane %v741_v57, 3  ;;  %v746_v1 = vrot.slane %v744_v58, 4  ;;  %v605_v3 = vshrl.u32 %v549_v54, 16  ;;  %v567_v12 = vld [vmem:[#allocation2 + $0xa8] sm:$0xf]  ;;  %v225_v43 = vld [vmem:[%s6487_s30 + $0xd0] sm:$0xff] }
  0x2b   : > { %v731_v8 = vsel %vm578_vm3, %v722_v59, %v730_v60  ;;  %v599_v9 = vrot.slane %v597_v61, 3  ;;  %v602_v10 = vrot.slane %v600_v62, 4  ;;  %v608_v11 = vshll.u32 %v549_v54, 16  ;;  %v208_v42 = vld [vmem:[%s6487_s30 + $0x48] sm:$0xff]  ;;  %v6606_v38 = vld [vmem:[%s7714_s3 + $0x30] sm:$0xff]   ;;  %v226_v50 = vld [vmem:[%s6487_s30 + $0xd8] sm:$0xff] }
  0x2c   : > { %6041 = vmatprep.mubr.msk.bf16.mxu1 %vm341_vm0, %v731_v8  ;;  %v747_v13 = vor.u32 %v746_v1, %v743_v0  ;;  %v607_v14 = vrot.slane %v605_v3, 3  ;;  %v750_v15 = vshrl.u32 %v566_v7, 16  ;;  %v753_v16 = vshll.u32 %v566_v7, 16  ;;  %v227_v55 = vld [vmem:[%s6487_s30 + $0xe0] sm:$0xff]  ;;  %v228_v56 = vld [vmem:[%s6487_s30 + $0xe8] sm:$0xff] }
  0x2d   : > { %v603_v17 = vor.u32 %v602_v10, %v599_v9  ;;  %v610_v18 = vrot.slane %v608_v11, 4  ;;  %v758_v19 = vshrl.u32 %v567_v12, 16  ;;  %v761_v20 = vshll.u32 %v567_v12, 16 }
  0x2e   : > { %v748_v22 = vsel %vm578_vm3, %v739_v63, %v747_v13  ;;  %v752_v23 = vrot.slane %v750_v15, 3  ;;  %v755_v24 = vrot.slane %v753_v16, 4  ;;  %v415_v33 = vrot.slane %v6560_v35, 4 }
  0x2f   : > { %6042 = vmatmul.mubr.msk.bf16.vlgmr.msra.gmra.mrb[0].mxu1 %vm341_vm0, %v748_v22  ;;  %v611_v30 = vor.u32 %v610_v18, %v607_v14  ;;  %v760_v31 = vrot.slane %v758_v19, 3  ;;  %v763_v32 = vrot.slane %v761_v20, 4  ;;  %v416_v29 = vrot.slane %v6569_v48, 4  ;;  %v568_v7 = vld [vmem:[#allocation2 + $0xb0] sm:$0xf8] }
  0x30   : > { %6058 = vmatpush3.bf16.msra.mxu1 %v6480_v5  ;;  %v756_v39 = vor.u32 %v755_v24, %v752_v23  ;;  %v332_v40 = vmax.f32 %v6563_v36, 0.0  ;;  %448 = vst.msk [vmem:[#allocation2 + $0x20] sm:$0xf0] %vm365_vm2, %v415_v33  ;;  %v333_v5 = vmax.f32 %v6572_v49, 0.0  ;;  %v244_v45 = vmul.f32 %v6433_v2, %v205_v26  ;;  %v6364_v36 = vld [vmem:[%s7714_s3 + $0x28] sm:$0xff]  }
  0x31   : > { %v612_v44 = vsel %vm578_vm3, %v603_v17, %v611_v30  ;;  %v764_v35 = vor.u32 %v763_v32, %v760_v31  ;;  %449 = vst.msk [vmem:[#allocation2 + $0x28] sm:$0xf] %vm348_vm1, %v415_v33  ;;  %6059 = vmatprep.subr.bf16.mxu1 %v6363_v21  ;;  %451 = vst.msk [vmem:[#allocation2 + $0x38] sm:$0xf] %vm348_vm1, %v416_v29  ;;  %v334_v47 = vmax.f32 %v302_v41, 0.0  ;;  %v767_v13 = vshrl.u32 %v568_v7, 16 }
  0x32   : > { %6026 = vmatmul.mubr.msk.bf16.vlgmr.msra.gmra.mrb[0].mxu0 %vm341_vm0, %v612_v44  ;;  %450 = vst.msk [vmem:[#allocation2 + $0x30] sm:$0xf0] %vm365_vm2, %v416_v29  ;;  %v393_v46 = vpack.c.bf16 %v332_v40, %v331_v37  ;;  %v245_v48 = vmul.f32 %v6433_v2, %v206_v27  ;;  %v246_v49 = vmul.f32 %v6433_v2, %v207_v34  ;;  %v569_v8 = vld [vmem:[#allocation2 + $0xb8] sm:$0xf]  ;;  %v770_v14 = vshll.u32 %v568_v7, 16 }
  0x33   : > { %v765_v51 = vsel %vm578_vm3, %v756_v39, %v764_v35  ;;  %6094 = vmatpush3.bf16.msra.mxu0 %v6492_v6  ;;  %v283_v52 = vadd.f32 %v6443_v4, %v244_v45  ;;  %v247_v53 = vmul.f32 %v6433_v2, %v208_v42  ;;  %v264_v54 = vmul.f32 %v6433_v2, %v225_v43  ;;  %v6629_v6 = vld [vmem:[%s7714_s3 + $0x40] sm:$0xff]  }
  0x34   : > { %6045 = vmatprep.mubr.msk.bf16.mxu1 %vm341_vm0, %v765_v51  ;;  %v425_v28 = vrot.slane %v393_v46, 4  ;;  %v394_v37 = vpack.c.bf16 %v334_v47, %v333_v5  ;;  %6060 = vmatpush3.bf16.msra.mxu1 %v6363_v21  ;;  %v284_v57 = vadd.f32 %v6443_v4, %v245_v48  ;;  %v285_v58 = vadd.f32 %v6443_v4, %v246_v49 }
  0x35   : > { %v315_v59 = vmax.f32 %v283_v52, 0.0  ;;  %v286_v60 = vadd.f32 %v6443_v4, %v247_v53  ;;  %v265_v61 = vmul.f32 %v6433_v2, %v226_v50  ;;  %v6634_v62 = vadd.f32 %v6443_v4, %v264_v54  ;;  %6095 = vmatprep.subr.bf16.mxu0 %v6364_v36  ;;  %6129 = vmatprep.subr.bf16.mxu1 %v6606_v38 }
  0x36   : > { %468 = vst.msk [vmem:[#allocation2 + $0xc0] sm:$0xf0] %vm365_vm2, %v425_v28  ;;  %v426_v63 = vrot.slane %v394_v37, 4  ;;  %v316_v0 = vmax.f32 %v284_v57, 0.0  ;;  %v317_v1 = vmax.f32 %v285_v58, 0.0  ;;  %v6640_v3 = vmul.f32 %v6433_v2, %v227_v55 }
  0x37   : > { %469 = vst.msk [vmem:[#allocation2 + $0xc8] sm:$0xf] %vm348_vm1, %v425_v28  ;;  %v318_v9 = vmax.f32 %v286_v60, 0.0  ;;  %v6643_v10 = vadd.f32 %v6443_v4, %v265_v61  ;;  %v335_v11 = vmax.f32 %v6634_v62, 0.0  ;;  %v6647_v12 = vmul.f32 %v6433_v2, %v228_v56  ;;  %6096 = vmatpush3.bf16.msra.mxu0 %v6364_v36  ;;  %v550_v17 = vld [vmem:[#allocation2 + $0x20] sm:$0xf8] }
  0x38   : > { %v775_v15 = vshrl.u32 %v569_v8, 16  ;;  %v778_v16 = vshll.u32 %v569_v8, 16  ;;  %470 = vst.msk [vmem:[#allocation2 + $0xd0] sm:$0xf0] %vm365_vm2, %v426_v63  ;;  %6165 = vmatprep.subr.bf16.mxu0 %v6629_v6  ;;  %v551_v18 = vld [vmem:[#allocation2 + $0x28] sm:$0xf]  ;;  %v6652_v22 = vpack.c.bf16 %v316_v0, %v315_v59 }
  0x39   : > { %471 = vst.msk [vmem:[#allocation2 + $0xd8] sm:$0xf] %vm348_vm1, %v426_v63  ;;  %v614_v19 = vshrl.u32 %v550_v17, 16  ;;  %v617_v20 = vshll.u32 %v550_v17, 16  ;;  %v552_v21 = vld [vmem:[#allocation2 + $0x30] sm:$0xf8]  ;;  %v6654_v23 = vpack.c.bf16 %v318_v9, %v317_v1 }
  0x3a   : > { %v769_v24 = vrot.slane %v767_v13, 3  ;;  %v772_v25 = vrot.slane %v770_v14, 4  ;;  %v777_v26 = vrot.slane %v775_v15, 3  ;;  %v780_v27 = vrot.slane %v778_v16, 4  ;;  %v553_v30 = vld [vmem:[#allocation2 + $0x38] sm:$0xf] }
  0x3b   : > { %v616_v31 = vrot.slane %v614_v19, 3  ;;  %v619_v32 = vrot.slane %v617_v20, 4  ;;  %v622_v33 = vshrl.u32 %v551_v18, 16  ;;  %v625_v34 = vshll.u32 %v551_v18, 16  ;;  %v209_v18 = vld [vmem:[%s6487_s30 + $0x50] sm:$0xff]  ;;  %v210_v19 = vld [vmem:[%s6487_s30 + $0x58] sm:$0xff] }
  0x3c   : > { %v773_v39 = vor.u32 %v772_v25, %v769_v24  ;;  %v781_v29 = vor.u32 %v780_v27, %v777_v26  ;;  %v631_v40 = vshrl.u32 %v552_v21, 16  ;;  %v634_v41 = vshll.u32 %v552_v21, 16  ;;  %v211_v26 = vld [vmem:[%s6487_s30 + $0x60] sm:$0xff]  ;;  %v212_v27 = vld [vmem:[%s6487_s30 + $0x68] sm:$0xff] }
  0x3d   : > { %v620_v42 = vor.u32 %v619_v32, %v616_v31  ;;  %v624_v43 = vrot.slane %v622_v33, 3  ;;  %v627_v44 = vrot.slane %v625_v34, 4  ;;  %v639_v35 = vshrl.u32 %v553_v30, 16  ;;  %v570_v5 = vld [vmem:[#allocation2 + $0xc0] sm:$0xf8] }
  0x3e   : > { %v782_v45 = vsel %vm578_vm3, %v773_v39, %v781_v29  ;;  %v633_v36 = vrot.slane %v631_v40, 3  ;;  %v636_v46 = vrot.slane %v634_v41, 4  ;;  %v642_v47 = vshll.u32 %v553_v30, 16  ;;  %v571_v48 = vld [vmem:[#allocation2 + $0xc8] sm:$0xf] }
  0x3f   : > { %6046 = vmatmul.mubr.msk.bf16.gmra.mrb[4].mxu1 %vm341_vm0, %v782_v45  ;;  %v628_v49 = vor.u32 %v627_v44, %v624_v43  ;;  %v641_v50 = vrot.slane %v639_v35, 3  ;;  %v784_v51 = vshrl.u32 %v570_v5, 16  ;;  %v787_v52 = vshll.u32 %v570_v5, 16  ;;  %v572_v53 = vld [vmem:[#allocation2 + $0xd0] sm:$0xf8] }
  0x40   : > { %v637_v54 = vor.u32 %v636_v46, %v633_v36  ;;  %v644_v55 = vrot.slane %v642_v47, 4  ;;  %v792_v56 = vshrl.u32 %v571_v48, 16  ;;  %v795_v28 = vshll.u32 %v571_v48, 16  ;;  %v573_v37 = vld [vmem:[#allocation2 + $0xd8] sm:$0xf] }
  0x41   : > { %v629_v57 = vsel %vm578_vm3, %v620_v42, %v628_v49  ;;  %v786_v58 = vrot.slane %v784_v51, 3  ;;  %v789_v59 = vrot.slane %v787_v52, 4  ;;  %v801_v60 = vshrl.u32 %v572_v53, 16  ;;  %v6685_v40 = vld [vmem:[#allocation2] sm:$0xf0] }
  0x42   : > { %6029 = vmatprep.mubr.msk.bf16.mxu0 %vm341_vm0, %v629_v57  ;;  %v645_v61 = vor.u32 %v644_v55, %v641_v50  ;;  %v794_v63 = vrot.slane %v792_v56, 3  ;;  %v797_v0 = vrot.slane %v795_v28, 4  ;;  %v804_v1 = vshll.u32 %v572_v53, 16  ;;  %v6687_v41 = vld [vmem:[#allocation2 + $0x8] sm:$0xf] }
  0x43   : > { %v790_v7 = vor.u32 %v789_v59, %v786_v58  ;;  %v803_v8 = vrot.slane %v801_v60, 3  ;;  %v809_v9 = vshrl.u32 %v573_v37, 16  ;;  %v812_v13 = vshll.u32 %v573_v37, 16  ;;  %v6692_v44 = vld [vmem:[#allocation2 + $0x10] sm:$0xf0] }
  0x44   : > { %v646_v14 = vsel %vm578_vm3, %v637_v54, %v645_v61  ;;  %v798_v15 = vor.u32 %v797_v0, %v794_v63  ;;  %v806_v16 = vrot.slane %v804_v1, 4  ;;  %v417_v17 = vrot.slane %v6652_v22, 4  ;;  %v6697_v45 = vld [vmem:[#allocation2 + $0x18] sm:$0xf]  ;;  %v6699_v36 = vld [vmem:[#allocation2] sm:$0xf0] }
  0x45   : > { %6030 = vmatmul.mubr.msk.bf16.gmra.mrb[4].mxu0 %vm341_vm0, %v646_v14  ;;  %v811_v20 = vrot.slane %v809_v9, 3  ;;  %v814_v21 = vrot.slane %v812_v13, 4  ;;  %v418_v24 = vrot.slane %v6654_v23, 4  ;;  %v336_v25 = vmax.f32 %v6643_v10, 0.0 }
  0x46   : > { %v799_v30 = vsel %vm578_vm3, %v790_v7, %v798_v15  ;;  %v807_v31 = vor.u32 %v806_v16, %v803_v8  ;;  %452 = vst.msk [vmem:[#allocation2 + $0x40] sm:$0xf0] %vm365_vm2, %v417_v17  ;;  %v305_v22 = vadd.f32 %v6443_v4, %v6640_v3  ;;  %v306_v32 = vadd.f32 %v6443_v4, %v6647_v12 }
  0x47   : > { %453 = vst.msk [vmem:[#allocation2 + $0x48] sm:$0xf] %vm348_vm1, %v417_v17  ;;  %6049 = vmatprep.mubr.msk.bf16.mxu1 %vm341_vm0, %v799_v30  ;;  %v815_v23 = vor.u32 %v814_v21, %v811_v20  ;;  %455 = vst.msk [vmem:[#allocation2 + $0x58] sm:$0xf] %vm348_vm1, %v418_v24  ;;  %v395_v10 = vpack.c.bf16 %v336_v25, %v335_v11  ;;  %v248_v33 = vmul.f32 %v6433_v2, %v209_v18 }
  0x48   : > { %454 = vst.msk [vmem:[#allocation2 + $0x50] sm:$0xf0] %vm365_vm2, %v418_v24  ;;  %v249_v34 = vmul.f32 %v6433_v2, %v210_v19  ;;  %v337_v39 = vmax.f32 %v305_v22, 0.0  ;;  %v338_v29 = vmax.f32 %v306_v32, 0.0  ;;  %v250_v3 = vmul.f32 %v6433_v2, %v211_v26 }
  0x49   : > { %v251_v12 = vmul.f32 %v6433_v2, %v212_v27  ;;  %v816_v42 = vsel %vm578_vm3, %v807_v31, %v815_v23  ;;  %v427_v43 = vrot.slane %v395_v10, 4  ;;  %v287_v62 = vadd.f32 %v6443_v4, %v248_v33 }
  0x4a   : > { %v288_v11 = vadd.f32 %v6443_v4, %v249_v34  ;;  %6050 = vmatmul.mubr.msk.bf16.gmra.mrb[8].mxu1 %vm341_vm0, %v816_v42  ;;  %v396_v35 = vpack.c.bf16 %v338_v29, %v337_v39  ;;  %v289_v5 = vadd.f32 %v6443_v4, %v250_v3  ;;  %v1233_v48 = vrot.slane %v6685_v40, 4 }
  0x4b   : > { %v290_v2 = vadd.f32 %v6443_v4, %v251_v12  ;;  %472 = vst.msk [vmem:[#allocation2 + $0xe0] sm:$0xf0] %vm365_vm2, %v427_v43  ;;  %v319_v46 = vmax.f32 %v287_v62, 0.0  ;;  %v1234_v49 = vrot.slane %v6687_v41, 4  ;;  %v1236_v4 = vrot.slane %v6692_v44, 4 }
  0x4c   : > { %473 = vst.msk [vmem:[#allocation2 + $0xe8] sm:$0xf] %vm348_vm1, %v427_v43  ;;  %v320_v47 = vmax.f32 %v288_v11, 0.0  ;;  %v428_v50 = vrot.slane %v396_v35, 4  ;;  %v321_v51 = vmax.f32 %v289_v5, 0.0  ;;  %v1237_v56 = vrot.slane %v6697_v45, 4 }
  0x4d   : > { %v322_v52 = vmax.f32 %v290_v2, 0.0  ;;  %v554_v53 = vld [vmem:[#allocation2 + $0x40] sm:$0xf8]  ;;  %v1632_v28 = vshrl.u32 %v6699_v36, 16  ;;  %v1635_v26 = vshll.u32 %v6699_v36, 16  ;;  %v1235_v12 = vsel %vm1232_vm4, %v1233_v48, %v1234_v49  ;;  %v6367_v45 = vld [vmem:[%s7714_s3 + $0x38] sm:$0xff]  }
  0x4e   : > { %v555_v54 = vld [vmem:[#allocation2 + $0x48] sm:$0xf]  ;;  %v387_v55 = vpack.c.bf16 %v320_v47, %v319_v46  ;;  %v648_v37 = vshrl.u32 %v554_v53, 16  ;;  %v651_v57 = vshll.u32 %v554_v53, 16  ;;  %474 = vst.msk [vmem:[#allocation2 + $0xf0] sm:$0xf0] %vm365_vm2, %v428_v50 }
  0x4f   : > { %v656_v58 = vshrl.u32 %v555_v54, 16  ;;  %v659_v59 = vshll.u32 %v555_v54, 16  ;;  %v556_v60 = vld [vmem:[#allocation2 + $0x50] sm:$0xf8]  ;;  %475 = vst.msk [vmem:[#allocation2 + $0xf8] sm:$0xf] %vm348_vm1, %v428_v50  ;;  %v388_v7 = vpack.c.bf16 %v322_v52, %v321_v51 }
  0x50   : > { %v557_v61 = vld [vmem:[#allocation2 + $0x58] sm:$0xf]  ;;  %v665_v63 = vshrl.u32 %v556_v60, 16  ;;  %v668_v0 = vshll.u32 %v556_v60, 16  ;;  %v419_v1 = vrot.slane %v387_v55, 4  ;;  %v650_v8 = vrot.slane %v648_v37, 3 }
  0x51   : > { %v653_v9 = vrot.slane %v651_v57, 4  ;;  %v658_v13 = vrot.slane %v656_v58, 3  ;;  %v661_v14 = vrot.slane %v659_v59, 4  ;;  %v673_v17 = vshrl.u32 %v557_v61, 16  ;;  %v1599_v58 = vld [vmem:[#allocation2 + $0x8] sm:$0x1f] }
  0x52   : > { %v667_v15 = vrot.slane %v665_v63, 3  ;;  %v670_v16 = vrot.slane %v668_v0, 4  ;;  %v676_v18 = vshll.u32 %v557_v61, 16  ;;  %456 = vst.msk [vmem:[#allocation2 + $0x60] sm:$0xf0] %vm365_vm2, %v419_v1  ;;  %v420_v25 = vrot.slane %v388_v7, 4 }
  0x53   : > { %457 = vst.msk [vmem:[#allocation2 + $0x68] sm:$0xf] %vm348_vm1, %v419_v1  ;;  %v654_v19 = vor.u32 %v653_v9, %v650_v8  ;;  %v662_v20 = vor.u32 %v661_v14, %v658_v13  ;;  %v574_v21 = vld [vmem:[#allocation2 + $0xe0] sm:$0xf8]  ;;  %v575_v24 = vld [vmem:[#allocation2 + $0xe8] sm:$0xf] }
  0x54   : > { %v671_v27 = vor.u32 %v670_v16, %v667_v15  ;;  %v675_v30 = vrot.slane %v673_v17, 3  ;;  %v678_v31 = vrot.slane %v676_v18, 4  ;;  %v818_v22 = vshrl.u32 %v574_v21, 16  ;;  %458 = vst.msk [vmem:[#allocation2 + $0x70] sm:$0xf0] %vm365_vm2, %v420_v25 }
  0x55   : > { %v663_v32 = vsel %vm578_vm3, %v654_v19, %v662_v20  ;;  %v821_v23 = vshll.u32 %v574_v21, 16  ;;  %v826_v10 = vshrl.u32 %v575_v24, 16  ;;  %v829_v33 = vshll.u32 %v575_v24, 16  ;;  %459 = vst.msk [vmem:[#allocation2 + $0x78] sm:$0xf] %vm348_vm1, %v420_v25 }
  0x56   : > { %6033 = vmatprep.mubr.msk.bf16.mxu0 %vm341_vm0, %v663_v32  ;;  %v679_v34 = vor.u32 %v678_v31, %v675_v30  ;;  %v820_v39 = vrot.slane %v818_v22, 3  ;;  %v576_v29 = vld [vmem:[#allocation2 + $0xf0] sm:$0xf8]  ;;  %v577_v3 = vld [vmem:[#allocation2 + $0xf8] sm:$0xf]  ;;  %v6718_v40 = vrot.slane %v1632_v28, 4 }
  0x57   : > { %v823_v41 = vrot.slane %v821_v23, 4  ;;  %v828_v42 = vrot.slane %v826_v10, 3  ;;  %v831_v43 = vrot.slane %v829_v33, 4  ;;  %v835_v62 = vshrl.u32 %v576_v29, 16  ;;  %v1172_v14 = vld [vmem:[#allocation2 + $0x20] sm:$0xf0] }
  0x58   : > { %v680_v11 = vsel %vm578_vm3, %v671_v27, %v679_v34  ;;  %v838_v35 = vshll.u32 %v576_v29, 16  ;;  %v843_v5 = vshrl.u32 %v577_v3, 16  ;;  %v846_v2 = vshll.u32 %v577_v3, 16  ;;  %v1173_v19 = vld [vmem:[#allocation2 + $0x28] sm:$0xf] }
  0x59   : > { %6034 = vmatmul.mubr.msk.bf16.gmra.mrb[8].mxu0 %vm341_vm0, %v680_v11  ;;  %v824_v36 = vor.u32 %v823_v41, %v820_v39  ;;  %v832_v46 = vor.u32 %v831_v43, %v828_v42  ;;  %v837_v47 = vrot.slane %v835_v62, 3  ;;  %v558_v50 = vld [vmem:[#allocation2 + $0x60] sm:$0xf8]  ;;  %v6722_v52 = vrot.slane %v1635_v26, 5  ;;  %v1600_v26 = vld [vmem:[#allocation2 + $0x10] sm:$0xf0] }
  0x5a   : > { %v559_v51 = vld [vmem:[#allocation2 + $0x68] sm:$0xf]  ;;  %v840_v48 = vrot.slane %v838_v35, 4  ;;  %v845_v49 = vrot.slane %v843_v5, 3  ;;  %v848_v53 = vrot.slane %v846_v2, 4  ;;  %v682_v54 = vshrl.u32 %v558_v50, 16 }
  0x5b   : > { %v833_v55 = vsel %vm578_vm3, %v824_v36, %v832_v46  ;;  %v685_v28 = vshll.u32 %v558_v50, 16  ;;  %v690_v37 = vshrl.u32 %v559_v51, 16  ;;  %v693_v57 = vshll.u32 %v559_v51, 16  ;;  %v560_v63 = vld [vmem:[#allocation2 + $0x70] sm:$0xf8] }
  0x5c   : > { %6053 = vmatprep.mubr.msk.bf16.mxu1 %vm341_vm0, %v833_v55  ;;  %v841_v59 = vor.u32 %v840_v48, %v837_v47  ;;  %v849_v60 = vor.u32 %v848_v53, %v845_v49  ;;  %v684_v61 = vrot.slane %v682_v54, 3  ;;  %v561_v0 = vld [vmem:[#allocation2 + $0x78] sm:$0xf]  ;;  %v1638_v1 = vor.u32 %v6722_v52, %v6718_v40  ;;  %v1174_v41 = vld [vmem:[#allocation2 + $0x30] sm:$0xf0] }
  0x5d   : > { %v687_v7 = vrot.slane %v685_v28, 4  ;;  %v692_v8 = vrot.slane %v690_v37, 3  ;;  %v695_v9 = vrot.slane %v693_v57, 4  ;;  %v699_v13 = vshrl.u32 %v560_v63, 16  ;;  %v1601_v32 = vld [vmem:[#allocation2 + $0x18] sm:$0x1f] }
  0x5e   : > { %v850_v15 = vsel %vm578_vm3, %v841_v59, %v849_v60  ;;  %v702_v16 = vshll.u32 %v560_v63, 16  ;;  %v707_v17 = vshrl.u32 %v561_v0, 16  ;;  %v710_v18 = vshll.u32 %v561_v0, 16  ;;  %v1602_v42 = vld [vmem:[#allocation2 + $0x20] sm:$0xf0] }
  0x5f   : > { %6054 = vmatmul.mubr.msk.bf16.gmra.mrb[12].mxu1 %vm341_vm0, %v850_v15  ;;  %v688_v20 = vor.u32 %v687_v7, %v684_v61  ;;  %v696_v21 = vor.u32 %v695_v9, %v692_v8  ;;  %v701_v24 = vrot.slane %v699_v13, 3  ;;  %v1640_v25 = vshrl.u32 %v1599_v58, 16  ;;  %v1603_v35 = vld [vmem:[#allocation2 + $0x28] sm:$0x1f]  ;;  %v1175_v47 = vld [vmem:[#allocation2 + $0x38] sm:$0xf] }
  0x60   : > { %v704_v27 = vrot.slane %v702_v16, 4  ;;  %v709_v30 = vrot.slane %v707_v17, 3  ;;  %v712_v31 = vrot.slane %v710_v18, 4  ;;  %6061 = vmatprep.mubr.msk.bf16.mxu1 %vm341_vm0, %v1235_v12  ;;  %v1643_v22 = vshll.u32 %v1599_v58, 16  ;;  %v1604_v50 = vld [vmem:[#allocation2 + $0x30] sm:$0xf0] }
  0x61   : > { %v697_v23 = vsel %vm578_vm3, %v688_v20, %v696_v21  ;;  %v1642_v10 = vrot.slane %v1640_v25, 4  ;;  %v1239_v33 = vrot.slane %v1172_v14, 4  ;;  %v1240_v34 = vrot.slane %v1173_v19, 4  ;;  %v1176_v52 = vld [vmem:[#allocation2 + $0x40] sm:$0xf0]  ;;  %v6753_v15 = vld [vmem:[%s7714_s3 + $0x50] sm:$0xff]  }
  0x62   : > { %6037 = vmatprep.mubr.msk.bf16.mxu0 %vm341_vm0, %v697_v23  ;;  %v705_v39 = vor.u32 %v704_v27, %v701_v24  ;;  %v713_v29 = vor.u32 %v712_v31, %v709_v30  ;;  %v1645_v3 = vrot.slane %v1643_v22, 5  ;;  %v1649_v40 = vshrl.u32 %v1600_v26, 16  ;;  %v1177_v55 = vld [vmem:[#allocation2 + $0x48] sm:$0xf]  ;;  %v1605_v59 = vld [vmem:[#allocation2 + $0x38] sm:$0x1f] }
  0x63   : > { %v1238_v12 = vsel %vm1232_vm4, %v1236_v4, %v1237_v56  ;;  %v1652_v43 = vshll.u32 %v1600_v26, 16  ;;  %v1657_v62 = vshrl.u32 %v1601_v32, 16  ;;  %v1660_v11 = vshll.u32 %v1601_v32, 16  ;;  %v1606_v14 = vld [vmem:[#allocation2 + $0x40] sm:$0xf0]  ;;  %v6368_v30 = vld [vmem:[%s7714_s3 + $0x48] sm:$0xff]  }
  0x64   : > { %v714_v5 = vsel %vm578_vm3, %v705_v39, %v713_v29  ;;  %v1646_v2 = vor.u32 %v1645_v3, %v1642_v10  ;;  %v1241_v36 = vsel %vm1232_vm4, %v1239_v33, %v1240_v34  ;;  %v1651_v46 = vrot.slane %v1649_v40, 4  ;;  %v1607_v19 = vld [vmem:[#allocation2 + $0x48] sm:$0x1f]  ;;  %v1179_v26 = vld [vmem:[#allocation2 + $0x58] sm:$0xf] }
  0x65   : > { %6038 = vmatmul.mubr.msk.bf16.gmra.mrb[12].mxu0 %vm341_vm0, %v714_v5  ;;  %v1654_v44 = vrot.slane %v1652_v43, 5  ;;  %v1659_v4 = vrot.slane %v1657_v62, 4  ;;  %v1662_v56 = vrot.slane %v1660_v11, 5  ;;  %v1242_v51 = vrot.slane %v1174_v41, 4  ;;  %v1180_v27 = vld [vmem:[#allocation2 + $0x60] sm:$0xf0] }
  0x66   : > { %v1647_v48 = vsel %vm1630_vm5, %v1638_v1, %v1646_v2  ;;  %v1666_v49 = vshrl.u32 %v1602_v42, 16  ;;  %v1669_v53 = vshll.u32 %v1602_v42, 16  ;;  %v1674_v54 = vshrl.u32 %v1603_v35, 16  ;;  %v1178_v1 = vld [vmem:[#allocation2 + $0x50] sm:$0xf0]  ;;  %v6768_v62 = vld [vmem:[%s7714_s3 + $0x60] sm:$0xff]  }
  0x67   : > { %6062 = vmatmul.mubr.msk.bf16.vlgmr.msra.gmra.mrb[16].mxu1 %vm341_vm0, %v1238_v12  ;;  %6097 = vmatprep.mubr.msk.bf16.mxu0 %vm341_vm0, %v1647_v48  ;;  %v1655_v28 = vor.u32 %v1654_v44, %v1651_v46  ;;  %v1663_v37 = vor.u32 %v1662_v56, %v1659_v4  ;;  %v1243_v57 = vrot.slane %v1175_v47, 4  ;;  %v1677_v58 = vshll.u32 %v1603_v35, 16  ;;  %v1181_v10 = vld [vmem:[#allocation2 + $0x68] sm:$0xf]  ;;  %v1608_v3 = vld [vmem:[#allocation2 + $0x50] sm:$0xf0] }
  0x68   : > { %6130 = vmatpush3.bf16.msra.mxu1 %v6606_v38  ;;  %6065 = vmatprep.mubr.msk.bf16.mxu1 %vm341_vm0, %v1241_v36  ;;  %v1668_v60 = vrot.slane %v1666_v49, 4  ;;  %v1671_v61 = vrot.slane %v1669_v53, 5  ;;  %v1676_v63 = vrot.slane %v1674_v54, 4  ;;  %v1245_v0 = vrot.slane %v1176_v52, 4  ;;  %v1609_v43 = vld [vmem:[#allocation2 + $0x58] sm:$0x1f] }
  0x69   : > { %v1664_v7 = vsel %vm1630_vm5, %v1655_v28, %v1663_v37  ;;  %v1679_v8 = vrot.slane %v1677_v58, 5  ;;  %v1246_v9 = vrot.slane %v1177_v55, 4  ;;  %v1683_v13 = vshrl.u32 %v1604_v50, 16  ;;  %6131 = vmatprep.subr.bf16.mxu1 %v6367_v45  ;;  %v1610_v36 = vld [vmem:[#allocation2 + $0x60] sm:$0xf0] }
  0x6a   : > { %v1672_v38 = vor.u32 %v1671_v61, %v1668_v60  ;;  %v1686_v16 = vshll.u32 %v1604_v50, 16  ;;  %v1691_v17 = vshrl.u32 %v1605_v59, 16  ;;  %v1694_v18 = vshll.u32 %v1605_v59, 16  ;;  %v1611_v50 = vld [vmem:[#allocation2 + $0x68] sm:$0x1f] }
  0x6b   : > { %v1244_v20 = vsel %vm1232_vm4, %v1242_v51, %v1243_v57  ;;  %v1680_v21 = vor.u32 %v1679_v8, %v1676_v63  ;;  %v1247_v24 = vsel %vm1232_vm4, %v1245_v0, %v1246_v9  ;;  %v1685_v25 = vrot.slane %v1683_v13, 4  ;;  %v1182_v53 = vld [vmem:[#allocation2 + $0x70] sm:$0xf0]  ;;  %v1184_v54 = vld [vmem:[#allocation2 + $0x80] sm:$0xf0] }
  0x6c   : > { %v1688_v31 = vrot.slane %v1686_v16, 5  ;;  %v1693_v22 = vrot.slane %v1691_v17, 4  ;;  %v1696_v32 = vrot.slane %v1694_v18, 5  ;;  %v1248_v23 = vrot.slane %v1178_v1, 4  ;;  %6132 = vmatpush3.bf16.msra.mxu1 %v6367_v45  ;;  %v1185_v55 = vld [vmem:[#allocation2 + $0x88] sm:$0xf] }
  0x6d   : > { %6098 = vmatmul.mubr.msk.bf16.vlgmr.msra.gmra.mrb[16].mxu0 %vm341_vm0, %v1664_v7  ;;  %v1681_v33 = vsel %vm1630_vm5, %v1672_v38, %v1680_v21  ;;  %v1700_v34 = vshrl.u32 %v1606_v14, 16  ;;  %v1703_v39 = vshll.u32 %v1606_v14, 16  ;;  %v1708_v29 = vshrl.u32 %v1607_v19, 16  ;;  %6201 = vmatprep.subr.bf16.mxu1 %v6753_v15  ;;  %v1183_v59 = vld [vmem:[#allocation2 + $0x78] sm:$0xf] }
  0x6e   : > { %6166 = vmatpush3.bf16.msra.mxu0 %v6629_v6  ;;  %6101 = vmatprep.mubr.msk.bf16.mxu0 %vm341_vm0, %v1681_v33  ;;  %v1689_v40 = vor.u32 %v1688_v31, %v1685_v25  ;;  %v1697_v41 = vor.u32 %v1696_v32, %v1693_v22  ;;  %v1249_v42 = vrot.slane %v1179_v26, 4  ;;  %v1711_v12 = vshll.u32 %v1607_v19, 16  ;;  %v1612_v1 = vld [vmem:[#allocation2 + $0x70] sm:$0xf0]  ;;  %v1613_v14 = vld [vmem:[#allocation2 + $0x78] sm:$0x1f] }
  0x6f   : > { %6066 = vmatmul.mubr.msk.bf16.gmra.mrb[20].mxu1 %vm341_vm0, %v1244_v20  ;;  %v1702_v11 = vrot.slane %v1700_v34, 4  ;;  %v1705_v35 = vrot.slane %v1703_v39, 5  ;;  %v1710_v5 = vrot.slane %v1708_v29, 4  ;;  %v1251_v2 = vrot.slane %v1180_v27, 4  ;;  %6167 = vmatprep.subr.bf16.mxu0 %v6368_v30  ;;  %v1186_v38 = vld [vmem:[#allocation2 + $0x90] sm:$0xf0] }
  0x70   : > { %6069 = vmatprep.mubr.msk.bf16.mxu1 %vm341_vm0, %v1247_v24  ;;  %v1713_v6 = vrot.slane %v1711_v12, 5  ;;  %v1252_v46 = vrot.slane %v1181_v10, 4  ;;  %v1717_v47 = vshrl.u32 %v1608_v3, 16  ;;  %v1720_v44 = vshll.u32 %v1608_v3, 16  ;;  %v1187_v20 = vld [vmem:[#allocation2 + $0x98] sm:$0xf] }
  0x71   : > { %v1706_v45 = vor.u32 %v1705_v35, %v1702_v11  ;;  %v1725_v4 = vshrl.u32 %v1609_v43, 16  ;;  %v1728_v56 = vshll.u32 %v1609_v43, 16  ;;  %v1698_v51 = vsel %vm1630_vm5, %v1689_v40, %v1697_v41  ;;  %v1614_v27 = vld [vmem:[#allocation2 + $0x80] sm:$0xf0] }
  0x72   : > { %v1250_v52 = vsel %vm1232_vm4, %v1248_v23, %v1249_v42  ;;  %v1714_v48 = vor.u32 %v1713_v6, %v1710_v5  ;;  %v1719_v49 = vrot.slane %v1717_v47, 4  ;;  %6168 = vmatpush3.bf16.msra.mxu0 %v6368_v30  ;;  %v1253_v28 = vsel %vm1232_vm4, %v1251_v2, %v1252_v46  ;;  %v1615_v23 = vld [vmem:[#allocation2 + $0x88] sm:$0x1f]  ;;  %v1188_v42 = vld [vmem:[#allocation2 + $0xa0] sm:$0xf0] }
  0x73   : > { %v1722_v37 = vrot.slane %v1720_v44, 5  ;;  %v1727_v57 = vrot.slane %v1725_v4, 4  ;;  %v1730_v58 = vrot.slane %v1728_v56, 5  ;;  %6237 = vmatprep.subr.bf16.mxu0 %v6768_v62  ;;  %v1734_v61 = vshrl.u32 %v1610_v36, 16  ;;  %v1616_v5 = vld [vmem:[#allocation2 + $0x90] sm:$0xf0] }
  0x74   : > { %v1715_v60 = vsel %vm1630_vm5, %v1706_v45, %v1714_v48  ;;  %v1737_v63 = vshll.u32 %v1610_v36, 16  ;;  %v1742_v0 = vshrl.u32 %v1611_v50, 16  ;;  %v1254_v9 = vrot.slane %v1182_v53, 4  ;;  %v1189_v47 = vld [vmem:[#allocation2 + $0xa8] sm:$0xf] }
  0x75   : > { %6102 = vmatmul.mubr.msk.bf16.gmra.mrb[20].mxu0 %vm341_vm0, %v1698_v51  ;;  %v1723_v7 = vor.u32 %v1722_v37, %v1719_v49  ;;  %v1731_v8 = vor.u32 %v1730_v58, %v1727_v57  ;;  %v1745_v13 = vshll.u32 %v1611_v50, 16  ;;  %v1255_v16 = vrot.slane %v1183_v59, 4  ;;  %v1617_v50 = vld [vmem:[#allocation2 + $0x98] sm:$0x1f]  ;;  %v1190_v51 = vld [vmem:[#allocation2 + $0xb0] sm:$0xf0] }
  0x76   : > { %6105 = vmatprep.mubr.msk.bf16.mxu0 %vm341_vm0, %v1715_v60  ;;  %v1736_v17 = vrot.slane %v1734_v61, 4  ;;  %v1739_v18 = vrot.slane %v1737_v63, 5  ;;  %v1744_v19 = vrot.slane %v1742_v0, 4  ;;  %v1257_v24 = vrot.slane %v1184_v54, 4  ;;  %v1619_v59 = vld [vmem:[#allocation2 + $0xa8] sm:$0x1f] }
  0x77   : > { %6070 = vmatmul.mubr.msk.bf16.gmra.mrb[24].mxu1 %vm341_vm0, %v1250_v52  ;;  %v1747_v21 = vrot.slane %v1745_v13, 5  ;;  %v1258_v25 = vrot.slane %v1185_v55, 4  ;;  %v1751_v26 = vshrl.u32 %v1612_v1, 16  ;;  %v1754_v31 = vshll.u32 %v1612_v1, 16  ;;  %v1618_v52 = vld [vmem:[#allocation2 + $0xa0] sm:$0xf0] }
  0x78   : > { %6073 = vmatprep.mubr.msk.bf16.mxu1 %vm341_vm0, %v1253_v28  ;;  %v1740_v30 = vor.u32 %v1739_v18, %v1736_v17  ;;  %v1759_v22 = vshrl.u32 %v1613_v14, 16  ;;  %v1762_v32 = vshll.u32 %v1613_v14, 16  ;;  %v1732_v10 = vsel %vm1630_vm5, %v1723_v7, %v1731_v8  ;;  %v1191_v55 = vld [vmem:[#allocation2 + $0xb8] sm:$0xf]  ;;  %v6790_v1 = vld [vmem:[#allocation2 + $0xc0] sm:$0xf0] }
  0x79   : > { %v1748_v33 = vor.u32 %v1747_v21, %v1744_v19  ;;  %v1753_v34 = vrot.slane %v1751_v26, 4  ;;  %v1260_v39 = vrot.slane %v1186_v38, 4  ;;  %v1756_v29 = vrot.slane %v1754_v31, 5  ;;  %v1620_v14 = vld [vmem:[#allocation2 + $0xb0] sm:$0xf0] }
  0x7a   : > { %v1761_v3 = vrot.slane %v1759_v22, 4  ;;  %v1764_v40 = vrot.slane %v1762_v32, 5  ;;  %v1261_v41 = vrot.slane %v1187_v20, 4  ;;  %v1768_v43 = vshrl.u32 %v1614_v27, 16  ;;  %v1193_v19 = vld [vmem:[#allocation2 + $0xc8] sm:$0xf] }
  0x7b   : > { %v1749_v12 = vsel %vm1630_vm5, %v1740_v30, %v1748_v33  ;;  %v1771_v11 = vshll.u32 %v1614_v27, 16  ;;  %v1776_v35 = vshrl.u32 %v1615_v23, 16  ;;  %v1256_v2 = vsel %vm1232_vm4, %v1254_v9, %v1255_v16  ;;  %v1621_v20 = vld [vmem:[#allocation2 + $0xb8] sm:$0x1f]  ;;  %v1194_v27 = vld [vmem:[#allocation2 + $0xd0] sm:$0xf0] }
  0x7c   : > { %v1259_v36 = vsel %vm1232_vm4, %v1257_v24, %v1258_v25  ;;  %v1757_v6 = vor.u32 %v1756_v29, %v1753_v34  ;;  %v1779_v46 = vshll.u32 %v1615_v23, 16  ;;  %v1765_v45 = vor.u32 %v1764_v40, %v1761_v3  ;;  %v1195_v23 = vld [vmem:[#allocation2 + $0xd8] sm:$0xf]  ;;  %v1622_v29 = vld [vmem:[#allocation2 + $0xc0] sm:$0xf0] }
  0x7d   : > { %6106 = vmatmul.mubr.msk.bf16.gmra.mrb[24].mxu0 %vm341_vm0, %v1732_v10  ;;  %v1770_v44 = vrot.slane %v1768_v43, 4  ;;  %v1773_v4 = vrot.slane %v1771_v11, 5  ;;  %v1778_v56 = vrot.slane %v1776_v35, 4  ;;  %v1262_v48 = vsel %vm1232_vm4, %v1260_v39, %v1261_v41 }
  0x7e   : > { %6109 = vmatprep.mubr.msk.bf16.mxu0 %vm341_vm0, %v1749_v12  ;;  %v1781_v49 = vrot.slane %v1779_v46, 5  ;;  %v1263_v53 = vrot.slane %v1188_v42, 4  ;;  %v1785_v54 = vshrl.u32 %v1616_v5, 16  ;;  %v1788_v37 = vshll.u32 %v1616_v5, 16  ;;  %v1623_v12 = vld [vmem:[#allocation2 + $0xc8] sm:$0x1f] }
  0x7f   : > { %6074 = vmatmul.mubr.msk.bf16.gmra.mrb[28].mxu1 %vm341_vm0, %v1256_v2  ;;  %v1774_v28 = vor.u32 %v1773_v4, %v1770_v44  ;;  %v1793_v57 = vshrl.u32 %v1617_v50, 16  ;;  %v1796_v58 = vshll.u32 %v1617_v50, 16  ;;  %v1264_v61 = vrot.slane %v1189_v47, 4  ;;  %v1624_v2 = vld [vmem:[#allocation2 + $0xd0] sm:$0xf0] }
  0x80   : > { %6077 = vmatprep.mubr.msk.bf16.mxu1 %vm341_vm0, %v1259_v36  ;;  %v1782_v60 = vor.u32 %v1781_v49, %v1778_v56  ;;  %v1787_v63 = vrot.slane %v1785_v54, 4  ;;  %v1266_v0 = vrot.slane %v1190_v51, 4  ;;  %v1790_v7 = vrot.slane %v1788_v37, 5  ;;  %v1196_v50 = vld [vmem:[#allocation2 + $0xe0] sm:$0xf0] }
  0x81   : > { %v1795_v8 = vrot.slane %v1793_v57, 4  ;;  %v1798_v9 = vrot.slane %v1796_v58, 5  ;;  %v1267_v13 = vrot.slane %v1191_v55, 4  ;;  %v1766_v38 = vsel %vm1630_vm5, %v1757_v6, %v1765_v45  ;;  %v1197_v51 = vld [vmem:[#allocation2 + $0xe8] sm:$0xf]  ;;  %v229_v55 = vld [vmem:[%s6487_s30 + $0xf0] sm:$0xff] }
  0x82   : > { %v1802_v16 = vshrl.u32 %v1618_v52, 16  ;;  %v1805_v17 = vshll.u32 %v1618_v52, 16  ;;  %v1810_v18 = vshrl.u32 %v1619_v59, 16  ;;  %v1783_v21 = vsel %vm1630_vm5, %v1774_v28, %v1782_v60  ;;  %v1625_v54 = vld [vmem:[#allocation2 + $0xd8] sm:$0x1f] }
  0x83   : > { %v1791_v24 = vor.u32 %v1790_v7, %v1787_v63  ;;  %v1799_v25 = vor.u32 %v1798_v9, %v1795_v8  ;;  %v1813_v26 = vshll.u32 %v1619_v59, 16  ;;  %v1265_v30 = vsel %vm1232_vm4, %v1263_v53, %v1264_v61  ;;  %v1626_v59 = vld [vmem:[#allocation2 + $0xe0] sm:$0xf0]  ;;  %v1627_v7 = vld [vmem:[#allocation2 + $0xe8] sm:$0x1f] }
  0x84   : > { %v1804_v31 = vrot.slane %v1802_v16, 4  ;;  %v1807_v22 = vrot.slane %v1805_v17, 5  ;;  %v1812_v32 = vrot.slane %v1810_v18, 4  ;;  %v1268_v10 = vsel %vm1232_vm4, %v1266_v0, %v1267_v13  ;;  %v1199_v18 = vld [vmem:[#allocation2 + $0xf8] sm:$0xf] }
  0x85   : > { %6110 = vmatmul.mubr.msk.bf16.gmra.mrb[28].mxu0 %vm341_vm0, %v1766_v38  ;;  %v1815_v33 = vrot.slane %v1813_v26, 5  ;;  %v1269_v34 = vrot.slane %v6790_v1, 4  ;;  %v1819_v39 = vshrl.u32 %v1620_v14, 16  ;;  %v1822_v40 = vshll.u32 %v1620_v14, 16  ;;  %v6805_v1 = vld [vmem:[#allocation2 + $0xf0] sm:$0xf0] }
  0x86   : > { %6113 = vmatprep.mubr.msk.bf16.mxu0 %vm341_vm0, %v1783_v21  ;;  %v1808_v3 = vor.u32 %v1807_v22, %v1804_v31  ;;  %v1827_v41 = vshrl.u32 %v1621_v20, 16  ;;  %v1830_v42 = vshll.u32 %v1621_v20, 16  ;;  %v1800_v43 = vsel %vm1630_vm5, %v1791_v24, %v1799_v25 }
  0x87   : > { %6078 = vmatmul.mubr.msk.bf16.gmra.mrb[32].mxu1 %vm341_vm0, %v1262_v48  ;;  %v1816_v11 = vor.u32 %v1815_v33, %v1812_v32  ;;  %v1270_v35 = vrot.slane %v1193_v19, 4  ;;  %v1821_v5 = vrot.slane %v1819_v39, 4  ;;  %v1824_v36 = vrot.slane %v1822_v40, 5  ;;  %v6815_v19 = vld [vmem:[%s7712_s1] ss:$0 sm:$0xff] }
  0x88   : > { %6081 = vmatprep.mubr.msk.bf16.mxu1 %vm341_vm0, %v1265_v30  ;;  %v1829_v6 = vrot.slane %v1827_v41, 4  ;;  %v1832_v46 = vrot.slane %v1830_v42, 5  ;;  %v1272_v47 = vrot.slane %v1194_v27, 4  ;;  %v1273_v45 = vrot.slane %v1195_v23, 4  ;;  %v1628_v27 = vld [vmem:[#allocation2 + $0xf0] sm:$0xf0] }
  0x89   : > { %v1836_v44 = vshrl.u32 %v1622_v29, 16  ;;  %v1839_v4 = vshll.u32 %v1622_v29, 16  ;;  %v1844_v56 = vshrl.u32 %v1623_v12, 16  ;;  %v1817_v52 = vsel %vm1630_vm5, %v1808_v3, %v1816_v11  ;;  %v1629_v23 = vld [vmem:[#allocation2 + $0xf8] sm:$0x1f] }
  0x8a   : > { %v1825_v48 = vor.u32 %v1824_v36, %v1821_v5  ;;  %v1833_v49 = vor.u32 %v1832_v46, %v1829_v6  ;;  %v1847_v53 = vshll.u32 %v1623_v12, 16  ;;  %v1275_v58 = vrot.slane %v1196_v50, 4  ;;  %v2220_v29 = vld [vmem:[#allocation2 + $0x10] sm:$0xf8]  ;;  %v2221_v5 = vld [vmem:[#allocation2 + $0x18] sm:$0xf] }
  0x8b   : > { %v1838_v28 = vrot.slane %v1836_v44, 4  ;;  %v1841_v37 = vrot.slane %v1839_v4, 5  ;;  %v1846_v57 = vrot.slane %v1844_v56, 4  ;;  %v1271_v60 = vsel %vm1232_vm4, %v1269_v34, %v1270_v35 }
  0x8c   : > { %v1849_v61 = vrot.slane %v1847_v53, 5  ;;  %v1276_v63 = vrot.slane %v1197_v51, 4  ;;  %v1853_v0 = vshrl.u32 %v1624_v2, 16  ;;  %v1856_v9 = vshll.u32 %v1624_v2, 16 }
  0x8d   : > { %6114 = vmatmul.mubr.msk.bf16.gmra.mrb[32].mxu0 %vm341_vm0, %v1800_v43  ;;  %v1842_v8 = vor.u32 %v1841_v37, %v1838_v28  ;;  %v1861_v13 = vshrl.u32 %v1625_v54, 16  ;;  %v1864_v14 = vshll.u32 %v1625_v54, 16  ;;  %v1274_v38 = vsel %vm1232_vm4, %v1272_v47, %v1273_v45  ;;  %v2222_v47 = vld [vmem:[#allocation2 + $0x20] sm:$0xf8]  ;;  %v6830_v37 = vld [vmem:[#allocation2 + $0x10] sm:$0xf0] }
  0x8e   : > { %6117 = vmatprep.mubr.msk.bf16.mxu0 %vm341_vm0, %v1817_v52  ;;  %v1850_v16 = vor.u32 %v1849_v61, %v1846_v57  ;;  %v6810_v17 = vrot.slane %v1853_v0, 4  ;;  %v6818_v20 = vmul.f32 %v6815_v19, %v229_v55  ;;  %v1834_v21 = vsel %vm1630_vm5, %v1825_v48, %v1833_v49  ;;  %v2223_v49 = vld [vmem:[#allocation2 + $0x28] sm:$0xf]  ;;  %v2224_v61 = vld [vmem:[#allocation2 + $0x30] sm:$0xf8] }
  0x8f   : > { %6082 = vmatmul.mubr.msk.bf16.gmra.mrb[36].mxu1 %vm341_vm0, %v1268_v10  ;;  %v1277_v24 = vsel %vm1232_vm4, %v1275_v58, %v1276_v63  ;;  %v1858_v25 = vrot.slane %v1856_v9, 5  ;;  %v1863_v26 = vrot.slane %v1861_v13, 4  ;;  %v1866_v30 = vrot.slane %v1864_v14, 5  ;;  %v2225_v9 = vld [vmem:[#allocation2 + $0x38] sm:$0xf] }
  0x90   : > { %6085 = vmatprep.mubr.msk.bf16.mxu1 %vm341_vm0, %v1271_v60  ;;  %v1870_v31 = vshrl.u32 %v1626_v59, 16  ;;  %v1873_v22 = vshll.u32 %v1626_v59, 16  ;;  %v1878_v32 = vshrl.u32 %v1627_v7, 16  ;;  %v1851_v33 = vsel %vm1630_vm5, %v1842_v8, %v1850_v16  ;;  %v2842_v8 = vld [vmem:[#allocation2 + $0x18] sm:$0xf] }
  0x91   : > { %v1278_v34 = vrot.slane %v6805_v1, 4  ;;  %v1279_v39 = vrot.slane %v1199_v18, 4  ;;  %v1881_v10 = vshll.u32 %v1627_v7, 16  ;;  %v1859_v3 = vor.u32 %v1858_v25, %v6810_v17  ;;  %v2843_v17 = vld [vmem:[#allocation2 + $0x20] sm:$0xf0] }
  0x92   : > { %v1872_v40 = vrot.slane %v1870_v31, 4  ;;  %v1875_v41 = vrot.slane %v1873_v22, 5  ;;  %v1887_v42 = vshrl.u32 %v1628_v27, 16  ;;  %v1880_v12 = vrot.slane %v1878_v32, 4  ;;  %v2226_v18 = vld [vmem:[#allocation2 + $0x40] sm:$0xf8] }
  0x93   : > { %v1883_v43 = vrot.slane %v1881_v10, 5  ;;  %v1890_v11 = vshll.u32 %v1628_v27, 16  ;;  %v1895_v35 = vshrl.u32 %v1629_v23, 16  ;;  %v1867_v2 = vor.u32 %v1866_v30, %v1863_v26  ;;  %v2844_v27 = vld [vmem:[#allocation2 + $0x28] sm:$0xf] }
  0x94   : > { %v1889_v36 = vrot.slane %v1887_v42, 4  ;;  %v1898_v6 = vshll.u32 %v1629_v23, 16  ;;  %v2253_v46 = vshrl.u32 %v2220_v29, 16  ;;  %v1876_v50 = vor.u32 %v1875_v41, %v1872_v40  ;;  %v2227_v30 = vld [vmem:[#allocation2 + $0x48] sm:$0xf] }
  0x95   : > { %6118 = vmatmul.mubr.msk.bf16.gmra.mrb[36].mxu0 %vm341_vm0, %v1834_v21  ;;  %v1892_v45 = vrot.slane %v1890_v11, 5  ;;  %v1897_v44 = vrot.slane %v1895_v35, 4  ;;  %v2256_v4 = vshll.u32 %v2220_v29, 16  ;;  %v2261_v52 = vshrl.u32 %v2221_v5, 16  ;;  %v2845_v42 = vld [vmem:[#allocation2 + $0x30] sm:$0xf0] }
  0x96   : > { %6121 = vmatprep.mubr.msk.bf16.mxu0 %vm341_vm0, %v1851_v33  ;;  %v1900_v56 = vrot.slane %v1898_v6, 5  ;;  %v2255_v51 = vrot.slane %v2253_v46, 3  ;;  %v2264_v48 = vshll.u32 %v2221_v5, 16  ;;  %v1884_v53 = vor.u32 %v1883_v43, %v1880_v12  ;;  %v2846_v12 = vld [vmem:[#allocation2 + $0x38] sm:$0xf] }
  0x97   : > { %6086 = vmatmul.mubr.msk.bf16.gmra.mrb[40].mxu1 %vm341_vm0, %v1274_v38  ;;  %v1893_v54 = vor.u32 %v1892_v45, %v1889_v36  ;;  %v2258_v55 = vrot.slane %v2256_v4, 4  ;;  %v2270_v28 = vshrl.u32 %v2222_v47, 16  ;;  %v2263_v58 = vrot.slane %v2261_v52, 3 }
  0x98   : > { %6089 = vmatprep.mubr.msk.bf16.mxu1 %vm341_vm0, %v1277_v24  ;;  %v1901_v57 = vor.u32 %v1900_v56, %v1897_v44  ;;  %v2266_v59 = vrot.slane %v2264_v48, 4  ;;  %v2273_v60 = vshll.u32 %v2222_v47, 16  ;;  %v1280_v63 = vsel %vm1232_vm4, %v1278_v34, %v1279_v39 }
  0x99   : > { %v2259_v0 = vor.u32 %v2258_v55, %v2255_v51  ;;  %v2278_v1 = vshrl.u32 %v2223_v49, 16  ;;  %v2281_v7 = vshll.u32 %v2223_v49, 16  ;;  %v1868_v13 = vsel %vm1630_vm5, %v1859_v3, %v1867_v2  ;;  %v2228_v2 = vld [vmem:[#allocation2 + $0x50] sm:$0xf8] }
  0x9a   : > { %v2267_v14 = vor.u32 %v2266_v59, %v2263_v58  ;;  %v2272_v38 = vrot.slane %v2270_v28, 3  ;;  %v2275_v16 = vrot.slane %v2273_v60, 4  ;;  %v1885_v21 = vsel %vm1630_vm5, %v1876_v50, %v1884_v53  ;;  %v2229_v50 = vld [vmem:[#allocation2 + $0x58] sm:$0xf]  ;;  %v6843_v53 = vld [vmem:[#allocation2 + $0x40] sm:$0xf0] }
  0x9b   : > { %v2280_v24 = vrot.slane %v2278_v1, 3  ;;  %v2283_v25 = vrot.slane %v2281_v7, 4  ;;  %v2287_v26 = vshrl.u32 %v2224_v61, 16  ;;  %v1902_v31 = vsel %vm1630_vm5, %v1893_v54, %v1901_v57  ;;  %v6847_v57 = vld [vmem:[#allocation2 + $0x48] sm:$0xf]  ;;  %v6371_v59 = vld [vmem:[%s7714_s3 + $0x58] sm:$0xff]  }
  0x9c   : > { %v2905_v22 = vrot.slane %v6830_v37, 4  ;;  %v2290_v32 = vshll.u32 %v2224_v61, 16  ;;  %v2295_v23 = vshrl.u32 %v2225_v9, 16  ;;  %v2268_v33 = vsel %vm578_vm3, %v2259_v0, %v2267_v14  ;;  %v2230_v58 = vld [vmem:[#allocation2 + $0x60] sm:$0xf8] }
  0x9d   : > { %6122 = vmatmul.mubr.msk.bf16.gmra.mrb[40].mxu0 %vm341_vm0, %v1868_v13  ;;  %v2906_v34 = vrot.slane %v2842_v8, 4  ;;  %v2289_v39 = vrot.slane %v2287_v26, 3  ;;  %v2298_v10 = vshll.u32 %v2225_v9, 16  ;;  %v2276_v29 = vor.u32 %v2275_v16, %v2272_v38  ;;  %v2231_v1 = vld [vmem:[#allocation2 + $0x68] sm:$0xf] }
  0x9e   : > { %6125 = vmatprep.mubr.msk.bf16.mxu0 %vm341_vm0, %v1885_v21  ;;  %v2284_v3 = vor.u32 %v2283_v25, %v2280_v24  ;;  %v2292_v40 = vrot.slane %v2290_v32, 4  ;;  %v2297_v41 = vrot.slane %v2295_v23, 3  ;;  %v2908_v11 = vrot.slane %v2843_v17, 4  ;;  %v2849_v14 = vld [vmem:[#allocation2 + $0x50] sm:$0xf0] }
  0x9f   : > { %6090 = vmatmul.mubr.msk.bf16.gmra.mrb[44].mxu1 %vm341_vm0, %v1280_v63  ;;  %v2300_v43 = vrot.slane %v2298_v10, 4  ;;  %v2304_v35 = vshrl.u32 %v2226_v18, 16  ;;  %v2307_v5 = vshll.u32 %v2226_v18, 16  ;;  %v2909_v6 = vrot.slane %v2844_v27, 4  ;;  %v2850_v38 = vld [vmem:[#allocation2 + $0x58] sm:$0xf] }
  0xa0   : > { %6133 = vmatprep.mubr.msk.bf16.mxu1 %vm341_vm0, %v2268_v33  ;;  %v2293_v36 = vor.u32 %v2292_v40, %v2289_v39  ;;  %v2312_v46 = vshrl.u32 %v2227_v30, 16  ;;  %v2315_v47 = vshll.u32 %v2227_v30, 16  ;;  %v2911_v56 = vrot.slane %v2845_v42, 4  ;;  %v2232_v24 = vld [vmem:[#allocation2 + $0x70] sm:$0xf8] }
  0xa1   : > { %v2301_v45 = vor.u32 %v2300_v43, %v2297_v41  ;;  %v2306_v44 = vrot.slane %v2304_v35, 3  ;;  %v2309_v4 = vrot.slane %v2307_v5, 4  ;;  %v2912_v48 = vrot.slane %v2846_v12, 4  ;;  %v2852_v40 = vld [vmem:[#allocation2 + $0x68] sm:$0xf]  ;;  %v6866_v41 = vld [vmem:[%s7714_s3 + $0x70] sm:$0xff]  }
  0xa2   : > { %v2314_v51 = vrot.slane %v2312_v46, 3  ;;  %v2317_v52 = vrot.slane %v2315_v47, 4  ;;  %v2321_v49 = vshrl.u32 %v2228_v2, 16  ;;  %v2285_v54 = vsel %vm578_vm3, %v2276_v29, %v2284_v3  ;;  %v6372_v46 = vld [vmem:[%s7714_s3 + $0x68] sm:$0xff]  }
  0xa3   : > { %v2907_v55 = vsel %vm1232_vm4, %v2905_v22, %v2906_v34  ;;  %v2324_v28 = vshll.u32 %v2228_v2, 16  ;;  %v2329_v37 = vshrl.u32 %v2229_v50, 16  ;;  %v2302_v60 = vsel %vm578_vm3, %v2293_v36, %v2301_v45  ;;  %v2851_v34 = vld [vmem:[#allocation2 + $0x60] sm:$0xf0] }
  0xa4   : > { %v2910_v61 = vsel %vm1232_vm4, %v2908_v11, %v2909_v6  ;;  %v2323_v63 = vrot.slane %v2321_v49, 3  ;;  %v2332_v0 = vshll.u32 %v2229_v50, 16  ;;  %v2310_v7 = vor.u32 %v2309_v4, %v2306_v44  ;;  %v2234_v11 = vld [vmem:[#allocation2 + $0x80] sm:$0xf8]  ;;  %v2235_v6 = vld [vmem:[#allocation2 + $0x88] sm:$0xf] }
  0xa5   : > { %6126 = vmatmul.mubr.msk.bf16.gmra.mrb[44].mxu0 %vm341_vm0, %v1902_v31  ;;  %v2318_v8 = vor.u32 %v2317_v52, %v2314_v51  ;;  %v2326_v9 = vrot.slane %v2324_v28, 4  ;;  %v2331_v13 = vrot.slane %v2329_v37, 3  ;;  %v2913_v16 = vsel %vm1232_vm4, %v2911_v56, %v2912_v48  ;;  %v2233_v31 = vld [vmem:[#allocation2 + $0x78] sm:$0xf]  ;;  %v2236_v48 = vld [vmem:[#allocation2 + $0x90] sm:$0xf8] }
  0xa6   : > { %6169 = vmatprep.mubr.msk.bf16.mxu0 %vm341_vm0, %v2907_v55  ;;  %v2334_v17 = vrot.slane %v2332_v0, 4  ;;  %v2338_v18 = vshrl.u32 %v2230_v58, 16  ;;  %v2341_v21 = vshll.u32 %v2230_v58, 16  ;;  %v2914_v25 = vrot.slane %v6843_v53, 4  ;;  %v6879_v49 = vld [vmem:[%s7714_s3 + $0x80] sm:$0xff]  }
  0xa7   : > { %6134 = vmatmul.mubr.msk.bf16.vlgmr.msra.gmra.mrb[48].mxu1 %vm341_vm0, %v2285_v54  ;;  %v2915_v26 = vrot.slane %v6847_v57, 4  ;;  %v2346_v27 = vshrl.u32 %v2231_v1, 16  ;;  %v2349_v30 = vshll.u32 %v2231_v1, 16  ;;  %v2327_v22 = vor.u32 %v2326_v9, %v2323_v63  ;;  %v2853_v37 = vld [vmem:[#allocation2 + $0x70] sm:$0xf0] }
  0xa8   : > { %6202 = vmatpush3.bf16.msra.mxu1 %v6753_v15  ;;  %6137 = vmatprep.mubr.msk.bf16.mxu1 %vm341_vm0, %v2302_v60  ;;  %v2335_v32 = vor.u32 %v2334_v17, %v2331_v13  ;;  %v2340_v23 = vrot.slane %v2338_v18, 3  ;;  %v2343_v33 = vrot.slane %v2341_v21, 4  ;;  %v2319_v39 = vsel %vm578_vm3, %v2310_v7, %v2318_v8  ;;  %v2237_v57 = vld [vmem:[#allocation2 + $0x98] sm:$0xf]  ;;  %v2856_v9 = vld [vmem:[#allocation2 + $0x88] sm:$0xf] }
  0xa9   : > { %v2348_v10 = vrot.slane %v2346_v27, 3  ;;  %v2351_v29 = vrot.slane %v2349_v30, 4  ;;  %v2355_v3 = vshrl.u32 %v2232_v24, 16  ;;  %6203 = vmatprep.subr.bf16.mxu1 %v6371_v59  ;;  %v2917_v15 = vrot.slane %v2849_v14, 4  ;;  %v2854_v63 = vld [vmem:[#allocation2 + $0x78] sm:$0xf] }
  0xaa   : > { %v2918_v42 = vrot.slane %v2850_v38, 4  ;;  %v2358_v12 = vshll.u32 %v2232_v24, 16  ;;  %v2363_v43 = vshrl.u32 %v2233_v31, 16  ;;  %v2344_v35 = vor.u32 %v2343_v33, %v2340_v23  ;;  %v2238_v17 = vld [vmem:[#allocation2 + $0xa0] sm:$0xf8] }
  0xab   : > { %v2352_v5 = vor.u32 %v2351_v29, %v2348_v10  ;;  %v6868_v2 = vrot.slane %v2355_v3, 3  ;;  %v2366_v36 = vshll.u32 %v2233_v31, 16  ;;  %v2336_v47 = vsel %vm578_vm3, %v2327_v22, %v2335_v32  ;;  %v6892_v32 = vld [vmem:[#allocation2 + $0x90] sm:$0xf0]  ;;  %v2858_v10 = vld [vmem:[#allocation2 + $0x98] sm:$0xf] }
  0xac   : > { %v2360_v50 = vrot.slane %v2358_v12, 4  ;;  %v2920_v45 = vrot.slane %v2851_v34, 4  ;;  %v2921_v44 = vrot.slane %v2852_v40, 4  ;;  %6204 = vmatpush3.bf16.msra.mxu1 %v6371_v59  ;;  %v2365_v4 = vrot.slane %v2363_v43, 3  ;;  %v2240_v29 = vld [vmem:[#allocation2 + $0xb0] sm:$0xf8] }
  0xad   : > { %6170 = vmatmul.mubr.msk.bf16.vlgmr.msra.gmra.mrb[48].mxu0 %vm341_vm0, %v2910_v61  ;;  %v2368_v56 = vrot.slane %v2366_v36, 4  ;;  %v2372_v51 = vshrl.u32 %v2234_v11, 16  ;;  %v2375_v52 = vshll.u32 %v2234_v11, 16  ;;  %6273 = vmatprep.subr.bf16.mxu1 %v6866_v41  ;;  %v2916_v53 = vsel %vm1232_vm4, %v2914_v25, %v2915_v26  ;;  %v2239_v26 = vld [vmem:[#allocation2 + $0xa8] sm:$0xf] }
  0xae   : > { %6238 = vmatpush3.bf16.msra.mxu0 %v6768_v62  ;;  %6173 = vmatprep.mubr.msk.bf16.mxu0 %vm341_vm0, %v2913_v16  ;;  %v2919_v54 = vsel %vm1232_vm4, %v2917_v15, %v2918_v42  ;;  %v2380_v55 = vshrl.u32 %v2235_v6, 16  ;;  %v2383_v28 = vshll.u32 %v2235_v6, 16  ;;  %v2353_v58 = vsel %vm578_vm3, %v2344_v35, %v2352_v5  ;;  %v2855_v62 = vld [vmem:[#allocation2 + $0x80] sm:$0xf0]  ;;  %v2241_v12 = vld [vmem:[#allocation2 + $0xb8] sm:$0xf] }
  0xaf   : > { %6138 = vmatmul.mubr.msk.bf16.gmra.mrb[52].mxu1 %vm341_vm0, %v2319_v39  ;;  %v2361_v59 = vor.u32 %v2360_v50, %v6868_v2  ;;  %v2374_v60 = vrot.slane %v2372_v51, 3  ;;  %v2377_v61 = vrot.slane %v2375_v52, 4  ;;  %6239 = vmatprep.subr.bf16.mxu0 %v6372_v46  ;;  %v6890_v0 = vsel %vm1232_vm4, %v2920_v45, %v2921_v44  ;;  %v2859_v2 = vld [vmem:[#allocation2 + $0xa0] sm:$0xf0]  ;;  %v2860_v50 = vld [vmem:[#allocation2 + $0xa8] sm:$0xf] }
  0xb0   : > { %6141 = vmatprep.mubr.msk.bf16.mxu1 %vm341_vm0, %v2336_v47  ;;  %v2382_v1 = vrot.slane %v2380_v55, 3  ;;  %v2385_v7 = vrot.slane %v2383_v28, 4  ;;  %v2389_v8 = vshrl.u32 %v2236_v48, 16  ;;  %v2369_v13 = vor.u32 %v2368_v56, %v2365_v4  ;;  %v2242_v51 = vld [vmem:[#allocation2 + $0xc0] sm:$0xf8] }
  0xb1   : > { %v2923_v14 = vrot.slane %v2853_v37, 4  ;;  %v2392_v38 = vshll.u32 %v2236_v48, 16  ;;  %v2397_v16 = vshrl.u32 %v2237_v57, 16  ;;  %v2378_v18 = vor.u32 %v2377_v61, %v2374_v60  ;;  %v2243_v55 = vld [vmem:[#allocation2 + $0xc8] sm:$0xf] }
  0xb2   : > { %v2924_v21 = vrot.slane %v2854_v63, 4  ;;  %v2391_v24 = vrot.slane %v2389_v8, 3  ;;  %v2400_v25 = vshll.u32 %v2237_v57, 16  ;;  %6240 = vmatpush3.bf16.msra.mxu0 %v6372_v46  ;;  %v2386_v27 = vor.u32 %v2385_v7, %v2382_v1  ;;  %v2862_v60 = vld [vmem:[#allocation2 + $0xb8] sm:$0xf] }
  0xb3   : > { %v2394_v30 = vrot.slane %v2392_v38, 4  ;;  %v2399_v31 = vrot.slane %v2397_v16, 3  ;;  %v2926_v22 = vrot.slane %v2855_v62, 4  ;;  %6309 = vmatprep.subr.bf16.mxu0 %v6879_v49  ;;  %v2927_v33 = vrot.slane %v2856_v9, 4  ;;  %v2244_v7 = vld [vmem:[#allocation2 + $0xd0] sm:$0xf8] }
  0xb4   : > { %v2402_v23 = vrot.slane %v2400_v25, 4  ;;  %v2406_v34 = vshrl.u32 %v2238_v17, 16  ;;  %v2409_v39 = vshll.u32 %v2238_v17, 16  ;;  %v2370_v3 = vsel %vm578_vm3, %v2361_v59, %v2369_v13  ;;  %v2861_v59 = vld [vmem:[#allocation2 + $0xb0] sm:$0xf0] }
  0xb5   : > { %6174 = vmatmul.mubr.msk.bf16.gmra.mrb[52].mxu0 %vm341_vm0, %v2916_v53  ;;  %v2395_v40 = vor.u32 %v2394_v30, %v2391_v24  ;;  %v2414_v15 = vshrl.u32 %v2239_v26, 16  ;;  %v2417_v42 = vshll.u32 %v2239_v26, 16  ;;  %v2925_v43 = vsel %vm1232_vm4, %v2923_v14, %v2924_v21  ;;  %v2245_v38 = vld [vmem:[#allocation2 + $0xd8] sm:$0xf]  ;;  %v2863_v30 = vld [vmem:[#allocation2 + $0xc0] sm:$0xf0] }
  0xb6   : > { %6177 = vmatprep.mubr.msk.bf16.mxu0 %vm341_vm0, %v2919_v54  ;;  %v2403_v11 = vor.u32 %v2402_v23, %v2399_v31  ;;  %v2408_v35 = vrot.slane %v2406_v34, 3  ;;  %v2411_v5 = vrot.slane %v2409_v39, 4  ;;  %v2387_v36 = vsel %vm578_vm3, %v2378_v18, %v2386_v27 }
  0xb7   : > { %6142 = vmatmul.mubr.msk.bf16.gmra.mrb[56].mxu1 %vm341_vm0, %v2353_v58  ;;  %v2416_v6 = vrot.slane %v2414_v15, 3  ;;  %v2419_v46 = vrot.slane %v2417_v42, 4  ;;  %v2423_v47 = vshrl.u32 %v2240_v29, 16  ;;  %v6903_v45 = vsel %vm1232_vm4, %v2926_v22, %v2927_v33 }
  0xb8   : > { %6145 = vmatprep.mubr.msk.bf16.mxu1 %vm341_vm0, %v2370_v3  ;;  %v2929_v44 = vrot.slane %v6892_v32, 4  ;;  %v2426_v4 = vshll.u32 %v2240_v29, 16  ;;  %v2431_v56 = vshrl.u32 %v2241_v12, 16  ;;  %v2404_v52 = vsel %vm578_vm3, %v2395_v40, %v2403_v11  ;;  %v2864_v29 = vld [vmem:[#allocation2 + $0xc8] sm:$0xf] }
  0xb9   : > { %v2930_v48 = vrot.slane %v2858_v10, 4  ;;  %v2425_v53 = vrot.slane %v2423_v47, 3  ;;  %v2434_v54 = vshll.u32 %v2241_v12, 16  ;;  %v2412_v28 = vor.u32 %v2411_v5, %v2408_v35  ;;  %v2247_v3 = vld [vmem:[#allocation2 + $0xe8] sm:$0xf] }
  0xba   : > { %v2420_v37 = vor.u32 %v2419_v46, %v2416_v6  ;;  %v2428_v57 = vrot.slane %v2426_v4, 4  ;;  %v2433_v58 = vrot.slane %v2431_v56, 3  ;;  %v2932_v63 = vrot.slane %v2859_v2, 4  ;;  %v2866_v11 = vld [vmem:[#allocation2 + $0xd8] sm:$0xf] }
  0xbb   : > { %v2436_v61 = vrot.slane %v2434_v54, 4  ;;  %v2440_v62 = vshrl.u32 %v2242_v51, 16  ;;  %v2443_v1 = vshll.u32 %v2242_v51, 16  ;;  %v2933_v9 = vrot.slane %v2860_v50, 4  ;;  %v2248_v6 = vld [vmem:[#allocation2 + $0xf0] sm:$0xf8] }
  0xbc   : > { %v2429_v8 = vor.u32 %v2428_v57, %v2425_v53  ;;  %v2448_v13 = vshrl.u32 %v2243_v55, 16  ;;  %v2451_v14 = vshll.u32 %v2243_v55, 16  ;;  %v2935_v21 = vrot.slane %v2861_v59, 4  ;;  %v2249_v4 = vld [vmem:[#allocation2 + $0xf8] sm:$0xf] }
  0xbd   : > { %6178 = vmatmul.mubr.msk.bf16.gmra.mrb[56].mxu0 %vm341_vm0, %v6890_v0  ;;  %v2437_v16 = vor.u32 %v2436_v61, %v2433_v58  ;;  %v2442_v17 = vrot.slane %v2440_v62, 3  ;;  %v2445_v18 = vrot.slane %v2443_v1, 4  ;;  %v2936_v26 = vrot.slane %v2862_v60, 4  ;;  %v2246_v0 = vld [vmem:[#allocation2 + $0xe0] sm:$0xf8] }
  0xbe   : > { %6181 = vmatprep.mubr.msk.bf16.mxu0 %vm341_vm0, %v2925_v43  ;;  %v2450_v24 = vrot.slane %v2448_v13, 3  ;;  %v2453_v25 = vrot.slane %v2451_v14, 4  ;;  %v2457_v27 = vshrl.u32 %v2244_v7, 16  ;;  %v2421_v31 = vsel %vm578_vm3, %v2412_v28, %v2420_v37  ;;  %v2865_v43 = vld [vmem:[#allocation2 + $0xd0] sm:$0xf0] }
  0xbf   : > { %6146 = vmatmul.mubr.msk.bf16.gmra.mrb[60].mxu1 %vm341_vm0, %v2387_v36  ;;  %v2931_v22 = vsel %vm1232_vm4, %v2929_v44, %v2930_v48  ;;  %v2460_v32 = vshll.u32 %v2244_v7, 16  ;;  %v2465_v23 = vshrl.u32 %v2245_v38, 16  ;;  %v2438_v33 = vsel %vm578_vm3, %v2429_v8, %v2437_v16  ;;  %v2867_v53 = vld [vmem:[#allocation2 + $0xe0] sm:$0xf0]  ;;  %v2868_v57 = vld [vmem:[#allocation2 + $0xe8] sm:$0xf] }
  0xc0   : > { %6149 = vmatprep.mubr.msk.bf16.mxu1 %vm341_vm0, %v2404_v52  ;;  %v6916_v34 = vsel %vm1232_vm4, %v2932_v63, %v2933_v9  ;;  %v2459_v39 = vrot.slane %v2457_v27, 3  ;;  %v2468_v10 = vshll.u32 %v2245_v38, 16  ;;  %v2446_v40 = vor.u32 %v2445_v18, %v2442_v17  ;;  %v230_v63 = vld [vmem:[%s6487_s30 + $0xf8] sm:$0xff]  ;;  %v3270_v38 = vld [vmem:[#allocation2 + $0x10] sm:$0xf0] }
  0xc1   : > { %v2454_v15 = vor.u32 %v2453_v25, %v2450_v24  ;;  %v2462_v42 = vrot.slane %v2460_v32, 4  ;;  %v2467_v12 = vrot.slane %v2465_v23, 3  ;;  %v6919_v35 = vsel %vm1232_vm4, %v2935_v21, %v2936_v26  ;;  %v6378_v21 = vld [vmem:[%s7713_s2] ss:$0 sm:$0xff]  ;;  %v3271_v25 = vld [vmem:[#allocation2 + $0x18] sm:$0x1f] }
  0xc2   : > { %v2470_v5 = vrot.slane %v2468_v10, 4  ;;  %v2474_v2 = vshrl.u32 %v2246_v0, 16  ;;  %v2477_v36 = vshll.u32 %v2246_v0, 16  ;;  %v2938_v46 = vrot.slane %v2863_v30, 4  ;;  %v3272_v32 = vld [vmem:[#allocation2 + $0x20] sm:$0xf0] }
  0xc3   : > { %v2939_v47 = vrot.slane %v2864_v29, 4  ;;  %v2482_v50 = vshrl.u32 %v2247_v3, 16  ;;  %v2485_v44 = vshll.u32 %v2247_v3, 16  ;;  %v2463_v56 = vor.u32 %v2462_v42, %v2459_v39 }
  0xc4   : > { %v2471_v51 = vor.u32 %v2470_v5, %v2467_v12  ;;  %v2476_v52 = vrot.slane %v2474_v2, 3  ;;  %v2479_v48 = vrot.slane %v2477_v36, 4  ;;  %v2941_v28 = vrot.slane %v2865_v43, 4 }
  0xc5   : > { %6182 = vmatmul.mubr.msk.bf16.gmra.mrb[60].mxu0 %vm341_vm0, %v6903_v45  ;;  %v2484_v54 = vrot.slane %v2482_v50, 3  ;;  %v2487_v55 = vrot.slane %v2485_v44, 4  ;;  %v2491_v37 = vshrl.u32 %v2248_v6, 16  ;;  %v2942_v59 = vrot.slane %v2866_v11, 4  ;;  %v3892_v11 = vld [vmem:[#allocation2 + $0x20] sm:$0xf8] }
  0xc6   : > { %6185 = vmatprep.mubr.msk.bf16.mxu0 %vm341_vm0, %v2931_v22  ;;  %v2480_v58 = vor.u32 %v2479_v48, %v2476_v52  ;;  %v2494_v60 = vshll.u32 %v2248_v6, 16  ;;  %v2499_v61 = vshrl.u32 %v2249_v4, 16  ;;  %v2455_v62 = vsel %vm578_vm3, %v2446_v40, %v2454_v15  ;;  %v6943_v22 = vld [vmem:[#allocation2 + $0xf0] sm:$0xf0]  ;;  %v3273_v40 = vld [vmem:[#allocation2 + $0x28] sm:$0x1f] }
  0xc7   : > { %6150 = vmatmul.mubr.msk.bf16.gmra.mrb[64].mxu1 %vm341_vm0, %v2421_v31  ;;  %v2488_v1 = vor.u32 %v2487_v55, %v2484_v54  ;;  %v2493_v7 = vrot.slane %v2491_v37, 3  ;;  %v2502_v8 = vshll.u32 %v2249_v4, 16  ;;  %v2944_v13 = vrot.slane %v2867_v53, 4  ;;  %v3893_v44 = vld [vmem:[#allocation2 + $0x28] sm:$0xf] }
  0xc8   : > { %6153 = vmatprep.mubr.msk.bf16.mxu1 %vm341_vm0, %v2438_v33  ;;  %v2496_v45 = vrot.slane %v2494_v60, 4  ;;  %v2501_v9 = vrot.slane %v2499_v61, 3  ;;  %v2945_v14 = vrot.slane %v2868_v57, 4  ;;  %v6929_v16 = vsel %vm1232_vm4, %v2938_v46, %v2939_v47  ;;  %v6948_v33 = vld [vmem:[#allocation2 + $0xf8] sm:$0xf] }
  0xc9   : > { %v2504_v17 = vrot.slane %v2502_v8, 4  ;;  %v269_v18 = vmul.f32 %v6815_v19, %v230_v63  ;;  %v307_v24 = vadd.f32 %v6378_v21, %v6818_v20  ;;  %v2472_v26 = vsel %vm578_vm3, %v2463_v56, %v2471_v51  ;;  %v3274_v52 = vld [vmem:[#allocation2 + $0x30] sm:$0xf0] }
  0xca   : > { %v6938_v27 = vsel %vm578_vm3, %v2480_v58, %v2488_v1  ;;  %v6941_v30 = vsel %vm1232_vm4, %v2941_v28, %v2942_v59  ;;  %v2497_v31 = vor.u32 %v2496_v45, %v2493_v7  ;;  %v6946_v19 = vsel %vm1232_vm4, %v2944_v13, %v2945_v14  ;;  %v3275_v28 = vld [vmem:[#allocation2 + $0x38] sm:$0x1f]  ;;  %v3894_v1 = vld [vmem:[#allocation2 + $0x30] sm:$0xf8] }
  0xcb   : > { %v308_v23 = vadd.f32 %v6378_v21, %v269_v18  ;;  %v339_v0 = vmax.f32 %v307_v24, 0.0  ;;  %v3303_v20 = vshrl.u32 %v3270_v38, 16  ;;  %v2505_v39 = vor.u32 %v2504_v17, %v2501_v9  ;;  %v3895_v13 = vld [vmem:[#allocation2 + $0x38] sm:$0xf] }
  0xcc   : > { %v3306_v10 = vshll.u32 %v3270_v38, 16  ;;  %v3311_v29 = vshrl.u32 %v3271_v25, 16  ;;  %v3314_v3 = vshll.u32 %v3271_v25, 16  ;;  %v2947_v42 = vrot.slane %v6943_v22, 4 }
  0xcd   : > { %6186 = vmatmul.mubr.msk.bf16.gmra.mrb[64].mxu0 %vm341_vm0, %v6916_v34  ;;  %v340_v15 = vmax.f32 %v308_v23, 0.0  ;;  %v6953_v12 = vrot.slane %v3303_v20, 4  ;;  %v3320_v43 = vshrl.u32 %v3272_v32, 16  ;;  %v3323_v6 = vshll.u32 %v3272_v32, 16 }
  0xce   : > { %6189 = vmatprep.mubr.msk.bf16.mxu0 %vm341_vm0, %v6919_v35  ;;  %v6957_v5 = vrot.slane %v3306_v10, 5  ;;  %v6959_v2 = vrot.slane %v3311_v29, 4  ;;  %v6961_v36 = vrot.slane %v3314_v3, 5  ;;  %v3328_v47 = vshrl.u32 %v3273_v40, 16 }
  0xcf   : > { %6154 = vmatmul.mubr.msk.bf16.gmra.mrb[68].mxu1 %vm341_vm0, %v2455_v62  ;;  %v397_v34 = vpack.c.bf16 %v340_v15, %v339_v0  ;;  %v3322_v46 = vrot.slane %v3320_v43, 4  ;;  %v3331_v50 = vshll.u32 %v3273_v40, 16  ;;  %v2506_v4 = vsel %vm578_vm3, %v2497_v31, %v2505_v39  ;;  %v3276_v31 = vld [vmem:[#allocation2 + $0x40] sm:$0xf0] }
  0xd0   : > { %6157 = vmatprep.mubr.msk.bf16.mxu1 %vm341_vm0, %v2472_v26  ;;  %v2948_v35 = vrot.slane %v6948_v33, 4  ;;  %v3325_v56 = vrot.slane %v3323_v6, 5  ;;  %v3925_v51 = vshrl.u32 %v3892_v11, 16  ;;  %v3330_v53 = vrot.slane %v3328_v47, 4 }
  0xd1   : > { %v429_v48 = vrot.slane %v397_v34, 4  ;;  %v3333_v54 = vrot.slane %v3331_v50, 5  ;;  %v3928_v55 = vshll.u32 %v3892_v11, 16  ;;  %v3309_v37 = vor.u32 %v6957_v5, %v6953_v12 }
  0xd2   : > { %v3317_v57 = vor.u32 %v6961_v36, %v6959_v2  ;;  %v3927_v58 = vrot.slane %v3925_v51, 3  ;;  %v3933_v59 = vshrl.u32 %v3893_v44, 16  ;;  %v3326_v60 = vor.u32 %v3325_v56, %v3322_v46 }
  0xd3   : > { %476 = vst.msk [vmem:[#allocation2 + $0x100] sm:$0xf0] %vm365_vm2, %v429_v48  ;;  %v3930_v61 = vrot.slane %v3928_v55, 4  ;;  %v3936_v63 = vshll.u32 %v3893_v44, 16  ;;  %v3337_v62 = vshrl.u32 %v3274_v52, 16  ;;  %v3340_v8 = vshll.u32 %v3274_v52, 16 }
  0xd4   : > { %477 = vst.msk [vmem:[#allocation2 + $0x108] sm:$0xf] %vm348_vm1, %v429_v48  ;;  %v3935_v7 = vrot.slane %v3933_v59, 3  ;;  %v3345_v45 = vshrl.u32 %v3275_v28, 16  ;;  %v3348_v9 = vshll.u32 %v3275_v28, 16  ;;  %v3334_v14 = vor.u32 %v3333_v54, %v3330_v53 }
  0xd5   : > { %6190 = vmatmul.mubr.msk.bf16.gmra.mrb[68].mxu0 %vm341_vm0, %v6929_v16  ;;  %v3931_v38 = vor.u32 %v3930_v61, %v3927_v58  ;;  %v3938_v17 = vrot.slane %v3936_v63, 4  ;;  %v3339_v18 = vrot.slane %v3337_v62, 4  ;;  %v3342_v21 = vrot.slane %v3340_v8, 5  ;;  %v3897_v53 = vld [vmem:[#allocation2 + $0x48] sm:$0xf] }
  0xd6   : > { %6193 = vmatprep.mubr.msk.bf16.mxu0 %vm341_vm0, %v6941_v30  ;;  %v3347_v24 = vrot.slane %v3345_v45, 4  ;;  %v3350_v25 = vrot.slane %v3348_v9, 5  ;;  %v3942_v26 = vshrl.u32 %v3894_v1, 16  ;;  %v3945_v32 = vshll.u32 %v3894_v1, 16  ;;  %v3278_v61 = vld [vmem:[#allocation2 + $0x50] sm:$0xf0] }
  0xd7   : > { %6158 = vmatmul.mubr.msk.bf16.gmra.mrb[72].mxu1 %vm341_vm0, %v6938_v27  ;;  %v3939_v22 = vor.u32 %v3938_v17, %v3935_v7  ;;  %v3950_v23 = vshrl.u32 %v3895_v13, 16  ;;  %v3953_v0 = vshll.u32 %v3895_v13, 16  ;;  %v2949_v16 = vsel %vm1232_vm4, %v2947_v42, %v2948_v35  ;;  %v3896_v35 = vld [vmem:[#allocation2 + $0x40] sm:$0xf8]  ;;  %v3279_v7 = vld [vmem:[#allocation2 + $0x58] sm:$0x1f] }
  0xd8   : > { %6161 = vmatprep.mubr.msk.bf16.mxu1 %vm341_vm0, %v2506_v4  ;;  %v3343_v33 = vor.u32 %v3342_v21, %v3339_v18  ;;  %v3351_v20 = vor.u32 %v3350_v25, %v3347_v24  ;;  %v3944_v39 = vrot.slane %v3942_v26, 3  ;;  %v3947_v30 = vrot.slane %v3945_v32, 4  ;;  %v3277_v4 = vld [vmem:[#allocation2 + $0x48] sm:$0x1f] }
  0xd9   : > { %v3952_v10 = vrot.slane %v3950_v23, 3  ;;  %v3955_v29 = vrot.slane %v3953_v0, 4  ;;  %v3354_v3 = vshrl.u32 %v3276_v31, 16  ;;  %v3318_v27 = vsel %vm1630_vm5, %v3309_v37, %v3317_v57  ;;  %v3899_v0 = vld [vmem:[#allocation2 + $0x58] sm:$0xf] }
  0xda   : > { %v2250_v40 = vld [vmem:[#allocation2 + $0x100] sm:$0xf8]  ;;  %v6983_v43 = vsel %vm1630_vm5, %v3326_v60, %v3334_v14  ;;  %v3940_v11 = vsel %vm578_vm3, %v3931_v38, %v3939_v22  ;;  %v6987_v5 = vsel %vm1630_vm5, %v3343_v33, %v3351_v20  ;;  %v3948_v50 = vor.u32 %v3947_v30, %v3944_v39  ;;  %v3898_v14 = vld [vmem:[#allocation2 + $0x50] sm:$0xf8] }
  0xdb   : > { %v2251_v15 = vld [vmem:[#allocation2 + $0x108] sm:$0xf]  ;;  %v2871_v12 = vld [vmem:[#allocation2 + $0x100] sm:$0xf0]  ;;  %v2508_v42 = vshrl.u32 %v2250_v40, 16  ;;  %v2511_v2 = vshll.u32 %v2250_v40, 16  ;;  %v3956_v44 = vor.u32 %v3955_v29, %v3952_v10 }
  0xdc   : > { %v2516_v36 = vshrl.u32 %v2251_v15, 16  ;;  %v2519_v6 = vshll.u32 %v2251_v15, 16  ;;  %v2872_v34 = vld [vmem:[#allocation2 + $0x108] sm:$0xf]  ;;  %v2950_v46 = vrot.slane %v2871_v12, 4  ;;  %v3356_v28 = vrot.slane %v3354_v3, 4 }
  0xdd   : > { %v2951_v47 = vrot.slane %v2872_v34, 4  ;;  %6194 = vmatmul.mubr.msk.bf16.gmra.mrb[72].mxu0 %vm341_vm0, %v6946_v19  ;;  %v2510_v56 = vrot.slane %v2508_v42, 3  ;;  %v2513_v51 = vrot.slane %v2511_v2, 4  ;;  %v6994_v55 = vsel %vm578_vm3, %v3948_v50, %v3956_v44  ;;  %v3280_v10 = vld [vmem:[#allocation2 + $0x60] sm:$0xf0]  ;;  %v6375_v44 = vld [vmem:[%s7714_s3 + $0x78] sm:$0xff]  }
  0xde   : > { %v2518_v52 = vrot.slane %v2516_v36, 3  ;;  %v2521_v48 = vrot.slane %v2519_v6, 4  ;;  %6197 = vmatprep.mubr.msk.bf16.mxu0 %vm341_vm0, %v2949_v16  ;;  %v3357_v37 = vshll.u32 %v3276_v31, 16  ;;  %v3362_v59 = vshrl.u32 %v3277_v4, 16  ;;  %v3281_v12 = vld [vmem:[#allocation2 + $0x68] sm:$0x1f] }
  0xdf   : > { %v2952_v54 = vsel %vm1232_vm4, %v2950_v46, %v2951_v47  ;;  %v2514_v57 = vor.u32 %v2513_v51, %v2510_v56  ;;  %v3365_v60 = vshll.u32 %v3277_v4, 16  ;;  %v3959_v63 = vshrl.u32 %v3896_v35, 16  ;;  %v3900_v50 = vld [vmem:[#allocation2 + $0x60] sm:$0xf8]  ;;  %v3901_v51 = vld [vmem:[#allocation2 + $0x68] sm:$0xf] }
  0xe0   : > { %v2522_v58 = vor.u32 %v2521_v48, %v2518_v52  ;;  %v3359_v19 = vrot.slane %v3357_v37, 5  ;;  %v3962_v62 = vshll.u32 %v3896_v35, 16  ;;  %v3967_v1 = vshrl.u32 %v3897_v53, 16 }
  0xe1   : > { %v3364_v45 = vrot.slane %v3362_v59, 4  ;;  %v3367_v9 = vrot.slane %v3365_v60, 5  ;;  %v3970_v13 = vshll.u32 %v3897_v53, 16  ;;  %v3961_v17 = vrot.slane %v3959_v63, 3  ;;  %v6376_v60 = vld [vmem:[%s7714_s3 + $0x88] sm:$0xff]  }
  0xe2   : > { %v2523_v8 = vsel %vm578_vm3, %v2514_v57, %v2522_v58  ;;  %v3360_v38 = vor.u32 %v3359_v19, %v3356_v28  ;;  %v3964_v18 = vrot.slane %v3962_v62, 4  ;;  %v3969_v21 = vrot.slane %v3967_v1, 3  ;;  %v3282_v28 = vld [vmem:[#allocation2 + $0x70] sm:$0xf0]  ;;  %v3283_v62 = vld [vmem:[#allocation2 + $0x78] sm:$0x1f] }
  0xe3   : > { %6162 = vmatmul.mubr.msk.bf16.gmra.mrb[76].mxu1 %vm341_vm0, %v2523_v8  ;;  %v3368_v24 = vor.u32 %v3367_v9, %v3364_v45  ;;  %v3972_v25 = vrot.slane %v3970_v13, 4  ;;  %v3371_v26 = vshrl.u32 %v3278_v61, 16  ;;  %v3374_v31 = vshll.u32 %v3278_v61, 16  ;;  %v3902_v8 = vld [vmem:[#allocation2 + $0x70] sm:$0xf8] }
  0xe4   : > { %6205 = vmatprep.mubr.msk.bf16.mxu1 %vm341_vm0, %v3318_v27  ;;  %v3965_v22 = vor.u32 %v3964_v18, %v3961_v17  ;;  %v3379_v32 = vshrl.u32 %v3279_v7, 16  ;;  %v3382_v23 = vshll.u32 %v3279_v7, 16  ;;  %v3976_v16 = vshrl.u32 %v3898_v14, 16 }
  0xe5   : > { %6198 = vmatmul.mubr.msk.bf16.gmra.mrb[76].mxu0 %vm341_vm0, %v2952_v54  ;;  %v7001_v33 = vsel %vm1630_vm5, %v3360_v38, %v3368_v24  ;;  %v3973_v20 = vor.u32 %v3972_v25, %v3969_v21  ;;  %v3373_v39 = vrot.slane %v3371_v26, 4  ;;  %v3376_v30 = vrot.slane %v3374_v31, 5  ;;  %v3903_v38 = vld [vmem:[#allocation2 + $0x78] sm:$0xf] }
  0xe6   : > { %6241 = vmatprep.mubr.msk.bf16.mxu0 %vm341_vm0, %v3940_v11  ;;  %v3381_v29 = vrot.slane %v3379_v32, 4  ;;  %v3384_v3 = vrot.slane %v3382_v23, 5  ;;  %v3978_v40 = vrot.slane %v3976_v16, 3  ;;  %v3979_v15 = vshll.u32 %v3898_v14, 16  ;;  %v3285_v16 = vld [vmem:[#allocation2 + $0x88] sm:$0x1f] }
  0xe7   : > { %v3974_v27 = vsel %vm578_vm3, %v3965_v22, %v3973_v20  ;;  %v3377_v42 = vor.u32 %v3376_v30, %v3373_v39  ;;  %v3984_v2 = vshrl.u32 %v3899_v0, 16  ;;  %v3987_v36 = vshll.u32 %v3899_v0, 16  ;;  %v3284_v22 = vld [vmem:[#allocation2 + $0x80] sm:$0xf0] }
  0xe8   : > { %v3385_v6 = vor.u32 %v3384_v3, %v3381_v29  ;;  %v3981_v34 = vrot.slane %v3979_v15, 4  ;;  %v3388_v46 = vshrl.u32 %v3280_v10, 16  ;;  %v3391_v47 = vshll.u32 %v3280_v10, 16  ;;  %v3904_v29 = vld [vmem:[#allocation2 + $0x80] sm:$0xf8] }
  0xe9   : > { %v3986_v11 = vrot.slane %v3984_v2, 3  ;;  %v3989_v4 = vrot.slane %v3987_v36, 4  ;;  %v3396_v35 = vshrl.u32 %v3281_v12, 16  ;;  %v3399_v56 = vshll.u32 %v3281_v12, 16 }
  0xea   : > { %v3386_v52 = vsel %vm1630_vm5, %v3377_v42, %v3385_v6  ;;  %v3982_v48 = vor.u32 %v3981_v34, %v3978_v40  ;;  %v3390_v53 = vrot.slane %v3388_v46, 4  ;;  %v3393_v54 = vrot.slane %v3391_v47, 5  ;;  %v3905_v6 = vld [vmem:[#allocation2 + $0x88] sm:$0xf] }
  0xeb   : > { %6206 = vmatmul.mubr.msk.bf16.vlgmr.msra.gmra.mrb[80].mxu1 %vm341_vm0, %v6983_v43  ;;  %v3990_v37 = vor.u32 %v3989_v4, %v3986_v11  ;;  %v3398_v57 = vrot.slane %v3396_v35, 4  ;;  %v3401_v58 = vrot.slane %v3399_v56, 5  ;;  %v3993_v59 = vshrl.u32 %v3900_v50, 16 }
  0xec   : > { %6274 = vmatpush3.bf16.msra.mxu1 %v6866_v41  ;;  %6209 = vmatprep.mubr.msk.bf16.mxu1 %vm341_vm0, %v6987_v5  ;;  %v3394_v43 = vor.u32 %v3393_v54, %v3390_v53  ;;  %v3996_v61 = vshll.u32 %v3900_v50, 16  ;;  %v4001_v19 = vshrl.u32 %v3901_v51, 16  ;;  %v4004_v63 = vshll.u32 %v3901_v51, 16  ;;  %v3286_v50 = vld [vmem:[#allocation2 + $0x90] sm:$0xf0] }
  0xed   : > { %6275 = vmatprep.subr.bf16.mxu1 %v6375_v44  ;;  %6242 = vmatmul.mubr.msk.bf16.vlgmr.msra.gmra.mrb[80].mxu0 %vm341_vm0, %v6994_v55  ;;  %v3991_v41 = vsel %vm578_vm3, %v3982_v48, %v3990_v37  ;;  %v3402_v5 = vor.u32 %v3401_v58, %v3398_v57  ;;  %v3995_v1 = vrot.slane %v3993_v59, 3  ;;  %v3405_v7 = vshrl.u32 %v3282_v28, 16  ;;  %v3287_v53 = vld [vmem:[#allocation2 + $0x98] sm:$0x1f]  ;;  %v3906_v58 = vld [vmem:[#allocation2 + $0x90] sm:$0xf8] }
  0xee   : > { %6310 = vmatpush3.bf16.msra.mxu0 %v6879_v49  ;;  %6245 = vmatprep.mubr.msk.bf16.mxu0 %vm341_vm0, %v3974_v27  ;;  %v3998_v45 = vrot.slane %v3996_v61, 4  ;;  %v4003_v9 = vrot.slane %v4001_v19, 3  ;;  %v4006_v13 = vrot.slane %v4004_v63, 4  ;;  %v3408_v14 = vshll.u32 %v3282_v28, 16  ;;  %v3907_v19 = vld [vmem:[#allocation2 + $0x98] sm:$0xf] }
  0xef   : > { %v3403_v17 = vsel %vm1630_vm5, %v3394_v43, %v3402_v5  ;;  %v3407_v18 = vrot.slane %v3405_v7, 4  ;;  %v3413_v21 = vshrl.u32 %v3283_v62, 16  ;;  %v3416_v55 = vshll.u32 %v3283_v62, 16  ;;  %6311 = vmatprep.subr.bf16.mxu0 %v6376_v60 }
  0xf0   : > { %6276 = vmatpush3.bf16.msra.mxu1 %v6375_v44  ;;  %v3999_v24 = vor.u32 %v3998_v45, %v3995_v1  ;;  %v4007_v25 = vor.u32 %v4006_v13, %v4003_v9  ;;  %v3410_v26 = vrot.slane %v3408_v14, 5  ;;  %v4010_v31 = vshrl.u32 %v3902_v8, 16  ;;  %v3288_v9 = vld [vmem:[#allocation2 + $0xa0] sm:$0xf0] }
  0xf1   : > { %v3415_v49 = vrot.slane %v3413_v21, 4  ;;  %v3418_v32 = vrot.slane %v3416_v55, 5  ;;  %v4013_v23 = vshll.u32 %v3902_v8, 16  ;;  %v4018_v0 = vshrl.u32 %v3903_v38, 16  ;;  %v3289_v21 = vld [vmem:[#allocation2 + $0xa8] sm:$0x1f] }
  0xf2   : > { %v4008_v20 = vsel %vm578_vm3, %v3999_v24, %v4007_v25  ;;  %v3411_v39 = vor.u32 %v3410_v26, %v3407_v18  ;;  %v4012_v30 = vrot.slane %v4010_v31, 3  ;;  %v4021_v10 = vshll.u32 %v3903_v38, 16  ;;  %6312 = vmatpush3.bf16.msra.mxu0 %v6376_v60  ;;  %v3908_v26 = vld [vmem:[#allocation2 + $0xa0] sm:$0xf8] }
  0xf3   : > { %6210 = vmatmul.mubr.msk.bf16.gmra.mrb[84].mxu1 %vm341_vm0, %v7001_v33  ;;  %v3419_v3 = vor.u32 %v3418_v32, %v3415_v49  ;;  %v4015_v40 = vrot.slane %v4013_v23, 4  ;;  %v4020_v15 = vrot.slane %v4018_v0, 3  ;;  %v3422_v12 = vshrl.u32 %v3284_v22, 16 }
  0xf4   : > { %6213 = vmatprep.mubr.msk.bf16.mxu1 %vm341_vm0, %v3386_v52  ;;  %v4023_v27 = vrot.slane %v4021_v10, 4  ;;  %v3425_v42 = vshll.u32 %v3284_v22, 16  ;;  %v3430_v2 = vshrl.u32 %v3285_v16, 16  ;;  %v3433_v36 = vshll.u32 %v3285_v16, 16 }
  0xf5   : > { %6246 = vmatmul.mubr.msk.bf16.gmra.mrb[84].mxu0 %vm341_vm0, %v3991_v41  ;;  %v3420_v33 = vsel %vm1630_vm5, %v3411_v39, %v3419_v3  ;;  %v4016_v34 = vor.u32 %v4015_v40, %v4012_v30  ;;  %v3424_v46 = vrot.slane %v3422_v12, 4  ;;  %v4027_v47 = vshrl.u32 %v3904_v29, 16  ;;  %v3909_v39 = vld [vmem:[#allocation2 + $0xa8] sm:$0xf]  ;;  %v3290_v40 = vld [vmem:[#allocation2 + $0xb0] sm:$0xf0] }
  0xf6   : > { %6249 = vmatprep.mubr.msk.bf16.mxu0 %vm341_vm0, %v4008_v20  ;;  %v4024_v44 = vor.u32 %v4023_v27, %v4020_v15  ;;  %v3427_v11 = vrot.slane %v3425_v42, 5  ;;  %v3432_v4 = vrot.slane %v3430_v2, 4  ;;  %v3435_v35 = vrot.slane %v3433_v36, 5 }
  0xf7   : > { %v4029_v56 = vrot.slane %v4027_v47, 3  ;;  %v4030_v51 = vshll.u32 %v3904_v29, 16  ;;  %v4035_v52 = vshrl.u32 %v3905_v6, 16  ;;  %v4038_v48 = vshll.u32 %v3905_v6, 16 }
  0xf8   : > { %v4025_v54 = vsel %vm578_vm3, %v4016_v34, %v4024_v44  ;;  %v3428_v28 = vor.u32 %v3427_v11, %v3424_v46  ;;  %v3436_v37 = vor.u32 %v3435_v35, %v3432_v4  ;;  %v3439_v57 = vshrl.u32 %v3286_v50, 16  ;;  %v3291_v34 = vld [vmem:[#allocation2 + $0xb8] sm:$0x1f]  ;;  %v3910_v11 = vld [vmem:[#allocation2 + $0xb0] sm:$0xf8] }
  0xf9   : > { %v4032_v59 = vrot.slane %v4030_v51, 4  ;;  %v4037_v60 = vrot.slane %v4035_v52, 3  ;;  %v4040_v43 = vrot.slane %v4038_v48, 4  ;;  %v3442_v61 = vshll.u32 %v3286_v50, 16  ;;  %v3911_v4 = vld [vmem:[#allocation2 + $0xb8] sm:$0xf] }
  0xfa   : > { %v3437_v63 = vsel %vm1630_vm5, %v3428_v28, %v3436_v37  ;;  %v3441_v62 = vrot.slane %v3439_v57, 4  ;;  %v3447_v41 = vshrl.u32 %v3287_v53, 16  ;;  %v3450_v5 = vshll.u32 %v3287_v53, 16 }
  0xfb   : > { %6214 = vmatmul.mubr.msk.bf16.gmra.mrb[88].mxu1 %vm341_vm0, %v3403_v17  ;;  %v4033_v1 = vor.u32 %v4032_v59, %v4029_v56  ;;  %v4041_v7 = vor.u32 %v4040_v43, %v4037_v60  ;;  %v3444_v8 = vrot.slane %v3442_v61, 5  ;;  %v4044_v45 = vshrl.u32 %v3906_v58, 16 }
  0xfc   : > { %6217 = vmatprep.mubr.msk.bf16.mxu1 %vm341_vm0, %v3420_v33  ;;  %v3449_v13 = vrot.slane %v3447_v41, 4  ;;  %v3452_v14 = vrot.slane %v3450_v5, 5  ;;  %v4047_v38 = vshll.u32 %v3906_v58, 16  ;;  %v4052_v18 = vshrl.u32 %v3907_v19, 16  ;;  %v3292_v58 = vld [vmem:[#allocation2 + $0xc0] sm:$0xf0] }
  0xfd   : > { %6250 = vmatmul.mubr.msk.bf16.gmra.mrb[88].mxu0 %vm341_vm0, %v4025_v54  ;;  %v4042_v17 = vsel %vm578_vm3, %v4033_v1, %v4041_v7  ;;  %v3445_v55 = vor.u32 %v3444_v8, %v3441_v62  ;;  %v4046_v24 = vrot.slane %v4044_v45, 3  ;;  %v4055_v25 = vshll.u32 %v3907_v19, 16 }
  0xfe   : > { %6253 = vmatprep.mubr.msk.bf16.mxu0 %vm341_vm0, %v4042_v17  ;;  %v3453_v31 = vor.u32 %v3452_v14, %v3449_v13  ;;  %v4049_v22 = vrot.slane %v4047_v38, 4  ;;  %v4054_v49 = vrot.slane %v4052_v18, 3  ;;  %v3456_v32 = vshrl.u32 %v3288_v9, 16  ;;  %v3912_v18 = vld [vmem:[#allocation2 + $0xc0] sm:$0xf8] }
  0xff   : > { %v4057_v23 = vrot.slane %v4055_v25, 4  ;;  %v3459_v0 = vshll.u32 %v3288_v9, 16  ;;  %v3464_v16 = vshrl.u32 %v3289_v21, 16  ;;  %v3467_v20 = vshll.u32 %v3289_v21, 16 }
 0x100   : > { %v3454_v30 = vsel %vm1630_vm5, %v3445_v55, %v3453_v31  ;;  %v4050_v10 = vor.u32 %v4049_v22, %v4046_v24  ;;  %v3458_v29 = vrot.slane %v3456_v32, 4  ;;  %v4061_v3 = vshrl.u32 %v3908_v26, 16 }
 0x101   : > { %v4058_v15 = vor.u32 %v4057_v23, %v4054_v49  ;;  %v3461_v12 = vrot.slane %v3459_v0, 5  ;;  %v3466_v27 = vrot.slane %v3464_v16, 4  ;;  %v3469_v42 = vrot.slane %v3467_v20, 5  ;;  %v3913_v23 = vld [vmem:[#allocation2 + $0xc8] sm:$0xf] }
 0x102   : > { %v4063_v2 = vrot.slane %v4061_v3, 3  ;;  %v4064_v36 = vshll.u32 %v3908_v26, 16  ;;  %v4069_v6 = vshrl.u32 %v3909_v39, 16  ;;  %v4072_v33 = vshll.u32 %v3909_v39, 16  ;;  %v7041_v35 = vpop.f32.mrb[0].mxu1 }
 0x103   : > { %6218 = vmatmul.mubr.msk.bf16.gmra.mrb[92].mxu1 %vm341_vm0, %v3437_v63  ;;  %v4059_v46 = vsel %vm578_vm3, %v4050_v10, %v4058_v15  ;;  %v3462_v47 = vor.u32 %v3461_v12, %v3458_v29  ;;  %v3470_v50 = vor.u32 %v3469_v42, %v3466_v27  ;;  %v3473_v44 = vshrl.u32 %v3290_v40, 16  ;;  %v7043_v53 = vpop.f32.mrb[1].mxu1  ;;  %v3293_v63 = vld [vmem:[#allocation2 + $0xc8] sm:$0x1f] }
 0x104   : > { %6221 = vmatprep.mubr.msk.bf16.mxu1 %vm341_vm0, %v3454_v30  ;;  %v4066_v56 = vrot.slane %v4064_v36, 4  ;;  %v4071_v51 = vrot.slane %v4069_v6, 3  ;;  %v4074_v52 = vrot.slane %v4072_v33, 4  ;;  %v3476_v48 = vshll.u32 %v3290_v40, 16  ;;  %v7047_v59 = vpop.f32.mrb[2].mxu1 }
 0x105   : > { %6254 = vmatmul.mubr.msk.bf16.gmra.mrb[92].mxu0 %vm341_vm0, %v4059_v46  ;;  %v3471_v54 = vsel %vm1630_vm5, %v3462_v47, %v3470_v50  ;;  %v3475_v28 = vrot.slane %v3473_v44, 4  ;;  %v3481_v37 = vshrl.u32 %v3291_v34, 16  ;;  %v3484_v57 = vshll.u32 %v3291_v34, 16  ;;  %v7049_v62 = vpop.f32.mrb[3].mxu1  ;;  %v7051_v41 = vpop.f32.mrb[0].mxu0 }
 0x106   : > { %v4067_v60 = vor.u32 %v4066_v56, %v4063_v2  ;;  %v4075_v43 = vor.u32 %v4074_v52, %v4071_v51  ;;  %v3478_v61 = vrot.slane %v3476_v48, 5  ;;  %v4078_v19 = vshrl.u32 %v3910_v11, 16  ;;  %v7053_v45 = vpop.f32.mrb[1].mxu0  ;;  %v3294_v30 = vld [vmem:[#allocation2 + $0xd0] sm:$0xf0] }
 0x107   : > { %v3483_v5 = vrot.slane %v3481_v37, 4  ;;  %v3486_v1 = vrot.slane %v3484_v57, 5  ;;  %v4081_v7 = vshll.u32 %v3910_v11, 16  ;;  %v4086_v8 = vshrl.u32 %v3911_v4, 16  ;;  %v7056_v21 = vpop.f32.mrb[2].mxu0 }
 0x108   : > { %v4076_v9 = vsel %vm578_vm3, %v4067_v60, %v4075_v43  ;;  %v3479_v13 = vor.u32 %v3478_v61, %v3475_v28  ;;  %v4080_v14 = vrot.slane %v4078_v19, 3  ;;  %v4089_v38 = vshll.u32 %v3911_v4, 16  ;;  %v7059_v26 = vpop.f32.mrb[3].mxu0  ;;  %v3295_v2 = vld [vmem:[#allocation2 + $0xd8] sm:$0x1f] }
 0x109   : > { %6257 = vmatprep.mubr.msk.bf16.mxu0 %vm341_vm0, %v4076_v9  ;;  %v3487_v17 = vor.u32 %v3486_v1, %v3483_v5  ;;  %v4083_v55 = vrot.slane %v4081_v7, 4  ;;  %v4088_v24 = vrot.slane %v4086_v8, 3  ;;  %v3490_v25 = vshrl.u32 %v3292_v58, 16  ;;  %v3914_v46 = vld [vmem:[#allocation2 + $0xd0] sm:$0xf8] }
 0x10a   : > { %v4091_v31 = vrot.slane %v4089_v38, 4  ;;  %v3493_v22 = vshll.u32 %v3292_v58, 16  ;;  %v3498_v49 = vshrl.u32 %v3293_v63, 16  ;;  %v3501_v32 = vshll.u32 %v3293_v63, 16  ;;  %v3915_v4 = vld [vmem:[#allocation2 + $0xd8] sm:$0xf] }
 0x10b   : > { %6222 = vmatmul.mubr.msk.bf16.gmra.mrb[96].mxu1 %vm341_vm0, %v3471_v54  ;;  %v3488_v0 = vsel %vm1630_vm5, %v3479_v13, %v3487_v17  ;;  %v4084_v16 = vor.u32 %v4083_v55, %v4080_v14  ;;  %v3492_v20 = vrot.slane %v3490_v25, 4  ;;  %v4095_v39 = vshrl.u32 %v3912_v18, 16  ;;  %v3296_v58 = vld [vmem:[#allocation2 + $0xe0] sm:$0xf0]  ;;  %v3297_v63 = vld [vmem:[#allocation2 + $0xe8] sm:$0x1f] }
 0x10c   : > { %6225 = vmatprep.mubr.msk.bf16.mxu1 %vm341_vm0, %v3488_v0  ;;  %v4092_v10 = vor.u32 %v4091_v31, %v4088_v24  ;;  %v3495_v29 = vrot.slane %v3493_v22, 5  ;;  %v3500_v3 = vrot.slane %v3498_v49, 4  ;;  %v3503_v40 = vrot.slane %v3501_v32, 5  ;;  %v7071_v9 = vld [vmem:[#allocation2 + $0xe0] sm:$0xf8] }
 0x10d   : > { %v4097_v15 = vrot.slane %v4095_v39, 3  ;;  %v4098_v12 = vshll.u32 %v3912_v18, 16  ;;  %v4103_v27 = vshrl.u32 %v3913_v23, 16  ;;  %v4106_v42 = vshll.u32 %v3913_v23, 16  ;;  %v7076_v55 = vld [vmem:[#allocation2 + $0xe8] sm:$0xf] }
 0x10e   : > { %v4093_v36 = vsel %vm578_vm3, %v4084_v16, %v4092_v10  ;;  %v3496_v6 = vor.u32 %v3495_v29, %v3492_v20  ;;  %v3504_v33 = vor.u32 %v3503_v40, %v3500_v3  ;;  %v3507_v34 = vshrl.u32 %v3294_v30, 16  ;;  %v7084_v20 = vld [vmem:[#allocation2 + $0xf0] sm:$0xf0] }
 0x10f   : > { %6258 = vmatmul.mubr.msk.bf16.gmra.mrb[96].mxu0 %vm341_vm0, %v4093_v36  ;;  %v4100_v47 = vrot.slane %v4098_v12, 4  ;;  %v4105_v50 = vrot.slane %v4103_v27, 3  ;;  %v4108_v44 = vrot.slane %v4106_v42, 4  ;;  %v3510_v11 = vshll.u32 %v3294_v30, 16 }
 0x110   : > { %v3505_v56 = vsel %vm1630_vm5, %v3496_v6, %v3504_v33  ;;  %v3509_v51 = vrot.slane %v3507_v34, 4  ;;  %v3515_v52 = vshrl.u32 %v3295_v2, 16  ;;  %v3518_v48 = vshll.u32 %v3295_v2, 16  ;;  %v3299_v2 = vld [vmem:[#allocation2 + $0xf8] sm:$0x1f] }
 0x111   : > { %v4101_v54 = vor.u32 %v4100_v47, %v4097_v15  ;;  %v4109_v28 = vor.u32 %v4108_v44, %v4105_v50  ;;  %v3512_v37 = vrot.slane %v3510_v11, 5  ;;  %v4112_v57 = vshrl.u32 %v3914_v46, 16  ;;  %v3919_v47 = vld [vmem:[#allocation2 + $0xf8] sm:$0xf] }
 0x112   : > { %v3517_v60 = vrot.slane %v3515_v52, 4  ;;  %v3520_v43 = vrot.slane %v3518_v48, 5  ;;  %v4115_v61 = vshll.u32 %v3914_v46, 16  ;;  %v4120_v19 = vshrl.u32 %v3915_v4, 16  ;;  %v7073_v13 = vpop.f32.mrb[4].mxu1 }
 0x113   : > { %6226 = vmatmul.mubr.msk.bf16.gmra.mrb[100].mxu1 %vm341_vm0, %v3505_v56  ;;  %v4110_v5 = vsel %vm578_vm3, %v4101_v54, %v4109_v28  ;;  %v3513_v1 = vor.u32 %v3512_v37, %v3509_v51  ;;  %v7069_v7 = vrot.slane %v4112_v57, 3  ;;  %v4123_v8 = vshll.u32 %v3915_v4, 16  ;;  %v7078_v24 = vpop.f32.mrb[5].mxu1  ;;  %v3918_v46 = vld [vmem:[#allocation2 + $0xf0] sm:$0xf8] }
 0x114   : > { %6261 = vmatprep.mubr.msk.bf16.mxu0 %vm341_vm0, %v4110_v5  ;;  %v3521_v14 = vor.u32 %v3520_v43, %v3517_v60  ;;  %v4117_v38 = vrot.slane %v4115_v61, 4  ;;  %v4122_v18 = vrot.slane %v4120_v19, 3  ;;  %v3524_v17 = vshrl.u32 %v3296_v58, 16  ;;  %v7080_v32 = vpop.f32.mrb[6].mxu1  ;;  %v3300_v61 = vld [vmem:[#allocation2 + $0x100] sm:$0xf0] }
 0x115   : > { %v4125_v25 = vrot.slane %v4123_v8, 4  ;;  %v3527_v31 = vshll.u32 %v3296_v58, 16  ;;  %v3532_v22 = vshrl.u32 %v3297_v63, 16  ;;  %v3535_v49 = vshll.u32 %v3297_v63, 16  ;;  %v7086_v39 = vpop.f32.mrb[7].mxu1 }
 0x116   : > { %v3522_v23 = vsel %vm1630_vm5, %v3513_v1, %v3521_v14  ;;  %v4118_v0 = vor.u32 %v4117_v38, %v7069_v7  ;;  %v3526_v16 = vrot.slane %v3524_v17, 4  ;;  %v6388_v40 = vmov 0.0   ;;  %v3301_v8 = vld [vmem:[#allocation2 + $0x108] sm:$0x1f] }
 0x117   : > { %6229 = vmatprep.mubr.msk.bf16.mxu1 %vm341_vm0, %v3522_v23  ;;  %v4126_v30 = vor.u32 %v4125_v25, %v4122_v18  ;;  %v3529_v10 = vrot.slane %v3527_v31, 5  ;;  %v3534_v29 = vrot.slane %v3532_v22, 4  ;;  %v3537_v3 = vrot.slane %v3535_v49, 5  ;;  %532 = vst.msk [vmem:[#allocation3 + $0x90] sm:$0xff] %vm341_vm0, %v6388_v40  ;;  %514 = vst.msk [vmem:[#allocation3] sm:$0xff] %vm341_vm0, %v6388_v40 }
 0x118   : > { %515 = vst.msk [vmem:[#allocation3 + $0x8] sm:$0xff] %vm341_vm0, %v6388_v40  ;;  %516 = vst.msk [vmem:[#allocation3 + $0x10] sm:$0xff] %vm341_vm0, %v6388_v40  ;;  %v4129_v15 = vshrl.u32 %v7071_v9, 16  ;;  %v4132_v12 = vshll.u32 %v7071_v9, 16  ;;  %v4137_v27 = vshrl.u32 %v7076_v55, 16  ;;  %v4140_v42 = vshll.u32 %v7076_v55, 16 }
 0x119   : > { %517 = vst.msk [vmem:[#allocation3 + $0x18] sm:$0xff] %vm341_vm0, %v6388_v40  ;;  %518 = vst.msk [vmem:[#allocation3 + $0x20] sm:$0xff] %vm341_vm0, %v6388_v40  ;;  %v4127_v36 = vsel %vm578_vm3, %v4118_v0, %v4126_v30  ;;  %v3530_v6 = vor.u32 %v3529_v10, %v3526_v16  ;;  %v3538_v33 = vor.u32 %v3537_v3, %v3534_v29  ;;  %v3541_v34 = vshrl.u32 %v7084_v20, 16  ;;  %v7127_v50 = vpop.f32.mrb[4].mxu0 }
 0x11a   : > { %519 = vst.msk [vmem:[#allocation3 + $0x28] sm:$0xff] %vm341_vm0, %v6388_v40  ;;  %520 = vst.msk [vmem:[#allocation3 + $0x30] sm:$0xff] %vm341_vm0, %v6388_v40  ;;  %6262 = vmatmul.mubr.msk.bf16.gmra.mrb[100].mxu0 %vm341_vm0, %v4127_v36  ;;  %v4131_v44 = vrot.slane %v4129_v15, 3  ;;  %v4134_v11 = vrot.slane %v4132_v12, 4  ;;  %v4139_v4 = vrot.slane %v4137_v27, 3  ;;  %v4142_v56 = vrot.slane %v4140_v42, 4 }
 0x11b   : > { %521 = vst.msk [vmem:[#allocation3 + $0x38] sm:$0xff] %vm341_vm0, %v6388_v40  ;;  %522 = vst.msk [vmem:[#allocation3 + $0x40] sm:$0xff] %vm341_vm0, %v6388_v40  ;;  %v7130_v51 = vpop.f32.mrb[5].mxu0  ;;  %v3539_v52 = vsel %vm1630_vm5, %v3530_v6, %v3538_v33  ;;  %v3543_v48 = vrot.slane %v3541_v34, 4  ;;  %v3544_v54 = vshll.u32 %v7084_v20, 16  ;;  %v3549_v28 = vshrl.u32 %v3299_v2, 16 }
 0x11c   : > { %523 = vst.msk [vmem:[#allocation3 + $0x48] sm:$0xff] %vm341_vm0, %v6388_v40  ;;  %524 = vst.msk [vmem:[#allocation3 + $0x50] sm:$0xff] %vm341_vm0, %v6388_v40  ;;  %v7134_v37 = vpop.f32.mrb[6].mxu0  ;;  %6230 = vmatmul.mubr.msk.bf16.gmra.mrb[104].mxu1 %vm341_vm0, %v3539_v52  ;;  %v4135_v57 = vor.u32 %v4134_v11, %v4131_v44  ;;  %v4143_v58 = vor.u32 %v4142_v56, %v4139_v4  ;;  %v3552_v60 = vshll.u32 %v3299_v2, 16  ;;  %v4146_v43 = vshrl.u32 %v3918_v46, 16 }
 0x11d   : > { %525 = vst.msk [vmem:[#allocation3 + $0x58] sm:$0xff] %vm341_vm0, %v6388_v40  ;;  %526 = vst.msk [vmem:[#allocation3 + $0x60] sm:$0xff] %vm341_vm0, %v6388_v40  ;;  %v7137_v19 = vpop.f32.mrb[7].mxu0  ;;  %v3546_v63 = vrot.slane %v3544_v54, 5  ;;  %v3551_v5 = vrot.slane %v3549_v28, 4  ;;  %v4149_v1 = vshll.u32 %v3918_v46, 16 }
 0x11e   : > { %527 = vst.msk [vmem:[#allocation3 + $0x68] sm:$0xff] %vm341_vm0, %v6388_v40  ;;  %528 = vst.msk [vmem:[#allocation3 + $0x70] sm:$0xff] %vm341_vm0, %v6388_v40  ;;  %v4154_v7 = vshrl.u32 %v3919_v47, 16  ;;  %v869_v9 = vld [vmem:[#allocation3 + $0x90] sm:$0xff]  ;;  %v4144_v18 = vsel %vm578_vm3, %v4135_v57, %v4143_v58  ;;  %v3554_v17 = vrot.slane %v3552_v60, 5  ;;  %v4148_v55 = vrot.slane %v4146_v43, 3 }
 0x11f   : > { %529 = vst.msk [vmem:[#allocation3 + $0x78] sm:$0xff] %vm341_vm0, %v6388_v40  ;;  %530 = vst.msk [vmem:[#allocation3 + $0x80] sm:$0xff] %vm341_vm0, %v6388_v40  ;;  %v4157_v25 = vshll.u32 %v3919_v47, 16  ;;  %v1122_v31 = vadd.f32 %v7041_v35, %v869_v9  ;;  %6265 = vmatprep.mubr.msk.bf16.mxu0 %vm341_vm0, %v4144_v18  ;;  %v3547_v0 = vor.u32 %v3546_v63, %v3543_v48  ;;  %v853_v16 = vld [vmem:[#allocation3 + $0x10] sm:$0xff]  ;;  %v7144_v20 = vpop.f32.mrb[8].mxu1  ;;  %v4151_v29 = vrot.slane %v4149_v1, 4 }
 0x120   : > { %531 = vst.msk [vmem:[#allocation3 + $0x88] sm:$0xff] %vm341_vm0, %v6388_v40  ;;  %533 = vst.msk [vmem:[#allocation3 + $0x98] sm:$0xff] %vm341_vm0, %v6388_v40  ;;  %v3555_v10 = vor.u32 %v3554_v17, %v3551_v5  ;;  %v4156_v3 = vrot.slane %v4154_v7, 3  ;;  %v7147_v15 = vpop.f32.mrb[9].mxu1  ;;  %v3566_v12 = vshrl.u32 %v3301_v8, 16  ;;  %v854_v42 = vld [vmem:[#allocation3 + $0x18] sm:$0xff]  ;;  %v1106_v6 = vadd.f32 %v7051_v41, %v853_v16 }
 0x121   : > { %534 = vst.msk [vmem:[#allocation3 + $0xa0] sm:$0xff] %vm341_vm0, %v6388_v40  ;;  %535 = vst.msk [vmem:[#allocation3 + $0xa8] sm:$0xff] %vm341_vm0, %v6388_v40  ;;  %v4159_v35 = vrot.slane %v4157_v25, 4  ;;  %v4152_v2 = vor.u32 %v4151_v29, %v4148_v55  ;;  %v3569_v36 = vshll.u32 %v3301_v8, 16  ;;  %v852_v34 = vld [vmem:[#allocation3 + $0x8] sm:$0xff]  ;;  %v7155_v47 = vpop.f32.mrb[10].mxu1  ;;  %v1107_v57 = vadd.f32 %v7056_v21, %v854_v42 }
 0x122   : > { %536 = vst.msk [vmem:[#allocation3 + $0xb0] sm:$0xff] %vm341_vm0, %v6388_v40  ;;  %537 = vst.msk [vmem:[#allocation3 + $0xb8] sm:$0xff] %vm341_vm0, %v6388_v40  ;;  %v3920_v46 = vld [vmem:[#allocation2 + $0x100] sm:$0xf8]  ;;  %v3568_v56 = vrot.slane %v3566_v12, 4  ;;  %v7162_v43 = vpop.f32.mrb[11].mxu1  ;;  %v1105_v1 = vadd.f32 %v7059_v26, %v852_v34 }
 0x123   : > { %538 = vst.msk [vmem:[#allocation3 + $0xc0] sm:$0xff] %vm341_vm0, %v6388_v40  ;;  %539 = vst.msk [vmem:[#allocation3 + $0xc8] sm:$0xff] %vm341_vm0, %v6388_v40  ;;  %v4160_v44 = vor.u32 %v4159_v35, %v4156_v3  ;;  %v3571_v54 = vrot.slane %v3569_v36, 5  ;;  %v3921_v58 = vld [vmem:[#allocation2 + $0x108] sm:$0xf]  ;;  %v4166_v26 = vshll.u32 %v3920_v46, 16 }
 0x124   : > { %540 = vst.msk [vmem:[#allocation3 + $0xd0] sm:$0xff] %vm341_vm0, %v6388_v40  ;;  %541 = vst.msk [vmem:[#allocation3 + $0xd8] sm:$0xff] %vm341_vm0, %v6388_v40  ;;  %v3922_v60 = vld [vmem:[#allocation2 + $0x110] sm:$0xf8]  ;;  %v3923_v7 = vld [vmem:[#allocation2 + $0x118] sm:$0xf] }
 0x125   : > { %542 = vst.msk [vmem:[#allocation3 + $0xe0] sm:$0xff] %vm341_vm0, %v6388_v40  ;;  %543 = vst.msk [vmem:[#allocation3 + $0xe8] sm:$0xff] %vm341_vm0, %v6388_v40  ;;  %v3572_v8 = vor.u32 %v3571_v54, %v3568_v56  ;;  %v4513_v9 = vld [vmem:[#allocation2 + $0x20] sm:$0xf0]  ;;  %v4180_v18 = vshrl.u32 %v3922_v60, 16  ;;  %v4188_v25 = vshrl.u32 %v3923_v7, 16 }
 0x126   : > { %544 = vst.msk [vmem:[#allocation3 + $0xf0] sm:$0xff] %vm341_vm0, %v6388_v40  ;;  %545 = vst.msk [vmem:[#allocation3 + $0xf8] sm:$0xff] %vm341_vm0, %v6388_v40  ;;  %v867_v14 = vld [vmem:[#allocation3 + $0x80] sm:$0xff]  ;;  %v4515_v17 = vld [vmem:[#allocation2 + $0x30] sm:$0xf0]  ;;  %v4191_v29 = vshll.u32 %v3923_v7, 16 }
 0x127   : > { %v870_v38 = vld [vmem:[#allocation3 + $0x98] sm:$0xff]  ;;  %v1120_v22 = vadd.f32 %v7043_v53, %v867_v14  ;;  %v868_v23 = vld [vmem:[#allocation3 + $0x88] sm:$0xff]  ;;  %v851_v40 = vld [vmem:[#allocation3] sm:$0xff]  ;;  %1154 = vst.msk [vmem:[#allocation3 + $0x90] sm:$0xff] %vm341_vm0, %v1122_v31  ;;  %v3558_v53 = vshrl.u32 %v3300_v61, 16  ;;  %v4577_v3 = vrot.slane %v4513_v9, 4 }
 0x128   : > { %v1123_v49 = vadd.f32 %v7047_v59, %v870_v38  ;;  %v1121_v30 = vadd.f32 %v7049_v62, %v868_v23  ;;  %v3561_v59 = vshll.u32 %v3300_v61, 16  ;;  %v3556_v62 = vsel %vm1630_vm5, %v3547_v0, %v3555_v10  ;;  %v871_v33 = vld [vmem:[#allocation3 + $0xa0] sm:$0xff]  ;;  %v872_v48 = vld [vmem:[#allocation3 + $0xa8] sm:$0xff]  ;;  %1138 = vst.msk [vmem:[#allocation3 + $0x10] sm:$0xff] %vm341_vm0, %v1106_v6  ;;  %1139 = vst.msk [vmem:[#allocation3 + $0x18] sm:$0xff] %vm341_vm0, %v1107_v57 }
 0x129   : > { %1152 = vst.msk [vmem:[#allocation3 + $0x80] sm:$0xff] %vm341_vm0, %v1120_v22  ;;  %v873_v27 = vld [vmem:[#allocation3 + $0xb0] sm:$0xff]  ;;  %6233 = vmatprep.mubr.msk.bf16.mxu1 %vm341_vm0, %v3556_v62  ;;  %v3560_v11 = vrot.slane %v3558_v53, 4  ;;  %v874_v52 = vld [vmem:[#allocation3 + $0xb8] sm:$0xff]  ;;  %v1104_v28 = vadd.f32 %v7053_v45, %v851_v40  ;;  %v4161_v61 = vsel %vm578_vm3, %v4152_v2, %v4160_v44  ;;  %v1124_v5 = vadd.f32 %v7078_v24, %v871_v33  ;;  %v4514_v14 = vld [vmem:[#allocation2 + $0x28] sm:$0xf] }
 0x12a   : > { %1155 = vst.msk [vmem:[#allocation3 + $0x98] sm:$0xff] %vm341_vm0, %v1123_v49  ;;  %1153 = vst.msk [vmem:[#allocation3 + $0x88] sm:$0xff] %vm341_vm0, %v1121_v30  ;;  %v3563_v4 = vrot.slane %v3561_v59, 5  ;;  %v1126_v41 = vadd.f32 %v7073_v13, %v873_v27  ;;  %6266 = vmatmul.mubr.msk.bf16.gmra.mrb[104].mxu0 %vm341_vm0, %v4161_v61  ;;  %v1127_v45 = vadd.f32 %v7080_v32, %v874_v52  ;;  %v4163_v13 = vshrl.u32 %v3920_v46, 16  ;;  %v4516_v31 = vld [vmem:[#allocation2 + $0x38] sm:$0xf] }
 0x12b   : > { %1136 = vst.msk [vmem:[#allocation3] sm:$0xff] %vm341_vm0, %v1104_v28  ;;  %v1125_v21 = vadd.f32 %v7086_v39, %v872_v48  ;;  %1156 = vst.msk [vmem:[#allocation3 + $0xa0] sm:$0xff] %vm341_vm0, %v1124_v5  ;;  %v4171_v24 = vshrl.u32 %v3921_v58, 16  ;;  %v4174_v38 = vshll.u32 %v3921_v58, 16  ;;  %v4183_v39 = vshll.u32 %v3922_v60, 16  ;;  %v857_v16 = vld [vmem:[#allocation3 + $0x30] sm:$0xff] }
 0x12c   : > { %v3564_v63 = vor.u32 %v3563_v4, %v3560_v11  ;;  %1158 = vst.msk [vmem:[#allocation3 + $0xb0] sm:$0xff] %vm341_vm0, %v1126_v41  ;;  %1137 = vst.msk [vmem:[#allocation3 + $0x8] sm:$0xff] %vm341_vm0, %v1105_v1  ;;  %v4165_v32 = vrot.slane %v4163_v13, 3  ;;  %v4168_v22 = vrot.slane %v4166_v26, 4  ;;  %v4182_v0 = vrot.slane %v4180_v18, 3  ;;  %v855_v40 = vld [vmem:[#allocation3 + $0x20] sm:$0xff] }
 0x12d   : > { %1159 = vst.msk [vmem:[#allocation3 + $0xb8] sm:$0xff] %vm341_vm0, %v1127_v45  ;;  %1157 = vst.msk [vmem:[#allocation3 + $0xa8] sm:$0xff] %vm341_vm0, %v1125_v21  ;;  %v4173_v49 = vrot.slane %v4171_v24, 3  ;;  %v4176_v23 = vrot.slane %v4174_v38, 4  ;;  %v4185_v30 = vrot.slane %v4183_v39, 4  ;;  %v4190_v10 = vrot.slane %v4188_v25, 3 }
 0x12e   : > { %v3573_v55 = vsel %vm1630_vm5, %v3564_v63, %v3572_v8  ;;  %v877_v35 = vld [vmem:[#allocation3 + $0xd0] sm:$0xff]  ;;  %v4169_v53 = vor.u32 %v4168_v22, %v4165_v32  ;;  %v4578_v12 = vrot.slane %v4514_v14, 4  ;;  %v4580_v27 = vrot.slane %v4515_v17, 4  ;;  %v858_v42 = vld [vmem:[#allocation3 + $0x38] sm:$0xff]  ;;  %v875_v62 = vld [vmem:[#allocation3 + $0xc0] sm:$0xff]  ;;  %v7180_v4 = vpop.f32.mrb[8].mxu0 }
 0x12f   : > { %6234 = vmatmul.mubr.msk.bf16.gmra.mrb[108].mxu1 %vm341_vm0, %v3573_v55  ;;  %v4177_v59 = vor.u32 %v4176_v23, %v4173_v49  ;;  %v4942_v2 = vld [vmem:[#allocation2 + $0x20] sm:$0xf0]  ;;  %v4186_v36 = vor.u32 %v4185_v30, %v4182_v0  ;;  %v4193_v6 = vrot.slane %v4191_v29, 4  ;;  %v4581_v33 = vrot.slane %v4516_v31, 4  ;;  %v856_v46 = vld [vmem:[#allocation3 + $0x28] sm:$0xff]  ;;  %v878_v44 = vld [vmem:[#allocation3 + $0xd8] sm:$0xff] }
 0x130   : > { %v1110_v34 = vadd.f32 %v7127_v50, %v857_v16  ;;  %v876_v11 = vld [vmem:[#allocation3 + $0xc8] sm:$0xff]  ;;  %v4579_v52 = vsel %vm1232_vm4, %v4577_v3, %v4578_v12  ;;  %v1108_v48 = vadd.f32 %v7130_v51, %v855_v40  ;;  %v1130_v54 = vadd.f32 %v7144_v20, %v877_v35  ;;  %v4517_v41 = vld [vmem:[#allocation2 + $0x40] sm:$0xf0]  ;;  %v7186_v57 = vpop.f32.mrb[9].mxu0  ;;  %v4944_v51 = vld [vmem:[#allocation2 + $0x30] sm:$0xf0] }
 0x131   : > { %v4178_v56 = vsel %vm578_vm3, %v4169_v53, %v4177_v59  ;;  %v4943_v28 = vld [vmem:[#allocation2 + $0x28] sm:$0x1f]  ;;  %v4194_v50 = vor.u32 %v4193_v6, %v4190_v10  ;;  %6277 = vmatprep.mubr.msk.bf16.mxu1 %vm341_vm0, %v4579_v52  ;;  %v4582_v58 = vsel %vm1232_vm4, %v4580_v27, %v4581_v33  ;;  %v1111_v60 = vadd.f32 %v7134_v37, %v858_v42  ;;  %v6036_v5 = vpop.f32.mrb[10].mxu0  ;;  %v4945_v45 = vld [vmem:[#allocation2 + $0x38] sm:$0x1f]  ;;  %v861_v38 = vld [vmem:[#allocation3 + $0x50] sm:$0xff] }
 0x132   : > { %6269 = vmatprep.mubr.msk.bf16.mxu0 %vm341_vm0, %v4178_v56  ;;  %1142 = vst.msk [vmem:[#allocation3 + $0x30] sm:$0xff] %vm341_vm0, %v1110_v34  ;;  %v4975_v61 = vshrl.u32 %v4942_v2, 16  ;;  %v4518_v63 = vld [vmem:[#allocation2 + $0x48] sm:$0xf]  ;;  %1140 = vst.msk [vmem:[#allocation3 + $0x20] sm:$0xff] %vm341_vm0, %v1108_v48  ;;  %v1128_v20 = vadd.f32 %v7147_v15, %v875_v62  ;;  %v1109_v1 = vadd.f32 %v7137_v19, %v856_v46  ;;  %v7199_v13 = vpop.f32.mrb[11].mxu0 }
 0x133   : > { %1162 = vst.msk [vmem:[#allocation3 + $0xd0] sm:$0xff] %vm341_vm0, %v1130_v54  ;;  %v1131_v7 = vadd.f32 %v7155_v47, %v878_v44  ;;  %v1129_v8 = vadd.f32 %v7162_v43, %v876_v11  ;;  %v4519_v21 = vld [vmem:[#allocation2 + $0x50] sm:$0xf0]  ;;  %v4195_v37 = vsel %vm578_vm3, %v4186_v36, %v4194_v50  ;;  %1143 = vst.msk [vmem:[#allocation3 + $0x38] sm:$0xff] %vm341_vm0, %v1111_v60  ;;  %v4978_v14 = vshll.u32 %v4942_v2, 16  ;;  %v859_v39 = vld [vmem:[#allocation3 + $0x40] sm:$0xff] }
 0x134   : > { %v4977_v9 = vrot.slane %v4975_v61, 4  ;;  %v4983_v26 = vshrl.u32 %v4943_v28, 16  ;;  %v4520_v24 = vld [vmem:[#allocation2 + $0x58] sm:$0xf]  ;;  %6270 = vmatmul.mubr.msk.bf16.gmra.mrb[108].mxu0 %vm341_vm0, %v4195_v37  ;;  %1160 = vst.msk [vmem:[#allocation3 + $0xc0] sm:$0xff] %vm341_vm0, %v1128_v20  ;;  %1141 = vst.msk [vmem:[#allocation3 + $0x28] sm:$0xff] %vm341_vm0, %v1109_v1  ;;  %v1114_v62 = vadd.f32 %v7180_v4, %v861_v38  ;;  %v1112_v46 = vadd.f32 %v7186_v57, %v859_v39 }
 0x135   : > { %1163 = vst.msk [vmem:[#allocation3 + $0xd8] sm:$0xff] %vm341_vm0, %v1131_v7  ;;  %1161 = vst.msk [vmem:[#allocation3 + $0xc8] sm:$0xff] %vm341_vm0, %v1129_v8  ;;  %v4986_v19 = vshll.u32 %v4943_v28, 16  ;;  %v4583_v15 = vrot.slane %v4517_v41, 4  ;;  %v4584_v47 = vrot.slane %v4518_v63, 4  ;;  %v4992_v43 = vshrl.u32 %v4944_v51, 16 }
 0x136   : > { %v4980_v18 = vrot.slane %v4978_v14, 5  ;;  %v4985_v17 = vrot.slane %v4983_v26, 4  ;;  %v4995_v55 = vshll.u32 %v4944_v51, 16  ;;  %v5000_v32 = vshrl.u32 %v4945_v45, 16  ;;  %v6055_v25 = vpop.f32.mrb[12].mxu1  ;;  %v881_v0 = vld [vmem:[#allocation3 + $0xf0] sm:$0xff] }
 0x137   : > { %6278 = vmatmul.mubr.msk.bf16.vlgmr.msra.gmra.mrb[112].mxu1 %vm341_vm0, %v4582_v58  ;;  %v4988_v31 = vrot.slane %v4986_v19, 5  ;;  %v4585_v22 = vsel %vm1232_vm4, %v4583_v15, %v4584_v47  ;;  %v4994_v49 = vrot.slane %v4992_v43, 4  ;;  %v5003_v23 = vshll.u32 %v4945_v45, 16  ;;  %v862_v16 = vld [vmem:[#allocation3 + $0x58] sm:$0xff]  ;;  %v1089_v30 = vpop.f32.mrb[13].mxu1  ;;  %v879_v53 = vld [vmem:[#allocation3 + $0xe0] sm:$0xff] }
 0x138   : > { %v4946_v10 = vld [vmem:[#allocation2 + $0x40] sm:$0xf0]  ;;  %v4981_v29 = vor.u32 %v4980_v18, %v4977_v9  ;;  %6281 = vmatprep.mubr.msk.bf16.mxu1 %vm341_vm0, %v4585_v22  ;;  %v4997_v3 = vrot.slane %v4995_v55, 5  ;;  %v5002_v40 = vrot.slane %v5000_v32, 4  ;;  %v4586_v35 = vrot.slane %v4519_v21, 4  ;;  %v6056_v59 = vpop.f32.mrb[14].mxu1 }
 0x139   : > { %v4989_v12 = vor.u32 %v4988_v31, %v4985_v17  ;;  %v5005_v27 = vrot.slane %v5003_v23, 5  ;;  %v4587_v42 = vrot.slane %v4520_v24, 4  ;;  %v860_v2 = vld [vmem:[#allocation3 + $0x48] sm:$0xff]  ;;  %v882_v36 = vld [vmem:[#allocation3 + $0xf8] sm:$0xff]  ;;  %v1092_v33 = vpop.f32.mrb[15].mxu1  ;;  %v1134_v44 = vadd.f32 %v6055_v25, %v881_v0  ;;  %1146 = vst.msk [vmem:[#allocation3 + $0x50] sm:$0xff] %vm341_vm0, %v1114_v62 }
 0x13a   : > { %v880_v6 = vld [vmem:[#allocation3 + $0xe8] sm:$0xff]  ;;  %v4998_v34 = vor.u32 %v4997_v3, %v4994_v49  ;;  %v1115_v11 = vadd.f32 %v6036_v5, %v862_v16  ;;  %v1132_v28 = vadd.f32 %v1089_v30, %v879_v53  ;;  %v4521_v41 = vld [vmem:[#allocation2 + $0x60] sm:$0xf0]  ;;  %v4948_v50 = vld [vmem:[#allocation2 + $0x50] sm:$0xf0]  ;;  %1144 = vst.msk [vmem:[#allocation3 + $0x40] sm:$0xff] %vm341_vm0, %v1112_v46  ;;  %v1113_v57 = vadd.f32 %v7199_v13, %v860_v2 }
 0x13b   : > { %v4947_v56 = vld [vmem:[#allocation2 + $0x48] sm:$0x1f]  ;;  %v4990_v52 = vsel %vm1630_vm5, %v4981_v29, %v4989_v12  ;;  %v5006_v48 = vor.u32 %v5005_v27, %v5002_v40  ;;  %v4588_v54 = vsel %vm1232_vm4, %v4586_v35, %v4587_v42  ;;  %1166 = vst.msk [vmem:[#allocation3 + $0xf0] sm:$0xff] %vm341_vm0, %v1134_v44  ;;  %v1135_v58 = vadd.f32 %v6056_v59, %v882_v36  ;;  %v4949_v63 = vld [vmem:[#allocation2 + $0x58] sm:$0x1f]  ;;  %v6039_v5 = vpop.f32.mrb[12].mxu0 }
 0x13c   : > { %v4522_v4 = vld [vmem:[#allocation2 + $0x68] sm:$0xf]  ;;  %6313 = vmatprep.mubr.msk.bf16.mxu0 %vm341_vm0, %v4990_v52  ;;  %1147 = vst.msk [vmem:[#allocation3 + $0x58] sm:$0xff] %vm341_vm0, %v1115_v11  ;;  %v1133_v60 = vadd.f32 %v1092_v33, %v880_v6  ;;  %v5009_v61 = vshrl.u32 %v4946_v10, 16  ;;  %v4523_v51 = vld [vmem:[#allocation2 + $0x70] sm:$0xf0] }
 0x13d   : > { %v5007_v20 = vsel %vm1630_vm5, %v4998_v34, %v5006_v48  ;;  %1164 = vst.msk [vmem:[#allocation3 + $0xe0] sm:$0xff] %vm341_vm0, %v1132_v28  ;;  %v5012_v1 = vshll.u32 %v4946_v10, 16  ;;  %v5017_v7 = vshrl.u32 %v4947_v56, 16  ;;  %v5020_v8 = vshll.u32 %v4947_v56, 16  ;;  %v4524_v45 = vld [vmem:[#allocation2 + $0x78] sm:$0xf] }
 0x13e   : > { %v865_v21 = vld [vmem:[#allocation3 + $0x70] sm:$0xff]  ;;  %v1025_v37 = vpop.f32.mrb[13].mxu0  ;;  %6314 = vmatmul.mubr.msk.bf16.vlgmr.msra.gmra.mrb[112].mxu0 %vm341_vm0, %v5007_v20  ;;  %1145 = vst.msk [vmem:[#allocation3 + $0x48] sm:$0xff] %vm341_vm0, %v1113_v57  ;;  %1167 = vst.msk [vmem:[#allocation3 + $0xf8] sm:$0xff] %vm341_vm0, %v1135_v58  ;;  %v5011_v13 = vrot.slane %v5009_v61, 4  ;;  %v4589_v9 = vrot.slane %v4521_v41, 4 }
 0x13f   : > { %6282 = vmatmul.mubr.msk.bf16.gmra.mrb[116].mxu1 %vm341_vm0, %v4588_v54  ;;  %1165 = vst.msk [vmem:[#allocation3 + $0xe8] sm:$0xff] %vm341_vm0, %v1133_v60  ;;  %v4590_v14 = vrot.slane %v4522_v4, 4  ;;  %v5026_v26 = vshrl.u32 %v4948_v50, 16  ;;  %v6063_v24 = vpop.f32.mrb[16].mxu1  ;;  %v6040_v19 = vpop.f32.mrb[14].mxu0  ;;  %v5014_v15 = vrot.slane %v5012_v1, 5  ;;  %v1118_v59 = vadd.f32 %v6039_v5, %v865_v21 }
 0x140   : > { %v5019_v47 = vrot.slane %v5017_v7, 4  ;;  %v5022_v43 = vrot.slane %v5020_v8, 5  ;;  %v5029_v38 = vshll.u32 %v4948_v50, 16  ;;  %v1407_v18 = vpop.f32.mrb[17].mxu1  ;;  %v1028_v17 = vpop.f32.mrb[15].mxu0  ;;  %v5034_v39 = vshrl.u32 %v4949_v63, 16 }
 0x141   : > { %v4591_v55 = vsel %vm1232_vm4, %v4589_v9, %v4590_v14  ;;  %v5028_v32 = vrot.slane %v5026_v26, 4  ;;  %v5037_v25 = vshll.u32 %v4949_v63, 16  ;;  %v863_v31 = vld [vmem:[#allocation3 + $0x60] sm:$0xff]  ;;  %v6064_v22 = vpop.f32.mrb[18].mxu1  ;;  %v5015_v23 = vor.u32 %v5014_v15, %v5011_v13  ;;  %v866_v10 = vld [vmem:[#allocation3 + $0x78] sm:$0xff]  ;;  %v1283_v12 = vld [vmem:[#allocation3 + $0x10] sm:$0xff] }
 0x142   : > { %v4950_v49 = vld [vmem:[#allocation2 + $0x60] sm:$0xf0]  ;;  %v5023_v0 = vor.u32 %v5022_v43, %v5019_v47  ;;  %6285 = vmatprep.mubr.msk.bf16.mxu1 %vm341_vm0, %v4591_v55  ;;  %v5031_v16 = vrot.slane %v5029_v38, 5  ;;  %v4592_v30 = vrot.slane %v4523_v51, 4  ;;  %v1410_v29 = vpop.f32.mrb[19].mxu1  ;;  %v5036_v40 = vrot.slane %v5034_v39, 4 }
 0x143   : > { %v4951_v3 = vld [vmem:[#allocation2 + $0x68] sm:$0x1f]  ;;  %v5039_v35 = vrot.slane %v5037_v25, 5  ;;  %v4593_v53 = vrot.slane %v4524_v45, 4  ;;  %v1116_v2 = vadd.f32 %v1025_v37, %v863_v31  ;;  %v1536_v36 = vadd.f32 %v6063_v24, %v1283_v12  ;;  %v1281_v6 = vld [vmem:[#allocation3] sm:$0xff]  ;;  %1150 = vst.msk [vmem:[#allocation3 + $0x70] sm:$0xff] %vm341_vm0, %v1118_v59 }
 0x144   : > { %v864_v27 = vld [vmem:[#allocation3 + $0x68] sm:$0xff]  ;;  %v5024_v42 = vsel %vm1630_vm5, %v5015_v23, %v5023_v0  ;;  %v5032_v62 = vor.u32 %v5031_v16, %v5028_v32  ;;  %v4525_v33 = vld [vmem:[#allocation2 + $0x80] sm:$0xf0]  ;;  %v1119_v11 = vadd.f32 %v6040_v19, %v866_v10  ;;  %v1534_v56 = vadd.f32 %v1407_v18, %v1281_v6  ;;  %v1284_v52 = vld [vmem:[#allocation3 + $0x18] sm:$0xff]  ;;  %v7234_v28 = vpop.f32.mrb[16].mxu0  ;;  %v6067_v7 = vpop.f32.mrb[20].mxu1 }
 0x145   : > { %v4526_v34 = vld [vmem:[#allocation2 + $0x88] sm:$0xf]  ;;  %6317 = vmatprep.mubr.msk.bf16.mxu0 %vm341_vm0, %v5024_v42  ;;  %v5040_v46 = vor.u32 %v5039_v35, %v5036_v40  ;;  %v4594_v44 = vsel %vm1232_vm4, %v4592_v30, %v4593_v53  ;;  %v4952_v54 = vld [vmem:[#allocation2 + $0x70] sm:$0xf0]  ;;  %1148 = vst.msk [vmem:[#allocation3 + $0x60] sm:$0xff] %vm341_vm0, %v1116_v2  ;;  %1568 = vst.msk [vmem:[#allocation3 + $0x10] sm:$0xff] %vm341_vm0, %v1536_v36  ;;  %v1117_v41 = vadd.f32 %v1028_v17, %v864_v27 }
 0x146   : > { %v1282_v48 = vld [vmem:[#allocation3 + $0x8] sm:$0xff]  ;;  %v1537_v4 = vadd.f32 %v6064_v22, %v1284_v52  ;;  %v5043_v57 = vshrl.u32 %v4950_v49, 16  ;;  %v4953_v58 = vld [vmem:[#allocation2 + $0x78] sm:$0x1f]  ;;  %v4527_v60 = vld [vmem:[#allocation2 + $0x90] sm:$0xf0] }
 0x147   : > { %6286 = vmatmul.mubr.msk.bf16.gmra.mrb[120].mxu1 %vm341_vm0, %v4594_v44  ;;  %v1535_v50 = vadd.f32 %v1410_v29, %v1282_v48  ;;  %v7239_v61 = vpop.f32.mrb[17].mxu0  ;;  %v5041_v63 = vsel %vm1630_vm5, %v5032_v62, %v5040_v46  ;;  %1151 = vst.msk [vmem:[#allocation3 + $0x78] sm:$0xff] %vm341_vm0, %v1119_v11  ;;  %1566 = vst.msk [vmem:[#allocation3] sm:$0xff] %vm341_vm0, %v1534_v56  ;;  %v5046_v51 = vshll.u32 %v4950_v49, 16  ;;  %v5051_v5 = vshrl.u32 %v4951_v3, 16  ;;  %v1423_v9 = vpop.f32.mrb[21].mxu1 }
 0x148   : > { %v5054_v20 = vshll.u32 %v4951_v3, 16  ;;  %v4528_v1 = vld [vmem:[#allocation2 + $0x98] sm:$0xf]  ;;  %v7244_v8 = vpop.f32.mrb[18].mxu0  ;;  %6318 = vmatmul.mubr.msk.bf16.gmra.mrb[116].mxu0 %vm341_vm0, %v5041_v63  ;;  %1149 = vst.msk [vmem:[#allocation3 + $0x68] sm:$0xff] %vm341_vm0, %v1117_v41  ;;  %1569 = vst.msk [vmem:[#allocation3 + $0x18] sm:$0xff] %vm341_vm0, %v1537_v4 }
 0x149   : > { %1567 = vst.msk [vmem:[#allocation3 + $0x8] sm:$0xff] %vm341_vm0, %v1535_v50  ;;  %v5045_v45 = vrot.slane %v5043_v57, 4  ;;  %v4595_v21 = vrot.slane %v4525_v33, 4  ;;  %v4596_v37 = vrot.slane %v4526_v34, 4  ;;  %v5060_v13 = vshrl.u32 %v4952_v54, 16  ;;  %v2032_v14 = vpop.f32.mrb[19].mxu0 }
 0x14a   : > { %v5048_v26 = vrot.slane %v5046_v51, 5  ;;  %v5053_v24 = vrot.slane %v5051_v5, 4  ;;  %v5056_v19 = vrot.slane %v5054_v20, 5  ;;  %v5063_v15 = vshll.u32 %v4952_v54, 16  ;;  %v6068_v47 = vpop.f32.mrb[22].mxu1  ;;  %v1287_v49 = vld [vmem:[#allocation3 + $0x30] sm:$0xff] }
 0x14b   : > { %v4597_v43 = vsel %vm1232_vm4, %v4595_v21, %v4596_v37  ;;  %v5062_v38 = vrot.slane %v5060_v13, 4  ;;  %v5068_v18 = vshrl.u32 %v4953_v58, 16  ;;  %v5071_v17 = vshll.u32 %v4953_v58, 16  ;;  %v1426_v55 = vpop.f32.mrb[23].mxu1  ;;  %v4954_v32 = vld [vmem:[#allocation2 + $0x80] sm:$0xf0] }
 0x14c   : > { %v5049_v39 = vor.u32 %v5048_v26, %v5045_v45  ;;  %v5057_v25 = vor.u32 %v5056_v19, %v5053_v24  ;;  %6289 = vmatprep.mubr.msk.bf16.mxu1 %vm341_vm0, %v4597_v43  ;;  %v5065_v31 = vrot.slane %v5063_v15, 5  ;;  %v4598_v22 = vrot.slane %v4527_v60, 4  ;;  %v4955_v23 = vld [vmem:[#allocation2 + $0x88] sm:$0x1f]  ;;  %v1285_v29 = vld [vmem:[#allocation3 + $0x20] sm:$0xff]  ;;  %v1288_v3 = vld [vmem:[#allocation3 + $0x38] sm:$0xff] }
 0x14d   : > { %v5070_v0 = vrot.slane %v5068_v18, 4  ;;  %v5073_v16 = vrot.slane %v5071_v17, 5  ;;  %v4599_v30 = vrot.slane %v4528_v1, 4  ;;  %v1540_v10 = vadd.f32 %v6067_v7, %v1287_v49  ;;  %v4529_v40 = vld [vmem:[#allocation2 + $0xa0] sm:$0xf0]  ;;  %v1905_v59 = vld [vmem:[#allocation3 + $0x10] sm:$0xff] }
 0x14e   : > { %v5058_v35 = vsel %vm1630_vm5, %v5049_v39, %v5057_v25  ;;  %v5066_v53 = vor.u32 %v5065_v31, %v5062_v38  ;;  %v1538_v12 = vadd.f32 %v1423_v9, %v1285_v29  ;;  %v1541_v27 = vadd.f32 %v6068_v47, %v1288_v3  ;;  %v1286_v42 = vld [vmem:[#allocation3 + $0x28] sm:$0xff]  ;;  %v4956_v2 = vld [vmem:[#allocation2 + $0x90] sm:$0xf0]  ;;  %v7253_v36 = vpop.f32.mrb[20].mxu0  ;;  %v1903_v46 = vld [vmem:[#allocation3] sm:$0xff]  ;;  %v6071_v57 = vpop.f32.mrb[24].mxu1 }
 0x14f   : > { %v4530_v62 = vld [vmem:[#allocation2 + $0xa8] sm:$0xf]  ;;  %6321 = vmatprep.mubr.msk.bf16.mxu0 %vm341_vm0, %v5058_v35  ;;  %v5074_v6 = vor.u32 %v5073_v16, %v5070_v0  ;;  %v4600_v33 = vsel %vm1232_vm4, %v4598_v22, %v4599_v30  ;;  %v2158_v34 = vadd.f32 %v7234_v28, %v1905_v59  ;;  %1572 = vst.msk [vmem:[#allocation3 + $0x30] sm:$0xff] %vm341_vm0, %v1540_v10  ;;  %v4957_v11 = vld [vmem:[#allocation2 + $0x98] sm:$0x1f]  ;;  %v7261_v52 = vpop.f32.mrb[21].mxu0 }
 0x150   : > { %v1539_v44 = vadd.f32 %v1426_v55, %v1286_v42  ;;  %v7259_v56 = vld [vmem:[#allocation2 + $0xb0] sm:$0xf0]  ;;  %6290 = vmatmul.mubr.msk.bf16.gmra.mrb[124].mxu1 %vm341_vm0, %v4600_v33  ;;  %v2156_v48 = vadd.f32 %v7239_v61, %v1903_v46  ;;  %1570 = vst.msk [vmem:[#allocation3 + $0x20] sm:$0xff] %vm341_vm0, %v1538_v12  ;;  %v1906_v54 = vld [vmem:[#allocation3 + $0x18] sm:$0xff]  ;;  %1573 = vst.msk [vmem:[#allocation3 + $0x38] sm:$0xff] %vm341_vm0, %v1541_v27  ;;  %v5077_v28 = vshrl.u32 %v4954_v32, 16 }
 0x151   : > { %v1904_v41 = vld [vmem:[#allocation3 + $0x8] sm:$0xff]  ;;  %v5080_v4 = vshll.u32 %v4954_v32, 16  ;;  %v5085_v50 = vshrl.u32 %v4955_v23, 16  ;;  %v5075_v58 = vsel %vm1630_vm5, %v5066_v53, %v5074_v6  ;;  %2190 = vst.msk [vmem:[#allocation3 + $0x10] sm:$0xff] %vm341_vm0, %v2158_v34  ;;  %v2159_v60 = vadd.f32 %v7244_v8, %v1906_v54  ;;  %v4532_v51 = vld [vmem:[#allocation2 + $0xb8] sm:$0xf] }
 0x152   : > { %v2157_v63 = vadd.f32 %v2032_v14, %v1904_v41  ;;  %1571 = vst.msk [vmem:[#allocation3 + $0x28] sm:$0xff] %vm341_vm0, %v1539_v44  ;;  %v5088_v61 = vshll.u32 %v4955_v23, 16  ;;  %v1439_v5 = vpop.f32.mrb[25].mxu1  ;;  %v6104_v20 = vpop.f32.mrb[22].mxu0  ;;  %6322 = vmatmul.mubr.msk.bf16.gmra.mrb[120].mxu0 %vm341_vm0, %v5075_v58  ;;  %2188 = vst.msk [vmem:[#allocation3] sm:$0xff] %vm341_vm0, %v2156_v48  ;;  %v5079_v1 = vrot.slane %v5077_v28, 4 }
 0x153   : > { %v5082_v7 = vrot.slane %v5080_v4, 5  ;;  %v5087_v45 = vrot.slane %v5085_v50, 4  ;;  %v4601_v21 = vrot.slane %v4529_v40, 4  ;;  %v6072_v37 = vpop.f32.mrb[26].mxu1  ;;  %v2048_v13 = vpop.f32.mrb[23].mxu0  ;;  %2191 = vst.msk [vmem:[#allocation3 + $0x18] sm:$0xff] %vm341_vm0, %v2159_v60 }
 0x154   : > { %2189 = vst.msk [vmem:[#allocation3 + $0x8] sm:$0xff] %vm341_vm0, %v2157_v63  ;;  %v5090_v8 = vrot.slane %v5088_v61, 5  ;;  %v4602_v9 = vrot.slane %v4530_v62, 4  ;;  %v5094_v14 = vshrl.u32 %v4956_v2, 16  ;;  %v5097_v26 = vshll.u32 %v4956_v2, 16  ;;  %v1442_v24 = vpop.f32.mrb[27].mxu1 }
 0x155   : > { %v5083_v19 = vor.u32 %v5082_v7, %v5079_v1  ;;  %v5102_v15 = vshrl.u32 %v4957_v11, 16  ;;  %v5105_v47 = vshll.u32 %v4957_v11, 16  ;;  %v4604_v43 = vrot.slane %v7259_v56, 4  ;;  %v7276_v38 = vld [vmem:[#allocation2 + $0xa0] sm:$0xf0]  ;;  %v1291_v39 = vld [vmem:[#allocation3 + $0x50] sm:$0xff] }
 0x156   : > { %v5091_v18 = vor.u32 %v5090_v8, %v5087_v45  ;;  %v4603_v17 = vsel %vm1232_vm4, %v4601_v21, %v4602_v9  ;;  %v5096_v55 = vrot.slane %v5094_v14, 4  ;;  %v5099_v32 = vrot.slane %v5097_v26, 5  ;;  %v4959_v25 = vld [vmem:[#allocation2 + $0xa8] sm:$0x1f]  ;;  %v1909_v23 = vld [vmem:[#allocation3 + $0x30] sm:$0xff]  ;;  %v1289_v16 = vld [vmem:[#allocation3 + $0x40] sm:$0xff] }
 0x157   : > { %6293 = vmatprep.mubr.msk.bf16.mxu1 %vm341_vm0, %v4603_v17  ;;  %v5104_v31 = vrot.slane %v5102_v15, 4  ;;  %v5107_v22 = vrot.slane %v5105_v47, 5  ;;  %v4605_v49 = vrot.slane %v4532_v51, 4  ;;  %v1544_v0 = vadd.f32 %v6071_v57, %v1291_v39  ;;  %v4533_v30 = vld [vmem:[#allocation2 + $0xc0] sm:$0xf0]  ;;  %v7280_v29 = vpop.f32.mrb[24].mxu0 }
 0x158   : > { %v4534_v10 = vld [vmem:[#allocation2 + $0xc8] sm:$0xf]  ;;  %v5092_v3 = vsel %vm1630_vm5, %v5083_v19, %v5091_v18  ;;  %v5100_v40 = vor.u32 %v5099_v32, %v5096_v55  ;;  %v2162_v35 = vadd.f32 %v7253_v36, %v1909_v23  ;;  %v1907_v53 = vld [vmem:[#allocation3 + $0x20] sm:$0xff]  ;;  %v1542_v59 = vadd.f32 %v1439_v5, %v1289_v16  ;;  %v1910_v12 = vld [vmem:[#allocation3 + $0x38] sm:$0xff]  ;;  %v7284_v42 = vpop.f32.mrb[25].mxu0  ;;  %v6075_v36 = vpop.f32.mrb[28].mxu1 }
 0x159   : > { %v4960_v27 = vld [vmem:[#allocation2 + $0xb0] sm:$0xf0]  ;;  %6325 = vmatprep.mubr.msk.bf16.mxu0 %vm341_vm0, %v5092_v3  ;;  %v5108_v62 = vor.u32 %v5107_v22, %v5104_v31  ;;  %v4606_v2 = vsel %vm1232_vm4, %v4604_v43, %v4605_v49  ;;  %1576 = vst.msk [vmem:[#allocation3 + $0x50] sm:$0xff] %vm341_vm0, %v1544_v0  ;;  %v2160_v6 = vadd.f32 %v7261_v52, %v1907_v53  ;;  %v1292_v34 = vld [vmem:[#allocation3 + $0x58] sm:$0xff]  ;;  %v1908_v46 = vld [vmem:[#allocation3 + $0x28] sm:$0xff]  ;;  %v7290_v11 = vpop.f32.mrb[26].mxu0 }
 0x15a   : > { %v2163_v33 = vadd.f32 %v6104_v20, %v1910_v12  ;;  %v1290_v44 = vld [vmem:[#allocation3 + $0x48] sm:$0xff]  ;;  %6294 = vmatmul.mubr.msk.bf16.gmra.mrb[128].mxu1 %vm341_vm0, %v4606_v2  ;;  %2194 = vst.msk [vmem:[#allocation3 + $0x30] sm:$0xff] %vm341_vm0, %v2162_v35  ;;  %1574 = vst.msk [vmem:[#allocation3 + $0x40] sm:$0xff] %vm341_vm0, %v1542_v59  ;;  %v1545_v56 = vadd.f32 %v6072_v37, %v1292_v34  ;;  %v2161_v48 = vadd.f32 %v2048_v13, %v1908_v46  ;;  %v4961_v28 = vld [vmem:[#allocation2 + $0xb8] sm:$0x1f]  ;;  %v1455_v52 = vpop.f32.mrb[29].mxu1 }
 0x15b   : > { %v1543_v54 = vadd.f32 %v1442_v24, %v1290_v44  ;;  %v5111_v41 = vshrl.u32 %v7276_v38, 16  ;;  %v7296_v4 = vpop.f32.mrb[27].mxu0  ;;  %v5109_v50 = vsel %vm1630_vm5, %v5100_v40, %v5108_v62  ;;  %2192 = vst.msk [vmem:[#allocation3 + $0x20] sm:$0xff] %vm341_vm0, %v2160_v6  ;;  %v5114_v57 = vshll.u32 %v7276_v38, 16  ;;  %v4535_v63 = vld [vmem:[#allocation2 + $0xd0] sm:$0xf0] }
 0x15c   : > { %2195 = vst.msk [vmem:[#allocation3 + $0x38] sm:$0xff] %vm341_vm0, %v2163_v33  ;;  %v5119_v58 = vshrl.u32 %v4959_v25, 16  ;;  %v5122_v60 = vshll.u32 %v4959_v25, 16  ;;  %v6076_v61 = vpop.f32.mrb[30].mxu1  ;;  %6326 = vmatmul.mubr.msk.bf16.gmra.mrb[124].mxu0 %vm341_vm0, %v5109_v50  ;;  %1577 = vst.msk [vmem:[#allocation3 + $0x58] sm:$0xff] %vm341_vm0, %v1545_v56  ;;  %v4607_v5 = vrot.slane %v4533_v30, 4 }
 0x15d   : > { %2193 = vst.msk [vmem:[#allocation3 + $0x28] sm:$0xff] %vm341_vm0, %v2161_v48  ;;  %1575 = vst.msk [vmem:[#allocation3 + $0x48] sm:$0xff] %vm341_vm0, %v1543_v54  ;;  %v5113_v51 = vrot.slane %v5111_v41, 4  ;;  %v4608_v20 = vrot.slane %v4534_v10, 4  ;;  %v5128_v1 = vshrl.u32 %v4960_v27, 16  ;;  %v1458_v7 = vpop.f32.mrb[31].mxu1 }
 0x15e   : > { %v5116_v45 = vrot.slane %v5114_v57, 5  ;;  %v5121_v21 = vrot.slane %v5119_v58, 4  ;;  %v5124_v37 = vrot.slane %v5122_v60, 5  ;;  %v5131_v13 = vshll.u32 %v4960_v27, 16  ;;  %v4536_v8 = vld [vmem:[#allocation2 + $0xd8] sm:$0xf] }
 0x15f   : > { %v4609_v9 = vsel %vm1232_vm4, %v4607_v5, %v4608_v20  ;;  %v5130_v14 = vrot.slane %v5128_v1, 4  ;;  %v5136_v26 = vshrl.u32 %v4961_v28, 16  ;;  %v5139_v24 = vshll.u32 %v4961_v28, 16  ;;  %v4962_v19 = vld [vmem:[#allocation2 + $0xc0] sm:$0xf0]  ;;  %v1295_v18 = vld [vmem:[#allocation3 + $0x70] sm:$0xff] }
 0x160   : > { %v5117_v15 = vor.u32 %v5116_v45, %v5113_v51  ;;  %v5125_v47 = vor.u32 %v5124_v37, %v5121_v21  ;;  %6297 = vmatprep.mubr.msk.bf16.mxu1 %vm341_vm0, %v4609_v9  ;;  %v5133_v43 = vrot.slane %v5131_v13, 5  ;;  %v4610_v38 = vrot.slane %v4535_v63, 4  ;;  %v4963_v17 = vld [vmem:[#allocation2 + $0xc8] sm:$0x1f]  ;;  %v7308_v55 = vpop.f32.mrb[28].mxu0  ;;  %v1913_v31 = vld [vmem:[#allocation3 + $0x50] sm:$0xff] }
 0x161   : > { %v5138_v32 = vrot.slane %v5136_v26, 4  ;;  %v5141_v39 = vrot.slane %v5139_v24, 5  ;;  %v4611_v25 = vrot.slane %v4536_v8, 4  ;;  %v1548_v22 = vadd.f32 %v6075_v36, %v1295_v18  ;;  %v1293_v49 = vld [vmem:[#allocation3 + $0x60] sm:$0xff]  ;;  %v7310_v0 = vpop.f32.mrb[29].mxu0  ;;  %v1296_v35 = vld [vmem:[#allocation3 + $0x78] sm:$0xff] }
 0x162   : > { %v4537_v23 = vld [vmem:[#allocation2 + $0xe0] sm:$0xf0]  ;;  %v5126_v16 = vsel %vm1630_vm5, %v5117_v15, %v5125_v47  ;;  %v5134_v30 = vor.u32 %v5133_v43, %v5130_v14  ;;  %v2166_v10 = vadd.f32 %v7280_v29, %v1913_v31  ;;  %v1546_v40 = vadd.f32 %v1455_v52, %v1293_v49  ;;  %v4538_v53 = vld [vmem:[#allocation2 + $0xe8] sm:$0xf]  ;;  %v7314_v59 = vpop.f32.mrb[32].mxu1  ;;  %v7316_v12 = vpop.f32.mrb[30].mxu0 }
 0x163   : > { %v1911_v3 = vld [vmem:[#allocation3 + $0x40] sm:$0xff]  ;;  %6329 = vmatprep.mubr.msk.bf16.mxu0 %vm341_vm0, %v5126_v16  ;;  %v5142_v27 = vor.u32 %v5141_v39, %v5138_v32  ;;  %v4612_v62 = vsel %vm1232_vm4, %v4610_v38, %v4611_v25  ;;  %1580 = vst.msk [vmem:[#allocation3 + $0x70] sm:$0xff] %vm341_vm0, %v1548_v22  ;;  %v1549_v6 = vadd.f32 %v6076_v61, %v1296_v35  ;;  %v1294_v33 = vld [vmem:[#allocation3 + $0x68] sm:$0xff]  ;;  %v4964_v29 = vld [vmem:[#allocation2 + $0xd0] sm:$0xf0]  ;;  %v1471_v34 = vpop.f32.mrb[33].mxu1 }
 0x164   : > { %v2164_v2 = vadd.f32 %v7284_v42, %v1911_v3  ;;  %v7322_v46 = vpop.f32.mrb[31].mxu0  ;;  %6298 = vmatmul.mubr.msk.bf16.gmra.mrb[132].mxu1 %vm341_vm0, %v4612_v62  ;;  %2198 = vst.msk [vmem:[#allocation3 + $0x50] sm:$0xff] %vm341_vm0, %v2166_v10  ;;  %1578 = vst.msk [vmem:[#allocation3 + $0x60] sm:$0xff] %vm341_vm0, %v1546_v40  ;;  %v1914_v44 = vld [vmem:[#allocation3 + $0x58] sm:$0xff]  ;;  %v1912_v36 = vld [vmem:[#allocation3 + $0x48] sm:$0xff]  ;;  %v1547_v56 = vadd.f32 %v1458_v7, %v1294_v33  ;;  %v5145_v48 = vshrl.u32 %v4962_v19, 16 }
 0x165   : > { %v5148_v54 = vshll.u32 %v4962_v19, 16  ;;  %v5153_v41 = vshrl.u32 %v4963_v17, 16  ;;  %v6080_v28 = vpop.f32.mrb[34].mxu1  ;;  %v5143_v42 = vsel %vm1630_vm5, %v5134_v30, %v5142_v27  ;;  %v2167_v52 = vadd.f32 %v7290_v11, %v1914_v44  ;;  %1581 = vst.msk [vmem:[#allocation3 + $0x78] sm:$0xff] %vm341_vm0, %v1549_v6  ;;  %v4965_v58 = vld [vmem:[#allocation2 + $0xd8] sm:$0x1f] }
 0x166   : > { %2196 = vst.msk [vmem:[#allocation3 + $0x40] sm:$0xff] %vm341_vm0, %v2164_v2  ;;  %v2165_v50 = vadd.f32 %v7296_v4, %v1912_v36  ;;  %v5156_v57 = vshll.u32 %v4963_v17, 16  ;;  %v4539_v60 = vld [vmem:[#allocation2 + $0xf0] sm:$0xf0]  ;;  %v1474_v63 = vpop.f32.mrb[35].mxu1  ;;  %6330 = vmatmul.mubr.msk.bf16.gmra.mrb[128].mxu0 %vm341_vm0, %v5143_v42  ;;  %1579 = vst.msk [vmem:[#allocation3 + $0x68] sm:$0xff] %vm341_vm0, %v1547_v56 }
 0x167   : > { %v5147_v61 = vrot.slane %v5145_v48, 4  ;;  %v5150_v51 = vrot.slane %v5148_v54, 5  ;;  %v5155_v5 = vrot.slane %v5153_v41, 4  ;;  %v4613_v20 = vrot.slane %v4537_v23, 4  ;;  %2199 = vst.msk [vmem:[#allocation3 + $0x58] sm:$0xff] %vm341_vm0, %v2167_v52  ;;  %v7336_v14 = vpop.f32.mrb[32].mxu0 }
 0x168   : > { %2197 = vst.msk [vmem:[#allocation3 + $0x48] sm:$0xff] %vm341_vm0, %v2165_v50  ;;  %v5158_v11 = vrot.slane %v5156_v57, 5  ;;  %v4614_v1 = vrot.slane %v4538_v53, 4  ;;  %v5162_v7 = vshrl.u32 %v4964_v29, 16  ;;  %v5165_v4 = vshll.u32 %v4964_v29, 16  ;;  %v1299_v47 = vld [vmem:[#allocation3 + $0x90] sm:$0xff] }
 0x169   : > { %v4540_v45 = vld [vmem:[#allocation2 + $0xf8] sm:$0xf]  ;;  %v5151_v21 = vor.u32 %v5150_v51, %v5147_v61  ;;  %v5170_v37 = vshrl.u32 %v4965_v58, 16  ;;  %v5173_v13 = vshll.u32 %v4965_v58, 16  ;;  %v4616_v8 = vrot.slane %v4539_v60, 4  ;;  %v1297_v43 = vld [vmem:[#allocation3 + $0x80] sm:$0xff] }
 0x16a   : > { %v4966_v9 = vld [vmem:[#allocation2 + $0xe0] sm:$0xf0]  ;;  %v5159_v26 = vor.u32 %v5158_v11, %v5155_v5  ;;  %v4615_v24 = vsel %vm1232_vm4, %v4613_v20, %v4614_v1  ;;  %v5164_v19 = vrot.slane %v5162_v7, 4  ;;  %v5167_v15 = vrot.slane %v5165_v4, 5  ;;  %v4967_v38 = vld [vmem:[#allocation2 + $0xe8] sm:$0x1f] }
 0x16b   : > { %v7339_v18 = vpop.f32.mrb[33].mxu0  ;;  %6301 = vmatprep.mubr.msk.bf16.mxu1 %vm341_vm0, %v4615_v24  ;;  %v5172_v17 = vrot.slane %v5170_v37, 4  ;;  %v5175_v32 = vrot.slane %v5173_v13, 5  ;;  %v4617_v39 = vrot.slane %v4540_v45, 4  ;;  %v1917_v25 = vld [vmem:[#allocation3 + $0x70] sm:$0xff]  ;;  %v1552_v31 = vadd.f32 %v7314_v59, %v1299_v47  ;;  %v7343_v22 = vpop.f32.mrb[36].mxu1 }
 0x16c   : > { %v7345_v49 = vpop.f32.mrb[34].mxu0  ;;  %v5160_v23 = vsel %vm1630_vm5, %v5151_v21, %v5159_v26  ;;  %v5168_v16 = vor.u32 %v5167_v15, %v5164_v19  ;;  %v2170_v30 = vadd.f32 %v7308_v55, %v1917_v25  ;;  %v1915_v10 = vld [vmem:[#allocation3 + $0x60] sm:$0xff]  ;;  %v1550_v3 = vadd.f32 %v1471_v34, %v1297_v43  ;;  %v1300_v40 = vld [vmem:[#allocation3 + $0x98] sm:$0xff]  ;;  %v7349_v53 = vpop.f32.mrb[37].mxu1  ;;  %v1298_v55 = vld [vmem:[#allocation3 + $0x88] sm:$0xff] }
 0x16d   : > { %v4541_v35 = vld [vmem:[#allocation2 + $0x100] sm:$0xf0]  ;;  %v7351_v27 = vpop.f32.mrb[35].mxu0  ;;  %6333 = vmatprep.mubr.msk.bf16.mxu0 %vm341_vm0, %v5160_v23  ;;  %v5176_v59 = vor.u32 %v5175_v32, %v5172_v17  ;;  %v4618_v62 = vsel %vm1232_vm4, %v4616_v8, %v4617_v39  ;;  %1584 = vst.msk [vmem:[#allocation3 + $0x90] sm:$0xff] %vm341_vm0, %v1552_v31  ;;  %v2168_v2 = vadd.f32 %v7310_v0, %v1915_v10  ;;  %v1918_v6 = vld [vmem:[#allocation3 + $0x78] sm:$0xff]  ;;  %v7357_v34 = vpop.f32.mrb[38].mxu1 }
 0x16e   : > { %v1553_v33 = vadd.f32 %v6080_v28, %v1300_v40  ;;  %v4542_v29 = vld [vmem:[#allocation2 + $0x108] sm:$0xf]  ;;  %6302 = vmatmul.mubr.msk.bf16.gmra.mrb[136].mxu1 %vm341_vm0, %v4618_v62  ;;  %2202 = vst.msk [vmem:[#allocation3 + $0x70] sm:$0xff] %vm341_vm0, %v2170_v30  ;;  %1582 = vst.msk [vmem:[#allocation3 + $0x80] sm:$0xff] %vm341_vm0, %v1550_v3  ;;  %v2171_v44 = vadd.f32 %v7316_v12, %v1918_v6  ;;  %v1551_v56 = vadd.f32 %v1474_v63, %v1298_v55  ;;  %v4968_v41 = vld [vmem:[#allocation2 + $0xf0] sm:$0xf0] }
 0x16f   : > { %v1916_v36 = vld [vmem:[#allocation3 + $0x68] sm:$0xff]  ;;  %v5179_v48 = vshrl.u32 %v4966_v9, 16  ;;  %v5182_v54 = vshll.u32 %v4966_v9, 16  ;;  %v7363_v0 = vpop.f32.mrb[39].mxu1  ;;  %v5177_v28 = vsel %vm1630_vm5, %v5168_v16, %v5176_v59  ;;  %2200 = vst.msk [vmem:[#allocation3 + $0x60] sm:$0xff] %vm341_vm0, %v2168_v2  ;;  %v5187_v52 = vshrl.u32 %v4967_v38, 16 }
 0x170   : > { %1585 = vst.msk [vmem:[#allocation3 + $0x98] sm:$0xff] %vm341_vm0, %v1553_v33  ;;  %v2169_v42 = vadd.f32 %v7322_v46, %v1916_v36  ;;  %v5190_v50 = vshll.u32 %v4967_v38, 16  ;;  %v4969_v57 = vld [vmem:[#allocation2 + $0xf8] sm:$0x1f]  ;;  %v4543_v58 = vld [vmem:[#allocation2 + $0x110] sm:$0xf0]  ;;  %6334 = vmatmul.mubr.msk.bf16.gmra.mrb[132].mxu0 %vm341_vm0, %v5177_v28 }
 0x171   : > { %2203 = vst.msk [vmem:[#allocation3 + $0x78] sm:$0xff] %vm341_vm0, %v2171_v44  ;;  %1583 = vst.msk [vmem:[#allocation3 + $0x88] sm:$0xff] %vm341_vm0, %v1551_v56  ;;  %v5181_v12 = vrot.slane %v5179_v48, 4  ;;  %v5184_v60 = vrot.slane %v5182_v54, 5  ;;  %v4619_v63 = vrot.slane %v4541_v35, 4  ;;  %v4620_v61 = vrot.slane %v4542_v29, 4 }
 0x172   : > { %v4544_v51 = vld [vmem:[#allocation2 + $0x118] sm:$0xf]  ;;  %2201 = vst.msk [vmem:[#allocation3 + $0x68] sm:$0xff] %vm341_vm0, %v2169_v42  ;;  %v5189_v5 = vrot.slane %v5187_v52, 4  ;;  %v5192_v20 = vrot.slane %v5190_v50, 5  ;;  %v5196_v46 = vshrl.u32 %v4968_v41, 16 }
 0x173   : > { %v5199_v11 = vshll.u32 %v4968_v41, 16  ;;  %v7373_v1 = vpop.f32.mrb[36].mxu0  ;;  %v5185_v7 = vor.u32 %v5184_v60, %v5181_v12  ;;  %v4621_v4 = vsel %vm1232_vm4, %v4619_v63, %v4620_v61  ;;  %v5204_v45 = vshrl.u32 %v4969_v57, 16  ;;  %v1303_v37 = vld [vmem:[#allocation3 + $0xb0] sm:$0xff]  ;;  %v4970_v13 = vld [vmem:[#allocation2 + $0x100] sm:$0xf0] }
 0x174   : > { %v5207_v21 = vshll.u32 %v4969_v57, 16  ;;  %v7376_v8 = vpop.f32.mrb[37].mxu0  ;;  %v5193_v9 = vor.u32 %v5192_v20, %v5189_v5  ;;  %6305 = vmatprep.mubr.msk.bf16.mxu1 %vm341_vm0, %v4621_v4  ;;  %v5198_v26 = vrot.slane %v5196_v46, 4  ;;  %v4622_v19 = vrot.slane %v4543_v58, 4  ;;  %v1301_v15 = vld [vmem:[#allocation3 + $0xa0] sm:$0xff]  ;;  %v6087_v47 = vpop.f32.mrb[40].mxu1 }
 0x175   : > { %v5201_v24 = vrot.slane %v5199_v11, 5  ;;  %v7379_v43 = vpop.f32.mrb[38].mxu0  ;;  %v5206_v38 = vrot.slane %v5204_v45, 4  ;;  %v4623_v32 = vrot.slane %v4544_v51, 4  ;;  %v1921_v39 = vld [vmem:[#allocation3 + $0x90] sm:$0xff]  ;;  %v1556_v25 = vadd.f32 %v7343_v22, %v1303_v37  ;;  %v1503_v31 = vpop.f32.mrb[41].mxu1 }
 0x176   : > { %v5209_v17 = vrot.slane %v5207_v21, 5  ;;  %v7382_v23 = vpop.f32.mrb[39].mxu0  ;;  %v5194_v16 = vsel %vm1630_vm5, %v5185_v7, %v5193_v9  ;;  %v2174_v10 = vadd.f32 %v7336_v14, %v1921_v39  ;;  %v1919_v3 = vld [vmem:[#allocation3 + $0x80] sm:$0xff]  ;;  %v1554_v40 = vadd.f32 %v7349_v53, %v1301_v15  ;;  %v1304_v35 = vld [vmem:[#allocation3 + $0xb8] sm:$0xff]  ;;  %v4971_v59 = vld [vmem:[#allocation2 + $0x108] sm:$0x1f] }
 0x177   : > { %v5202_v30 = vor.u32 %v5201_v24, %v5198_v26  ;;  %v6088_v62 = vpop.f32.mrb[42].mxu1  ;;  %6337 = vmatprep.mubr.msk.bf16.mxu0 %vm341_vm0, %v5194_v16  ;;  %v4624_v6 = vsel %vm1232_vm4, %v4622_v19, %v4623_v32  ;;  %1588 = vst.msk [vmem:[#allocation3 + $0xb0] sm:$0xff] %vm341_vm0, %v1556_v25  ;;  %v2172_v22 = vadd.f32 %v7339_v18, %v1919_v3  ;;  %v1922_v33 = vld [vmem:[#allocation3 + $0x98] sm:$0xff]  ;;  %v1302_v29 = vld [vmem:[#allocation3 + $0xa8] sm:$0xff]  ;;  %v4972_v14 = vld [vmem:[#allocation2 + $0x110] sm:$0xf0] }
 0x178   : > { %v5210_v2 = vor.u32 %v5209_v17, %v5206_v38  ;;  %v1557_v55 = vadd.f32 %v7357_v34, %v1304_v35  ;;  %v1506_v44 = vpop.f32.mrb[43].mxu1  ;;  %6306 = vmatmul.mubr.msk.bf16.gmra.mrb[140].mxu1 %vm341_vm0, %v4624_v6  ;;  %2206 = vst.msk [vmem:[#allocation3 + $0x90] sm:$0xff] %vm341_vm0, %v2174_v10  ;;  %1586 = vst.msk [vmem:[#allocation3 + $0xa0] sm:$0xff] %vm341_vm0, %v1554_v40  ;;  %v2175_v53 = vadd.f32 %v7345_v49, %v1922_v33  ;;  %v1920_v36 = vld [vmem:[#allocation3 + $0x88] sm:$0xff]  ;;  %v4973_v18 = vld [vmem:[#allocation2 + $0x118] sm:$0x1f] }
 0x179   : > { %v1555_v56 = vadd.f32 %v7363_v0, %v1302_v29  ;;  %v5213_v48 = vshrl.u32 %v4970_v13, 16  ;;  %v5216_v54 = vshll.u32 %v4970_v13, 16  ;;  %2204 = vst.msk [vmem:[#allocation3 + $0x80] sm:$0xff] %vm341_vm0, %v2172_v22  ;;  %v2173_v34 = vadd.f32 %v7351_v27, %v1920_v36  ;;  %v7404_v57 = vpop.f32.mrb[40].mxu0  ;;  %v1307_v63 = vld [vmem:[#allocation3 + $0xd0] sm:$0xff]  ;;  %v1305_v11 = vld [vmem:[#allocation3 + $0xc0] sm:$0xff] }
 0x17a   : > { %v5211_v41 = vsel %vm1630_vm5, %v5202_v30, %v5210_v2  ;;  %1589 = vst.msk [vmem:[#allocation3 + $0xb8] sm:$0xff] %vm341_vm0, %v1557_v55  ;;  %v5221_v28 = vshrl.u32 %v4971_v59, 16  ;;  %v5224_v42 = vshll.u32 %v4971_v59, 16  ;;  %2207 = vst.msk [vmem:[#allocation3 + $0x98] sm:$0xff] %vm341_vm0, %v2175_v53  ;;  %v5230_v52 = vshrl.u32 %v4972_v14, 16  ;;  %v7407_v61 = vpop.f32.mrb[41].mxu0 }
 0x17b   : > { %6338 = vmatmul.mubr.msk.bf16.gmra.mrb[136].mxu0 %vm341_vm0, %v5211_v41  ;;  %1587 = vst.msk [vmem:[#allocation3 + $0xa8] sm:$0xff] %vm341_vm0, %v1555_v56  ;;  %v5215_v49 = vrot.slane %v5213_v48, 4  ;;  %v5218_v0 = vrot.slane %v5216_v54, 5  ;;  %v5233_v50 = vshll.u32 %v4972_v14, 16  ;;  %2205 = vst.msk [vmem:[#allocation3 + $0x88] sm:$0xff] %vm341_vm0, %v2173_v34  ;;  %v5238_v60 = vshrl.u32 %v4973_v18, 16 }
 0x17c   : > { %v5223_v58 = vrot.slane %v5221_v28, 4  ;;  %v5226_v12 = vrot.slane %v5224_v42, 5  ;;  %v5241_v27 = vshll.u32 %v4973_v18, 16  ;;  %v5232_v5 = vrot.slane %v5230_v52, 4  ;;  %v1308_v7 = vld [vmem:[#allocation3 + $0xd8] sm:$0xff]  ;;  %v6091_v4 = vpop.f32.mrb[44].mxu1 }
 0x17d   : > { %v5219_v51 = vor.u32 %v5218_v0, %v5215_v49  ;;  %v5235_v20 = vrot.slane %v5233_v50, 5  ;;  %v1560_v46 = vadd.f32 %v6087_v47, %v1307_v63  ;;  %v7409_v45 = vpop.f32.mrb[42].mxu0  ;;  %v5240_v37 = vrot.slane %v5238_v60, 4  ;;  %v1306_v26 = vld [vmem:[#allocation3 + $0xc8] sm:$0xff]  ;;  %v1311_v24 = vld [vmem:[#allocation3 + $0xf0] sm:$0xff]  ;;  %v1519_v19 = vpop.f32.mrb[45].mxu1 }
 0x17e   : > { %v5227_v21 = vor.u32 %v5226_v12, %v5223_v58  ;;  %v5243_v13 = vrot.slane %v5241_v27, 5  ;;  %v1558_v9 = vadd.f32 %v1503_v31, %v1305_v11  ;;  %v7411_v15 = vpop.f32.mrb[43].mxu0  ;;  %v1925_v17 = vld [vmem:[#allocation3 + $0xb0] sm:$0xff]  ;;  %v1561_v32 = vadd.f32 %v6088_v62, %v1308_v7  ;;  %v1309_v25 = vld [vmem:[#allocation3 + $0xe0] sm:$0xff]  ;;  %v6092_v16 = vpop.f32.mrb[46].mxu1  ;;  %v1312_v35 = vld [vmem:[#allocation3 + $0xf8] sm:$0xff] }
 0x17f   : > { %v5236_v38 = vor.u32 %v5235_v20, %v5232_v5  ;;  %1592 = vst.msk [vmem:[#allocation3 + $0xd0] sm:$0xff] %vm341_vm0, %v1560_v46  ;;  %v1559_v47 = vadd.f32 %v1506_v44, %v1306_v26  ;;  %v1564_v39 = vadd.f32 %v6091_v4, %v1311_v24  ;;  %v2178_v3 = vadd.f32 %v7373_v1, %v1925_v17  ;;  %v1923_v31 = vld [vmem:[#allocation3 + $0xa0] sm:$0xff]  ;;  %v1310_v59 = vld [vmem:[#allocation3 + $0xe8] sm:$0xff]  ;;  %v1522_v2 = vpop.f32.mrb[47].mxu1  ;;  %v6127_v14 = vpop.f32.mrb[44].mxu0  ;;  %v2527_v42 = vld [vmem:[#allocation3 + $0x18] sm:$0xff] }
 0x180   : > { %v5228_v30 = vsel %vm1630_vm5, %v5219_v51, %v5227_v21  ;;  %v5244_v10 = vor.u32 %v5243_v13, %v5240_v37  ;;  %1590 = vst.msk [vmem:[#allocation3 + $0xc0] sm:$0xff] %vm341_vm0, %v1558_v9  ;;  %v1562_v40 = vadd.f32 %v1519_v19, %v1309_v25  ;;  %v2176_v62 = vadd.f32 %v7376_v8, %v1923_v31  ;;  %v2141_v44 = vpop.f32.mrb[45].mxu0  ;;  %v6135_v53 = vpop.f32.mrb[48].mxu1  ;;  %v2524_v54 = vld [vmem:[#allocation3] sm:$0xff]  ;;  %v2525_v0 = vld [vmem:[#allocation3 + $0x8] sm:$0xff]  ;;  %v2530_v37 = vld [vmem:[#allocation3 + $0x30] sm:$0xff] }
 0x181   : > { %6341 = vmatprep.mubr.msk.bf16.mxu0 %vm341_vm0, %v5228_v30  ;;  %v1926_v6 = vld [vmem:[#allocation3 + $0xb8] sm:$0xff]  ;;  %1593 = vst.msk [vmem:[#allocation3 + $0xd8] sm:$0xff] %vm341_vm0, %v1561_v32  ;;  %1591 = vst.msk [vmem:[#allocation3 + $0xc8] sm:$0xff] %vm341_vm0, %v1559_v47  ;;  %v1565_v22 = vadd.f32 %v6092_v16, %v1312_v35  ;;  %v1563_v1 = vadd.f32 %v1522_v2, %v1310_v59  ;;  %v6128_v36 = vpop.f32.mrb[46].mxu0  ;;  %v2650_v18 = vpop.f32.mrb[49].mxu1  ;;  %v2528_v24 = vld [vmem:[#allocation3 + $0x20] sm:$0xff] }
 0x182   : > { %1596 = vst.msk [vmem:[#allocation3 + $0xf0] sm:$0xff] %vm341_vm0, %v1564_v39  ;;  %v5245_v33 = vsel %vm1630_vm5, %v5236_v38, %v5244_v10  ;;  %2210 = vst.msk [vmem:[#allocation3 + $0xb0] sm:$0xff] %vm341_vm0, %v2178_v3  ;;  %v2179_v55 = vadd.f32 %v7379_v43, %v1926_v6  ;;  %v1924_v29 = vld [vmem:[#allocation3 + $0xa8] sm:$0xff]  ;;  %v2526_v43 = vld [vmem:[#allocation3 + $0x10] sm:$0xff]  ;;  %v2144_v41 = vpop.f32.mrb[47].mxu0  ;;  %v2777_v28 = vadd.f32 %v2650_v18, %v2524_v54  ;;  %v6136_v49 = vpop.f32.mrb[50].mxu1 }
 0x183   : > { %1594 = vst.msk [vmem:[#allocation3 + $0xe0] sm:$0xff] %vm341_vm0, %v1562_v40  ;;  %6342 = vmatmul.mubr.msk.bf16.gmra.mrb[140].mxu0 %vm341_vm0, %v5245_v33  ;;  %2208 = vst.msk [vmem:[#allocation3 + $0xa0] sm:$0xff] %vm341_vm0, %v2176_v62  ;;  %v2177_v8 = vadd.f32 %v7382_v23, %v1924_v29  ;;  %v2779_v48 = vadd.f32 %v6135_v53, %v2526_v43  ;;  %v2780_v60 = vadd.f32 %v6136_v49, %v2527_v42  ;;  %v2653_v27 = vpop.f32.mrb[51].mxu1  ;;  %v2531_v32 = vld [vmem:[#allocation3 + $0x38] sm:$0xff]  ;;  %v2529_v30 = vld [vmem:[#allocation3 + $0x28] sm:$0xff] }
 0x184   : > { %1597 = vst.msk [vmem:[#allocation3 + $0xf8] sm:$0xff] %vm341_vm0, %v1565_v22  ;;  %1595 = vst.msk [vmem:[#allocation3 + $0xe8] sm:$0xff] %vm341_vm0, %v1563_v1  ;;  %v2778_v20 = vadd.f32 %v2653_v27, %v2525_v0  ;;  %v6139_v13 = vpop.f32.mrb[52].mxu1  ;;  %v2534_v22 = vld [vmem:[#allocation3 + $0x50] sm:$0xff]  ;;  %v2532_v29 = vld [vmem:[#allocation3 + $0x40] sm:$0xff] }
 0x185   : > { %2211 = vst.msk [vmem:[#allocation3 + $0xb8] sm:$0xff] %vm341_vm0, %v2179_v55  ;;  %2209 = vst.msk [vmem:[#allocation3 + $0xa8] sm:$0xff] %vm341_vm0, %v2177_v8  ;;  %v2783_v26 = vadd.f32 %v6139_v13, %v2530_v37  ;;  %v2666_v19 = vpop.f32.mrb[53].mxu1  ;;  %v2535_v53 = vld [vmem:[#allocation3 + $0x58] sm:$0xff]  ;;  %v2533_v18 = vld [vmem:[#allocation3 + $0x48] sm:$0xff] }
 0x186   : > { %v1929_v56 = vld [vmem:[#allocation3 + $0xd0] sm:$0xff]  ;;  %2811 = vst.msk [vmem:[#allocation3 + $0x10] sm:$0xff] %vm341_vm0, %v2779_v48  ;;  %2809 = vst.msk [vmem:[#allocation3] sm:$0xff] %vm341_vm0, %v2777_v28  ;;  %v2781_v17 = vadd.f32 %v2666_v19, %v2528_v24  ;;  %v6140_v47 = vpop.f32.mrb[54].mxu1 }
 0x187   : > { %v2182_v23 = vadd.f32 %v7404_v57, %v1929_v56  ;;  %v1927_v34 = vld [vmem:[#allocation3 + $0xc0] sm:$0xff]  ;;  %2812 = vst.msk [vmem:[#allocation3 + $0x18] sm:$0xff] %vm341_vm0, %v2780_v60  ;;  %2810 = vst.msk [vmem:[#allocation3 + $0x8] sm:$0xff] %vm341_vm0, %v2778_v20  ;;  %v2784_v16 = vadd.f32 %v6140_v47, %v2531_v32  ;;  %v2669_v10 = vpop.f32.mrb[55].mxu1 }
 0x188   : > { %v2180_v52 = vadd.f32 %v7407_v61, %v1927_v34  ;;  %v1930_v50 = vld [vmem:[#allocation3 + $0xd8] sm:$0xff]  ;;  %v1928_v58 = vld [vmem:[#allocation3 + $0xc8] sm:$0xff]  ;;  %2815 = vst.msk [vmem:[#allocation3 + $0x30] sm:$0xff] %vm341_vm0, %v2783_v26  ;;  %2813 = vst.msk [vmem:[#allocation3 + $0x20] sm:$0xff] %vm341_vm0, %v2781_v17  ;;  %v2782_v40 = vadd.f32 %v2669_v10, %v2529_v30 }
 0x189   : > { %v1933_v12 = vld [vmem:[#allocation3 + $0xf0] sm:$0xff]  ;;  %2214 = vst.msk [vmem:[#allocation3 + $0xd0] sm:$0xff] %vm341_vm0, %v2182_v23  ;;  %v2183_v63 = vadd.f32 %v7409_v45, %v1930_v50  ;;  %v2181_v57 = vadd.f32 %v7411_v15, %v1928_v58  ;;  %v6171_v45 = vpop.f32.mrb[48].mxu0  ;;  %2816 = vst.msk [vmem:[#allocation3 + $0x38] sm:$0xff] %vm341_vm0, %v2784_v16 }
 0x18a   : > { %v2186_v51 = vadd.f32 %v6127_v14, %v1933_v12  ;;  %v1931_v5 = vld [vmem:[#allocation3 + $0xe0] sm:$0xff]  ;;  %2212 = vst.msk [vmem:[#allocation3 + $0xc0] sm:$0xff] %vm341_vm0, %v2180_v52  ;;  %v3079_v21 = vpop.f32.mrb[49].mxu0  ;;  %2814 = vst.msk [vmem:[#allocation3 + $0x28] sm:$0xff] %vm341_vm0, %v2782_v40  ;;  %v6143_v1 = vpop.f32.mrb[56].mxu1  ;;  %v2538_v58 = vld [vmem:[#allocation3 + $0x70] sm:$0xff] }
 0x18b   : > { %v2184_v61 = vadd.f32 %v2141_v44, %v1931_v5  ;;  %v1934_v46 = vld [vmem:[#allocation3 + $0xf8] sm:$0xff]  ;;  %v1932_v11 = vld [vmem:[#allocation3 + $0xe8] sm:$0xff]  ;;  %2215 = vst.msk [vmem:[#allocation3 + $0xd8] sm:$0xff] %vm341_vm0, %v2183_v63  ;;  %2213 = vst.msk [vmem:[#allocation3 + $0xc8] sm:$0xff] %vm341_vm0, %v2181_v57  ;;  %v6172_v9 = vpop.f32.mrb[50].mxu0  ;;  %v2787_v55 = vadd.f32 %v6143_v1, %v2534_v22  ;;  %v2682_v8 = vpop.f32.mrb[57].mxu1 }
 0x18c   : > { %2218 = vst.msk [vmem:[#allocation3 + $0xf0] sm:$0xff] %vm341_vm0, %v2186_v51  ;;  %v2187_v7 = vadd.f32 %v6128_v36, %v1934_v46  ;;  %v2185_v4 = vadd.f32 %v2144_v41, %v1932_v11  ;;  %v3082_v15 = vpop.f32.mrb[51].mxu0  ;;  %v2785_v43 = vadd.f32 %v2682_v8, %v2532_v29  ;;  %v6144_v36 = vpop.f32.mrb[58].mxu1  ;;  %v2536_v63 = vld [vmem:[#allocation3 + $0x60] sm:$0xff]  ;;  %v2542_v17 = vld [vmem:[#allocation3 + $0x90] sm:$0xff] }
 0x18d   : > { %2216 = vst.msk [vmem:[#allocation3 + $0xe0] sm:$0xff] %vm341_vm0, %v2184_v61  ;;  %v2955_v38 = vld [vmem:[#allocation3 + $0x10] sm:$0xff]  ;;  %v2953_v25 = vld [vmem:[#allocation3] sm:$0xff]  ;;  %v6175_v62 = vpop.f32.mrb[52].mxu0  ;;  %2819 = vst.msk [vmem:[#allocation3 + $0x50] sm:$0xff] %vm341_vm0, %v2787_v55  ;;  %v2788_v54 = vadd.f32 %v6144_v36, %v2535_v53  ;;  %v2685_v41 = vpop.f32.mrb[59].mxu1 }
 0x18e   : > { %2219 = vst.msk [vmem:[#allocation3 + $0xf8] sm:$0xff] %vm341_vm0, %v2187_v7  ;;  %2217 = vst.msk [vmem:[#allocation3 + $0xe8] sm:$0xff] %vm341_vm0, %v2185_v4  ;;  %v3208_v39 = vadd.f32 %v6171_v45, %v2955_v38  ;;  %v3206_v3 = vadd.f32 %v3079_v21, %v2953_v25  ;;  %v2956_v31 = vld [vmem:[#allocation3 + $0x18] sm:$0xff]  ;;  %v2954_v59 = vld [vmem:[#allocation3 + $0x8] sm:$0xff]  ;;  %v3095_v6 = vpop.f32.mrb[53].mxu0  ;;  %v2786_v28 = vadd.f32 %v2685_v41, %v2533_v18 }
 0x18f   : > { %v3209_v35 = vadd.f32 %v6172_v9, %v2956_v31  ;;  %v3207_v2 = vadd.f32 %v3082_v15, %v2954_v59  ;;  %v6176_v33 = vpop.f32.mrb[54].mxu0  ;;  %v2959_v44 = vld [vmem:[#allocation3 + $0x30] sm:$0xff]  ;;  %v2957_v48 = vld [vmem:[#allocation3 + $0x20] sm:$0xff]  ;;  %2817 = vst.msk [vmem:[#allocation3 + $0x40] sm:$0xff] %vm341_vm0, %v2785_v43  ;;  %2820 = vst.msk [vmem:[#allocation3 + $0x58] sm:$0xff] %vm341_vm0, %v2788_v54 }
 0x190   : > { %3240 = vst.msk [vmem:[#allocation3 + $0x10] sm:$0xff] %vm341_vm0, %v3208_v39  ;;  %3238 = vst.msk [vmem:[#allocation3] sm:$0xff] %vm341_vm0, %v3206_v3  ;;  %v3098_v14 = vpop.f32.mrb[55].mxu0  ;;  %v3212_v56 = vadd.f32 %v6175_v62, %v2959_v44  ;;  %v3210_v23 = vadd.f32 %v3095_v6, %v2957_v48  ;;  %v2960_v34 = vld [vmem:[#allocation3 + $0x38] sm:$0xff]  ;;  %v2537_v45 = vld [vmem:[#allocation3 + $0x68] sm:$0xff] }
 0x191   : > { %3241 = vst.msk [vmem:[#allocation3 + $0x18] sm:$0xff] %vm341_vm0, %v3209_v35  ;;  %3239 = vst.msk [vmem:[#allocation3 + $0x8] sm:$0xff] %vm341_vm0, %v3207_v2  ;;  %v3213_v42 = vadd.f32 %v6176_v33, %v2960_v34  ;;  %v2958_v49 = vld [vmem:[#allocation3 + $0x28] sm:$0xff]  ;;  %v6179_v52 = vpop.f32.mrb[56].mxu0  ;;  %v2539_v61 = vld [vmem:[#allocation3 + $0x78] sm:$0xff] }
 0x192   : > { %3244 = vst.msk [vmem:[#allocation3 + $0x30] sm:$0xff] %vm341_vm0, %v3212_v56  ;;  %3242 = vst.msk [vmem:[#allocation3 + $0x20] sm:$0xff] %vm341_vm0, %v3210_v23  ;;  %v3211_v0 = vadd.f32 %v3098_v14, %v2958_v49  ;;  %v3111_v50 = vpop.f32.mrb[57].mxu0  ;;  %v6147_v12 = vpop.f32.mrb[60].mxu1  ;;  %v2540_v25 = vld [vmem:[#allocation3 + $0x80] sm:$0xff]  ;;  %v2543_v31 = vld [vmem:[#allocation3 + $0x98] sm:$0xff] }
 0x193   : > { %2818 = vst.msk [vmem:[#allocation3 + $0x48] sm:$0xff] %vm341_vm0, %v2786_v28  ;;  %3245 = vst.msk [vmem:[#allocation3 + $0x38] sm:$0xff] %vm341_vm0, %v3213_v42  ;;  %v6180_v60 = vpop.f32.mrb[58].mxu0  ;;  %v2791_v27 = vadd.f32 %v6147_v12, %v2538_v58  ;;  %v2698_v57 = vpop.f32.mrb[61].mxu1  ;;  %v2541_v62 = vld [vmem:[#allocation3 + $0x88] sm:$0xff]  ;;  %v2546_v43 = vld [vmem:[#allocation3 + $0xb0] sm:$0xff] }
 0x194   : > { %3243 = vst.msk [vmem:[#allocation3 + $0x28] sm:$0xff] %vm341_vm0, %v3211_v0  ;;  %v3114_v51 = vpop.f32.mrb[59].mxu0  ;;  %v2963_v5 = vld [vmem:[#allocation3 + $0x50] sm:$0xff]  ;;  %v2789_v20 = vadd.f32 %v2698_v57, %v2536_v63  ;;  %v6148_v46 = vpop.f32.mrb[62].mxu1  ;;  %v2544_v48 = vld [vmem:[#allocation3 + $0xa0] sm:$0xff]  ;;  %v2547_v34 = vld [vmem:[#allocation3 + $0xb8] sm:$0xff] }
 0x195   : > { %v3216_v11 = vadd.f32 %v6179_v52, %v2963_v5  ;;  %2823 = vst.msk [vmem:[#allocation3 + $0x70] sm:$0xff] %vm341_vm0, %v2791_v27  ;;  %v2792_v4 = vadd.f32 %v6148_v46, %v2539_v61  ;;  %v2701_v21 = vpop.f32.mrb[63].mxu1  ;;  %v2545_v52 = vld [vmem:[#allocation3 + $0xa8] sm:$0xff] }
 0x196   : > { %v2961_v7 = vld [vmem:[#allocation3 + $0x40] sm:$0xff]  ;;  %2821 = vst.msk [vmem:[#allocation3 + $0x60] sm:$0xff] %vm341_vm0, %v2789_v20  ;;  %v2964_v13 = vld [vmem:[#allocation3 + $0x58] sm:$0xff]  ;;  %v2790_v9 = vadd.f32 %v2701_v21, %v2537_v45  ;;  %v2550_v20 = vld [vmem:[#allocation3 + $0xd0] sm:$0xff] }
 0x197   : > { %v3214_v37 = vadd.f32 %v3111_v50, %v2961_v7  ;;  %3248 = vst.msk [vmem:[#allocation3 + $0x50] sm:$0xff] %vm341_vm0, %v3216_v11  ;;  %v3217_v26 = vadd.f32 %v6180_v60, %v2964_v13  ;;  %2824 = vst.msk [vmem:[#allocation3 + $0x78] sm:$0xff] %vm341_vm0, %v2792_v4  ;;  %v2548_v7 = vld [vmem:[#allocation3 + $0xc0] sm:$0xff]  ;;  %v2551_v13 = vld [vmem:[#allocation3 + $0xd8] sm:$0xff] }
 0x198   : > { %2822 = vst.msk [vmem:[#allocation3 + $0x68] sm:$0xff] %vm341_vm0, %v2790_v9  ;;  %v6183_v15 = vpop.f32.mrb[60].mxu0 }
 0x199   : > { %3246 = vst.msk [vmem:[#allocation3 + $0x40] sm:$0xff] %vm341_vm0, %v3214_v37  ;;  %3249 = vst.msk [vmem:[#allocation3 + $0x58] sm:$0xff] %vm341_vm0, %v3217_v26  ;;  %v3127_v38 = vpop.f32.mrb[61].mxu0 }
 0x19a   : > { %v2962_v24 = vld [vmem:[#allocation3 + $0x48] sm:$0xff]  ;;  %v6151_v32 = vpop.f32.mrb[64].mxu1  ;;  %v6184_v47 = vpop.f32.mrb[62].mxu0 }
 0x19b   : > { %v3215_v19 = vadd.f32 %v3114_v51, %v2962_v24  ;;  %v2795_v39 = vadd.f32 %v6151_v32, %v2542_v17  ;;  %v2714_v16 = vpop.f32.mrb[65].mxu1  ;;  %v3130_v30 = vpop.f32.mrb[63].mxu0 }
 0x19c   : > { %v2967_v10 = vld [vmem:[#allocation3 + $0x70] sm:$0xff]  ;;  %v2793_v3 = vadd.f32 %v2714_v16, %v2540_v25  ;;  %v6152_v40 = vpop.f32.mrb[66].mxu1 }
 0x19d   : > { %3247 = vst.msk [vmem:[#allocation3 + $0x48] sm:$0xff] %vm341_vm0, %v3215_v19  ;;  %v3220_v35 = vadd.f32 %v6183_v15, %v2967_v10  ;;  %2827 = vst.msk [vmem:[#allocation3 + $0x90] sm:$0xff] %vm341_vm0, %v2795_v39  ;;  %v2965_v59 = vld [vmem:[#allocation3 + $0x60] sm:$0xff]  ;;  %v2796_v2 = vadd.f32 %v6152_v40, %v2543_v31  ;;  %v2717_v6 = vpop.f32.mrb[67].mxu1  ;;  %v2549_v15 = vld [vmem:[#allocation3 + $0xc8] sm:$0xff] }
 0x19e   : > { %v3218_v22 = vadd.f32 %v3127_v38, %v2965_v59  ;;  %2825 = vst.msk [vmem:[#allocation3 + $0x80] sm:$0xff] %vm341_vm0, %v2793_v3  ;;  %v2968_v1 = vld [vmem:[#allocation3 + $0x78] sm:$0xff]  ;;  %v2794_v33 = vadd.f32 %v2717_v6, %v2541_v62  ;;  %v2554_v59 = vld [vmem:[#allocation3 + $0xf0] sm:$0xff] }
 0x19f   : > { %3252 = vst.msk [vmem:[#allocation3 + $0x70] sm:$0xff] %vm341_vm0, %v3220_v35  ;;  %v3221_v55 = vadd.f32 %v6184_v47, %v2968_v1  ;;  %2828 = vst.msk [vmem:[#allocation3 + $0x98] sm:$0xff] %vm341_vm0, %v2796_v2  ;;  %v2966_v29 = vld [vmem:[#allocation3 + $0x68] sm:$0xff]  ;;  %v2552_v1 = vld [vmem:[#allocation3 + $0xe0] sm:$0xff] }
 0x1a0   : > { %3250 = vst.msk [vmem:[#allocation3 + $0x60] sm:$0xff] %vm341_vm0, %v3218_v22  ;;  %v3219_v8 = vadd.f32 %v3130_v30, %v2966_v29  ;;  %2826 = vst.msk [vmem:[#allocation3 + $0x88] sm:$0xff] %vm341_vm0, %v2794_v33  ;;  %v6187_v14 = vpop.f32.mrb[64].mxu0 }
 0x1a1   : > { %3253 = vst.msk [vmem:[#allocation3 + $0x78] sm:$0xff] %vm341_vm0, %v3221_v55  ;;  %v3143_v44 = vpop.f32.mrb[65].mxu0 }
 0x1a2   : > { %3251 = vst.msk [vmem:[#allocation3 + $0x68] sm:$0xff] %vm341_vm0, %v3219_v8  ;;  %v6155_v53 = vpop.f32.mrb[68].mxu1  ;;  %v6188_v36 = vpop.f32.mrb[66].mxu0 }
 0x1a3   : > { %v2799_v56 = vadd.f32 %v6155_v53, %v2546_v43  ;;  %v2730_v54 = vpop.f32.mrb[69].mxu1  ;;  %v3146_v18 = vpop.f32.mrb[67].mxu0 }
 0x1a4   : > { %v2971_v41 = vld [vmem:[#allocation3 + $0x90] sm:$0xff]  ;;  %v2797_v23 = vadd.f32 %v2730_v54, %v2544_v48  ;;  %v6156_v28 = vpop.f32.mrb[70].mxu1 }
 0x1a5   : > { %v3224_v42 = vadd.f32 %v6187_v14, %v2971_v41  ;;  %2831 = vst.msk [vmem:[#allocation3 + $0xb0] sm:$0xff] %vm341_vm0, %v2799_v56  ;;  %v2969_v49 = vld [vmem:[#allocation3 + $0x80] sm:$0xff]  ;;  %v2800_v0 = vadd.f32 %v6156_v28, %v2547_v34  ;;  %v2733_v50 = vpop.f32.mrb[71].mxu1  ;;  %v2555_v14 = vld [vmem:[#allocation3 + $0xf8] sm:$0xff]  ;;  %v2553_v56 = vld [vmem:[#allocation3 + $0xe8] sm:$0xff] }
 0x1a6   : > { %v3222_v58 = vadd.f32 %v3143_v44, %v2969_v49  ;;  %2829 = vst.msk [vmem:[#allocation3 + $0xa0] sm:$0xff] %vm341_vm0, %v2797_v23  ;;  %v2972_v12 = vld [vmem:[#allocation3 + $0x98] sm:$0xff]  ;;  %v2798_v60 = vadd.f32 %v2733_v50, %v2545_v52  ;;  %v3576_v28 = vld [vmem:[#allocation3 + $0x10] sm:$0xff] }
 0x1a7   : > { %3256 = vst.msk [vmem:[#allocation3 + $0x90] sm:$0xff] %vm341_vm0, %v3224_v42  ;;  %v3225_v27 = vadd.f32 %v6188_v36, %v2972_v12  ;;  %2832 = vst.msk [vmem:[#allocation3 + $0xb8] sm:$0xff] %vm341_vm0, %v2800_v0  ;;  %v2970_v63 = vld [vmem:[#allocation3 + $0x88] sm:$0xff]  ;;  %v3574_v0 = vld [vmem:[#allocation3] sm:$0xff] }
 0x1a8   : > { %3254 = vst.msk [vmem:[#allocation3 + $0x80] sm:$0xff] %vm341_vm0, %v3222_v58  ;;  %v3223_v57 = vadd.f32 %v3146_v18, %v2970_v63  ;;  %2830 = vst.msk [vmem:[#allocation3 + $0xa8] sm:$0xff] %vm341_vm0, %v2798_v60  ;;  %v6191_v51 = vpop.f32.mrb[68].mxu0  ;;  %v3577_v12 = vld [vmem:[#allocation3 + $0x18] sm:$0xff] }
 0x1a9   : > { %3257 = vst.msk [vmem:[#allocation3 + $0x98] sm:$0xff] %vm341_vm0, %v3225_v27  ;;  %v3159_v5 = vpop.f32.mrb[69].mxu0 }
 0x1aa   : > { %3255 = vst.msk [vmem:[#allocation3 + $0x88] sm:$0xff] %vm341_vm0, %v3223_v57  ;;  %v6159_v61 = vpop.f32.mrb[72].mxu1  ;;  %v6192_v46 = vpop.f32.mrb[70].mxu0 }
 0x1ab   : > { %v2803_v11 = vadd.f32 %v6159_v61, %v2550_v20  ;;  %v2746_v4 = vpop.f32.mrb[73].mxu1  ;;  %v3162_v45 = vpop.f32.mrb[71].mxu0 }
 0x1ac   : > { %v2975_v21 = vld [vmem:[#allocation3 + $0xb0] sm:$0xff]  ;;  %v2801_v37 = vadd.f32 %v2746_v4, %v2548_v7  ;;  %v6160_v9 = vpop.f32.mrb[74].mxu1 }
 0x1ad   : > { %v3228_v26 = vadd.f32 %v6191_v51, %v2975_v21  ;;  %2835 = vst.msk [vmem:[#allocation3 + $0xd0] sm:$0xff] %vm341_vm0, %v2803_v11  ;;  %v2973_v24 = vld [vmem:[#allocation3 + $0xa0] sm:$0xff]  ;;  %v2804_v19 = vadd.f32 %v6160_v9, %v2551_v13  ;;  %v2749_v38 = vpop.f32.mrb[75].mxu1  ;;  %v3575_v51 = vld [vmem:[#allocation3 + $0x8] sm:$0xff]  ;;  %v3580_v9 = vld [vmem:[#allocation3 + $0x30] sm:$0xff] }
 0x1ae   : > { %v3226_v17 = vadd.f32 %v3159_v5, %v2973_v24  ;;  %2833 = vst.msk [vmem:[#allocation3 + $0xc0] sm:$0xff] %vm341_vm0, %v2801_v37  ;;  %v2976_v32 = vld [vmem:[#allocation3 + $0xb8] sm:$0xff]  ;;  %v2802_v47 = vadd.f32 %v2749_v38, %v2549_v15 }
 0x1af   : > { %3260 = vst.msk [vmem:[#allocation3 + $0xb0] sm:$0xff] %vm341_vm0, %v3228_v26  ;;  %v3229_v39 = vadd.f32 %v6192_v46, %v2976_v32  ;;  %2836 = vst.msk [vmem:[#allocation3 + $0xd8] sm:$0xff] %vm341_vm0, %v2804_v19  ;;  %v2974_v25 = vld [vmem:[#allocation3 + $0xa8] sm:$0xff]  ;;  %v3578_v19 = vld [vmem:[#allocation3 + $0x20] sm:$0xff] }
 0x1b0   : > { %3258 = vst.msk [vmem:[#allocation3 + $0xa0] sm:$0xff] %vm341_vm0, %v3226_v17  ;;  %v3227_v16 = vadd.f32 %v3162_v45, %v2974_v25  ;;  %2834 = vst.msk [vmem:[#allocation3 + $0xc8] sm:$0xff] %vm341_vm0, %v2802_v47  ;;  %v6195_v30 = vpop.f32.mrb[72].mxu0  ;;  %v3581_v32 = vld [vmem:[#allocation3 + $0x38] sm:$0xff] }
 0x1b1   : > { %3261 = vst.msk [vmem:[#allocation3 + $0xb8] sm:$0xff] %vm341_vm0, %v3229_v39  ;;  %v3175_v10 = vpop.f32.mrb[73].mxu0 }
 0x1b2   : > { %3259 = vst.msk [vmem:[#allocation3 + $0xa8] sm:$0xff] %vm341_vm0, %v3227_v16  ;;  %v6196_v3 = vpop.f32.mrb[74].mxu0 }
 0x1b3   : > { %v3178_v31 = vpop.f32.mrb[75].mxu0 }
 0x1b4   : > { %v2979_v40 = vld [vmem:[#allocation3 + $0xd0] sm:$0xff] }
 0x1b5   : > { %v3232_v35 = vadd.f32 %v6195_v30, %v2979_v40  ;;  %v2977_v62 = vld [vmem:[#allocation3 + $0xc0] sm:$0xff]  ;;  %v3579_v30 = vld [vmem:[#allocation3 + $0x28] sm:$0xff] }
 0x1b6   : > { %v6163_v2 = vpop.f32.mrb[76].mxu1  ;;  %v3230_v22 = vadd.f32 %v3175_v10, %v2977_v62  ;;  %v2980_v55 = vld [vmem:[#allocation3 + $0xd8] sm:$0xff] }
 0x1b7   : > { %v2807_v6 = vadd.f32 %v6163_v2, %v2554_v59  ;;  %v2762_v33 = vpop.f32.mrb[77].mxu1  ;;  %3264 = vst.msk [vmem:[#allocation3 + $0xd0] sm:$0xff] %vm341_vm0, %v3232_v35  ;;  %v3233_v8 = vadd.f32 %v6196_v3, %v2980_v55  ;;  %v2978_v43 = vld [vmem:[#allocation3 + $0xc8] sm:$0xff] }
 0x1b8   : > { %v2805_v29 = vadd.f32 %v2762_v33, %v2552_v1  ;;  %v6164_v44 = vpop.f32.mrb[78].mxu1  ;;  %3262 = vst.msk [vmem:[#allocation3 + $0xc0] sm:$0xff] %vm341_vm0, %v3230_v22  ;;  %v3231_v36 = vadd.f32 %v3178_v31, %v2978_v43  ;;  %v6199_v54 = vpop.f32.mrb[76].mxu0  ;;  %v3584_v33 = vld [vmem:[#allocation3 + $0x50] sm:$0xff] }
 0x1b9   : > { %2839 = vst.msk [vmem:[#allocation3 + $0xf0] sm:$0xff] %vm341_vm0, %v2807_v6  ;;  %v2808_v53 = vadd.f32 %v6164_v44, %v2555_v14  ;;  %v2765_v48 = vpop.f32.mrb[79].mxu1  ;;  %3265 = vst.msk [vmem:[#allocation3 + $0xd8] sm:$0xff] %vm341_vm0, %v3233_v8  ;;  %v3191_v41 = vpop.f32.mrb[77].mxu0  ;;  %v3582_v8 = vld [vmem:[#allocation3 + $0x40] sm:$0xff] }
 0x1ba   : > { %2837 = vst.msk [vmem:[#allocation3 + $0xe0] sm:$0xff] %vm341_vm0, %v2805_v29  ;;  %v2806_v18 = vadd.f32 %v2765_v48, %v2553_v56  ;;  %3263 = vst.msk [vmem:[#allocation3 + $0xc8] sm:$0xff] %vm341_vm0, %v3231_v36  ;;  %v6200_v23 = vpop.f32.mrb[78].mxu0 }
 0x1bb   : > { %2840 = vst.msk [vmem:[#allocation3 + $0xf8] sm:$0xff] %vm341_vm0, %v2808_v53  ;;  %v3194_v34 = vpop.f32.mrb[79].mxu0  ;;  %v3585_v53 = vld [vmem:[#allocation3 + $0x58] sm:$0xff] }
 0x1bc   : > { %2838 = vst.msk [vmem:[#allocation3 + $0xe8] sm:$0xff] %vm341_vm0, %v2806_v18  ;;  %v3583_v18 = vld [vmem:[#allocation3 + $0x48] sm:$0xff] }
 0x1be   : > { %v6207_v42 = vpop.f32.mrb[80].mxu1 }
 0x1bf   : > { %v3829_v49 = vadd.f32 %v6207_v42, %v3576_v28  ;;  %v3700_v52 = vpop.f32.mrb[81].mxu1 }
 0x1c0   : > { %v2983_v50 = vld [vmem:[#allocation3 + $0xf0] sm:$0xff]  ;;  %v3827_v58 = vadd.f32 %v3700_v52, %v3574_v0  ;;  %v6208_v60 = vpop.f32.mrb[82].mxu1  ;;  %v6243_v20 = vpop.f32.mrb[80].mxu0 }
 0x1c1   : > { %v3236_v27 = vadd.f32 %v6199_v54, %v2983_v50  ;;  %v2981_v63 = vld [vmem:[#allocation3 + $0xe0] sm:$0xff]  ;;  %3861 = vst.msk [vmem:[#allocation3 + $0x10] sm:$0xff] %vm341_vm0, %v3829_v49  ;;  %v3830_v57 = vadd.f32 %v6208_v60, %v3577_v12  ;;  %v3703_v5 = vpop.f32.mrb[83].mxu1  ;;  %v4322_v7 = vpop.f32.mrb[81].mxu0  ;;  %v3588_v60 = vld [vmem:[#allocation3 + $0x70] sm:$0xff] }
 0x1c2   : > { %v3234_v61 = vadd.f32 %v3191_v41, %v2981_v63  ;;  %v2984_v46 = vld [vmem:[#allocation3 + $0xf8] sm:$0xff]  ;;  %3859 = vst.msk [vmem:[#allocation3] sm:$0xff] %vm341_vm0, %v3827_v58  ;;  %v3828_v11 = vadd.f32 %v3703_v5, %v3575_v51  ;;  %v6244_v21 = vpop.f32.mrb[82].mxu0 }
 0x1c3   : > { %3268 = vst.msk [vmem:[#allocation3 + $0xf0] sm:$0xff] %vm341_vm0, %v3236_v27  ;;  %v3237_v4 = vadd.f32 %v6200_v23, %v2984_v46  ;;  %v2982_v45 = vld [vmem:[#allocation3 + $0xe8] sm:$0xff]  ;;  %3862 = vst.msk [vmem:[#allocation3 + $0x18] sm:$0xff] %vm341_vm0, %v3830_v57  ;;  %v4325_v13 = vpop.f32.mrb[83].mxu0  ;;  %v3586_v57 = vld [vmem:[#allocation3 + $0x60] sm:$0xff] }
 0x1c4   : > { %3266 = vst.msk [vmem:[#allocation3 + $0xe0] sm:$0xff] %vm341_vm0, %v3234_v61  ;;  %v3235_v37 = vadd.f32 %v3194_v34, %v2982_v45  ;;  %3860 = vst.msk [vmem:[#allocation3 + $0x8] sm:$0xff] %vm341_vm0, %v3828_v11  ;;  %v3589_v61 = vld [vmem:[#allocation3 + $0x78] sm:$0xff]  ;;  %v3587_v45 = vld [vmem:[#allocation3 + $0x68] sm:$0xff] }
 0x1c5   : > { %3269 = vst.msk [vmem:[#allocation3 + $0xf8] sm:$0xff] %vm341_vm0, %v3237_v4 }
 0x1c6   : > { %3267 = vst.msk [vmem:[#allocation3 + $0xe8] sm:$0xff] %vm341_vm0, %v3235_v37  ;;  %v6211_v26 = vpop.f32.mrb[84].mxu1 }
 0x1c7   : > { %v3833_v24 = vadd.f32 %v6211_v26, %v3580_v9  ;;  %v3716_v15 = vpop.f32.mrb[85].mxu1 }
 0x1c8   : > { %v4198_v38 = vld [vmem:[#allocation3 + $0x10] sm:$0xff]  ;;  %v3831_v17 = vadd.f32 %v3716_v15, %v3578_v19  ;;  %v6212_v47 = vpop.f32.mrb[86].mxu1  ;;  %v6247_v3 = vpop.f32.mrb[84].mxu0 }
 0x1c9   : > { %v4451_v39 = vadd.f32 %v6243_v20, %v4198_v38  ;;  %3865 = vst.msk [vmem:[#allocation3 + $0x30] sm:$0xff] %vm341_vm0, %v3833_v24  ;;  %v4196_v25 = vld [vmem:[#allocation3] sm:$0xff]  ;;  %v3834_v16 = vadd.f32 %v6212_v47, %v3581_v32  ;;  %v3719_v10 = vpop.f32.mrb[87].mxu1  ;;  %v4338_v59 = vpop.f32.mrb[85].mxu0  ;;  %v3592_v47 = vld [vmem:[#allocation3 + $0x90] sm:$0xff] }
 0x1ca   : > { %v4449_v31 = vadd.f32 %v4322_v7, %v4196_v25  ;;  %3863 = vst.msk [vmem:[#allocation3 + $0x20] sm:$0xff] %vm341_vm0, %v3831_v17  ;;  %v4199_v40 = vld [vmem:[#allocation3 + $0x18] sm:$0xff]  ;;  %v3832_v35 = vadd.f32 %v3719_v10, %v3579_v30  ;;  %v6248_v6 = vpop.f32.mrb[86].mxu0 }
 0x1cb   : > { %4483 = vst.msk [vmem:[#allocation3 + $0x10] sm:$0xff] %vm341_vm0, %v4451_v39  ;;  %v4452_v2 = vadd.f32 %v6244_v21, %v4199_v40  ;;  %3866 = vst.msk [vmem:[#allocation3 + $0x38] sm:$0xff] %vm341_vm0, %v3834_v16  ;;  %v4197_v62 = vld [vmem:[#allocation3 + $0x8] sm:$0xff]  ;;  %v4341_v1 = vpop.f32.mrb[87].mxu0  ;;  %v3590_v16 = vld [vmem:[#allocation3 + $0x80] sm:$0xff] }
 0x1cc   : > { %4481 = vst.msk [vmem:[#allocation3] sm:$0xff] %vm341_vm0, %v4449_v31  ;;  %v4450_v22 = vadd.f32 %v4325_v13, %v4197_v62  ;;  %3864 = vst.msk [vmem:[#allocation3 + $0x28] sm:$0xff] %vm341_vm0, %v3832_v35  ;;  %v3593_v31 = vld [vmem:[#allocation3 + $0x98] sm:$0xff]  ;;  %v3591_v62 = vld [vmem:[#allocation3 + $0x88] sm:$0xff] }
 0x1cd   : > { %4484 = vst.msk [vmem:[#allocation3 + $0x18] sm:$0xff] %vm341_vm0, %v4452_v2 }
 0x1ce   : > { %4482 = vst.msk [vmem:[#allocation3 + $0x8] sm:$0xff] %vm341_vm0, %v4450_v22  ;;  %v6215_v55 = vpop.f32.mrb[88].mxu1 }
 0x1cf   : > { %v3837_v29 = vadd.f32 %v6215_v55, %v3584_v33  ;;  %v3732_v14 = vpop.f32.mrb[89].mxu1 }
 0x1d0   : > { %v4202_v44 = vld [vmem:[#allocation3 + $0x30] sm:$0xff]  ;;  %v3835_v43 = vadd.f32 %v3732_v14, %v3582_v8  ;;  %v6216_v36 = vpop.f32.mrb[90].mxu1  ;;  %v6251_v23 = vpop.f32.mrb[88].mxu0 }
 0x1d1   : > { %v4455_v56 = vadd.f32 %v6247_v3, %v4202_v44  ;;  %3869 = vst.msk [vmem:[#allocation3 + $0x50] sm:$0xff] %vm341_vm0, %v3837_v29  ;;  %v4200_v48 = vld [vmem:[#allocation3 + $0x20] sm:$0xff]  ;;  %v3838_v54 = vadd.f32 %v6216_v36, %v3585_v53  ;;  %v3735_v41 = vpop.f32.mrb[91].mxu1  ;;  %v4354_v49 = vpop.f32.mrb[89].mxu0  ;;  %v3596_v53 = vld [vmem:[#allocation3 + $0xb0] sm:$0xff] }
 0x1d2   : > { %v4453_v34 = vadd.f32 %v4338_v59, %v4200_v48  ;;  %3867 = vst.msk [vmem:[#allocation3 + $0x40] sm:$0xff] %vm341_vm0, %v3835_v43  ;;  %v4203_v28 = vld [vmem:[#allocation3 + $0x38] sm:$0xff]  ;;  %v3836_v42 = vadd.f32 %v3735_v41, %v3583_v18  ;;  %v6252_v50 = vpop.f32.mrb[90].mxu0 }
 0x1d3   : > { %4487 = vst.msk [vmem:[#allocation3 + $0x30] sm:$0xff] %vm341_vm0, %v4455_v56  ;;  %v4456_v0 = vadd.f32 %v6248_v6, %v4203_v28  ;;  %3870 = vst.msk [vmem:[#allocation3 + $0x58] sm:$0xff] %vm341_vm0, %v3838_v54  ;;  %v4201_v52 = vld [vmem:[#allocation3 + $0x28] sm:$0xff]  ;;  %v4357_v12 = vpop.f32.mrb[91].mxu0  ;;  %v3594_v54 = vld [vmem:[#allocation3 + $0xa0] sm:$0xff] }
 0x1d4   : > { %4485 = vst.msk [vmem:[#allocation3 + $0x20] sm:$0xff] %vm341_vm0, %v4453_v34  ;;  %v4454_v58 = vadd.f32 %v4341_v1, %v4201_v52  ;;  %3868 = vst.msk [vmem:[#allocation3 + $0x48] sm:$0xff] %vm341_vm0, %v3836_v42  ;;  %v3597_v34 = vld [vmem:[#allocation3 + $0xb8] sm:$0xff]  ;;  %v3595_v52 = vld [vmem:[#allocation3 + $0xa8] sm:$0xff] }
 0x1d5   : > { %4488 = vst.msk [vmem:[#allocation3 + $0x38] sm:$0xff] %vm341_vm0, %v4456_v0 }
 0x1d6   : > { %4486 = vst.msk [vmem:[#allocation3 + $0x28] sm:$0xff] %vm341_vm0, %v4454_v58  ;;  %v6219_v27 = vpop.f32.mrb[92].mxu1 }
 0x1d7   : > { %v3841_v63 = vadd.f32 %v6219_v27, %v3588_v60  ;;  %v3748_v51 = vpop.f32.mrb[93].mxu1 }
 0x1d8   : > { %v4206_v5 = vld [vmem:[#allocation3 + $0x50] sm:$0xff]  ;;  %v3839_v20 = vadd.f32 %v3748_v51, %v3586_v57  ;;  %v6220_v46 = vpop.f32.mrb[94].mxu1  ;;  %v6255_v37 = vpop.f32.mrb[92].mxu0 }
 0x1d9   : > { %v4459_v11 = vadd.f32 %v6251_v23, %v4206_v5  ;;  %3873 = vst.msk [vmem:[#allocation3 + $0x70] sm:$0xff] %vm341_vm0, %v3841_v63  ;;  %v4204_v7 = vld [vmem:[#allocation3 + $0x40] sm:$0xff]  ;;  %v3842_v4 = vadd.f32 %v6220_v46, %v3589_v61  ;;  %v3751_v21 = vpop.f32.mrb[95].mxu1  ;;  %v4370_v24 = vpop.f32.mrb[93].mxu0  ;;  %v3600_v61 = vld [vmem:[#allocation3 + $0xd0] sm:$0xff] }
 0x1da   : > { %v4457_v13 = vadd.f32 %v4354_v49, %v4204_v7  ;;  %3871 = vst.msk [vmem:[#allocation3 + $0x60] sm:$0xff] %vm341_vm0, %v3839_v20  ;;  %v4207_v9 = vld [vmem:[#allocation3 + $0x58] sm:$0xff]  ;;  %v3840_v26 = vadd.f32 %v3751_v21, %v3587_v45  ;;  %v6256_v38 = vpop.f32.mrb[94].mxu0  ;;  %v3598_v21 = vld [vmem:[#allocation3 + $0xc0] sm:$0xff] }
 0x1db   : > { %4491 = vst.msk [vmem:[#allocation3 + $0x50] sm:$0xff] %vm341_vm0, %v4459_v11  ;;  %v4460_v19 = vadd.f32 %v6252_v50, %v4207_v9  ;;  %3874 = vst.msk [vmem:[#allocation3 + $0x78] sm:$0xff] %vm341_vm0, %v3842_v4  ;;  %v4205_v15 = vld [vmem:[#allocation3 + $0x48] sm:$0xff]  ;;  %v4373_v32 = vpop.f32.mrb[95].mxu0 }
 0x1dc   : > { %4489 = vst.msk [vmem:[#allocation3 + $0x40] sm:$0xff] %vm341_vm0, %v4457_v13  ;;  %v4458_v17 = vadd.f32 %v4357_v12, %v4205_v15  ;;  %3872 = vst.msk [vmem:[#allocation3 + $0x68] sm:$0xff] %vm341_vm0, %v3840_v26 }
 0x1dd   : > { %4492 = vst.msk [vmem:[#allocation3 + $0x58] sm:$0xff] %vm341_vm0, %v4460_v19  ;;  %v3601_v19 = vld [vmem:[#allocation3 + $0xd8] sm:$0xff] }
 0x1de   : > { %4490 = vst.msk [vmem:[#allocation3 + $0x48] sm:$0xff] %vm341_vm0, %v4458_v17  ;;  %v6223_v39 = vpop.f32.mrb[96].mxu1 }
 0x1df   : > { %v3845_v25 = vadd.f32 %v6223_v39, %v3592_v47  ;;  %v3764_v30 = vpop.f32.mrb[97].mxu1  ;;  %v3599_v47 = vld [vmem:[#allocation3 + $0xc8] sm:$0xff] }
 0x1e0   : > { %v4210_v10 = vld [vmem:[#allocation3 + $0x70] sm:$0xff]  ;;  %v3843_v3 = vadd.f32 %v3764_v30, %v3590_v16  ;;  %v6224_v40 = vpop.f32.mrb[98].mxu1 }
 0x1e1   : > { %v4463_v35 = vadd.f32 %v6255_v37, %v4210_v10  ;;  %3877 = vst.msk [vmem:[#allocation3 + $0x90] sm:$0xff] %vm341_vm0, %v3845_v25  ;;  %v4208_v59 = vld [vmem:[#allocation3 + $0x60] sm:$0xff]  ;;  %v3846_v2 = vadd.f32 %v6224_v40, %v3593_v31  ;;  %v3767_v6 = vpop.f32.mrb[99].mxu1 }
 0x1e2   : > { %v4461_v22 = vadd.f32 %v4370_v24, %v4208_v59  ;;  %3875 = vst.msk [vmem:[#allocation3 + $0x80] sm:$0xff] %vm341_vm0, %v3843_v3  ;;  %v4211_v1 = vld [vmem:[#allocation3 + $0x78] sm:$0xff]  ;;  %v3844_v33 = vadd.f32 %v3767_v6, %v3591_v62  ;;  %v6259_v8 = vpop.f32.mrb[96].mxu0  ;;  %v3604_v62 = vld [vmem:[#allocation3 + $0xf0] sm:$0xff] }
 0x1e3   : > { %4495 = vst.msk [vmem:[#allocation3 + $0x70] sm:$0xff] %vm341_vm0, %v4463_v35  ;;  %v4464_v55 = vadd.f32 %v6256_v38, %v4211_v1  ;;  %3878 = vst.msk [vmem:[#allocation3 + $0x98] sm:$0xff] %vm341_vm0, %v3846_v2  ;;  %v4209_v29 = vld [vmem:[#allocation3 + $0x68] sm:$0xff]  ;;  %v4386_v44 = vpop.f32.mrb[97].mxu0 }
 0x1e4   : > { %4493 = vst.msk [vmem:[#allocation3 + $0x60] sm:$0xff] %vm341_vm0, %v4461_v22  ;;  %v4462_v14 = vadd.f32 %v4373_v32, %v4209_v29  ;;  %3876 = vst.msk [vmem:[#allocation3 + $0x88] sm:$0xff] %vm341_vm0, %v3844_v33  ;;  %v6260_v43 = vpop.f32.mrb[98].mxu0  ;;  %v3602_v29 = vld [vmem:[#allocation3 + $0xe0] sm:$0xff] }
 0x1e5   : > { %4496 = vst.msk [vmem:[#allocation3 + $0x78] sm:$0xff] %vm341_vm0, %v4464_v55  ;;  %v4389_v56 = vpop.f32.mrb[99].mxu0 }
 0x1e6   : > { %4494 = vst.msk [vmem:[#allocation3 + $0x68] sm:$0xff] %vm341_vm0, %v4462_v14  ;;  %v6227_v36 = vpop.f32.mrb[100].mxu1 }
 0x1e7   : > { %v3849_v48 = vadd.f32 %v6227_v36, %v3596_v53  ;;  %v3780_v18 = vpop.f32.mrb[101].mxu1 }
 0x1e8   : > { %v4214_v41 = vld [vmem:[#allocation3 + $0x90] sm:$0xff]  ;;  %v3847_v23 = vadd.f32 %v3780_v18, %v3594_v54  ;;  %v6228_v28 = vpop.f32.mrb[102].mxu1 }
 0x1e9   : > { %v4467_v42 = vadd.f32 %v6259_v8, %v4214_v41  ;;  %3881 = vst.msk [vmem:[#allocation3 + $0xb0] sm:$0xff] %vm341_vm0, %v3849_v48  ;;  %v4212_v49 = vld [vmem:[#allocation3 + $0x80] sm:$0xff]  ;;  %v3850_v0 = vadd.f32 %v6228_v28, %v3597_v34  ;;  %v3783_v50 = vpop.f32.mrb[103].mxu1  ;;  %v4627_v41 = vld [vmem:[#allocation3 + $0x10] sm:$0xff] }
 0x1ea   : > { %v4465_v58 = vadd.f32 %v4386_v44, %v4212_v49  ;;  %3879 = vst.msk [vmem:[#allocation3 + $0xa0] sm:$0xff] %vm341_vm0, %v3847_v23  ;;  %v4215_v12 = vld [vmem:[#allocation3 + $0x98] sm:$0xff]  ;;  %v3848_v60 = vadd.f32 %v3783_v50, %v3595_v52 }
 0x1eb   : > { %4499 = vst.msk [vmem:[#allocation3 + $0x90] sm:$0xff] %vm341_vm0, %v4467_v42  ;;  %v4468_v27 = vadd.f32 %v6260_v43, %v4215_v12  ;;  %3882 = vst.msk [vmem:[#allocation3 + $0xb8] sm:$0xff] %vm341_vm0, %v3850_v0  ;;  %v4213_v63 = vld [vmem:[#allocation3 + $0x88] sm:$0xff]  ;;  %v3605_v43 = vld [vmem:[#allocation3 + $0xf8] sm:$0xff] }
 0x1ec   : > { %4497 = vst.msk [vmem:[#allocation3 + $0x80] sm:$0xff] %vm341_vm0, %v4465_v58  ;;  %v4466_v57 = vadd.f32 %v4389_v56, %v4213_v63  ;;  %3880 = vst.msk [vmem:[#allocation3 + $0xa8] sm:$0xff] %vm341_vm0, %v3848_v60  ;;  %v3603_v56 = vld [vmem:[#allocation3 + $0xe8] sm:$0xff]  ;;  %v4625_v42 = vld [vmem:[#allocation3] sm:$0xff] }
 0x1ed   : > { %4500 = vst.msk [vmem:[#allocation3 + $0x98] sm:$0xff] %vm341_vm0, %v4468_v27  ;;  %v6263_v51 = vpop.f32.mrb[100].mxu0  ;;  %v4628_v58 = vld [vmem:[#allocation3 + $0x18] sm:$0xff] }
 0x1ee   : > { %4498 = vst.msk [vmem:[#allocation3 + $0x88] sm:$0xff] %vm341_vm0, %v4466_v57  ;;  %v4402_v5 = vpop.f32.mrb[101].mxu0 }
 0x1ef   : > { %v6231_v46 = vpop.f32.mrb[104].mxu1  ;;  %v6264_v11 = vpop.f32.mrb[102].mxu0 }
 0x1f0   : > { %v4218_v20 = vld [vmem:[#allocation3 + $0xb0] sm:$0xff]  ;;  %v3853_v4 = vadd.f32 %v6231_v46, %v3600_v61  ;;  %v3796_v37 = vpop.f32.mrb[105].mxu1  ;;  %v4405_v13 = vpop.f32.mrb[103].mxu0 }
 0x1f1   : > { %v4471_v7 = vadd.f32 %v6263_v51, %v4218_v20  ;;  %v4216_v45 = vld [vmem:[#allocation3 + $0xa0] sm:$0xff]  ;;  %v3851_v26 = vadd.f32 %v3796_v37, %v3598_v21  ;;  %v6232_v15 = vpop.f32.mrb[106].mxu1  ;;  %v4626_v51 = vld [vmem:[#allocation3 + $0x8] sm:$0xff] }
 0x1f2   : > { %v4469_v9 = vadd.f32 %v4402_v5, %v4216_v45  ;;  %v4219_v24 = vld [vmem:[#allocation3 + $0xb8] sm:$0xff]  ;;  %3885 = vst.msk [vmem:[#allocation3 + $0xd0] sm:$0xff] %vm341_vm0, %v3853_v4  ;;  %v3854_v17 = vadd.f32 %v6232_v15, %v3601_v19  ;;  %v3799_v39 = vpop.f32.mrb[107].mxu1  ;;  %v4631_v45 = vld [vmem:[#allocation3 + $0x30] sm:$0xff] }
 0x1f3   : > { %4503 = vst.msk [vmem:[#allocation3 + $0xb0] sm:$0xff] %vm341_vm0, %v4471_v7  ;;  %v4472_v38 = vadd.f32 %v6264_v11, %v4219_v24  ;;  %v4217_v32 = vld [vmem:[#allocation3 + $0xa8] sm:$0xff]  ;;  %3883 = vst.msk [vmem:[#allocation3 + $0xc0] sm:$0xff] %vm341_vm0, %v3851_v26  ;;  %v3852_v16 = vadd.f32 %v3799_v39, %v3599_v47 }
 0x1f4   : > { %4501 = vst.msk [vmem:[#allocation3 + $0xa0] sm:$0xff] %vm341_vm0, %v4469_v9  ;;  %v4470_v25 = vadd.f32 %v4405_v13, %v4217_v32  ;;  %3886 = vst.msk [vmem:[#allocation3 + $0xd8] sm:$0xff] %vm341_vm0, %v3854_v17  ;;  %v4629_v9 = vld [vmem:[#allocation3 + $0x20] sm:$0xff] }
 0x1f5   : > { %4504 = vst.msk [vmem:[#allocation3 + $0xb8] sm:$0xff] %vm341_vm0, %v4472_v38  ;;  %3884 = vst.msk [vmem:[#allocation3 + $0xc8] sm:$0xff] %vm341_vm0, %v3852_v16  ;;  %v4632_v38 = vld [vmem:[#allocation3 + $0x38] sm:$0xff]  ;;  %v4630_v16 = vld [vmem:[#allocation3 + $0x28] sm:$0xff] }
 0x1f6   : > { %4502 = vst.msk [vmem:[#allocation3 + $0xa8] sm:$0xff] %vm341_vm0, %v4470_v25 }
 0x1f9   : > { %v4222_v30 = vld [vmem:[#allocation3 + $0xd0] sm:$0xff] }
 0x1fa   : > { %v4220_v31 = vld [vmem:[#allocation3 + $0xc0] sm:$0xff] }
 0x1fb   : > { %v4223_v59 = vld [vmem:[#allocation3 + $0xd8] sm:$0xff] }
 0x1fc   : > { %v4221_v1 = vld [vmem:[#allocation3 + $0xc8] sm:$0xff] }
 0x1fd   : > { %v6267_v10 = vpop.f32.mrb[104].mxu0 }
 0x1fe   : > { %v4475_v3 = vadd.f32 %v6267_v10, %v4222_v30  ;;  %v4418_v40 = vpop.f32.mrb[105].mxu0 }
 0x1ff   : > { %v4473_v35 = vadd.f32 %v4418_v40, %v4220_v31  ;;  %v6268_v2 = vpop.f32.mrb[106].mxu0 }
 0x200   : > { %4507 = vst.msk [vmem:[#allocation3 + $0xd0] sm:$0xff] %vm341_vm0, %v4475_v3  ;;  %v4476_v22 = vadd.f32 %v6268_v2, %v4223_v59  ;;  %v4421_v33 = vpop.f32.mrb[107].mxu0 }
 0x201   : > { %4505 = vst.msk [vmem:[#allocation3 + $0xc0] sm:$0xff] %vm341_vm0, %v4473_v35  ;;  %v4474_v14 = vadd.f32 %v4421_v33, %v4221_v1  ;;  %v4633_v1 = vld [vmem:[#allocation3 + $0x40] sm:$0xff] }
 0x202   : > { %v6235_v6 = vpop.f32.mrb[108].mxu1  ;;  %4508 = vst.msk [vmem:[#allocation3 + $0xd8] sm:$0xff] %vm341_vm0, %v4476_v22 }
 0x203   : > { %v3857_v55 = vadd.f32 %v6235_v6, %v3604_v62  ;;  %v3812_v8 = vpop.f32.mrb[109].mxu1  ;;  %4506 = vst.msk [vmem:[#allocation3 + $0xc8] sm:$0xff] %vm341_vm0, %v4474_v14  ;;  %v4635_v62 = vld [vmem:[#allocation3 + $0x50] sm:$0xff]  ;;  %v4636_v14 = vld [vmem:[#allocation3 + $0x58] sm:$0xff] }
 0x204   : > { %v3855_v44 = vadd.f32 %v3812_v8, %v3602_v29  ;;  %v6236_v53 = vpop.f32.mrb[110].mxu1 }
 0x205   : > { %3889 = vst.msk [vmem:[#allocation3 + $0xf0] sm:$0xff] %vm341_vm0, %v3857_v55  ;;  %v3858_v36 = vadd.f32 %v6236_v53, %v3605_v43  ;;  %v3815_v48 = vpop.f32.mrb[111].mxu1 }
 0x206   : > { %3887 = vst.msk [vmem:[#allocation3 + $0xe0] sm:$0xff] %vm341_vm0, %v3855_v44  ;;  %v3856_v54 = vadd.f32 %v3815_v48, %v3603_v56  ;;  %v4634_v48 = vld [vmem:[#allocation3 + $0x48] sm:$0xff] }
 0x207   : > { %3890 = vst.msk [vmem:[#allocation3 + $0xf8] sm:$0xff] %vm341_vm0, %v3858_v36  ;;  %v6271_v18 = vpop.f32.mrb[108].mxu0 }
 0x208   : > { %3888 = vst.msk [vmem:[#allocation3 + $0xe8] sm:$0xff] %vm341_vm0, %v3856_v54  ;;  %v4434_v34 = vpop.f32.mrb[109].mxu0 }
 0x209   : > { %v6272_v52 = vpop.f32.mrb[110].mxu0 }
 0x20a   : > { %v6279_v23 = vpop.f32.mrb[112].mxu1  ;;  %v4437_v63 = vpop.f32.mrb[111].mxu0 }
 0x20b   : > { %v4880_v28 = vadd.f32 %v6279_v23, %v4627_v41  ;;  %v4751_v49 = vpop.f32.mrb[113].mxu1 }
 0x20c   : > { %v4226_v0 = vld [vmem:[#allocation3 + $0xf0] sm:$0xff]  ;;  %v4878_v50 = vadd.f32 %v4751_v49, %v4625_v42  ;;  %v6280_v12 = vpop.f32.mrb[114].mxu1 }
 0x20d   : > { %v4479_v60 = vadd.f32 %v6271_v18, %v4226_v0  ;;  %v4224_v27 = vld [vmem:[#allocation3 + $0xe0] sm:$0xff]  ;;  %4912 = vst.msk [vmem:[#allocation3 + $0x10] sm:$0xff] %vm341_vm0, %v4880_v28  ;;  %v4881_v57 = vadd.f32 %v6280_v12, %v4628_v58  ;;  %v4754_v5 = vpop.f32.mrb[115].mxu1 }
 0x20e   : > { %v4477_v20 = vadd.f32 %v4434_v34, %v4224_v27  ;;  %v4227_v61 = vld [vmem:[#allocation3 + $0xf8] sm:$0xff]  ;;  %4910 = vst.msk [vmem:[#allocation3] sm:$0xff] %vm341_vm0, %v4878_v50  ;;  %v4879_v46 = vadd.f32 %v4754_v5, %v4626_v51  ;;  %v4637_v51 = vld [vmem:[#allocation3 + $0x60] sm:$0xff] }
 0x20f   : > { %4511 = vst.msk [vmem:[#allocation3 + $0xf0] sm:$0xff] %vm341_vm0, %v4479_v60  ;;  %v4480_v11 = vadd.f32 %v6272_v52, %v4227_v61  ;;  %v4225_v7 = vld [vmem:[#allocation3 + $0xe8] sm:$0xff]  ;;  %4913 = vst.msk [vmem:[#allocation3 + $0x18] sm:$0xff] %vm341_vm0, %v4881_v57  ;;  %v4639_v60 = vld [vmem:[#allocation3 + $0x70] sm:$0xff] }
 0x210   : > { %4509 = vst.msk [vmem:[#allocation3 + $0xe0] sm:$0xff] %vm341_vm0, %v4477_v20  ;;  %v4478_v4 = vadd.f32 %v4437_v63, %v4225_v7  ;;  %4911 = vst.msk [vmem:[#allocation3 + $0x8] sm:$0xff] %vm341_vm0, %v4879_v46 }
 0x211   : > { %4512 = vst.msk [vmem:[#allocation3 + $0xf8] sm:$0xff] %vm341_vm0, %v4480_v11  ;;  %v6315_v37 = vpop.f32.mrb[112].mxu0  ;;  %v4640_v11 = vld [vmem:[#allocation3 + $0x78] sm:$0xff] }
 0x212   : > { %4510 = vst.msk [vmem:[#allocation3 + $0xe8] sm:$0xff] %vm341_vm0, %v4478_v4  ;;  %v6283_v21 = vpop.f32.mrb[116].mxu1  ;;  %v5372_v19 = vpop.f32.mrb[113].mxu0 }
 0x213   : > { %v4884_v13 = vadd.f32 %v6283_v21, %v4631_v45  ;;  %v4767_v26 = vpop.f32.mrb[117].mxu1  ;;  %v6316_v39 = vpop.f32.mrb[114].mxu0 }
 0x214   : > { %v5248_v24 = vld [vmem:[#allocation3 + $0x10] sm:$0xff]  ;;  %v4882_v15 = vadd.f32 %v4767_v26, %v4629_v9  ;;  %v6284_v17 = vpop.f32.mrb[118].mxu1  ;;  %v5375_v31 = vpop.f32.mrb[115].mxu0  ;;  %v4638_v9 = vld [vmem:[#allocation3 + $0x68] sm:$0xff] }
 0x215   : > { %v5501_v32 = vadd.f32 %v6315_v37, %v5248_v24  ;;  %4916 = vst.msk [vmem:[#allocation3 + $0x30] sm:$0xff] %vm341_vm0, %v4884_v13  ;;  %v5246_v47 = vld [vmem:[#allocation3] sm:$0xff]  ;;  %v4885_v25 = vadd.f32 %v6284_v17, %v4632_v38  ;;  %v4770_v30 = vpop.f32.mrb[119].mxu1 }
 0x216   : > { %v5499_v10 = vadd.f32 %v5372_v19, %v5246_v47  ;;  %4914 = vst.msk [vmem:[#allocation3 + $0x20] sm:$0xff] %vm341_vm0, %v4882_v15  ;;  %v5249_v3 = vld [vmem:[#allocation3 + $0x18] sm:$0xff]  ;;  %v4883_v40 = vadd.f32 %v4770_v30, %v4630_v16  ;;  %v4643_v30 = vld [vmem:[#allocation3 + $0x90] sm:$0xff] }
 0x217   : > { %5533 = vst.msk [vmem:[#allocation3 + $0x10] sm:$0xff] %vm341_vm0, %v5501_v32  ;;  %v5502_v35 = vadd.f32 %v6316_v39, %v5249_v3  ;;  %4917 = vst.msk [vmem:[#allocation3 + $0x38] sm:$0xff] %vm341_vm0, %v4885_v25  ;;  %v5247_v59 = vld [vmem:[#allocation3 + $0x8] sm:$0xff] }
 0x218   : > { %5531 = vst.msk [vmem:[#allocation3] sm:$0xff] %vm341_vm0, %v5499_v10  ;;  %v5500_v2 = vadd.f32 %v5375_v31, %v5247_v59  ;;  %4915 = vst.msk [vmem:[#allocation3 + $0x28] sm:$0xff] %vm341_vm0, %v4883_v40  ;;  %v4641_v40 = vld [vmem:[#allocation3 + $0x80] sm:$0xff] }
 0x219   : > { %5534 = vst.msk [vmem:[#allocation3 + $0x18] sm:$0xff] %vm341_vm0, %v5502_v35 }
 0x21a   : > { %5532 = vst.msk [vmem:[#allocation3 + $0x8] sm:$0xff] %vm341_vm0, %v5500_v2  ;;  %v6287_v6 = vpop.f32.mrb[120].mxu1 }
 0x21b   : > { %v4888_v22 = vadd.f32 %v6287_v6, %v4635_v62  ;;  %v4783_v33 = vpop.f32.mrb[121].mxu1  ;;  %v6319_v29 = vpop.f32.mrb[116].mxu0  ;;  %v4644_v6 = vld [vmem:[#allocation3 + $0x98] sm:$0xff] }
 0x21c   : > { %v5252_v55 = vld [vmem:[#allocation3 + $0x30] sm:$0xff]  ;;  %v4886_v8 = vadd.f32 %v4783_v33, %v4633_v1  ;;  %v6288_v44 = vpop.f32.mrb[122].mxu1  ;;  %v5388_v36 = vpop.f32.mrb[117].mxu0 }
 0x21d   : > { %v5505_v43 = vadd.f32 %v6319_v29, %v5252_v55  ;;  %4920 = vst.msk [vmem:[#allocation3 + $0x50] sm:$0xff] %vm341_vm0, %v4888_v22  ;;  %v5250_v53 = vld [vmem:[#allocation3 + $0x20] sm:$0xff]  ;;  %v4889_v56 = vadd.f32 %v6288_v44, %v4636_v14  ;;  %v4786_v54 = vpop.f32.mrb[123].mxu1  ;;  %v6320_v34 = vpop.f32.mrb[118].mxu0  ;;  %v4642_v14 = vld [vmem:[#allocation3 + $0x88] sm:$0xff] }
 0x21e   : > { %v5565_v18 = vld [vmem:[#allocation3 + $0x10] sm:$0xff]  ;;  %v5503_v41 = vadd.f32 %v5388_v36, %v5250_v53  ;;  %4918 = vst.msk [vmem:[#allocation3 + $0x40] sm:$0xff] %vm341_vm0, %v4886_v8  ;;  %v5253_v23 = vld [vmem:[#allocation3 + $0x38] sm:$0xff]  ;;  %v4887_v28 = vadd.f32 %v4786_v54, %v4634_v48  ;;  %v5391_v52 = vpop.f32.mrb[119].mxu0 }
 0x21f   : > { %5597 = vst.msk [vmem:[%s7590_s20 + $0x10] sm:$0xff] %vm341_vm0, %v5565_v18  ;;  %v5563_v42 = vld [vmem:[#allocation3] sm:$0xff]  ;;  %5537 = vst.msk [vmem:[#allocation3 + $0x30] sm:$0xff] %vm341_vm0, %v5505_v43  ;;  %v5506_v49 = vadd.f32 %v6320_v34, %v5253_v23  ;;  %v5251_v0 = vld [vmem:[#allocation3 + $0x28] sm:$0xff] }
 0x220   : > { %4921 = vst.msk [vmem:[#allocation3 + $0x58] sm:$0xff] %vm341_vm0, %v4889_v56  ;;  %5595 = vst.msk [vmem:[%s7590_s20] sm:$0xff] %vm341_vm0, %v5563_v42  ;;  %v5566_v50 = vld [vmem:[#allocation3 + $0x18] sm:$0xff]  ;;  %v5504_v58 = vadd.f32 %v5391_v52, %v5251_v0  ;;  %v4645_v52 = vld [vmem:[#allocation3 + $0xa0] sm:$0xff] }
 0x221   : > { %5535 = vst.msk [vmem:[#allocation3 + $0x20] sm:$0xff] %vm341_vm0, %v5503_v41  ;;  %4919 = vst.msk [vmem:[#allocation3 + $0x48] sm:$0xff] %vm341_vm0, %v4887_v28  ;;  %v5564_v12 = vld [vmem:[#allocation3 + $0x8] sm:$0xff]  ;;  %v4647_v28 = vld [vmem:[#allocation3 + $0xb0] sm:$0xff] }
 0x222   : > { %5598 = vst.msk [vmem:[%s7590_s20 + $0x18] sm:$0xff] %vm341_vm0, %v5566_v50  ;;  %5538 = vst.msk [vmem:[#allocation3 + $0x38] sm:$0xff] %vm341_vm0, %v5506_v49 }
 0x223   : > { %5596 = vst.msk [vmem:[%s7590_s20 + $0x8] sm:$0xff] %vm341_vm0, %v5564_v12  ;;  %5536 = vst.msk [vmem:[#allocation3 + $0x28] sm:$0xff] %vm341_vm0, %v5504_v58  ;;  %v6291_v27 = vpop.f32.mrb[124].mxu1 }
 0x224   : > { %v5256_v63 = vld [vmem:[#allocation3 + $0x50] sm:$0xff]  ;;  %v4892_v57 = vadd.f32 %v6291_v27, %v4639_v60  ;;  %v4799_v5 = vpop.f32.mrb[125].mxu1  ;;  %v4648_v27 = vld [vmem:[#allocation3 + $0xb8] sm:$0xff] }
 0x225   : > { %v6323_v20 = vpop.f32.mrb[120].mxu0  ;;  %v5254_v61 = vld [vmem:[#allocation3 + $0x40] sm:$0xff]  ;;  %v4890_v46 = vadd.f32 %v4799_v5, %v4637_v51  ;;  %v6292_v7 = vpop.f32.mrb[126].mxu1 }
 0x226   : > { %v5569_v4 = vld [vmem:[#allocation3 + $0x30] sm:$0xff]  ;;  %v5509_v45 = vadd.f32 %v6323_v20, %v5256_v63  ;;  %4924 = vst.msk [vmem:[#allocation3 + $0x70] sm:$0xff] %vm341_vm0, %v4892_v57  ;;  %v5404_v21 = vpop.f32.mrb[121].mxu0  ;;  %v4893_v13 = vadd.f32 %v6292_v7, %v4640_v11  ;;  %v4802_v26 = vpop.f32.mrb[127].mxu1 }
 0x227   : > { %v5257_v37 = vld [vmem:[#allocation3 + $0x58] sm:$0xff]  ;;  %5601 = vst.msk [vmem:[%s7590_s20 + $0x30] sm:$0xff] %vm341_vm0, %v5569_v4  ;;  %v5507_v19 = vadd.f32 %v5404_v21, %v5254_v61  ;;  %4922 = vst.msk [vmem:[#allocation3 + $0x60] sm:$0xff] %vm341_vm0, %v4890_v46  ;;  %v6324_v15 = vpop.f32.mrb[122].mxu0  ;;  %v4891_v17 = vadd.f32 %v4802_v26, %v4638_v9  ;;  %v4646_v46 = vld [vmem:[#allocation3 + $0xa8] sm:$0xff] }
 0x228   : > { %v5567_v24 = vld [vmem:[#allocation3 + $0x20] sm:$0xff]  ;;  %v5255_v38 = vld [vmem:[#allocation3 + $0x48] sm:$0xff]  ;;  %5541 = vst.msk [vmem:[#allocation3 + $0x50] sm:$0xff] %vm341_vm0, %v5509_v45  ;;  %v5510_v47 = vadd.f32 %v6324_v15, %v5257_v37  ;;  %4925 = vst.msk [vmem:[#allocation3 + $0x78] sm:$0xff] %vm341_vm0, %v4893_v13  ;;  %v5407_v39 = vpop.f32.mrb[123].mxu0 }
 0x229   : > { %5599 = vst.msk [vmem:[%s7590_s20 + $0x20] sm:$0xff] %vm341_vm0, %v5567_v24  ;;  %v5570_v32 = vld [vmem:[#allocation3 + $0x38] sm:$0xff]  ;;  %5539 = vst.msk [vmem:[#allocation3 + $0x40] sm:$0xff] %vm341_vm0, %v5507_v19  ;;  %v5508_v16 = vadd.f32 %v5407_v39, %v5255_v38  ;;  %v4651_v15 = vld [vmem:[#allocation3 + $0xd0] sm:$0xff] }
 0x22a   : > { %5602 = vst.msk [vmem:[%s7590_s20 + $0x38] sm:$0xff] %vm341_vm0, %v5570_v32  ;;  %v5568_v25 = vld [vmem:[#allocation3 + $0x28] sm:$0xff]  ;;  %4923 = vst.msk [vmem:[#allocation3 + $0x68] sm:$0xff] %vm341_vm0, %v4891_v17 }
 0x22b   : > { %5600 = vst.msk [vmem:[%s7590_s20 + $0x28] sm:$0xff] %vm341_vm0, %v5568_v25  ;;  %5542 = vst.msk [vmem:[#allocation3 + $0x58] sm:$0xff] %vm341_vm0, %v5510_v47  ;;  %v4649_v47 = vld [vmem:[#allocation3 + $0xc0] sm:$0xff] }
 0x22c   : > { %5540 = vst.msk [vmem:[#allocation3 + $0x48] sm:$0xff] %vm341_vm0, %v5508_v16 }
 0x22d   : > { %v6295_v10 = vpop.f32.mrb[128].mxu1  ;;  %v5260_v3 = vld [vmem:[#allocation3 + $0x70] sm:$0xff] }
 0x22e   : > { %v4896_v31 = vadd.f32 %v6295_v10, %v4643_v30  ;;  %v4815_v35 = vpop.f32.mrb[129].mxu1  ;;  %v5258_v2 = vld [vmem:[#allocation3 + $0x60] sm:$0xff]  ;;  %v4652_v10 = vld [vmem:[#allocation3 + $0xd8] sm:$0xff] }
 0x22f   : > { %v6327_v59 = vpop.f32.mrb[124].mxu0  ;;  %v4894_v62 = vadd.f32 %v4815_v35, %v4641_v40  ;;  %v6296_v22 = vpop.f32.mrb[130].mxu1  ;;  %v5573_v1 = vld [vmem:[#allocation3 + $0x50] sm:$0xff]  ;;  %v5261_v29 = vld [vmem:[#allocation3 + $0x78] sm:$0xff] }
 0x230   : > { %v5513_v33 = vadd.f32 %v6327_v59, %v5260_v3  ;;  %4928 = vst.msk [vmem:[#allocation3 + $0x90] sm:$0xff] %vm341_vm0, %v4896_v31  ;;  %v5420_v55 = vpop.f32.mrb[125].mxu0  ;;  %v4897_v8 = vadd.f32 %v6296_v22, %v4644_v6  ;;  %v4818_v44 = vpop.f32.mrb[131].mxu1  ;;  %5605 = vst.msk [vmem:[%s7590_s20 + $0x50] sm:$0xff] %vm341_vm0, %v5573_v1  ;;  %v5571_v43 = vld [vmem:[#allocation3 + $0x40] sm:$0xff] }
 0x231   : > { %v5511_v53 = vadd.f32 %v5420_v55, %v5258_v2  ;;  %4926 = vst.msk [vmem:[#allocation3 + $0x80] sm:$0xff] %vm341_vm0, %v4894_v62  ;;  %v6328_v36 = vpop.f32.mrb[126].mxu0  ;;  %v5259_v56 = vld [vmem:[#allocation3 + $0x68] sm:$0xff]  ;;  %v4895_v48 = vadd.f32 %v4818_v44, %v4642_v14  ;;  %5603 = vst.msk [vmem:[%s7590_s20 + $0x40] sm:$0xff] %vm341_vm0, %v5571_v43 }
 0x232   : > { %v5574_v54 = vld [vmem:[#allocation3 + $0x58] sm:$0xff]  ;;  %5545 = vst.msk [vmem:[#allocation3 + $0x70] sm:$0xff] %vm341_vm0, %v5513_v33  ;;  %v5514_v18 = vadd.f32 %v6328_v36, %v5261_v29  ;;  %4929 = vst.msk [vmem:[#allocation3 + $0x98] sm:$0xff] %vm341_vm0, %v4897_v8  ;;  %v5423_v41 = vpop.f32.mrb[127].mxu0  ;;  %v4650_v62 = vld [vmem:[#allocation3 + $0xc8] sm:$0xff] }
 0x233   : > { %5606 = vst.msk [vmem:[%s7590_s20 + $0x58] sm:$0xff] %vm341_vm0, %v5574_v54  ;;  %v5572_v23 = vld [vmem:[#allocation3 + $0x48] sm:$0xff]  ;;  %5543 = vst.msk [vmem:[#allocation3 + $0x60] sm:$0xff] %vm341_vm0, %v5511_v53  ;;  %v5512_v34 = vadd.f32 %v5423_v41, %v5259_v56  ;;  %v4655_v36 = vld [vmem:[#allocation3 + $0xf0] sm:$0xff] }
 0x234   : > { %4927 = vst.msk [vmem:[#allocation3 + $0x88] sm:$0xff] %vm341_vm0, %v4895_v48  ;;  %5604 = vst.msk [vmem:[%s7590_s20 + $0x48] sm:$0xff] %vm341_vm0, %v5572_v23 }
 0x235   : > { %5546 = vst.msk [vmem:[#allocation3 + $0x78] sm:$0xff] %vm341_vm0, %v5514_v18  ;;  %5544 = vst.msk [vmem:[#allocation3 + $0x68] sm:$0xff] %vm341_vm0, %v5512_v34  ;;  %v4653_v18 = vld [vmem:[#allocation3 + $0xe0] sm:$0xff] }
 0x237   : > { %v6299_v42 = vpop.f32.mrb[132].mxu1  ;;  %v5264_v49 = vld [vmem:[#allocation3 + $0x90] sm:$0xff] }
 0x238   : > { %v4900_v0 = vadd.f32 %v6299_v42, %v4647_v28  ;;  %v4831_v50 = vpop.f32.mrb[133].mxu1  ;;  %v5262_v12 = vld [vmem:[#allocation3 + $0x80] sm:$0xff]  ;;  %v4656_v42 = vld [vmem:[#allocation3 + $0xf8] sm:$0xff] }
 0x239   : > { %v6331_v58 = vpop.f32.mrb[128].mxu0  ;;  %v4898_v60 = vadd.f32 %v4831_v50, %v4645_v52  ;;  %v6300_v63 = vpop.f32.mrb[134].mxu1  ;;  %v5577_v57 = vld [vmem:[#allocation3 + $0x70] sm:$0xff]  ;;  %v5265_v20 = vld [vmem:[#allocation3 + $0x98] sm:$0xff] }
 0x23a   : > { %v5517_v51 = vadd.f32 %v6331_v58, %v5264_v49  ;;  %4932 = vst.msk [vmem:[#allocation3 + $0xb0] sm:$0xff] %vm341_vm0, %v4900_v0  ;;  %v5436_v5 = vpop.f32.mrb[129].mxu0  ;;  %v4901_v61 = vadd.f32 %v6300_v63, %v4648_v27  ;;  %v4834_v11 = vpop.f32.mrb[135].mxu1  ;;  %5609 = vst.msk [vmem:[%s7590_s20 + $0x70] sm:$0xff] %vm341_vm0, %v5577_v57  ;;  %v5575_v7 = vld [vmem:[#allocation3 + $0x60] sm:$0xff] }
 0x23b   : > { %v5515_v4 = vadd.f32 %v5436_v5, %v5262_v12  ;;  %4930 = vst.msk [vmem:[#allocation3 + $0xa0] sm:$0xff] %vm341_vm0, %v4898_v60  ;;  %v6332_v45 = vpop.f32.mrb[130].mxu0  ;;  %v5263_v21 = vld [vmem:[#allocation3 + $0x88] sm:$0xff]  ;;  %v4899_v37 = vadd.f32 %v4834_v11, %v4646_v46  ;;  %5607 = vst.msk [vmem:[%s7590_s20 + $0x60] sm:$0xff] %vm341_vm0, %v5575_v7 }
 0x23c   : > { %v5578_v13 = vld [vmem:[#allocation3 + $0x78] sm:$0xff]  ;;  %5549 = vst.msk [vmem:[#allocation3 + $0x90] sm:$0xff] %vm341_vm0, %v5517_v51  ;;  %v5518_v9 = vadd.f32 %v6332_v45, %v5265_v20  ;;  %4933 = vst.msk [vmem:[#allocation3 + $0xb8] sm:$0xff] %vm341_vm0, %v4901_v61  ;;  %v5439_v26 = vpop.f32.mrb[131].mxu0  ;;  %v5576_v24 = vld [vmem:[#allocation3 + $0x68] sm:$0xff] }
 0x23d   : > { %5610 = vst.msk [vmem:[%s7590_s20 + $0x78] sm:$0xff] %vm341_vm0, %v5578_v13  ;;  %5547 = vst.msk [vmem:[#allocation3 + $0x80] sm:$0xff] %vm341_vm0, %v5515_v4  ;;  %v5516_v19 = vadd.f32 %v5439_v26, %v5263_v21  ;;  %v4654_v60 = vld [vmem:[#allocation3 + $0xe8] sm:$0xff] }
 0x23e   : > { %4931 = vst.msk [vmem:[#allocation3 + $0xa8] sm:$0xff] %vm341_vm0, %v4899_v37  ;;  %5608 = vst.msk [vmem:[%s7590_s20 + $0x68] sm:$0xff] %vm341_vm0, %v5576_v24 }
 0x23f   : > { %5550 = vst.msk [vmem:[#allocation3 + $0x98] sm:$0xff] %vm341_vm0, %v5518_v9  ;;  %5548 = vst.msk [vmem:[#allocation3 + $0x88] sm:$0xff] %vm341_vm0, %v5516_v19 }
 0x241   : > { %v6303_v38 = vpop.f32.mrb[136].mxu1  ;;  %v5268_v17 = vld [vmem:[#allocation3 + $0xb0] sm:$0xff] }
 0x242   : > { %v4904_v32 = vadd.f32 %v6303_v38, %v4651_v15  ;;  %v4847_v39 = vpop.f32.mrb[137].mxu1  ;;  %v5266_v16 = vld [vmem:[#allocation3 + $0xa0] sm:$0xff] }
 0x243   : > { %v6335_v25 = vpop.f32.mrb[132].mxu0  ;;  %v4902_v30 = vadd.f32 %v4847_v39, %v4649_v47  ;;  %v6304_v3 = vpop.f32.mrb[138].mxu1  ;;  %v5581_v31 = vld [vmem:[#allocation3 + $0x90] sm:$0xff]  ;;  %v5269_v59 = vld [vmem:[#allocation3 + $0xb8] sm:$0xff] }
 0x244   : > { %v5521_v40 = vadd.f32 %v6335_v25, %v5268_v17  ;;  %4936 = vst.msk [vmem:[#allocation3 + $0xd0] sm:$0xff] %vm341_vm0, %v4904_v32  ;;  %v5452_v35 = vpop.f32.mrb[133].mxu0  ;;  %v4905_v2 = vadd.f32 %v6304_v3, %v4652_v10  ;;  %v4850_v6 = vpop.f32.mrb[139].mxu1  ;;  %5613 = vst.msk [vmem:[%s7590_s20 + $0x90] sm:$0xff] %vm341_vm0, %v5581_v31  ;;  %v5579_v22 = vld [vmem:[#allocation3 + $0x80] sm:$0xff] }
 0x245   : > { %v5519_v1 = vadd.f32 %v5452_v35, %v5266_v16  ;;  %4934 = vst.msk [vmem:[#allocation3 + $0xc0] sm:$0xff] %vm341_vm0, %v4902_v30  ;;  %v6336_v33 = vpop.f32.mrb[134].mxu0  ;;  %v5267_v55 = vld [vmem:[#allocation3 + $0xa8] sm:$0xff]  ;;  %v4903_v29 = vadd.f32 %v4850_v6, %v4650_v62  ;;  %5611 = vst.msk [vmem:[%s7590_s20 + $0x80] sm:$0xff] %vm341_vm0, %v5579_v22 }
 0x246   : > { %v5582_v8 = vld [vmem:[#allocation3 + $0x98] sm:$0xff]  ;;  %5553 = vst.msk [vmem:[#allocation3 + $0xb0] sm:$0xff] %vm341_vm0, %v5521_v40  ;;  %v5522_v14 = vadd.f32 %v6336_v33, %v5269_v59  ;;  %4937 = vst.msk [vmem:[#allocation3 + $0xd8] sm:$0xff] %vm341_vm0, %v4905_v2  ;;  %v5455_v44 = vpop.f32.mrb[135].mxu0  ;;  %v5580_v43 = vld [vmem:[#allocation3 + $0x88] sm:$0xff] }
 0x247   : > { %5614 = vst.msk [vmem:[%s7590_s20 + $0x98] sm:$0xff] %vm341_vm0, %v5582_v8  ;;  %5551 = vst.msk [vmem:[#allocation3 + $0xa0] sm:$0xff] %vm341_vm0, %v5519_v1  ;;  %v5520_v53 = vadd.f32 %v5455_v44, %v5267_v55 }
 0x248   : > { %4935 = vst.msk [vmem:[#allocation3 + $0xc8] sm:$0xff] %vm341_vm0, %v4903_v29  ;;  %5612 = vst.msk [vmem:[%s7590_s20 + $0x88] sm:$0xff] %vm341_vm0, %v5580_v43 }
 0x249   : > { %5554 = vst.msk [vmem:[#allocation3 + $0xb8] sm:$0xff] %vm341_vm0, %v5522_v14  ;;  %5552 = vst.msk [vmem:[#allocation3 + $0xa8] sm:$0xff] %vm341_vm0, %v5520_v53 }
 0x24b   : > { %v6307_v56 = vpop.f32.mrb[140].mxu1  ;;  %v5272_v48 = vld [vmem:[#allocation3 + $0xd0] sm:$0xff] }
 0x24c   : > { %v4908_v54 = vadd.f32 %v6307_v56, %v4655_v36  ;;  %v4863_v41 = vpop.f32.mrb[141].mxu1  ;;  %v5270_v34 = vld [vmem:[#allocation3 + $0xc0] sm:$0xff] }
 0x24d   : > { %v4906_v28 = vadd.f32 %v4863_v41, %v4653_v18  ;;  %v6308_v49 = vpop.f32.mrb[142].mxu1  ;;  %v5585_v0 = vld [vmem:[#allocation3 + $0xb0] sm:$0xff]  ;;  %v5273_v58 = vld [vmem:[#allocation3 + $0xd8] sm:$0xff] }
 0x24e   : > { %v6339_v23 = vpop.f32.mrb[136].mxu0  ;;  %4940 = vst.msk [vmem:[#allocation3 + $0xf0] sm:$0xff] %vm341_vm0, %v4908_v54  ;;  %v4909_v12 = vadd.f32 %v6308_v49, %v4656_v42  ;;  %v4866_v27 = vpop.f32.mrb[143].mxu1  ;;  %5617 = vst.msk [vmem:[%s7590_s20 + $0xb0] sm:$0xff] %vm341_vm0, %v5585_v0  ;;  %v5583_v63 = vld [vmem:[#allocation3 + $0xa0] sm:$0xff] }
 0x24f   : > { %v5525_v52 = vadd.f32 %v6339_v23, %v5272_v48  ;;  %v5468_v50 = vpop.f32.mrb[137].mxu0  ;;  %4938 = vst.msk [vmem:[#allocation3 + $0xe0] sm:$0xff] %vm341_vm0, %v4906_v28  ;;  %v5271_v5 = vld [vmem:[#allocation3 + $0xc8] sm:$0xff]  ;;  %v4907_v20 = vadd.f32 %v4866_v27, %v4654_v60  ;;  %5615 = vst.msk [vmem:[%s7590_s20 + $0xa0] sm:$0xff] %vm341_vm0, %v5583_v63 }
 0x250   : > { %v5523_v57 = vadd.f32 %v5468_v50, %v5270_v34  ;;  %v6340_v51 = vpop.f32.mrb[138].mxu0  ;;  %v5586_v61 = vld [vmem:[#allocation3 + $0xb8] sm:$0xff]  ;;  %4941 = vst.msk [vmem:[#allocation3 + $0xf8] sm:$0xff] %vm341_vm0, %v4909_v12  ;;  %v5584_v7 = vld [vmem:[#allocation3 + $0xa8] sm:$0xff] }
 0x251   : > { %5557 = vst.msk [vmem:[#allocation3 + $0xd0] sm:$0xff] %vm341_vm0, %v5525_v52  ;;  %v5526_v46 = vadd.f32 %v6340_v51, %v5273_v58  ;;  %v5471_v11 = vpop.f32.mrb[139].mxu0  ;;  %5618 = vst.msk [vmem:[%s7590_s20 + $0xb8] sm:$0xff] %vm341_vm0, %v5586_v61 }
 0x252   : > { %5555 = vst.msk [vmem:[#allocation3 + $0xc0] sm:$0xff] %vm341_vm0, %v5523_v57  ;;  %v5524_v4 = vadd.f32 %v5471_v11, %v5271_v5  ;;  %4939 = vst.msk [vmem:[#allocation3 + $0xe8] sm:$0xff] %vm341_vm0, %v4907_v20 }
 0x253   : > { %5616 = vst.msk [vmem:[%s7590_s20 + $0xa8] sm:$0xff] %vm341_vm0, %v5584_v7  ;;  %5558 = vst.msk [vmem:[#allocation3 + $0xd8] sm:$0xff] %vm341_vm0, %v5526_v46 }
 0x254   : > { %5556 = vst.msk [vmem:[#allocation3 + $0xc8] sm:$0xff] %vm341_vm0, %v5524_v4 }
 0x255   : > { %v5276_v45 = vld [vmem:[#allocation3 + $0xf0] sm:$0xff] }
 0x256   : > { %v6343_v21 = vpop.f32.mrb[140].mxu0  ;;  %v5274_v13 = vld [vmem:[#allocation3 + $0xe0] sm:$0xff] }
 0x257   : > { %v5529_v37 = vadd.f32 %v6343_v21, %v5276_v45  ;;  %v5484_v9 = vpop.f32.mrb[141].mxu0  ;;  %v5277_v19 = vld [vmem:[#allocation3 + $0xf8] sm:$0xff] }
 0x258   : > { %v5589_v26 = vld [vmem:[#allocation3 + $0xd0] sm:$0xff]  ;;  %v5527_v24 = vadd.f32 %v5484_v9, %v5274_v13  ;;  %v6344_v15 = vpop.f32.mrb[142].mxu0 }
 0x259   : > { %5621 = vst.msk [vmem:[%s7590_s20 + $0xd0] sm:$0xff] %vm341_vm0, %v5589_v26  ;;  %v5587_v38 = vld [vmem:[#allocation3 + $0xc0] sm:$0xff]  ;;  %5561 = vst.msk [vmem:[#allocation3 + $0xf0] sm:$0xff] %vm341_vm0, %v5529_v37  ;;  %v5530_v17 = vadd.f32 %v6344_v15, %v5277_v19  ;;  %v5275_v32 = vld [vmem:[#allocation3 + $0xe8] sm:$0xff]  ;;  %v5487_v47 = vpop.f32.mrb[143].mxu0 }
 0x25a   : > { %5619 = vst.msk [vmem:[%s7590_s20 + $0xc0] sm:$0xff] %vm341_vm0, %v5587_v38  ;;  %v5590_v39 = vld [vmem:[#allocation3 + $0xd8] sm:$0xff]  ;;  %5559 = vst.msk [vmem:[#allocation3 + $0xe0] sm:$0xff] %vm341_vm0, %v5527_v24  ;;  %v5528_v25 = vadd.f32 %v5487_v47, %v5275_v32 }
 0x25b   : > { %5622 = vst.msk [vmem:[%s7590_s20 + $0xd8] sm:$0xff] %vm341_vm0, %v5590_v39  ;;  %v5588_v16 = vld [vmem:[#allocation3 + $0xc8] sm:$0xff]  ;;  %5562 = vst.msk [vmem:[#allocation3 + $0xf8] sm:$0xff] %vm341_vm0, %v5530_v17 }
 0x25c   : > { %5620 = vst.msk [vmem:[%s7590_s20 + $0xc8] sm:$0xff] %vm341_vm0, %v5588_v16  ;;  %5560 = vst.msk [vmem:[#allocation3 + $0xe8] sm:$0xff] %vm341_vm0, %v5528_v25 }
 0x260   : > { %v5593_v30 = vld [vmem:[#allocation3 + $0xf0] sm:$0xff] }
 0x261   : > { %5625 = vst.msk [vmem:[%s7590_s20 + $0xf0] sm:$0xff] %vm341_vm0, %v5593_v30  ;;  %v5591_v10 = vld [vmem:[#allocation3 + $0xe0] sm:$0xff] }
 0x262   : > { %5623 = vst.msk [vmem:[%s7590_s20 + $0xe0] sm:$0xff] %vm341_vm0, %v5591_v10  ;;  %v5594_v3 = vld [vmem:[#allocation3 + $0xf8] sm:$0xff] }
 0x263   : > { %5626 = vst.msk [vmem:[%s7590_s20 + $0xf8] sm:$0xff] %vm341_vm0, %v5594_v3  ;;  %v5592_v31 = vld [vmem:[#allocation3 + $0xe8] sm:$0xff] }
 0x264   : > { %5624 = vst.msk [vmem:[%s7590_s20 + $0xe8] sm:$0xff] %vm341_vm0, %v5592_v31 }
 0x265 PF: > { %s14_s15 = sadd.s32 1, %s6385_s15  }
 0x266   : > { %p11_p4 = scmp.ge.s32.totalorder %s14_s15, 4  }
 0x268   :  { %13 = sbr.rel (!%p11_p4) target bundleno = 1 (0x1), region = 69 }

</bundles_post_ra>
